<compile_context>
chip_gen: v5e
topology: v5e:2x2
jax: 0.10.0
libtpu: 0.0.40
codegen_flags: <defaults>
</compile_context>

<pallas_src>
import functools

import jax
import jax.numpy as jnp
from jax.experimental import pallas as pl
from jax.experimental.pallas import tpu as pltpu


def _round_up(n, m):
    return ((n + m - 1) // m) * m


# ---------------------------------------------------------------------------
# Fused kernel: lstm1 -> (dropout1 = id) -> lstm2 -> (dropout2 = id) -> fc
# ---------------------------------------------------------------------------
def _fused_lstm_fc_kernel(x_ref, wih1_ref, b1_ref, wfused_ref, b2_ref,
                          wfc_ref, bfc_ref, out_ref, xg1_ref, *, T, B, GW):
    """x_ref:      (T*B, D)        bf16 time-major flattened input (row = t*B + b)
       wih1_ref:   (D, 4*GW)       bf16 layer-1 input->gates weights (g tile x2)
       b1_ref:     (1, 4*GW)       f32  layer-1 combined bias (b_ih + b_hh)
       wfused_ref: (2*GW, 8*GW)    bf16 block weight [[whh1, wih2],[0, whh2]]
       b2_ref:     (1, 4*GW)       f32  layer-2 combined bias
       wfc_ref:    (GW, O) bf16,   bfc_ref: (1, O) f32
       out_ref:    (B, O)          f32  model output
       xg1_ref:    (T*B, 4*GW)     f32  VMEM scratch: layer-1 input projection
    """
    f32 = jnp.float32
    bf16 = jnp.bfloat16
    G4 = 4 * GW

    # One-time batched input projection for layer 1 (bias folded), off the
    # serial path; parked in VMEM scratch, sliced per step.
    xg1_ref[...] = jnp.dot(x_ref[...], wih1_ref[...],
                           preferred_element_type=f32) + b1_ref[...]

    b2 = b2_ref[...]  # (1, 4*GW) f32

    def cell(gates, c):
        # ONE sigmoid over all four 128-lane gate tiles.  The g-gate
        # pre-activation was scaled by 2 at pack time, so tanh(z) = 2*s - 1.
        s = jax.nn.sigmoid(gates)
        i_g = s[:, 0 * GW:1 * GW]
        f_g = s[:, 1 * GW:2 * GW]
        g_g = 2.0 * s[:, 2 * GW:3 * GW] - 1.0
        o_g = s[:, 3 * GW:4 * GW]
        c = f_g * c + i_g * g_g
        h = o_g * jnp.tanh(c)
        return h, c

    c1 = jnp.zeros((B, GW), f32)
    h2 = jnp.zeros((B, GW), f32)
    c2 = jnp.zeros((B, GW), f32)

    # Step 0: layer-1 timestep 0 only (h1_{-1} = 0 => recurrent term is zero).
    h1, c1 = cell(xg1_ref[pl.ds(0, B), :], c1)

    # Wavefront steps 1..T: one block-structured recurrent matmul per step
    # drives layer-1 timestep s and layer-2 timestep s-1 together.
    for s in range(1, T + 1):                       # static unroll, h/c in vregs
        lhs = jnp.concatenate([h1, h2], axis=1).astype(bf16)   # (B, 2*GW)
        if s < T:
            fused = jnp.dot(lhs, wfused_ref[...], preferred_element_type=f32)
            gates2 = fused[:, G4:] + b2                          # layer-2, t=s-1
            h1, c1 = cell(xg1_ref[pl.ds(s * B, B), :] + fused[:, :G4], c1)
        else:
            # Last step: only the layer-2 half of the fused weight is needed.
            gates2 = jnp.dot(lhs, wfused_ref[:, G4:],
                             preferred_element_type=f32) + b2
        h2, c2 = cell(gates2, c2)

    # dropout1/dropout2: identity (eval mode).  Fused FC on final hidden state.
    out_ref[...] = jnp.dot(h2.astype(bf16), wfc_ref[...],
                           preferred_element_type=f32) + bfc_ref[...]


# ---------------------------------------------------------------------------
# Parameter packing: PyTorch layout -> gate-tile-aligned, block-fused layout
# ---------------------------------------------------------------------------
def _pack_lstm(w_ih, w_hh, b_ih, b_hh, in_width, GW):
    """w_ih: (4H, Din), w_hh: (4H, H), b_*: (4H,) in PyTorch [i, f, g, o] order.
    The g-gate tile is pre-scaled by 2 so the kernel can use a single sigmoid
    (tanh(z) = 2*sigmoid(2z) - 1).  Padded rows/cols are zero."""
    H = w_hh.shape[1]
    Din = w_ih.shape[1]
    wih_p = jnp.zeros((in_width, 4 * GW), jnp.float32)
    whh_p = jnp.zeros((GW, 4 * GW), jnp.float32)
    b_p = jnp.zeros((1, 4 * GW), jnp.float32)
    b = (b_ih + b_hh).astype(jnp.float32)
    for k in range(4):
        scale = 2.0 if k == 2 else 1.0           # g-gate pre-scale
        wih_p = wih_p.at[:Din, k * GW:k * GW + H].set(
            scale * jnp.transpose(w_ih[k * H:(k + 1) * H, :]))
        whh_p = whh_p.at[:H, k * GW:k * GW + H].set(
            scale * jnp.transpose(w_hh[k * H:(k + 1) * H, :]))
        b_p = b_p.at[:, k * GW:k * GW + H].set(
            scale * b[k * H:(k + 1) * H].reshape(1, H))
    return wih_p, whh_p, b_p


def pack_params(params, input_dim, hidden_dim, output_dim):
    """One-time repack of PyTorch-shaped params into the kernel's padded,
    block-fused, bf16 layout (matmul inputs bf16, biases f32)."""
    H = hidden_dim
    GW = _round_up(max(H, 1), 128)
    l1, l2, fc = params["lstm1"], params["lstm2"], params["fc"]
    wih1, whh1, b1 = _pack_lstm(l1["w_ih"], l1["w_hh"], l1["b_ih"], l1["b_hh"],
                                input_dim, GW)
    wih2, whh2, b2 = _pack_lstm(l2["w_ih"], l2["w_hh"], l2["b_ih"], l2["b_hh"],
                                GW, GW)
    # Block-structured fused recurrent weight: [[whh1, wih2], [0, whh2]].
    wfused = jnp.zeros((2 * GW, 8 * GW), jnp.float32)
    wfused = wfused.at[:GW, :4 * GW].set(whh1)
    wfused = wfused.at[:GW, 4 * GW:].set(wih2)
    wfused = wfused.at[GW:, 4 * GW:].set(whh2)
    wfc = jnp.zeros((GW, output_dim), jnp.float32).at[:H, :].set(
        jnp.transpose(fc["w"]).astype(jnp.float32))
    bfc = fc["b"].reshape(1, output_dim).astype(jnp.float32)
    bf16 = jnp.bfloat16
    return {"wih1": wih1.astype(bf16), "b1": b1,
            "wfused": wfused.astype(bf16), "b2": b2,
            "wfc": wfc.astype(bf16), "bfc": bfc}


# ---------------------------------------------------------------------------
# Forward pass
# ---------------------------------------------------------------------------
@jax.jit
def lstm_model_forward(x, packed):
    """x: (B, T, input_dim) batch-first (matches nn.LSTM(batch_first=True)).
    Returns (B, output_dim) float32."""
    B, T, D = x.shape
    GW = packed["wfused"].shape[0] // 2
    O = packed["wfc"].shape[1]

    # Single transpose at the wrapper boundary; time-major flatten (row = t*B+b).
    x_flat = jnp.transpose(x, (1, 0, 2)).reshape(T * B, D).astype(jnp.bfloat16)

    kernel = functools.partial(_fused_lstm_fc_kernel, T=T, B=B, GW=GW)
    return pl.pallas_call(
        kernel,
        out_shape=jax.ShapeDtypeStruct((B, O), jnp.float32),
        scratch_shapes=[pltpu.VMEM((T * B, 4 * GW), jnp.float32)],  # xg1
    )(x_flat,
      packed["wih1"], packed["b1"],
      packed["wfused"], packed["b2"],
      packed["wfc"], packed["bfc"])


# ---------------------------------------------------------------------------
# PyTorch-shaped parameter init (uniform +-1/sqrt(H)) and pure-JAX reference
# ---------------------------------------------------------------------------
def init_params(key, input_dim, hidden_dim, output_dim):
    H = hidden_dim
    k = 1.0 / jnp.sqrt(jnp.float32(H))
    keys = jax.random.split(key, 10)
    u = lambda kk, shape: jax.random.uniform(kk, shape, jnp.float32, -k, k)
    return {
        "lstm1": {"w_ih": u(keys[0], (4 * H, input_dim)),
                  "w_hh": u(keys[1], (4 * H, H)),
                  "b_ih": u(keys[2], (4 * H,)),
                  "b_hh": u(keys[3], (4 * H,))},
        "lstm2": {"w_ih": u(keys[4], (4 * H, H)),
                  "w_hh": u(keys[5], (4 * H, H)),
                  "b_ih": u(keys[6], (4 * H,)),
                  "b_hh": u(keys[7], (4 * H,))},
        "fc": {"w": u(keys[8], (output_dim, H)),
               "b": u(keys[9], (output_dim,))},
    }


def _lstm_ref(x, w_ih, w_hh, b_ih, b_hh):
    B, T, D = x.shape
    H = w_hh.shape[1]

    def step(carry, x_t):
        h, c = carry
        gates = x_t @ w_ih.T + h @ w_hh.T + b_ih + b_hh
        i, f, g, o = jnp.split(gates, 4, axis=-1)
        i, f, o = jax.nn.sigmoid(i), jax.nn.sigmoid(f), jax.nn.sigmoid(o)
        g = jnp.tanh(g)
        c = f * c + i * g
        h = o * jnp.tanh(c)
        return (h, c), h

    init = (jnp.zeros((B, H), jnp.float32), jnp.zeros((B, H), jnp.float32))
    _, hs = jax.lax.scan(step, init, jnp.transpose(x, (1, 0, 2)))
    return jnp.transpose(hs, (1, 0, 2))


def model_ref(x, params):
    out = _lstm_ref(x, **params["lstm1"])
    out = _lstm_ref(out, **params["lstm2"])
    last = out[:, -1, :]
    return last @ params["fc"]["w"].T + params["fc"]["b"]


if __name__ == "__main__":
    B, T = 2, 8                     # batch, window_size (sequence length)
    input_dim, hidden_dim, output_dim = 16, 32, 4

    key = jax.random.PRNGKey(0)
    kx, kp = jax.random.split(key)
    x = jax.random.normal(kx, (B, T, input_dim), dtype=jnp.float32)
    params = init_params(kp, input_dim, hidden_dim, output_dim)
    packed = pack_params(params, input_dim, hidden_dim, output_dim)

    out = lstm_model_forward(x, packed)
    out = jax.block_until_ready(out)
    assert out.shape == (B, output_dim), out.shape

    ref = model_ref(x, params)
    # bf16 matmul inputs (f32 accumulation/elementwise): tolerance accounts for
    # bf16 rounding compounded over the 2xT recurrent steps.
    assert jnp.allclose(out, ref, atol=2e-2, rtol=2e-2), (out, ref)

    print("KERNEL_OK")
</pallas_src>

<mosaic_0001>
module attributes {stable_mosaic.version = 11 : i64} {
  func.func @_fused_lstm_fc_kernel(%arg0: memref<16x16xbf16, #tpu.memory_space<vmem>>, %arg1: memref<16x512xbf16, #tpu.memory_space<vmem>>, %arg2: memref<1x512xf32, #tpu.memory_space<vmem>>, %arg3: memref<256x1024xbf16, #tpu.memory_space<vmem>>, %arg4: memref<1x512xf32, #tpu.memory_space<vmem>>, %arg5: memref<128x4xbf16, #tpu.memory_space<vmem>>, %arg6: memref<1x4xf32, #tpu.memory_space<vmem>>, %arg7: memref<2x4xf32, #tpu.memory_space<vmem>>, %arg8: memref<16x512xf32, #tpu.memory_space<vmem>>) attributes {dimension_semantics = [], scalar_prefetch = 0 : i64, scratch_operands = 1 : i64, tpu.core_type = #tpu.core_type<tc>} {
    %c0 = arith.constant 0 : index
    %c0_0 = arith.constant 0 : index
    %0 = vector.load %arg0[%c0, %c0_0] : memref<16x16xbf16, #tpu.memory_space<vmem>>, vector<16x16xbf16>
    %c0_1 = arith.constant 0 : index
    %c0_2 = arith.constant 0 : index
    %1 = vector.load %arg1[%c0_1, %c0_2] : memref<16x512xbf16, #tpu.memory_space<vmem>>, vector<16x512xbf16>
    %cst = arith.constant dense<0.000000e+00> : vector<16x512xf32>
    %2 = tpu.matmul %0, %1, %cst {dimension_numbers = #tpu.dot_dimension_numbers<[1], [0], [0], [1], [0, 0, 1, 1], [], []>} : vector<16x16xbf16>, vector<16x512xbf16>, vector<16x512xf32> -> vector<16x512xf32>
    %c0_3 = arith.constant 0 : index
    %c0_4 = arith.constant 0 : index
    %3 = vector.load %arg2[%c0_3, %c0_4] : memref<1x512xf32, #tpu.memory_space<vmem>>, vector<1x512xf32>
    %4 = vector.broadcast %3 : vector<1x512xf32> to vector<16x512xf32>
    %5 = arith.addf %2, %4 : vector<16x512xf32>
    %c0_5 = arith.constant 0 : index
    %c0_6 = arith.constant 0 : index
    %6 = vector.load %arg8[%c0_5, %c0_6] : memref<16x512xf32, #tpu.memory_space<vmem>>, vector<16x512xf32>
    tpu.vector_store %arg8[%c0_5, %c0_6], %5 {strides = array<i32>} : memref<16x512xf32, #tpu.memory_space<vmem>>, vector<16x512xf32>,
    %c0_7 = arith.constant 0 : index
    %c0_8 = arith.constant 0 : index
    %7 = vector.load %arg4[%c0_7, %c0_8] : memref<1x512xf32, #tpu.memory_space<vmem>>, vector<1x512xf32>
    %cst_9 = arith.constant 0.000000e+00 : f32
    %8 = vector.broadcast %cst_9 : f32 to vector<2x128xf32>
    %cst_10 = arith.constant 0.000000e+00 : f32
    %9 = vector.broadcast %cst_10 : f32 to vector<2x128xf32>
    %cst_11 = arith.constant 0.000000e+00 : f32
    %10 = vector.broadcast %cst_11 : f32 to vector<2x128xf32>
    %c0_12 = arith.constant 0 : index
    %c0_13 = arith.constant 0 : index
    %11 = vector.load %arg8[%c0_12, %c0_13] : memref<16x512xf32, #tpu.memory_space<vmem>>, vector<2x512xf32>
    %12 = arith.negf %11 : vector<2x512xf32>
    %13 = math.exp %12 : vector<2x512xf32>
    %cst_14 = arith.constant 1.000000e+00 : f32
    %14 = vector.broadcast %cst_14 : f32 to vector<2x512xf32>
    %15 = arith.addf %14, %13 : vector<2x512xf32>
    %16 = arith.divf %14, %15 : vector<2x512xf32>
    %17 = vector.extract_strided_slice %16 {offsets = [0, 0], sizes = [2, 128], strides = [1, 1]} : vector<2x512xf32> to vector<2x128xf32>
    %18 = vector.extract_strided_slice %16 {offsets = [0, 128], sizes = [2, 128], strides = [1, 1]} : vector<2x512xf32> to vector<2x128xf32>
    %19 = vector.extract_strided_slice %16 {offsets = [0, 256], sizes = [2, 128], strides = [1, 1]} : vector<2x512xf32> to vector<2x128xf32>
    %cst_15 = arith.constant 2.000000e+00 : f32
    %20 = vector.broadcast %cst_15 : f32 to vector<2x128xf32>
    %21 = arith.mulf %20, %19 : vector<2x128xf32>
    %cst_16 = arith.constant 1.000000e+00 : f32
    %22 = vector.broadcast %cst_16 : f32 to vector<2x128xf32>
    %23 = arith.subf %21, %22 : vector<2x128xf32>
    %24 = vector.extract_strided_slice %16 {offsets = [0, 384], sizes = [2, 128], strides = [1, 1]} : vector<2x512xf32> to vector<2x128xf32>
    %25 = arith.mulf %18, %8 : vector<2x128xf32>
    %26 = arith.mulf %17, %23 : vector<2x128xf32>
    %27 = arith.addf %25, %26 : vector<2x128xf32>
    %28 = math.tanh %27 : vector<2x128xf32>
    %29 = arith.mulf %24, %28 : vector<2x128xf32>
    %30 = tpu.concatenate %29, %9 in 1 : vector<2x128xf32>, vector<2x128xf32> -> vector<2x256xf32>
    %31 = arith.truncf %30 : vector<2x256xf32> to vector<2x256xbf16>
    %c0_17 = arith.constant 0 : index
    %c0_18 = arith.constant 0 : index
    %32 = vector.load %arg3[%c0_17, %c0_18] : memref<256x1024xbf16, #tpu.memory_space<vmem>>, vector<256x1024xbf16>
    %cst_19 = arith.constant dense<0.000000e+00> : vector<2x1024xf32>
    %33 = tpu.matmul %31, %32, %cst_19 {dimension_numbers = #tpu.dot_dimension_numbers<[1], [0], [0], [1], [0, 0, 1, 1], [], []>} : vector<2x256xbf16>, vector<256x1024xbf16>, vector<2x1024xf32> -> vector<2x1024xf32>
    %34 = vector.extract_strided_slice %33 {offsets = [0, 512], sizes = [2, 512], strides = [1, 1]} : vector<2x1024xf32> to vector<2x512xf32>
    %35 = vector.broadcast %7 : vector<1x512xf32> to vector<2x512xf32>
    %36 = arith.addf %34, %35 : vector<2x512xf32>
    %c2 = arith.constant 2 : index
    %c0_20 = arith.constant 0 : index
    %37 = vector.load %arg8[%c2, %c0_20] : memref<16x512xf32, #tpu.memory_space<vmem>>, vector<2x512xf32>
    %38 = vector.extract_strided_slice %33 {offsets = [0, 0], sizes = [2, 512], strides = [1, 1]} : vector<2x1024xf32> to vector<2x512xf32>
    %39 = arith.addf %37, %38 : vector<2x512xf32>
    %40 = arith.negf %39 : vector<2x512xf32>
    %41 = math.exp %40 : vector<2x512xf32>
    %cst_21 = arith.constant 1.000000e+00 : f32
    %42 = vector.broadcast %cst_21 : f32 to vector<2x512xf32>
    %43 = arith.addf %42, %41 : vector<2x512xf32>
    %44 = arith.divf %42, %43 : vector<2x512xf32>
    %45 = vector.extract_strided_slice %44 {offsets = [0, 0], sizes = [2, 128], strides = [1, 1]} : vector<2x512xf32> to vector<2x128xf32>
    %46 = vector.extract_strided_slice %44 {offsets = [0, 128], sizes = [2, 128], strides = [1, 1]} : vector<2x512xf32> to vector<2x128xf32>
    %47 = vector.extract_strided_slice %44 {offsets = [0, 256], sizes = [2, 128], strides = [1, 1]} : vector<2x512xf32> to vector<2x128xf32>
    %cst_22 = arith.constant 2.000000e+00 : f32
    %48 = vector.broadcast %cst_22 : f32 to vector<2x128xf32>
    %49 = arith.mulf %48, %47 : vector<2x128xf32>
    %cst_23 = arith.constant 1.000000e+00 : f32
    %50 = vector.broadcast %cst_23 : f32 to vector<2x128xf32>
    %51 = arith.subf %49, %50 : vector<2x128xf32>
    %52 = vector.extract_strided_slice %44 {offsets = [0, 384], sizes = [2, 128], strides = [1, 1]} : vector<2x512xf32> to vector<2x128xf32>
    %53 = arith.mulf %46, %27 : vector<2x128xf32>
    %54 = arith.mulf %45, %51 : vector<2x128xf32>
    %55 = arith.addf %53, %54 : vector<2x128xf32>
    %56 = math.tanh %55 : vector<2x128xf32>
    %57 = arith.mulf %52, %56 : vector<2x128xf32>
    %58 = arith.negf %36 : vector<2x512xf32>
    %59 = math.exp %58 : vector<2x512xf32>
    %cst_24 = arith.constant 1.000000e+00 : f32
    %60 = vector.broadcast %cst_24 : f32 to vector<2x512xf32>
    %61 = arith.addf %60, %59 : vector<2x512xf32>
    %62 = arith.divf %60, %61 : vector<2x512xf32>
    %63 = vector.extract_strided_slice %62 {offsets = [0, 0], sizes = [2, 128], strides = [1, 1]} : vector<2x512xf32> to vector<2x128xf32>
    %64 = vector.extract_strided_slice %62 {offsets = [0, 128], sizes = [2, 128], strides = [1, 1]} : vector<2x512xf32> to vector<2x128xf32>
    %65 = vector.extract_strided_slice %62 {offsets = [0, 256], sizes = [2, 128], strides = [1, 1]} : vector<2x512xf32> to vector<2x128xf32>
    %cst_25 = arith.constant 2.000000e+00 : f32
    %66 = vector.broadcast %cst_25 : f32 to vector<2x128xf32>
    %67 = arith.mulf %66, %65 : vector<2x128xf32>
    %cst_26 = arith.constant 1.000000e+00 : f32
    %68 = vector.broadcast %cst_26 : f32 to vector<2x128xf32>
    %69 = arith.subf %67, %68 : vector<2x128xf32>
    %70 = vector.extract_strided_slice %62 {offsets = [0, 384], sizes = [2, 128], strides = [1, 1]} : vector<2x512xf32> to vector<2x128xf32>
    %71 = arith.mulf %64, %10 : vector<2x128xf32>
    %72 = arith.mulf %63, %69 : vector<2x128xf32>
    %73 = arith.addf %71, %72 : vector<2x128xf32>
    %74 = math.tanh %73 : vector<2x128xf32>
    %75 = arith.mulf %70, %74 : vector<2x128xf32>
    %76 = tpu.concatenate %57, %75 in 1 : vector<2x128xf32>, vector<2x128xf32> -> vector<2x256xf32>
    %77 = arith.truncf %76 : vector<2x256xf32> to vector<2x256xbf16>
    %c0_27 = arith.constant 0 : index
    %c0_28 = arith.constant 0 : index
    %78 = vector.load %arg3[%c0_27, %c0_28] : memref<256x1024xbf16, #tpu.memory_space<vmem>>, vector<256x1024xbf16>
    %cst_29 = arith.constant dense<0.000000e+00> : vector<2x1024xf32>
    %79 = tpu.matmul %77, %78, %cst_29 {dimension_numbers = #tpu.dot_dimension_numbers<[1], [0], [0], [1], [0, 0, 1, 1], [], []>} : vector<2x256xbf16>, vector<256x1024xbf16>, vector<2x1024xf32> -> vector<2x1024xf32>
    %80 = vector.extract_strided_slice %79 {offsets = [0, 512], sizes = [2, 512], strides = [1, 1]} : vector<2x1024xf32> to vector<2x512xf32>
    %81 = vector.broadcast %7 : vector<1x512xf32> to vector<2x512xf32>
    %82 = arith.addf %80, %81 : vector<2x512xf32>
    %c4 = arith.constant 4 : index
    %c0_30 = arith.constant 0 : index
    %83 = vector.load %arg8[%c4, %c0_30] : memref<16x512xf32, #tpu.memory_space<vmem>>, vector<2x512xf32>
    %84 = vector.extract_strided_slice %79 {offsets = [0, 0], sizes = [2, 512], strides = [1, 1]} : vector<2x1024xf32> to vector<2x512xf32>
    %85 = arith.addf %83, %84 : vector<2x512xf32>
    %86 = arith.negf %85 : vector<2x512xf32>
    %87 = math.exp %86 : vector<2x512xf32>
    %cst_31 = arith.constant 1.000000e+00 : f32
    %88 = vector.broadcast %cst_31 : f32 to vector<2x512xf32>
    %89 = arith.addf %88, %87 : vector<2x512xf32>
    %90 = arith.divf %88, %89 : vector<2x512xf32>
    %91 = vector.extract_strided_slice %90 {offsets = [0, 0], sizes = [2, 128], strides = [1, 1]} : vector<2x512xf32> to vector<2x128xf32>
    %92 = vector.extract_strided_slice %90 {offsets = [0, 128], sizes = [2, 128], strides = [1, 1]} : vector<2x512xf32> to vector<2x128xf32>
    %93 = vector.extract_strided_slice %90 {offsets = [0, 256], sizes = [2, 128], strides = [1, 1]} : vector<2x512xf32> to vector<2x128xf32>
    %cst_32 = arith.constant 2.000000e+00 : f32
    %94 = vector.broadcast %cst_32 : f32 to vector<2x128xf32>
    %95 = arith.mulf %94, %93 : vector<2x128xf32>
    %cst_33 = arith.constant 1.000000e+00 : f32
    %96 = vector.broadcast %cst_33 : f32 to vector<2x128xf32>
    %97 = arith.subf %95, %96 : vector<2x128xf32>
    %98 = vector.extract_strided_slice %90 {offsets = [0, 384], sizes = [2, 128], strides = [1, 1]} : vector<2x512xf32> to vector<2x128xf32>
    %99 = arith.mulf %92, %55 : vector<2x128xf32>
    %100 = arith.mulf %91, %97 : vector<2x128xf32>
    %101 = arith.addf %99, %100 : vector<2x128xf32>
    %102 = math.tanh %101 : vector<2x128xf32>
    %103 = arith.mulf %98, %102 : vector<2x128xf32>
    %104 = arith.negf %82 : vector<2x512xf32>
    %105 = math.exp %104 : vector<2x512xf32>
    %cst_34 = arith.constant 1.000000e+00 : f32
    %106 = vector.broadcast %cst_34 : f32 to vector<2x512xf32>
    %107 = arith.addf %106, %105 : vector<2x512xf32>
    %108 = arith.divf %106, %107 : vector<2x512xf32>
    %109 = vector.extract_strided_slice %108 {offsets = [0, 0], sizes = [2, 128], strides = [1, 1]} : vector<2x512xf32> to vector<2x128xf32>
    %110 = vector.extract_strided_slice %108 {offsets = [0, 128], sizes = [2, 128], strides = [1, 1]} : vector<2x512xf32> to vector<2x128xf32>
    %111 = vector.extract_strided_slice %108 {offsets = [0, 256], sizes = [2, 128], strides = [1, 1]} : vector<2x512xf32> to vector<2x128xf32>
    %cst_35 = arith.constant 2.000000e+00 : f32
    %112 = vector.broadcast %cst_35 : f32 to vector<2x128xf32>
    %113 = arith.mulf %112, %111 : vector<2x128xf32>
    %cst_36 = arith.constant 1.000000e+00 : f32
    %114 = vector.broadcast %cst_36 : f32 to vector<2x128xf32>
    %115 = arith.subf %113, %114 : vector<2x128xf32>
    %116 = vector.extract_strided_slice %108 {offsets = [0, 384], sizes = [2, 128], strides = [1, 1]} : vector<2x512xf32> to vector<2x128xf32>
    %117 = arith.mulf %110, %73 : vector<2x128xf32>
    %118 = arith.mulf %109, %115 : vector<2x128xf32>
    %119 = arith.addf %117, %118 : vector<2x128xf32>
    %120 = math.tanh %119 : vector<2x128xf32>
    %121 = arith.mulf %116, %120 : vector<2x128xf32>
    %122 = tpu.concatenate %103, %121 in 1 : vector<2x128xf32>, vector<2x128xf32> -> vector<2x256xf32>
    %123 = arith.truncf %122 : vector<2x256xf32> to vector<2x256xbf16>
    %c0_37 = arith.constant 0 : index
    %c0_38 = arith.constant 0 : index
    %124 = vector.load %arg3[%c0_37, %c0_38] : memref<256x1024xbf16, #tpu.memory_space<vmem>>, vector<256x1024xbf16>
    %cst_39 = arith.constant dense<0.000000e+00> : vector<2x1024xf32>
    %125 = tpu.matmul %123, %124, %cst_39 {dimension_numbers = #tpu.dot_dimension_numbers<[1], [0], [0], [1], [0, 0, 1, 1], [], []>} : vector<2x256xbf16>, vector<256x1024xbf16>, vector<2x1024xf32> -> vector<2x1024xf32>
    %126 = vector.extract_strided_slice %125 {offsets = [0, 512], sizes = [2, 512], strides = [1, 1]} : vector<2x1024xf32> to vector<2x512xf32>
    %127 = vector.broadcast %7 : vector<1x512xf32> to vector<2x512xf32>
    %128 = arith.addf %126, %127 : vector<2x512xf32>
    %c6 = arith.constant 6 : index
    %c0_40 = arith.constant 0 : index
    %129 = vector.load %arg8[%c6, %c0_40] : memref<16x512xf32, #tpu.memory_space<vmem>>, vector<2x512xf32>
    %130 = vector.extract_strided_slice %125 {offsets = [0, 0], sizes = [2, 512], strides = [1, 1]} : vector<2x1024xf32> to vector<2x512xf32>
    %131 = arith.addf %129, %130 : vector<2x512xf32>
    %132 = arith.negf %131 : vector<2x512xf32>
    %133 = math.exp %132 : vector<2x512xf32>
    %cst_41 = arith.constant 1.000000e+00 : f32
    %134 = vector.broadcast %cst_41 : f32 to vector<2x512xf32>
    %135 = arith.addf %134, %133 : vector<2x512xf32>
    %136 = arith.divf %134, %135 : vector<2x512xf32>
    %137 = vector.extract_strided_slice %136 {offsets = [0, 0], sizes = [2, 128], strides = [1, 1]} : vector<2x512xf32> to vector<2x128xf32>
    %138 = vector.extract_strided_slice %136 {offsets = [0, 128], sizes = [2, 128], strides = [1, 1]} : vector<2x512xf32> to vector<2x128xf32>
    %139 = vector.extract_strided_slice %136 {offsets = [0, 256], sizes = [2, 128], strides = [1, 1]} : vector<2x512xf32> to vector<2x128xf32>
    %cst_42 = arith.constant 2.000000e+00 : f32
    %140 = vector.broadcast %cst_42 : f32 to vector<2x128xf32>
    %141 = arith.mulf %140, %139 : vector<2x128xf32>
    %cst_43 = arith.constant 1.000000e+00 : f32
    %142 = vector.broadcast %cst_43 : f32 to vector<2x128xf32>
    %143 = arith.subf %141, %142 : vector<2x128xf32>
    %144 = vector.extract_strided_slice %136 {offsets = [0, 384], sizes = [2, 128], strides = [1, 1]} : vector<2x512xf32> to vector<2x128xf32>
    %145 = arith.mulf %138, %101 : vector<2x128xf32>
    %146 = arith.mulf %137, %143 : vector<2x128xf32>
    %147 = arith.addf %145, %146 : vector<2x128xf32>
    %148 = math.tanh %147 : vector<2x128xf32>
    %149 = arith.mulf %144, %148 : vector<2x128xf32>
    %150 = arith.negf %128 : vector<2x512xf32>
    %151 = math.exp %150 : vector<2x512xf32>
    %cst_44 = arith.constant 1.000000e+00 : f32
    %152 = vector.broadcast %cst_44 : f32 to vector<2x512xf32>
    %153 = arith.addf %152, %151 : vector<2x512xf32>
    %154 = arith.divf %152, %153 : vector<2x512xf32>
    %155 = vector.extract_strided_slice %154 {offsets = [0, 0], sizes = [2, 128], strides = [1, 1]} : vector<2x512xf32> to vector<2x128xf32>
    %156 = vector.extract_strided_slice %154 {offsets = [0, 128], sizes = [2, 128], strides = [1, 1]} : vector<2x512xf32> to vector<2x128xf32>
    %157 = vector.extract_strided_slice %154 {offsets = [0, 256], sizes = [2, 128], strides = [1, 1]} : vector<2x512xf32> to vector<2x128xf32>
    %cst_45 = arith.constant 2.000000e+00 : f32
    %158 = vector.broadcast %cst_45 : f32 to vector<2x128xf32>
    %159 = arith.mulf %158, %157 : vector<2x128xf32>
    %cst_46 = arith.constant 1.000000e+00 : f32
    %160 = vector.broadcast %cst_46 : f32 to vector<2x128xf32>
    %161 = arith.subf %159, %160 : vector<2x128xf32>
    %162 = vector.extract_strided_slice %154 {offsets = [0, 384], sizes = [2, 128], strides = [1, 1]} : vector<2x512xf32> to vector<2x128xf32>
    %163 = arith.mulf %156, %119 : vector<2x128xf32>
    %164 = arith.mulf %155, %161 : vector<2x128xf32>
    %165 = arith.addf %163, %164 : vector<2x128xf32>
    %166 = math.tanh %165 : vector<2x128xf32>
    %167 = arith.mulf %162, %166 : vector<2x128xf32>
    %168 = tpu.concatenate %149, %167 in 1 : vector<2x128xf32>, vector<2x128xf32> -> vector<2x256xf32>
    %169 = arith.truncf %168 : vector<2x256xf32> to vector<2x256xbf16>
    %c0_47 = arith.constant 0 : index
    %c0_48 = arith.constant 0 : index
    %170 = vector.load %arg3[%c0_47, %c0_48] : memref<256x1024xbf16, #tpu.memory_space<vmem>>, vector<256x1024xbf16>
    %cst_49 = arith.constant dense<0.000000e+00> : vector<2x1024xf32>
    %171 = tpu.matmul %169, %170, %cst_49 {dimension_numbers = #tpu.dot_dimension_numbers<[1], [0], [0], [1], [0, 0, 1, 1], [], []>} : vector<2x256xbf16>, vector<256x1024xbf16>, vector<2x1024xf32> -> vector<2x1024xf32>
    %172 = vector.extract_strided_slice %171 {offsets = [0, 512], sizes = [2, 512], strides = [1, 1]} : vector<2x1024xf32> to vector<2x512xf32>
    %173 = vector.broadcast %7 : vector<1x512xf32> to vector<2x512xf32>
    %174 = arith.addf %172, %173 : vector<2x512xf32>
    %c8 = arith.constant 8 : index
    %c0_50 = arith.constant 0 : index
    %175 = vector.load %arg8[%c8, %c0_50] : memref<16x512xf32, #tpu.memory_space<vmem>>, vector<2x512xf32>
    %176 = vector.extract_strided_slice %171 {offsets = [0, 0], sizes = [2, 512], strides = [1, 1]} : vector<2x1024xf32> to vector<2x512xf32>
    %177 = arith.addf %175, %176 : vector<2x512xf32>
    %178 = arith.negf %177 : vector<2x512xf32>
    %179 = math.exp %178 : vector<2x512xf32>
    %cst_51 = arith.constant 1.000000e+00 : f32
    %180 = vector.broadcast %cst_51 : f32 to vector<2x512xf32>
    %181 = arith.addf %180, %179 : vector<2x512xf32>
    %182 = arith.divf %180, %181 : vector<2x512xf32>
    %183 = vector.extract_strided_slice %182 {offsets = [0, 0], sizes = [2, 128], strides = [1, 1]} : vector<2x512xf32> to vector<2x128xf32>
    %184 = vector.extract_strided_slice %182 {offsets = [0, 128], sizes = [2, 128], strides = [1, 1]} : vector<2x512xf32> to vector<2x128xf32>
    %185 = vector.extract_strided_slice %182 {offsets = [0, 256], sizes = [2, 128], strides = [1, 1]} : vector<2x512xf32> to vector<2x128xf32>
    %cst_52 = arith.constant 2.000000e+00 : f32
    %186 = vector.broadcast %cst_52 : f32 to vector<2x128xf32>
    %187 = arith.mulf %186, %185 : vector<2x128xf32>
    %cst_53 = arith.constant 1.000000e+00 : f32
    %188 = vector.broadcast %cst_53 : f32 to vector<2x128xf32>
    %189 = arith.subf %187, %188 : vector<2x128xf32>
    %190 = vector.extract_strided_slice %182 {offsets = [0, 384], sizes = [2, 128], strides = [1, 1]} : vector<2x512xf32> to vector<2x128xf32>
    %191 = arith.mulf %184, %147 : vector<2x128xf32>
    %192 = arith.mulf %183, %189 : vector<2x128xf32>
    %193 = arith.addf %191, %192 : vector<2x128xf32>
    %194 = math.tanh %193 : vector<2x128xf32>
    %195 = arith.mulf %190, %194 : vector<2x128xf32>
    %196 = arith.negf %174 : vector<2x512xf32>
    %197 = math.exp %196 : vector<2x512xf32>
    %cst_54 = arith.constant 1.000000e+00 : f32
    %198 = vector.broadcast %cst_54 : f32 to vector<2x512xf32>
    %199 = arith.addf %198, %197 : vector<2x512xf32>
    %200 = arith.divf %198, %199 : vector<2x512xf32>
    %201 = vector.extract_strided_slice %200 {offsets = [0, 0], sizes = [2, 128], strides = [1, 1]} : vector<2x512xf32> to vector<2x128xf32>
    %202 = vector.extract_strided_slice %200 {offsets = [0, 128], sizes = [2, 128], strides = [1, 1]} : vector<2x512xf32> to vector<2x128xf32>
    %203 = vector.extract_strided_slice %200 {offsets = [0, 256], sizes = [2, 128], strides = [1, 1]} : vector<2x512xf32> to vector<2x128xf32>
    %cst_55 = arith.constant 2.000000e+00 : f32
    %204 = vector.broadcast %cst_55 : f32 to vector<2x128xf32>
    %205 = arith.mulf %204, %203 : vector<2x128xf32>
    %cst_56 = arith.constant 1.000000e+00 : f32
    %206 = vector.broadcast %cst_56 : f32 to vector<2x128xf32>
    %207 = arith.subf %205, %206 : vector<2x128xf32>
    %208 = vector.extract_strided_slice %200 {offsets = [0, 384], sizes = [2, 128], strides = [1, 1]} : vector<2x512xf32> to vector<2x128xf32>
    %209 = arith.mulf %202, %165 : vector<2x128xf32>
    %210 = arith.mulf %201, %207 : vector<2x128xf32>
    %211 = arith.addf %209, %210 : vector<2x128xf32>
    %212 = math.tanh %211 : vector<2x128xf32>
    %213 = arith.mulf %208, %212 : vector<2x128xf32>
    %214 = tpu.concatenate %195, %213 in 1 : vector<2x128xf32>, vector<2x128xf32> -> vector<2x256xf32>
    %215 = arith.truncf %214 : vector<2x256xf32> to vector<2x256xbf16>
    %c0_57 = arith.constant 0 : index
    %c0_58 = arith.constant 0 : index
    %216 = vector.load %arg3[%c0_57, %c0_58] : memref<256x1024xbf16, #tpu.memory_space<vmem>>, vector<256x1024xbf16>
    %cst_59 = arith.constant dense<0.000000e+00> : vector<2x1024xf32>
    %217 = tpu.matmul %215, %216, %cst_59 {dimension_numbers = #tpu.dot_dimension_numbers<[1], [0], [0], [1], [0, 0, 1, 1], [], []>} : vector<2x256xbf16>, vector<256x1024xbf16>, vector<2x1024xf32> -> vector<2x1024xf32>
    %218 = vector.extract_strided_slice %217 {offsets = [0, 512], sizes = [2, 512], strides = [1, 1]} : vector<2x1024xf32> to vector<2x512xf32>
    %219 = vector.broadcast %7 : vector<1x512xf32> to vector<2x512xf32>
    %220 = arith.addf %218, %219 : vector<2x512xf32>
    %c10 = arith.constant 10 : index
    %c0_60 = arith.constant 0 : index
    %221 = vector.load %arg8[%c10, %c0_60] : memref<16x512xf32, #tpu.memory_space<vmem>>, vector<2x512xf32>
    %222 = vector.extract_strided_slice %217 {offsets = [0, 0], sizes = [2, 512], strides = [1, 1]} : vector<2x1024xf32> to vector<2x512xf32>
    %223 = arith.addf %221, %222 : vector<2x512xf32>
    %224 = arith.negf %223 : vector<2x512xf32>
    %225 = math.exp %224 : vector<2x512xf32>
    %cst_61 = arith.constant 1.000000e+00 : f32
    %226 = vector.broadcast %cst_61 : f32 to vector<2x512xf32>
    %227 = arith.addf %226, %225 : vector<2x512xf32>
    %228 = arith.divf %226, %227 : vector<2x512xf32>
    %229 = vector.extract_strided_slice %228 {offsets = [0, 0], sizes = [2, 128], strides = [1, 1]} : vector<2x512xf32> to vector<2x128xf32>
    %230 = vector.extract_strided_slice %228 {offsets = [0, 128], sizes = [2, 128], strides = [1, 1]} : vector<2x512xf32> to vector<2x128xf32>
    %231 = vector.extract_strided_slice %228 {offsets = [0, 256], sizes = [2, 128], strides = [1, 1]} : vector<2x512xf32> to vector<2x128xf32>
    %cst_62 = arith.constant 2.000000e+00 : f32
    %232 = vector.broadcast %cst_62 : f32 to vector<2x128xf32>
    %233 = arith.mulf %232, %231 : vector<2x128xf32>
    %cst_63 = arith.constant 1.000000e+00 : f32
    %234 = vector.broadcast %cst_63 : f32 to vector<2x128xf32>
    %235 = arith.subf %233, %234 : vector<2x128xf32>
    %236 = vector.extract_strided_slice %228 {offsets = [0, 384], sizes = [2, 128], strides = [1, 1]} : vector<2x512xf32> to vector<2x128xf32>
    %237 = arith.mulf %230, %193 : vector<2x128xf32>
    %238 = arith.mulf %229, %235 : vector<2x128xf32>
    %239 = arith.addf %237, %238 : vector<2x128xf32>
    %240 = math.tanh %239 : vector<2x128xf32>
    %241 = arith.mulf %236, %240 : vector<2x128xf32>
    %242 = arith.negf %220 : vector<2x512xf32>
    %243 = math.exp %242 : vector<2x512xf32>
    %cst_64 = arith.constant 1.000000e+00 : f32
    %244 = vector.broadcast %cst_64 : f32 to vector<2x512xf32>
    %245 = arith.addf %244, %243 : vector<2x512xf32>
    %246 = arith.divf %244, %245 : vector<2x512xf32>
    %247 = vector.extract_strided_slice %246 {offsets = [0, 0], sizes = [2, 128], strides = [1, 1]} : vector<2x512xf32> to vector<2x128xf32>
    %248 = vector.extract_strided_slice %246 {offsets = [0, 128], sizes = [2, 128], strides = [1, 1]} : vector<2x512xf32> to vector<2x128xf32>
    %249 = vector.extract_strided_slice %246 {offsets = [0, 256], sizes = [2, 128], strides = [1, 1]} : vector<2x512xf32> to vector<2x128xf32>
    %cst_65 = arith.constant 2.000000e+00 : f32
    %250 = vector.broadcast %cst_65 : f32 to vector<2x128xf32>
    %251 = arith.mulf %250, %249 : vector<2x128xf32>
    %cst_66 = arith.constant 1.000000e+00 : f32
    %252 = vector.broadcast %cst_66 : f32 to vector<2x128xf32>
    %253 = arith.subf %251, %252 : vector<2x128xf32>
    %254 = vector.extract_strided_slice %246 {offsets = [0, 384], sizes = [2, 128], strides = [1, 1]} : vector<2x512xf32> to vector<2x128xf32>
    %255 = arith.mulf %248, %211 : vector<2x128xf32>
    %256 = arith.mulf %247, %253 : vector<2x128xf32>
    %257 = arith.addf %255, %256 : vector<2x128xf32>
    %258 = math.tanh %257 : vector<2x128xf32>
    %259 = arith.mulf %254, %258 : vector<2x128xf32>
    %260 = tpu.concatenate %241, %259 in 1 : vector<2x128xf32>, vector<2x128xf32> -> vector<2x256xf32>
    %261 = arith.truncf %260 : vector<2x256xf32> to vector<2x256xbf16>
    %c0_67 = arith.constant 0 : index
    %c0_68 = arith.constant 0 : index
    %262 = vector.load %arg3[%c0_67, %c0_68] : memref<256x1024xbf16, #tpu.memory_space<vmem>>, vector<256x1024xbf16>
    %cst_69 = arith.constant dense<0.000000e+00> : vector<2x1024xf32>
    %263 = tpu.matmul %261, %262, %cst_69 {dimension_numbers = #tpu.dot_dimension_numbers<[1], [0], [0], [1], [0, 0, 1, 1], [], []>} : vector<2x256xbf16>, vector<256x1024xbf16>, vector<2x1024xf32> -> vector<2x1024xf32>
    %264 = vector.extract_strided_slice %263 {offsets = [0, 512], sizes = [2, 512], strides = [1, 1]} : vector<2x1024xf32> to vector<2x512xf32>
    %265 = vector.broadcast %7 : vector<1x512xf32> to vector<2x512xf32>
    %266 = arith.addf %264, %265 : vector<2x512xf32>
    %c12 = arith.constant 12 : index
    %c0_70 = arith.constant 0 : index
    %267 = vector.load %arg8[%c12, %c0_70] : memref<16x512xf32, #tpu.memory_space<vmem>>, vector<2x512xf32>
    %268 = vector.extract_strided_slice %263 {offsets = [0, 0], sizes = [2, 512], strides = [1, 1]} : vector<2x1024xf32> to vector<2x512xf32>
    %269 = arith.addf %267, %268 : vector<2x512xf32>
    %270 = arith.negf %269 : vector<2x512xf32>
    %271 = math.exp %270 : vector<2x512xf32>
    %cst_71 = arith.constant 1.000000e+00 : f32
    %272 = vector.broadcast %cst_71 : f32 to vector<2x512xf32>
    %273 = arith.addf %272, %271 : vector<2x512xf32>
    %274 = arith.divf %272, %273 : vector<2x512xf32>
    %275 = vector.extract_strided_slice %274 {offsets = [0, 0], sizes = [2, 128], strides = [1, 1]} : vector<2x512xf32> to vector<2x128xf32>
    %276 = vector.extract_strided_slice %274 {offsets = [0, 128], sizes = [2, 128], strides = [1, 1]} : vector<2x512xf32> to vector<2x128xf32>
    %277 = vector.extract_strided_slice %274 {offsets = [0, 256], sizes = [2, 128], strides = [1, 1]} : vector<2x512xf32> to vector<2x128xf32>
    %cst_72 = arith.constant 2.000000e+00 : f32
    %278 = vector.broadcast %cst_72 : f32 to vector<2x128xf32>
    %279 = arith.mulf %278, %277 : vector<2x128xf32>
    %cst_73 = arith.constant 1.000000e+00 : f32
    %280 = vector.broadcast %cst_73 : f32 to vector<2x128xf32>
    %281 = arith.subf %279, %280 : vector<2x128xf32>
    %282 = vector.extract_strided_slice %274 {offsets = [0, 384], sizes = [2, 128], strides = [1, 1]} : vector<2x512xf32> to vector<2x128xf32>
    %283 = arith.mulf %276, %239 : vector<2x128xf32>
    %284 = arith.mulf %275, %281 : vector<2x128xf32>
    %285 = arith.addf %283, %284 : vector<2x128xf32>
    %286 = math.tanh %285 : vector<2x128xf32>
    %287 = arith.mulf %282, %286 : vector<2x128xf32>
    %288 = arith.negf %266 : vector<2x512xf32>
    %289 = math.exp %288 : vector<2x512xf32>
    %cst_74 = arith.constant 1.000000e+00 : f32
    %290 = vector.broadcast %cst_74 : f32 to vector<2x512xf32>
    %291 = arith.addf %290, %289 : vector<2x512xf32>
    %292 = arith.divf %290, %291 : vector<2x512xf32>
    %293 = vector.extract_strided_slice %292 {offsets = [0, 0], sizes = [2, 128], strides = [1, 1]} : vector<2x512xf32> to vector<2x128xf32>
    %294 = vector.extract_strided_slice %292 {offsets = [0, 128], sizes = [2, 128], strides = [1, 1]} : vector<2x512xf32> to vector<2x128xf32>
    %295 = vector.extract_strided_slice %292 {offsets = [0, 256], sizes = [2, 128], strides = [1, 1]} : vector<2x512xf32> to vector<2x128xf32>
    %cst_75 = arith.constant 2.000000e+00 : f32
    %296 = vector.broadcast %cst_75 : f32 to vector<2x128xf32>
    %297 = arith.mulf %296, %295 : vector<2x128xf32>
    %cst_76 = arith.constant 1.000000e+00 : f32
    %298 = vector.broadcast %cst_76 : f32 to vector<2x128xf32>
    %299 = arith.subf %297, %298 : vector<2x128xf32>
    %300 = vector.extract_strided_slice %292 {offsets = [0, 384], sizes = [2, 128], strides = [1, 1]} : vector<2x512xf32> to vector<2x128xf32>
    %301 = arith.mulf %294, %257 : vector<2x128xf32>
    %302 = arith.mulf %293, %299 : vector<2x128xf32>
    %303 = arith.addf %301, %302 : vector<2x128xf32>
    %304 = math.tanh %303 : vector<2x128xf32>
    %305 = arith.mulf %300, %304 : vector<2x128xf32>
    %306 = tpu.concatenate %287, %305 in 1 : vector<2x128xf32>, vector<2x128xf32> -> vector<2x256xf32>
    %307 = arith.truncf %306 : vector<2x256xf32> to vector<2x256xbf16>
    %c0_77 = arith.constant 0 : index
    %c0_78 = arith.constant 0 : index
    %308 = vector.load %arg3[%c0_77, %c0_78] : memref<256x1024xbf16, #tpu.memory_space<vmem>>, vector<256x1024xbf16>
    %cst_79 = arith.constant dense<0.000000e+00> : vector<2x1024xf32>
    %309 = tpu.matmul %307, %308, %cst_79 {dimension_numbers = #tpu.dot_dimension_numbers<[1], [0], [0], [1], [0, 0, 1, 1], [], []>} : vector<2x256xbf16>, vector<256x1024xbf16>, vector<2x1024xf32> -> vector<2x1024xf32>
    %310 = vector.extract_strided_slice %309 {offsets = [0, 512], sizes = [2, 512], strides = [1, 1]} : vector<2x1024xf32> to vector<2x512xf32>
    %311 = vector.broadcast %7 : vector<1x512xf32> to vector<2x512xf32>
    %312 = arith.addf %310, %311 : vector<2x512xf32>
    %c14 = arith.constant 14 : index
    %c0_80 = arith.constant 0 : index
    %313 = vector.load %arg8[%c14, %c0_80] : memref<16x512xf32, #tpu.memory_space<vmem>>, vector<2x512xf32>
    %314 = vector.extract_strided_slice %309 {offsets = [0, 0], sizes = [2, 512], strides = [1, 1]} : vector<2x1024xf32> to vector<2x512xf32>
    %315 = arith.addf %313, %314 : vector<2x512xf32>
    %316 = arith.negf %315 : vector<2x512xf32>
    %317 = math.exp %316 : vector<2x512xf32>
    %cst_81 = arith.constant 1.000000e+00 : f32
    %318 = vector.broadcast %cst_81 : f32 to vector<2x512xf32>
    %319 = arith.addf %318, %317 : vector<2x512xf32>
    %320 = arith.divf %318, %319 : vector<2x512xf32>
    %321 = vector.extract_strided_slice %320 {offsets = [0, 0], sizes = [2, 128], strides = [1, 1]} : vector<2x512xf32> to vector<2x128xf32>
    %322 = vector.extract_strided_slice %320 {offsets = [0, 128], sizes = [2, 128], strides = [1, 1]} : vector<2x512xf32> to vector<2x128xf32>
    %323 = vector.extract_strided_slice %320 {offsets = [0, 256], sizes = [2, 128], strides = [1, 1]} : vector<2x512xf32> to vector<2x128xf32>
    %cst_82 = arith.constant 2.000000e+00 : f32
    %324 = vector.broadcast %cst_82 : f32 to vector<2x128xf32>
    %325 = arith.mulf %324, %323 : vector<2x128xf32>
    %cst_83 = arith.constant 1.000000e+00 : f32
    %326 = vector.broadcast %cst_83 : f32 to vector<2x128xf32>
    %327 = arith.subf %325, %326 : vector<2x128xf32>
    %328 = vector.extract_strided_slice %320 {offsets = [0, 384], sizes = [2, 128], strides = [1, 1]} : vector<2x512xf32> to vector<2x128xf32>
    %329 = arith.mulf %322, %285 : vector<2x128xf32>
    %330 = arith.mulf %321, %327 : vector<2x128xf32>
    %331 = arith.addf %329, %330 : vector<2x128xf32>
    %332 = math.tanh %331 : vector<2x128xf32>
    %333 = arith.mulf %328, %332 : vector<2x128xf32>
    %334 = arith.negf %312 : vector<2x512xf32>
    %335 = math.exp %334 : vector<2x512xf32>
    %cst_84 = arith.constant 1.000000e+00 : f32
    %336 = vector.broadcast %cst_84 : f32 to vector<2x512xf32>
    %337 = arith.addf %336, %335 : vector<2x512xf32>
    %338 = arith.divf %336, %337 : vector<2x512xf32>
    %339 = vector.extract_strided_slice %338 {offsets = [0, 0], sizes = [2, 128], strides = [1, 1]} : vector<2x512xf32> to vector<2x128xf32>
    %340 = vector.extract_strided_slice %338 {offsets = [0, 128], sizes = [2, 128], strides = [1, 1]} : vector<2x512xf32> to vector<2x128xf32>
    %341 = vector.extract_strided_slice %338 {offsets = [0, 256], sizes = [2, 128], strides = [1, 1]} : vector<2x512xf32> to vector<2x128xf32>
    %cst_85 = arith.constant 2.000000e+00 : f32
    %342 = vector.broadcast %cst_85 : f32 to vector<2x128xf32>
    %343 = arith.mulf %342, %341 : vector<2x128xf32>
    %cst_86 = arith.constant 1.000000e+00 : f32
    %344 = vector.broadcast %cst_86 : f32 to vector<2x128xf32>
    %345 = arith.subf %343, %344 : vector<2x128xf32>
    %346 = vector.extract_strided_slice %338 {offsets = [0, 384], sizes = [2, 128], strides = [1, 1]} : vector<2x512xf32> to vector<2x128xf32>
    %347 = arith.mulf %340, %303 : vector<2x128xf32>
    %348 = arith.mulf %339, %345 : vector<2x128xf32>
    %349 = arith.addf %347, %348 : vector<2x128xf32>
    %350 = math.tanh %349 : vector<2x128xf32>
    %351 = arith.mulf %346, %350 : vector<2x128xf32>
    %352 = tpu.concatenate %333, %351 in 1 : vector<2x128xf32>, vector<2x128xf32> -> vector<2x256xf32>
    %353 = arith.truncf %352 : vector<2x256xf32> to vector<2x256xbf16>
    %c0_87 = arith.constant 0 : index
    %c512 = arith.constant 512 : index
    %354 = vector.load %arg3[%c0_87, %c512] : memref<256x1024xbf16, #tpu.memory_space<vmem>>, vector<256x512xbf16>
    %cst_88 = arith.constant dense<0.000000e+00> : vector<2x512xf32>
    %355 = tpu.matmul %353, %354, %cst_88 {dimension_numbers = #tpu.dot_dimension_numbers<[1], [0], [0], [1], [0, 0, 1, 1], [], []>} : vector<2x256xbf16>, vector<256x512xbf16>, vector<2x512xf32> -> vector<2x512xf32>
    %356 = vector.broadcast %7 : vector<1x512xf32> to vector<2x512xf32>
    %357 = arith.addf %355, %356 : vector<2x512xf32>
    %358 = arith.negf %357 : vector<2x512xf32>
    %359 = math.exp %358 : vector<2x512xf32>
    %cst_89 = arith.constant 1.000000e+00 : f32
    %360 = vector.broadcast %cst_89 : f32 to vector<2x512xf32>
    %361 = arith.addf %360, %359 : vector<2x512xf32>
    %362 = arith.divf %360, %361 : vector<2x512xf32>
    %363 = vector.extract_strided_slice %362 {offsets = [0, 0], sizes = [2, 128], strides = [1, 1]} : vector<2x512xf32> to vector<2x128xf32>
    %364 = vector.extract_strided_slice %362 {offsets = [0, 128], sizes = [2, 128], strides = [1, 1]} : vector<2x512xf32> to vector<2x128xf32>
    %365 = vector.extract_strided_slice %362 {offsets = [0, 256], sizes = [2, 128], strides = [1, 1]} : vector<2x512xf32> to vector<2x128xf32>
    %cst_90 = arith.constant 2.000000e+00 : f32
    %366 = vector.broadcast %cst_90 : f32 to vector<2x128xf32>
    %367 = arith.mulf %366, %365 : vector<2x128xf32>
    %cst_91 = arith.constant 1.000000e+00 : f32
    %368 = vector.broadcast %cst_91 : f32 to vector<2x128xf32>
    %369 = arith.subf %367, %368 : vector<2x128xf32>
    %370 = vector.extract_strided_slice %362 {offsets = [0, 384], sizes = [2, 128], strides = [1, 1]} : vector<2x512xf32> to vector<2x128xf32>
    %371 = arith.mulf %364, %349 : vector<2x128xf32>
    %372 = arith.mulf %363, %369 : vector<2x128xf32>
    %373 = arith.addf %371, %372 : vector<2x128xf32>
    %374 = math.tanh %373 : vector<2x128xf32>
    %375 = arith.mulf %370, %374 : vector<2x128xf32>
    %376 = arith.truncf %375 : vector<2x128xf32> to vector<2x128xbf16>
    %c0_92 = arith.constant 0 : index
    %c0_93 = arith.constant 0 : index
    %377 = vector.load %arg5[%c0_92, %c0_93] : memref<128x4xbf16, #tpu.memory_space<vmem>>, vector<128x4xbf16>
    %cst_94 = arith.constant dense<0.000000e+00> : vector<2x4xf32>
    %378 = tpu.matmul %376, %377, %cst_94 {dimension_numbers = #tpu.dot_dimension_numbers<[1], [0], [0], [1], [0, 0, 1, 1], [], []>} : vector<2x128xbf16>, vector<128x4xbf16>, vector<2x4xf32> -> vector<2x4xf32>
    %c0_95 = arith.constant 0 : index
    %c0_96 = arith.constant 0 : index
    %379 = vector.load %arg6[%c0_95, %c0_96] : memref<1x4xf32, #tpu.memory_space<vmem>>, vector<1x4xf32>
    %380 = vector.broadcast %379 : vector<1x4xf32> to vector<2x4xf32>
    %381 = arith.addf %378, %380 : vector<2x4xf32>
    %c0_97 = arith.constant 0 : index
    %c0_98 = arith.constant 0 : index
    %382 = vector.load %arg7[%c0_97, %c0_98] : memref<2x4xf32, #tpu.memory_space<vmem>>, vector<2x4xf32>
    tpu.vector_store %arg7[%c0_97, %c0_98], %381 {strides = array<i32>} : memref<2x4xf32, #tpu.memory_space<vmem>>, vector<2x4xf32>,
    return
  }
}

</mosaic_0001>

<bundles_post_ra>
// kernel: lstm_model_forward.1
= control target key start
LH: loop header
LB: loop body
LE: loop exit
PB: predicated region body
PF: predicated region fallthrough
CT: control target
= control target key end

     0   :  { %12 = vsyncpa [#allocation4], 0  ;;  %s7688_s0 = inlined_call_operand.vmem [shape: bf16[16,16], index: 0, kind: input, shape index: {}]   ;;  %s7689_s1 = inlined_call_operand.vmem [shape: bf16[16,512], index: 1, kind: input, shape index: {}]   ;;  %s7690_s2 = inlined_call_operand.vmem [shape: f32[1,512], index: 2, kind: input, shape index: {}]   ;;  %s7691_s3 = inlined_call_operand.hbm [shape: bf16[256,1024], index: 3, kind: input, shape index: {}]   ;;  %s7692_s4 = inlined_call_operand.vmem [shape: f32[1,512], index: 4, kind: input, shape index: {}]   ;;  %s7693_s5 = inlined_call_operand.vmem [shape: bf16[128,4], index: 5, kind: input, shape index: {}]   ;;  %s7694_s6 = inlined_call_operand.vmem [shape: f32[1,4], index: 6, kind: input, shape index: {}]   ;;  %s7695_s7 = inlined_call_operand.hbm [shape: f32[2,4], index: 7, kind: output, shape index: {}]  }
   0x1   :  { %13 = vsyncpa [#allocation5], 0  ;;  %s24_s26 = sshll.u32 %s7691_s3, 4  ;;  %s5306_s27 = smov [#allocation3]   ;;  %s25_s26 = int_to_ptr.hbm [resolvable:$true] %s24_s26 }
   0x2   :  { %s26_s28 = sshll.u32 %s5306_s27, 4  ;;  %s5307_s29 = smov 512   ;;  %s27_s28 = int_to_ptr.vmem [resolvable:$true] %s26_s28 }
   0x3   :  { %s5308_s30 = smov 32  }
   0x4   :  { %32 = dma.hbm_to_vmem [thread:$0]  %s25_s26, 16384, %s27_s28, [#allocation4], %s5307_s29, %s5307_s29, %s5308_s30  }
   0x5   :  { %5302 = dma.done.wait [#allocation4], 16384  }
   0x6   :  { %5303 = vsyncadd [#allocation4], 4294950912  ;;  %v4177_v0 = vld [vmem:[%s7689_s1] sm:$0xf]  ;;  %v4822_v1 = vld [vmem:[%s7689_s1 + $0xc] sm:$0xf0] }
   0x7   :  { %v4185_v2 = vld [vmem:[%s7689_s1 + $0x8] sm:$0xf]  ;;  %v4178_v3 = vor.u32 %v4822_v1, %v4177_v0  ;;  %v4823_v4 = vld [vmem:[%s7689_s1 + $0x14] sm:$0xf0]  ;;  %v4819_v5 = vld [vmem:[%s7688_s0] sm:$0xff]  ;;  %vm85_vm0 = vcmask 130048  }
   0x8   :  { %v4821_v6 = vld [vmem:[%s7689_s1 + $0xc] sm:$0xf]  ;;  %v4186_v7 = vor.u32 %v4823_v4, %v4185_v2  ;;  %v4187_v8 = vld [vmem:[%s7689_s1 + $0x18] sm:$0xf0]  ;;  %v4820_v9 = vld [vmem:[%s7689_s1 + $0x4] sm:$0xf] }
   0x9   :  { %v4179_v10 = vld [vmem:[%s7689_s1 + $0x10] sm:$0xf0]  ;;  %96 = vmatpush.bf16.msra.mxu1 %v4178_v3  ;;  %v4190_v11 = vor.u32 %v4821_v6, %v4187_v8  ;;  %v4682_v13 = vld [vmem:[#allocation3 + $0x3c0] sm:$0xf]  ;;  %v4880_v24 = vld [vmem:[#allocation3 + $0x1c4] sm:$0xf] }
   0xa   :  { %v4182_v12 = vor.u32 %v4820_v9, %v4179_v10  ;;  %124 = vmatpush.bf16.msra.mxu2 %v4186_v7  ;;  %v4948_v14 = vld [vmem:[#allocation3 + $0x3dc] sm:$0xf0]  ;;  %v4428_v25 = vld [vmem:[#allocation3 + $0x1e0] sm:$0xf0]  ;;  %s5310_s18 = smov [#allocation6]   ;;  %s4161_s22 = sshll.u32 %s7695_s7, 4  ;;  %s4162_s22 = int_to_ptr.hbm [resolvable:$true] %s4161_s22 }
   0xb   :  { %138 = vmatpush.bf16.msra.mxu3 %v4190_v11  ;;  %v5381_v15 = vor.u32 %v4948_v14, %v4682_v13  ;;  %v4650_v16 = vld [vmem:[#allocation3 + $0x380] sm:$0xf]  ;;  %v5391_v27 = vor.u32 %v4880_v24, %v4428_v25  ;;  %v4944_v28 = vld [vmem:[#allocation3 + $0x3c4] sm:$0xf]  ;;  %s4159_s19 = sshll.u32 %s5310_s18, 4  ;;  %s4160_s19 = int_to_ptr.vmem [resolvable:$true] %s4159_s19 }
   0xc   :  { %4191 = vmatmul.msk.bf16.vlgmr.msra.gmra.mxu1 %vm85_vm0, %v4819_v5  ;;  %v4940_v17 = vld [vmem:[#allocation3 + $0x39c] sm:$0xf0]  ;;  %v4684_v29 = vld [vmem:[#allocation3 + $0x3e0] sm:$0xf0] }
   0xd   :  { %110 = vmatpush.bf16.msrb.mxu1 %v4182_v12  ;;  %4193 = vmatmul.msk.bf16.vlgmr.msra.gmra.mxu2 %vm85_vm0, %v4819_v5  ;;  %7925 = vst [vmem:[#allocation9_spill] sm:$0xff] %v5381_v15  ;;  %v5384_v18 = vor.u32 %v4940_v17, %v4650_v16  ;;  %v4426_v19 = vld [vmem:[#allocation3 + $0x1c0] sm:$0xf]  ;;  %v5394_v30 = vor.u32 %v4944_v28, %v4684_v29  ;;  %v4872_v36 = vld [vmem:[#allocation3 + $0x184] sm:$0xf] }
   0xe   :  { %4194 = vmatmul.msk.bf16.vlgmr.msra.gmra.mxu3 %vm85_vm0, %v4819_v5  ;;  %v4884_v20 = vld [vmem:[#allocation3 + $0x1dc] sm:$0xf0]  ;;  %7929 = vst [vmem:[#allocation13_spill] sm:$0xff] %v5391_v27  ;;  %1037 = vmatpush.bf16.msrb.mxu2 %v5391_v27  ;;  %v4396_v38 = vld [vmem:[#allocation3 + $0x1a0] sm:$0xf0] }
   0xf   :  { %7926 = vst [vmem:[#allocation10_spill] sm:$0xff] %v5384_v18  ;;  %v4618_v21 = vld [vmem:[#allocation3 + $0x340] sm:$0xf]  ;;  %v5387_v22 = vor.u32 %v4884_v20, %v4426_v19  ;;  %1050 = vmatpush.bf16.msrb.mxu3 %v5394_v30  ;;  %v4936_v39 = vld [vmem:[#allocation3 + $0x384] sm:$0xf]  ;;  %v5404_v40 = vor.u32 %v4872_v36, %v4396_v38 }
  0x10   :  { %v4932_v23 = vld [vmem:[#allocation3 + $0x35c] sm:$0xf0]  ;;  %7930 = vst [vmem:[#allocation14_spill] sm:$0xff] %v5394_v30  ;;  %v4652_v41 = vld [vmem:[#allocation3 + $0x3a0] sm:$0xf0] }
  0x11   :  { %1024 = vmatpush.bf16.msra.mxu1 %v5381_v15  ;;  %7927 = vst [vmem:[#allocation11_spill] sm:$0xff] %v5387_v22  ;;  %v5389_v26 = vor.u32 %v4932_v23, %v4618_v21  ;;  %1011 = vmatpush.bf16.msra.mxu0 %v5387_v22  ;;  %v4394_v31 = vld [vmem:[#allocation3 + $0x180] sm:$0xf]  ;;  %v5407_v42 = vor.u32 %v4936_v39, %v4652_v41  ;;  %v4864_v48 = vld [vmem:[#allocation3 + $0x144] sm:$0xf] }
  0x12   :  { %v4876_v32 = vld [vmem:[#allocation3 + $0x19c] sm:$0xf0]  ;;  %7933 = vst [vmem:[#allocation17_spill] sm:$0xff] %v5404_v40  ;;  %1038 = vmatpush.bf16.msrb.mxu2 %v5404_v40  ;;  %v4364_v49 = vld [vmem:[#allocation3 + $0x160] sm:$0xf0] }
  0x13   :  { %7928 = vst [vmem:[#allocation12_spill] sm:$0xff] %v5389_v26  ;;  %v5399_v33 = vor.u32 %v4876_v32, %v4394_v31  ;;  %v4586_v34 = vld [vmem:[#allocation3 + $0x300] sm:$0xf]  ;;  %1051 = vmatpush.bf16.msrb.mxu3 %v5407_v42  ;;  %v5415_v51 = vor.u32 %v4864_v48, %v4364_v49  ;;  %v4928_v52 = vld [vmem:[#allocation3 + $0x344] sm:$0xf] }
  0x14   :  { %v4924_v35 = vld [vmem:[#allocation3 + $0x31c] sm:$0xf0]  ;;  %7934 = vst [vmem:[#allocation18_spill] sm:$0xff] %v5407_v42  ;;  %v4620_v53 = vld [vmem:[#allocation3 + $0x360] sm:$0xf0] }
  0x15   :  { %1025 = vmatpush.bf16.msra.mxu1 %v5384_v18  ;;  %7931 = vst [vmem:[#allocation15_spill] sm:$0xff] %v5399_v33  ;;  %v5401_v37 = vor.u32 %v4924_v35, %v4586_v34  ;;  %1012 = vmatpush.bf16.msra.mxu0 %v5399_v33  ;;  %v4362_v43 = vld [vmem:[#allocation3 + $0x140] sm:$0xf]  ;;  %v5418_v54 = vor.u32 %v4928_v52, %v4620_v53  ;;  %v4856_v60 = vld [vmem:[#allocation3 + $0x104] sm:$0xf] }
  0x16   :  { %v4868_v44 = vld [vmem:[#allocation3 + $0x15c] sm:$0xf0]  ;;  %7937 = vst [vmem:[#allocation21_spill] sm:$0xff] %v5415_v51  ;;  %1039 = vmatpush.bf16.msrb.mxu2 %v5415_v51  ;;  %v4332_v61 = vld [vmem:[#allocation3 + $0x120] sm:$0xf0] }
  0x17   :  { %7932 = vst [vmem:[#allocation16_spill] sm:$0xff] %v5401_v37  ;;  %v4554_v45 = vld [vmem:[#allocation3 + $0x2c0] sm:$0xf]  ;;  %v5410_v46 = vor.u32 %v4868_v44, %v4362_v43  ;;  %1052 = vmatpush.bf16.msrb.mxu3 %v5418_v54  ;;  %v5427_v63 = vor.u32 %v4856_v60, %v4332_v61  ;;  %v4920_v0 = vld [vmem:[#allocation3 + $0x304] sm:$0xf] }
  0x18   :  { %v4916_v47 = vld [vmem:[#allocation3 + $0x2dc] sm:$0xf0]  ;;  %7938 = vst [vmem:[#allocation22_spill] sm:$0xff] %v5418_v54  ;;  %v4588_v1 = vld [vmem:[#allocation3 + $0x320] sm:$0xf0] }
  0x19   :  { %1026 = vmatpush.bf16.msra.mxu1 %v5389_v26  ;;  %7935 = vst [vmem:[#allocation19_spill] sm:$0xff] %v5410_v46  ;;  %v5413_v50 = vor.u32 %v4916_v47, %v4554_v45  ;;  %1013 = vmatpush.bf16.msra.mxu0 %v5410_v46  ;;  %v4330_v55 = vld [vmem:[#allocation3 + $0x100] sm:$0xf]  ;;  %v5435_v3 = vor.u32 %v4920_v0, %v4588_v1  ;;  %v4848_v9 = vld [vmem:[#allocation3 + $0xc4] sm:$0xf] }
  0x1a   :  { %v4860_v56 = vld [vmem:[#allocation3 + $0x11c] sm:$0xf0]  ;;  %7941 = vst [vmem:[#allocation25_spill] sm:$0xff] %v5427_v63  ;;  %1040 = vmatpush.bf16.msrb.mxu2 %v5427_v63  ;;  %v4300_v10 = vld [vmem:[#allocation3 + $0xe0] sm:$0xf0] }
  0x1b   :  { %7936 = vst [vmem:[#allocation20_spill] sm:$0xff] %v5413_v50  ;;  %v4522_v57 = vld [vmem:[#allocation3 + $0x280] sm:$0xf]  ;;  %v5422_v58 = vor.u32 %v4860_v56, %v4330_v55  ;;  %1053 = vmatpush.bf16.msrb.mxu3 %v5435_v3  ;;  %v5444_v12 = vor.u32 %v4848_v9, %v4300_v10  ;;  %v4912_v13 = vld [vmem:[#allocation3 + $0x2c4] sm:$0xf] }
  0x1c   :  { %4192 = vmatmul.msk.bf16.vlgmr.msrb.gmra.mxu1 %vm85_vm0, %v4819_v5  ;;  %v4908_v59 = vld [vmem:[#allocation3 + $0x29c] sm:$0xf0]  ;;  %7942 = vst [vmem:[#allocation26_spill] sm:$0xff] %v5435_v3  ;;  %v4556_v14 = vld [vmem:[#allocation3 + $0x2e0] sm:$0xf0] }
  0x1d   :  { %1027 = vmatpush.bf16.msra.mxu1 %v5401_v37  ;;  %7939 = vst [vmem:[#allocation23_spill] sm:$0xff] %v5422_v58  ;;  %v5425_v62 = vor.u32 %v4908_v59, %v4522_v57  ;;  %v5432_v2 = vld [vmem:[%s7690_s2] sm:$0xf]  ;;  %1014 = vmatpush.bf16.msra.mxu0 %v5422_v58  ;;  %v5448_v17 = vor.u32 %v4912_v13, %v4556_v14  ;;  %v4840_v25 = vld [vmem:[#allocation3 + $0x84] sm:$0xf] }
  0x1e   :  { %v4298_v4 = vld [vmem:[#allocation3 + $0xc0] sm:$0xf]  ;;  %7945 = vst [vmem:[#allocation29_spill] sm:$0xff] %v5444_v12  ;;  %v52_v16 = vperm.slane %v5432_v2, 0  ;;  %1041 = vmatpush.bf16.msrb.mxu2 %v5444_v12  ;;  %v4268_v28 = vld [vmem:[#allocation3 + $0xa0] sm:$0xf0] }
  0x1f   :  { %7940 = vst [vmem:[#allocation24_spill] sm:$0xff] %v5425_v62  ;;  %v4852_v5 = vld [vmem:[#allocation3 + $0xdc] sm:$0xf0]  ;;  %1054 = vmatpush.bf16.msrb.mxu3 %v5448_v17  ;;  %v5457_v32 = vor.u32 %v4840_v25, %v4268_v28  ;;  %v4904_v34 = vld [vmem:[#allocation3 + $0x284] sm:$0xf]  ;;  %v54_v48 = vperm.slane %v5432_v2, 2 }
  0x20   :  { %v4490_v6 = vld [vmem:[#allocation3 + $0x240] sm:$0xf]  ;;  %v5439_v7 = vor.u32 %v4852_v5, %v4298_v4  ;;  %7946 = vst [vmem:[#allocation30_spill] sm:$0xff] %v5448_v17  ;;  %v4524_v35 = vld [vmem:[#allocation3 + $0x2a0] sm:$0xf0]  ;;  %v55_v60 = vperm.slane %v5432_v2, 3 }
  0x21   :  { %1028 = vmatpush.bf16.msra.mxu1 %v5413_v50  ;;  %v4900_v8 = vld [vmem:[#allocation3 + $0x25c] sm:$0xf0]  ;;  %7949 = vst [vmem:[#allocation33_spill] sm:$0xff] %v5457_v32  ;;  %v4690_v36 = vld [vmem:[#allocation3 + $0x3c8] sm:$0xf]  ;;  %v5462_v39 = vor.u32 %v4904_v34, %v4524_v35 }
  0x22   :  { %7943 = vst [vmem:[#allocation27_spill] sm:$0xff] %v5439_v7  ;;  %v5442_v11 = vor.u32 %v4900_v8, %v4490_v6  ;;  %1015 = vmatpush.bf16.msra.mxu0 %v5439_v7  ;;  %v4266_v19 = vld [vmem:[#allocation3 + $0x80] sm:$0xf]  ;;  %v4949_v41 = vld [vmem:[#allocation3 + $0x3e4] sm:$0xf0]  ;;  %1042 = vmatpush.bf16.msrb.mxu2 %v5457_v32 }
  0x23   :  { %v4844_v20 = vld [vmem:[#allocation3 + $0x9c] sm:$0xf0]  ;;  %7950 = vst [vmem:[#allocation34_spill] sm:$0xff] %v5462_v39  ;;  %v5465_v43 = vor.u32 %v4949_v41, %v4690_v36  ;;  %v4832_v47 = vld [vmem:[#allocation3 + $0x44] sm:$0xf]  ;;  %1055 = vmatpush.bf16.msrb.mxu3 %v5462_v39 }
  0x24   :  { %7944 = vst [vmem:[#allocation28_spill] sm:$0xff] %v5442_v11  ;;  %v4458_v21 = vld [vmem:[#allocation3 + $0x200] sm:$0xf]  ;;  %v5452_v23 = vor.u32 %v4844_v20, %v4266_v19  ;;  %v4236_v52 = vld [vmem:[#allocation3 + $0x60] sm:$0xf0] }
  0x25   :  { %1029 = vmatpush.bf16.msra.mxu1 %v5425_v62  ;;  %v4892_v24 = vld [vmem:[#allocation3 + $0x21c] sm:$0xf0]  ;;  %7951 = vst [vmem:[#allocation35_spill] sm:$0xff] %v5465_v43  ;;  %v4896_v53 = vld [vmem:[#allocation3 + $0x244] sm:$0xf]  ;;  %v5473_v55 = vor.u32 %v4832_v47, %v4236_v52 }
  0x26   :  { %7947 = vst [vmem:[#allocation31_spill] sm:$0xff] %v5452_v23  ;;  %v5455_v31 = vor.u32 %v4892_v24, %v4458_v21  ;;  %1016 = vmatpush.bf16.msra.mxu0 %v5452_v23  ;;  %v4234_v44 = vld [vmem:[#allocation3 + $0x40] sm:$0xf]  ;;  %v4492_v56 = vld [vmem:[#allocation3 + $0x260] sm:$0xf0] }
  0x27   :  { %v4836_v45 = vld [vmem:[#allocation3 + $0x5c] sm:$0xf0]  ;;  %7953 = vst [vmem:[#allocation37_spill] sm:$0xff] %v5473_v55  ;;  %v4658_v57 = vld [vmem:[#allocation3 + $0x388] sm:$0xf]  ;;  %v5477_v61 = vor.u32 %v4896_v53, %v4492_v56  ;;  %1043 = vmatpush.bf16.msrb.mxu2 %v5473_v55 }
  0x28   :  { %7948 = vst [vmem:[#allocation32_spill] sm:$0xff] %v5455_v31  ;;  %v5469_v49 = vor.u32 %v4836_v45, %v4234_v44  ;;  %v4941_v59 = vld [vmem:[#allocation3 + $0x3a4] sm:$0xf0]  ;;  %v4202_v1 = vld [vmem:[#allocation3] sm:$0xf] }
  0x29   :  { %1030 = vmatpush.bf16.msra.mxu1 %v5442_v11  ;;  %7954 = vst [vmem:[#allocation38_spill] sm:$0xff] %v5477_v61  ;;  %v5479_v0 = vor.u32 %v4941_v59, %v4658_v57  ;;  %v4828_v4 = vld [vmem:[#allocation3 + $0x1c] sm:$0xf0]  ;;  %v4824_v5 = vld [vmem:[#allocation3 + $0x4] sm:$0xf]  ;;  %1056 = vmatpush.bf16.msrb.mxu3 %v5477_v61  ;;  %v7698_v57 = vperm.slane %v5432_v2, 1 }
  0x2a   :  { %7952 = vst [vmem:[#allocation36_spill] sm:$0xff] %v5469_v49  ;;  %1017 = vmatpush.bf16.msra.mxu0 %v5469_v49  ;;  %v5482_v8 = vor.u32 %v4828_v4, %v4202_v1  ;;  %v4204_v9 = vld [vmem:[#allocation3 + $0x20] sm:$0xf0]  ;;  %v4434_v25 = vld [vmem:[#allocation3 + $0x1c8] sm:$0xf] }
  0x2b   :  { %7955 = vst [vmem:[#allocation39_spill] sm:$0xff] %v5479_v0  ;;  %v4888_v10 = vld [vmem:[#allocation3 + $0x204] sm:$0xf]  ;;  %v5488_v21 = vor.u32 %v4824_v5, %v4204_v9  ;;  %v4885_v28 = vld [vmem:[#allocation3 + $0x1e4] sm:$0xf0] }
  0x2c   :  { %7956 = vst [vmem:[#allocation40_spill] sm:$0xff] %v5482_v8  ;;  %v4460_v13 = vld [vmem:[#allocation3 + $0x220] sm:$0xf0]  ;;  %v5497_v36 = vor.u32 %v4885_v28, %v4434_v25  ;;  %v4881_v41 = vld [vmem:[#allocation3 + $0x1cc] sm:$0xf] }
  0x2d   :  { %1031 = vmatpush.bf16.msra.mxu1 %v5455_v31  ;;  %7957 = vst [vmem:[#allocation41_spill] sm:$0xff] %v5488_v21  ;;  %v5490_v24 = vor.u32 %v4888_v10, %v4460_v13  ;;  %v4436_v44 = vld [vmem:[#allocation3 + $0x1e8] sm:$0xf0]  ;;  %1044 = vmatpush.bf16.msrb.mxu2 %v5488_v21  ;;  %v4402_v1 = vld [vmem:[#allocation3 + $0x188] sm:$0xf] }
  0x2e   :  { %1018 = vmatpush.bf16.msra.mxu0 %v5482_v8  ;;  %7959 = vst [vmem:[#allocation43_spill] sm:$0xff] %v5497_v36  ;;  %v5501_v52 = vor.u32 %v4881_v41, %v4436_v44  ;;  %v4945_v53 = vld [vmem:[#allocation3 + $0x3cc] sm:$0xf]  ;;  %v4877_v4 = vld [vmem:[#allocation3 + $0x1a4] sm:$0xf0] }
  0x2f   :  { %7958 = vst [vmem:[#allocation42_spill] sm:$0xff] %v5490_v24  ;;  %1057 = vmatpush.bf16.msrb.mxu3 %v5490_v24  ;;  %v5511_v5 = vor.u32 %v4877_v4, %v4402_v1  ;;  %v4925_v9 = vld [vmem:[#allocation3 + $0x324] sm:$0xf0]  ;;  %v4873_v10 = vld [vmem:[#allocation3 + $0x18c] sm:$0xf] }
  0x30   :  { %7961 = vst [vmem:[#allocation45_spill] sm:$0xff] %v5501_v52  ;;  %v4372_v1 = vld [vmem:[#allocation3 + $0x168] sm:$0xf0] }
  0x31   :  { %1076 = vmatpush.bf16.msrb.mxu1 %v5465_v43  ;;  %1089 = vmatpush.bf16.msra.mxu2 %v5501_v52  ;;  %7963 = vst [vmem:[#allocation47_spill] sm:$0xff] %v5511_v5  ;;  %v4825_v8 = vld [vmem:[#allocation3 + $0xc] sm:$0xf] }
  0x32   :  { %1063 = vmatpush.bf16.msrb.mxu0 %v5497_v36  ;;  %v4532_v36 = vld [vmem:[#allocation3 + $0x2a8] sm:$0xf0] }
  0x33   :  { %v4212_v55 = vld [vmem:[#allocation3 + $0x28] sm:$0xf0] }
  0x35   :  { %1077 = vmatpush.bf16.msrb.mxu1 %v5479_v0 }
  0x36   :  { %1064 = vmatpush.bf16.msrb.mxu0 %v5511_v5  ;;  %v4845_v5 = vld [vmem:[#allocation3 + $0xa4] sm:$0xf0] }
  0x89   :  { %v98_v29 = vpop.f32.mrf.mxu1 }
  0x8a   :  { %v99_v38 = vadd.f32 %v98_v29, %v52_v16  ;;  %v4626_v29 = vld [vmem:[#allocation3 + $0x348] sm:$0xf] }
  0x8c   :  { %145 = vst [vmem:[#allocation2 + $0x30] sm:$0xff] %v99_v38  ;;  %v4933_v38 = vld [vmem:[#allocation3 + $0x364] sm:$0xf0] }
  0x8d   :  { %v5499_v47 = vor.u32 %v4933_v38, %v4626_v29  ;;  %v4562_v38 = vld [vmem:[#allocation3 + $0x2c8] sm:$0xf] }
  0x8f   :  { %7960 = vst [vmem:[#allocation44_spill] sm:$0xff] %v5499_v47  ;;  %1078 = vmatpush.bf16.msrb.mxu1 %v5499_v47 }
  0x90   :  { %v126_v6 = vpop.f32.mrf.mxu2 }
  0x91   :  { %v127_v14 = vadd.f32 %v126_v6, %v54_v48  ;;  %v100_v19 = vpop.f32.mrf.mxu1  ;;  %v140_v20 = vpop.f32.mrf.mxu3  ;;  %v4594_v6 = vld [vmem:[#allocation3 + $0x308] sm:$0xf] }
  0x92   :  { %v101_v34 = vadd.f32 %v100_v19, %v52_v16  ;;  %v141_v35 = vadd.f32 %v140_v20, %v55_v60  ;;  %v4692_v16 = vld [vmem:[#allocation3 + $0x3e8] sm:$0xf0]  ;;  %v5514_v13 = vor.u32 %v4925_v9, %v4594_v6 }
  0x93   :  { %v154_v45 = vld [vmem:[#allocation2 + $0x30] sm:$0x3]  ;;  %147 = vst [vmem:[#allocation2 + $0x18] sm:$0xff] %v127_v14  ;;  %v5508_v59 = vor.u32 %v4945_v53, %v4692_v16  ;;  %v4404_v14 = vld [vmem:[#allocation3 + $0x1a8] sm:$0xf0] }
  0x94   :  { %v4195_v56 = vmul.f32 -1.442695, %v154_v45  ;;  %149 = vst [vmem:[#allocation2 + $0x8] sm:$0xff] %v101_v34  ;;  %v4937_v19 = vld [vmem:[#allocation3 + $0x38c] sm:$0xf]  ;;  %v5517_v28 = vor.u32 %v4873_v10, %v4404_v14  ;;  %1079 = vmatpush.bf16.msrb.mxu1 %v5514_v13 }
  0x95   :  { %148 = vst [vmem:[#allocation2 + $0x10] sm:$0xff] %v141_v35  ;;  %1102 = vmatpush.bf16.msra.mxu3 %v5508_v59  ;;  %v4660_v20 = vld [vmem:[#allocation3 + $0x3a8] sm:$0xf0]  ;;  %v4370_v34 = vld [vmem:[#allocation3 + $0x148] sm:$0xf] }
  0x96   :  { %7962 = vst [vmem:[#allocation46_spill] sm:$0xff] %v5508_v59  ;;  %4966 = vpow2.f32 %v4195_v56  ;;  %v5519_v29 = vor.u32 %v4937_v19, %v4660_v20  ;;  %v4869_v35 = vld [vmem:[#allocation3 + $0x164] sm:$0xf0]  ;;  %v4865_v16 = vld [vmem:[#allocation3 + $0x14c] sm:$0xf]  ;;  %1090 = vmatpush.bf16.msra.mxu2 %v5517_v28 }
  0x97   :  { %7964 = vst [vmem:[#allocation48_spill] sm:$0xff] %v5514_v13  ;;  %v5524_v53 = vor.u32 %v4869_v35, %v4370_v34  ;;  %v4917_v56 = vld [vmem:[#allocation3 + $0x2e4] sm:$0xf0]  ;;  %v4929_v14 = vld [vmem:[#allocation3 + $0x34c] sm:$0xf] }
  0x98   :  { %v128_v25 = vpop.f32.mrf.mxu2  ;;  %7965 = vst [vmem:[#allocation49_spill] sm:$0xff] %v5517_v28  ;;  %v5531_v10 = vor.u32 %v4917_v56, %v4562_v38  ;;  %v4628_v19 = vld [vmem:[#allocation3 + $0x368] sm:$0xf0]  ;;  %v4338_v34 = vld [vmem:[#allocation3 + $0x108] sm:$0xf] }
  0x99   :  { %7966 = vst [vmem:[#allocation50_spill] sm:$0xff] %v5519_v29  ;;  %v129_v41 = vadd.f32 %v128_v25, %v54_v48  ;;  %v112_v44 = vpop.f32.mrf.mxu1  ;;  %v142_v45 = vpop.f32.mrf.mxu3  ;;  %v5533_v48 = vor.u32 %v4865_v16, %v4372_v1  ;;  %1103 = vmatpush.bf16.msra.mxu3 %v5519_v29  ;;  %v5536_v25 = vor.u32 %v4929_v14, %v4628_v19  ;;  %v4530_v16 = vld [vmem:[#allocation3 + $0x288] sm:$0xf] }
  0x9a   :  { %7967 = vst [vmem:[#allocation51_spill] sm:$0xff] %v5524_v53  ;;  %v156_v4 = vld [vmem:[#allocation2 + $0x18] sm:$0x3]  ;;  %v113_v6 = vadd.f32 %v112_v44, %v7698_v57  ;;  %v143_v9 = vadd.f32 %v142_v45, %v55_v60  ;;  %1065 = vmatpush.bf16.msrb.mxu0 %v5524_v53  ;;  %v4861_v60 = vld [vmem:[#allocation3 + $0x124] sm:$0xf0]  ;;  %v7696_v45 = vmov 0.0|0.0   ;;  %1080 = vmatpush.bf16.msrb.mxu1 %v5531_v10 }
  0x9b   :  { %7968 = vst [vmem:[#allocation52_spill] sm:$0xff] %v5531_v10  ;;  %v4197_v20 = vmul.f32 -1.442695, %v156_v4  ;;  %1032 = vmatmul.bf16.vlgmr.msra.gmra.mxu1 %v7696_v45  ;;  %1058 = vmatmul.bf16.vlgmr.msrb.gmra.mxu3 %v7696_v45  ;;  %v4909_v1 = vld [vmem:[#allocation3 + $0x2a4] sm:$0xf0] }
  0x9c   :  { %7969 = vst [vmem:[#allocation53_spill] sm:$0xff] %v5533_v48  ;;  %v4967_v35 = vpop.eup %4966  ;;  %v157_v44 = vld [vmem:[#allocation2 + $0x10] sm:$0x3]  ;;  %1091 = vmatpush.bf16.msra.mxu2 %v5533_v48  ;;  %v4857_v4 = vld [vmem:[#allocation3 + $0x10c] sm:$0xf]  ;;  %v5548_v14 = vor.u32 %v4909_v1, %v4530_v16 }
  0x9d   :  { %151 = vst [vmem:[#allocation2 + $0x28] sm:$0xff] %v129_v41  ;;  %v5540_v38 = vadd.f32 1.0, %v4967_v35  ;;  %4968 = vpow2.f32 %v4197_v20  ;;  %v4198_v56 = vmul.f32 -1.442695, %v157_v44  ;;  %v5543_v41 = vor.u32 %v4861_v60, %v4338_v34  ;;  %1104 = vmatpush.bf16.msra.mxu3 %v5536_v25  ;;  %v4921_v20 = vld [vmem:[#allocation3 + $0x30c] sm:$0xf] }
  0x9e   :  { %7970 = vst [vmem:[#allocation54_spill] sm:$0xff] %v5536_v25  ;;  %v4306_v35 = vld [vmem:[#allocation3 + $0xc8] sm:$0xf]  ;;  %1081 = vmatpush.bf16.msrb.mxu1 %v5548_v14  ;;  %v4849_v16 = vld [vmem:[#allocation3 + $0xcc] sm:$0xf] }
  0x9f   :  { %146 = vst [vmem:[#allocation2] sm:$0xff] %v113_v6  ;;  %v4340_v6 = vld [vmem:[#allocation3 + $0x128] sm:$0xf0]  ;;  %1066 = vmatpush.bf16.msrb.mxu0 %v5543_v41  ;;  %v4853_v44 = vld [vmem:[#allocation3 + $0xe4] sm:$0xf0]  ;;  %4970 = vpow2.f32 %v4198_v56  ;;  %vm179_vm6 = vweird.f32 %v5540_v38 }
  0xa0   :  { %152 = vst [vmem:[#allocation2 + $0x38] sm:$0xff] %v143_v9  ;;  %v5550_v19 = vor.u32 %v4857_v4, %v4340_v6  ;;  %v4596_v9 = vld [vmem:[#allocation3 + $0x328] sm:$0xf0]  ;;  %v4498_v60 = vld [vmem:[#allocation3 + $0x248] sm:$0xf]  ;;  %v5556_v48 = vor.u32 %v4853_v44, %v4306_v35  ;;  %v7977_v6 = vperm.slane %v5432_v2, 1  ;;  %4972 = vrcp.f32 %v5540_v38 }
  0xa1   :  { %7971 = vst [vmem:[#allocation55_spill] sm:$0xff] %v5543_v41  ;;  %v5553_v34 = vor.u32 %v4921_v20, %v4596_v9  ;;  %v4901_v45 = vld [vmem:[#allocation3 + $0x264] sm:$0xf0]  ;;  %v114_v57 = vpop.f32.mrf.mxu1  ;;  %v4308_v1 = vld [vmem:[#allocation3 + $0xe8] sm:$0xf0] }
  0xa2   :  { %7972 = vst [vmem:[#allocation56_spill] sm:$0xff] %v5548_v14  ;;  %v5558_v53 = vor.u32 %v4901_v45, %v4498_v60  ;;  %v4913_v4 = vld [vmem:[#allocation3 + $0x2cc] sm:$0xf]  ;;  %v115_v28 = vadd.f32 %v114_v57, %v7977_v6  ;;  %1092 = vmatpush.bf16.msra.mxu2 %v5550_v19  ;;  %v5563_v20 = vor.u32 %v4849_v16, %v4308_v1  ;;  %v4274_v41 = vld [vmem:[#allocation3 + $0x88] sm:$0xf] }
  0xa3   :  { %7973 = vst [vmem:[#allocation57_spill] sm:$0xff] %v5550_v19  ;;  %v4564_v9 = vld [vmem:[#allocation3 + $0x2e8] sm:$0xf0]  ;;  %v4969_v52 = vpop.eup %4968  ;;  %1105 = vmatpush.bf16.msra.mxu3 %v5553_v34  ;;  %v4466_v44 = vld [vmem:[#allocation3 + $0x208] sm:$0xf]  ;;  %1067 = vmatpush.bf16.msrb.mxu0 %v5556_v48  ;;  %v5572_v57 = vor.u32 %v4845_v5, %v4274_v41 }
  0xa4   :  { %7974 = vst [vmem:[#allocation58_spill] sm:$0xff] %v5553_v34  ;;  %v5567_v45 = vor.u32 %v4913_v4, %v4564_v9  ;;  %v4893_v56 = vld [vmem:[#allocation3 + $0x224] sm:$0xf0]  ;;  %v5569_v60 = vadd.f32 1.0, %v4969_v52  ;;  %v4841_v16 = vld [vmem:[#allocation3 + $0x8c] sm:$0xf]  ;;  %1082 = vmatpush.bf16.msrb.mxu1 %v5558_v53 }
  0xa5   :  { %7975 = vst [vmem:[#allocation59_spill] sm:$0xff] %v5556_v48  ;;  %v5575_v1 = vor.u32 %v4893_v56, %v4466_v44  ;;  %v4276_v6 = vld [vmem:[#allocation3 + $0xa8] sm:$0xf0]  ;;  %v4698_v52 = vld [vmem:[#allocation3 + $0x3d0] sm:$0xf] }
  0xa6   :  { %7976 = vst [vmem:[#allocation60_spill] sm:$0xff] %v5558_v53  ;;  %v155_v35 = vld [vmem:[#allocation2] sm:$0x3]  ;;  %v4905_v19 = vld [vmem:[#allocation3 + $0x28c] sm:$0xf]  ;;  %4974 = vrcp.f32 %v5569_v60  ;;  %1093 = vmatpush.bf16.msra.mxu2 %v5563_v20  ;;  %vm209_vm1 = vweird.f32 %v5569_v60 }
  0xa7   :  { %7978 = vst [vmem:[#allocation61_spill] sm:$0xff] %v5563_v20  ;;  %v4196_v2 = vmul.f32 -1.442695, %v155_v35  ;;  %v4950_v4 = vld [vmem:[#allocation3 + $0x3ec] sm:$0xf0]  ;;  %1106 = vmatpush.bf16.msra.mxu3 %v5567_v45  ;;  %v5582_v5 = vor.u32 %v4905_v19, %v4532_v36  ;;  %v4971_v35 = vpop.eup %4970  ;;  %1068 = vmatpush.bf16.msrb.mxu0 %v5572_v57 }
  0xa8   :  { %7979 = vst [vmem:[#allocation62_spill] sm:$0xff] %v5567_v45  ;;  %v4242_v41 = vld [vmem:[#allocation3 + $0x48] sm:$0xf]  ;;  %v5585_v44 = vor.u32 %v4950_v4, %v4698_v52  ;;  %v4833_v48 = vld [vmem:[#allocation3 + $0x4c] sm:$0xf]  ;;  %v5589_v21 = vpop.eup %4972  ;;  %1083 = vmatpush.bf16.msrb.mxu1 %v5575_v1 }
  0xa9   :  { %150 = vst [vmem:[#allocation2 + $0x20] sm:$0xff] %v115_v28  ;;  %4976 = vpow2.f32 %v4196_v2  ;;  %v5580_v28 = vor.u32 %v4841_v16, %v4276_v6  ;;  %v4837_v9 = vld [vmem:[#allocation3 + $0x64] sm:$0xf0]  ;;  %v4244_v20 = vld [vmem:[#allocation3 + $0x68] sm:$0xf0]  ;;  %vm180_vm5 = vweird.f32 %v5589_v21 }
  0xaa   :  { %7980 = vst [vmem:[#allocation63_spill] sm:$0xff] %v5572_v57  ;;  %v5587_v56 = vor.u32 %v4837_v9, %v4242_v41  ;;  %v4897_v2 = vld [vmem:[#allocation3 + $0x24c] sm:$0xf]  ;;  %v4666_v6 = vld [vmem:[#allocation3 + $0x390] sm:$0xf]  ;;  %v5594_v36 = vor.u32 %v4833_v48, %v4244_v20  ;;  %v5596_v41 = vadd.f32 1.0, %v4971_v35  ;;  %vm5657_vm8 = vmor %vm179_vm6, %vm180_vm5 }
  0xab   :  { %7981 = vst [vmem:[#allocation64_spill] sm:$0xff] %v5575_v1  ;;  %v4500_v16 = vld [vmem:[#allocation3 + $0x268] sm:$0xf0]  ;;  %1094 = vmatpush.bf16.msra.mxu2 %v5580_v28  ;;  %v4942_v19 = vld [vmem:[#allocation3 + $0x3ac] sm:$0xf0]  ;;  %1107 = vmatpush.bf16.msra.mxu3 %v5582_v5  ;;  %v7990_v35 = vmov 0.0|0.0  }
  0xac   :  { %7982 = vst [vmem:[#allocation65_spill] sm:$0xff] %v5580_v28  ;;  %1128 = vmatpush.bf16.msra.mxu1 %v5585_v44  ;;  %v4210_v52 = vld [vmem:[#allocation3 + $0x8] sm:$0xf]  ;;  %v5599_v9 = vor.u32 %v4897_v2, %v4500_v16  ;;  %v5601_v57 = vor.u32 %v4942_v19, %v4666_v6  ;;  %v4975_v49 = vpop.eup %4974  ;;  %v175_v28 = vmul.f32 %v5589_v21, %v5540_v38  ;;  %v4889_v20 = vld [vmem:[#allocation3 + $0x20c] sm:$0xf]  ;;  %4978 = vrcp.f32 %v5596_v41 }
  0xad   :  { %7983 = vst [vmem:[#allocation66_spill] sm:$0xff] %v5582_v5  ;;  %v4829_v4 = vld [vmem:[#allocation3 + $0x24] sm:$0xf0]  ;;  %1069 = vmatpush.bf16.msrb.mxu0 %v5587_v56  ;;  %1084 = vmatmul.bf16.vlgmr.msrb.gmra.mxu1 %v7990_v35  ;;  %v205_v2 = vmul.f32 %v4975_v49, %v5569_v60  ;;  %v5614_v6 = vor.u32 %v4825_v8, %v4212_v55  ;;  %vm210_vm2 = vweird.f32 %v4975_v49  ;;  %v213_v55 = vand.u32 2147483647, %v5569_v60 }
  0xae   :  { %7984 = vst [vmem:[#allocation67_spill] sm:$0xff] %v5585_v44  ;;  %v5606_v48 = vor.u32 %v4829_v4, %v4210_v52  ;;  %v4468_v44 = vld [vmem:[#allocation3 + $0x228] sm:$0xf0]  ;;  %v176_v4 = vsub.f32 1.0, %v175_v28  ;;  %v4634_v8 = vld [vmem:[#allocation3 + $0x350] sm:$0xf]  ;;  %vm211_vm3 = vmor %vm209_vm1, %vm210_vm2  ;;  %vm224_vm13 = vweird.f32 %v5596_v41 }
  0xaf   :  { %7985 = vst [vmem:[#allocation68_spill] sm:$0xff] %v5587_v56  ;;  %v4977_v45 = vpop.eup %4976  ;;  %1095 = vmatpush.bf16.msra.mxu2 %v5594_v36  ;;  %v206_v19 = vsub.f32 1.0, %v205_v2  ;;  %1108 = vmatpush.bf16.msra.mxu3 %v5599_v9  ;;  %v5618_v52 = vor.u32 %v4889_v20, %v4468_v44  ;;  %v215_v56 = vand.u32 2147483648, %v5569_v60  ;;  %v4934_v2 = vld [vmem:[#allocation3 + $0x36c] sm:$0xf0]  ;;  %vm214_vm4 = vcmp.eq.f32.partialorder %v213_v55, 8.507059e+37 }
  0xb0   :  { %7986 = vst [vmem:[#allocation69_spill] sm:$0xff] %v5594_v36  ;;  %v5610_v16 = vadd.f32 1.0, %v4977_v45  ;;  %1129 = vmatpush.bf16.msra.mxu1 %v5601_v57  ;;  %v5627_v28 = vor.u32 %v4934_v2, %v4634_v8  ;;  %v4946_v20 = vld [vmem:[#allocation3 + $0x3d4] sm:$0xf]  ;;  %v4926_v5 = vld [vmem:[#allocation3 + $0x32c] sm:$0xf0] }
  0xb1   :  { %7987 = vst [vmem:[#allocation70_spill] sm:$0xff] %v5599_v9  ;;  %1070 = vmatpush.bf16.msrb.mxu0 %v5606_v48  ;;  %v207_v45 = vmul.f32 %v4975_v49, %v206_v19  ;;  %v4700_v36 = vld [vmem:[#allocation3 + $0x3f0] sm:$0xf0]  ;;  %v177_v19 = vmul.f32 %v5589_v21, %v176_v4 }
  0xb2   :  { %7988 = vst [vmem:[#allocation71_spill] sm:$0xff] %v5601_v57  ;;  %4980 = vrcp.f32 %v5610_v16  ;;  %v216_v57 = vor.u32 1.1754944e-38, %v215_v56  ;;  %v5633_v60 = vor.u32 %v4946_v20, %v4700_v36  ;;  %v4938_v2 = vld [vmem:[#allocation3 + $0x394] sm:$0xf]  ;;  %vm194_vm9 = vweird.f32 %v5610_v16 }
  0xb3   :  { %7989 = vst [vmem:[#allocation72_spill] sm:$0xff] %v5606_v48  ;;  %1096 = vmatpush.bf16.msra.mxu2 %v5614_v6  ;;  %1109 = vmatpush.bf16.msra.mxu3 %v5618_v52  ;;  %v208_v44 = vadd.f32 %v4975_v49, %v207_v45  ;;  %v5629_v48 = vpop.eup %4978  ;;  %v4668_v56 = vld [vmem:[#allocation3 + $0x3b0] sm:$0xf0]  ;;  %v178_v55 = vadd.f32 %v5589_v21, %v177_v19  ;;  %v198_v19 = vand.u32 2147483647, %v5610_v16 }
  0xb4   :  { %7991 = vst [vmem:[#allocation73_spill] sm:$0xff] %v5614_v6  ;;  %1130 = vmatpush.bf16.msra.mxu1 %v5627_v28  ;;  %v4602_v6 = vld [vmem:[#allocation3 + $0x310] sm:$0xf]  ;;  %v5642_v4 = vor.u32 %v4938_v2, %v4668_v56  ;;  %v4930_v2 = vld [vmem:[#allocation3 + $0x354] sm:$0xf]  ;;  %vm225_vm14 = vweird.f32 %v5629_v48 }
  0xb5   :  { %7992 = vst [vmem:[#allocation74_spill] sm:$0xff] %v5618_v52  ;;  %v212_v9 = vsel %vm211_vm3, %v4975_v49, %v208_v44  ;;  %v5635_v8 = vor.u32 %v4926_v5, %v4602_v6  ;;  %v220_v49 = vmul.f32 %v5629_v48, %v5596_v41  ;;  %v4570_v5 = vld [vmem:[#allocation3 + $0x2d0] sm:$0xf]  ;;  %v185_v6 = vand.u32 2147483648, %v5540_v38  ;;  %vm5688_vm15 = vmor %vm224_vm13, %vm225_vm14 }
  0xb6   :  { %7993 = vst [vmem:[#allocation75_spill] sm:$0xff] %v5627_v28  ;;  %v217_v45 = vsel %vm214_vm4, %v216_v57, %v212_v9  ;;  %1110 = vmatmul.bf16.vlgmr.msra.gmra.mxu3 %v7990_v35  ;;  %v4918_v9 = vld [vmem:[#allocation3 + $0x2ec] sm:$0xf0]  ;;  %v200_v44 = vand.u32 2147483648, %v5610_v16  ;;  %vm199_vm12 = vcmp.eq.f32.partialorder %v198_v19, 8.507059e+37 }
  0xb7   :  { %7994 = vst [vmem:[#allocation76_spill] sm:$0xff] %v5633_v60  ;;  %1154 = vmatpush.bf16.msrb.mxu3 %v5633_v60  ;;  %v234_v57 = vmul.f32 2.0, %v217_v45  ;;  %v5650_v20 = vor.u32 %v4918_v9, %v4570_v5  ;;  %v4636_v45 = vld [vmem:[#allocation3 + $0x370] sm:$0xf0]  ;;  %v221_v28 = vsub.f32 1.0, %v220_v49  ;;  %v186_v32 = vor.u32 1.1754944e-38, %v185_v6 }
  0xb8   :  { %v4981_v52 = vpop.eup %4980  ;;  %7995 = vst [vmem:[#allocation77_spill] sm:$0xff] %v5635_v8  ;;  %1131 = vmatpush.bf16.msra.mxu1 %v5635_v8  ;;  %v5661_v60 = vor.u32 %v4930_v2, %v4636_v45  ;;  %v4538_v9 = vld [vmem:[#allocation3 + $0x290] sm:$0xf]  ;;  %v201_v23 = vor.u32 1.1754944e-38, %v200_v44  ;;  %v4922_v49 = vld [vmem:[#allocation3 + $0x314] sm:$0xf] }
  0xb9   :  { %v190_v1 = vmul.f32 %v4981_v52, %v5610_v16  ;;  %7996 = vst [vmem:[#allocation78_spill] sm:$0xff] %v5642_v4  ;;  %vm195_vm7 = vweird.f32 %v4981_v52  ;;  %v4199_v5 = vadd.f32 -1.0, %v234_v57  ;;  %v4604_v2 = vld [vmem:[#allocation3 + $0x330] sm:$0xf0]  ;;  %v4506_v44 = vld [vmem:[#allocation3 + $0x250] sm:$0xf] }
  0xba   :  { %7997 = vst [vmem:[#allocation79_spill] sm:$0xff] %v5650_v20  ;;  %vm196_vm10 = vmor %vm194_vm9, %vm195_vm7 }
  0xbb   :  { %v191_v36 = vsub.f32 1.0, %v190_v1  ;;  %v183_v1 = vand.u32 2147483647, %v5540_v38  ;;  %1155 = vmatpush.bf16.msrb.mxu3 %v5642_v4  ;;  %8000 = vst [vmem:[#allocation80_spill] sm:$0xff] %v5661_v60  ;;  %v182_v38 = vsel %vm5657_vm8, %v5589_v21, %v178_v55  ;;  %v4910_v4 = vld [vmem:[#allocation3 + $0x2ac] sm:$0xf0]  ;;  %v5672_v21 = vor.u32 %v4922_v49, %v4604_v2 }
  0xbc   :  { %1132 = vmatpush.bf16.msra.mxu1 %v5650_v20  ;;  %v5669_v34 = vor.u32 %v4910_v4, %v4538_v9  ;;  %v222_v55 = vmul.f32 %v5629_v48, %v221_v28  ;;  %v4902_v4 = vld [vmem:[#allocation3 + $0x26c] sm:$0xf0]  ;;  %v228_v28 = vand.u32 2147483647, %v5596_v41  ;;  %v4906_v2 = vld [vmem:[#allocation3 + $0x294] sm:$0xf] }
  0xbd   :  { %v192_v56 = vmul.f32 %v4981_v52, %v191_v36  ;;  %vm184_vm11 = vcmp.eq.f32.partialorder %v183_v1, 8.507059e+37  ;;  %8002 = vst [vmem:[#allocation82_spill] sm:$0xff] %v5672_v21  ;;  %v4914_v1 = vld [vmem:[#allocation3 + $0x2d4] sm:$0xf]  ;;  %v4894_v9 = vld [vmem:[#allocation3 + $0x22c] sm:$0xf0] }
  0xbe   :  { %8001 = vst [vmem:[#allocation81_spill] sm:$0xff] %v5669_v34  ;;  %v187_v16 = vsel %vm184_vm11, %v186_v32, %v182_v38  ;;  %v223_v32 = vadd.f32 %v5629_v48, %v222_v55  ;;  %v4951_v55 = vld [vmem:[#allocation3 + $0x3f4] sm:$0xf0]  ;;  %vm229_vm0 = vcmp.eq.f32.partialorder %v228_v28, 8.507059e+37  ;;  %v4316_v20 = vld [vmem:[#allocation3 + $0xf0] sm:$0xf0] }
  0xbf   :  { %v193_v36 = vadd.f32 %v4981_v52, %v192_v56  ;;  %1156 = vmatpush.bf16.msrb.mxu3 %v5661_v60  ;;  %v237_v6 = vmul.f32 %v4199_v5, %v187_v16  ;;  %v230_v56 = vand.u32 2147483648, %v5596_v41  ;;  %v4474_v5 = vld [vmem:[#allocation3 + $0x210] sm:$0xf]  ;;  %v4903_v60 = vld [vmem:[#allocation3 + $0x274] sm:$0xf0] }
  0xc0   :  { %1133 = vmatpush.bf16.msra.mxu1 %v5669_v34  ;;  %v5694_v49 = vor.u32 %v4894_v9, %v4474_v5  ;;  %v4508_v5 = vld [vmem:[#allocation3 + $0x270] sm:$0xf0]  ;;  %v4674_v9 = vld [vmem:[#allocation3 + $0x398] sm:$0xf] }
  0xc1   :  { %v197_v45 = vsel %vm196_vm10, %v4981_v52, %v193_v36  ;;  %v5678_v52 = vor.u32 %v4902_v4, %v4506_v44  ;;  %v231_v16 = vor.u32 1.1754944e-38, %v230_v56  ;;  %v4886_v44 = vld [vmem:[#allocation3 + $0x1ec] sm:$0xf0]  ;;  %v4898_v56 = vld [vmem:[#allocation3 + $0x254] sm:$0xf] }
  0xc2   :  { %v202_v8 = vsel %vm199_vm12, %v201_v23, %v197_v45  ;;  %v4572_v23 = vld [vmem:[#allocation3 + $0x2f0] sm:$0xf0]  ;;  %8007 = vst [vmem:[#allocation85_spill] sm:$0xff] %v5694_v49 }
  0xc3   :  { %v236_v57 = vmul.f32 0.0, %v202_v8  ;;  %8003 = vst [vmem:[#allocation83_spill] sm:$0xff] %v5678_v52  ;;  %1157 = vmatpush.bf16.msrb.mxu3 %v5672_v21  ;;  %v5686_v38 = vor.u32 %v4914_v1, %v4572_v23  ;;  %v4540_v45 = vld [vmem:[#allocation3 + $0x2b0] sm:$0xf0]  ;;  %v4706_v8 = vld [vmem:[#allocation3 + $0x3d8] sm:$0xf] }
  0xc4   :  { %1134 = vmatpush.bf16.msra.mxu1 %v5678_v52  ;;  %v5697_v41 = vor.u32 %v4906_v2, %v4540_v45  ;;  %v5702_v4 = vor.u32 %v4951_v55, %v4706_v8  ;;  %v4882_v1 = vld [vmem:[#allocation3 + $0x1d4] sm:$0xf]  ;;  %v4943_v2 = vld [vmem:[#allocation3 + $0x3b4] sm:$0xf0]  ;;  %v4410_v55 = vld [vmem:[#allocation3 + $0x190] sm:$0xf] }
  0xc5   :  { %v5681_v19 = vadd.f32 %v237_v6, %v236_v57  ;;  %8004 = vst [vmem:[#allocation84_spill] sm:$0xff] %v5686_v38  ;;  %v227_v57 = vsel %vm5688_vm15, %v5629_v48, %v223_v32  ;;  %v4442_v6 = vld [vmem:[#allocation3 + $0x1d0] sm:$0xf]  ;;  %v4444_v23 = vld [vmem:[#allocation3 + $0x1f0] sm:$0xf0]  ;;  %v5707_v48 = vor.u32 %v4898_v56, %v4508_v5  ;;  %v5709_v32 = vor.u32 %v4943_v2, %v4674_v9 }
  0xc6   :  { %8008 = vst [vmem:[#allocation86_spill] sm:$0xff] %v5697_v41  ;;  %v232_v52 = vsel %vm229_vm0, %v231_v16, %v227_v57  ;;  %v5712_v36 = vor.u32 %v4886_v44, %v4442_v6  ;;  %v5714_v8 = vor.u32 %v4882_v1, %v4444_v23  ;;  %v4412_v16 = vld [vmem:[#allocation3 + $0x1b0] sm:$0xf0]  ;;  %v4935_v5 = vld [vmem:[#allocation3 + $0x374] sm:$0xf0] }
  0xc7   :  { %4982 = vtanh.f32 %v5681_v19  ;;  %1158 = vmatpush.bf16.msrb.mxu3 %v5686_v38  ;;  %8009 = vst [vmem:[#allocation87_spill] sm:$0xff] %v5702_v4  ;;  %v4874_v38 = vld [vmem:[#allocation3 + $0x194] sm:$0xf]  ;;  %v4947_v44 = vld [vmem:[#allocation3 + $0x3dc] sm:$0xf] }
  0xc8   :  { %1135 = vmatpush.bf16.msra.mxu1 %v5694_v49  ;;  %8010 = vst [vmem:[#allocation88_spill] sm:$0xff] %v5707_v48  ;;  %v4890_v49 = vld [vmem:[#allocation3 + $0x214] sm:$0xf]  ;;  %v4708_v1 = vld [vmem:[#allocation3 + $0x3f8] sm:$0xf0]  ;;  %v5730_v9 = vor.u32 %v4874_v38, %v4412_v16 }
  0xc9   :  { %8011 = vst [vmem:[#allocation89_spill] sm:$0xff] %v5709_v32  ;;  %v4476_v57 = vld [vmem:[#allocation3 + $0x230] sm:$0xf0]  ;;  %v4870_v2 = vld [vmem:[#allocation3 + $0x16c] sm:$0xf0] }
  0xca   :  { %v5720_v56 = vor.u32 %v4890_v49, %v4476_v57  ;;  %v4378_v49 = vld [vmem:[#allocation3 + $0x150] sm:$0xf]  ;;  %v4380_v57 = vld [vmem:[#allocation3 + $0x170] sm:$0xf0] }
  0xcb   :  { %1159 = vmatpush.bf16.msrb.mxu3 %v5697_v41  ;;  %1136 = vmatmul.bf16.vlgmr.msra.gmra.mxu1 %v7990_v35  ;;  %v4676_v41 = vld [vmem:[#allocation3 + $0x3b8] sm:$0xf0]  ;;  %v4346_v16 = vld [vmem:[#allocation3 + $0x110] sm:$0xf] }
  0xcc   :  { %1180 = vmatpush.bf16.msrb.mxu1 %v5702_v4  ;;  %v4878_v4 = vld [vmem:[#allocation3 + $0x1ac] sm:$0xf0]  ;;  %8012 = vst [vmem:[#allocation90_spill] sm:$0xff] %v5720_v56 }
  0xcd   :  { %v4983_v45 = vpop.eup %4982  ;;  %v5728_v23 = vor.u32 %v4878_v4, %v4410_v55  ;;  %v5743_v4 = vor.u32 %v4870_v2, %v4378_v49 }
  0xce   :  { %v240_v28 = vmul.f32 %v4983_v45, %v232_v52  ;;  %v4642_v52 = vld [vmem:[#allocation3 + $0x358] sm:$0xf]  ;;  %v4866_v45 = vld [vmem:[#allocation3 + $0x154] sm:$0xf] }
  0xcf   :  { %1160 = vmatpush.bf16.msrb.mxu3 %v5707_v48  ;;  %v5724_v6 = vor.u32 %v4935_v5, %v4642_v52  ;;  %v4610_v52 = vld [vmem:[#allocation3 + $0x318] sm:$0xf]  ;;  %v4939_v48 = vld [vmem:[#allocation3 + $0x39c] sm:$0xf]  ;;  %8017 = vst [vmem:[#allocation95_spill] sm:$0xff] %v5743_v4  ;;  %v5745_v55 = vor.u32 %v4866_v45, %v4380_v57 }
  0xd0   :  { %v5716_v34 = vpack.c.bf16 %v240_v28, %v240_v28  ;;  %1181 = vmatpush.bf16.msrb.mxu1 %v5709_v32  ;;  %v5732_v28 = vor.u32 %v4947_v44, %v4708_v1  ;;  %v4927_v5 = vld [vmem:[#allocation3 + $0x334] sm:$0xf0]  ;;  %v5739_v38 = vor.u32 %v4939_v48, %v4676_v41  ;;  %v4862_v44 = vld [vmem:[#allocation3 + $0x12c] sm:$0xf0]  ;;  %v4858_v1 = vld [vmem:[#allocation3 + $0x114] sm:$0xf] }
  0xd1   :  { %8013 = vst [vmem:[#allocation91_spill] sm:$0xff] %v5724_v6  ;;  %v5736_v32 = vor.u32 %v4927_v5, %v4610_v52  ;;  %v4578_v52 = vld [vmem:[#allocation3 + $0x2d8] sm:$0xf]  ;;  %v4931_v48 = vld [vmem:[#allocation3 + $0x35c] sm:$0xf]  ;;  %v5756_v2 = vor.u32 %v4862_v44, %v4346_v16 }
  0xd2   :  { %1019 = vmatmul.bf16.vlgmr.msra.gmra.mxu0 %v5716_v34  ;;  %1045 = vmatmul.bf16.vlgmr.msrb.gmra.mxu2 %v5716_v34  ;;  %8014 = vst [vmem:[#allocation92_spill] sm:$0xff] %v5732_v28  ;;  %v4919_v5 = vld [vmem:[#allocation3 + $0x2f4] sm:$0xf0]  ;;  %v4314_v57 = vld [vmem:[#allocation3 + $0xd0] sm:$0xf] }
  0xd3   :  { %1115 = vmatpush.bf16.msra.mxu0 %v5712_v36  ;;  %1141 = vmatpush.bf16.msrb.mxu2 %v5714_v8  ;;  %8015 = vst [vmem:[#allocation93_spill] sm:$0xff] %v5736_v32  ;;  %v5749_v41 = vor.u32 %v4919_v5, %v4578_v52  ;;  %v4546_v52 = vld [vmem:[#allocation3 + $0x298] sm:$0xf]  ;;  %v4282_v44 = vld [vmem:[#allocation3 + $0x90] sm:$0xf] }
  0xd4   :  { %1182 = vmatpush.bf16.msrb.mxu1 %v5724_v6  ;;  %1161 = vmatpush.bf16.msrb.mxu3 %v5720_v56  ;;  %8016 = vst [vmem:[#allocation94_spill] sm:$0xff] %v5739_v38  ;;  %v4348_v6 = vld [vmem:[#allocation3 + $0x130] sm:$0xf0]  ;;  %v4911_v5 = vld [vmem:[#allocation3 + $0x2b4] sm:$0xf0] }
  0xd5   :  { %8018 = vst [vmem:[#allocation96_spill] sm:$0xff] %v5745_v55  ;;  %v5758_v45 = vor.u32 %v4858_v1, %v4348_v6  ;;  %v4850_v56 = vld [vmem:[#allocation3 + $0xd4] sm:$0xf]  ;;  %v5761_v21 = vor.u32 %v4911_v5, %v4546_v52  ;;  %v4846_v1 = vld [vmem:[#allocation3 + $0xac] sm:$0xf0] }
  0xd6   :  { %8019 = vst [vmem:[#allocation97_spill] sm:$0xff] %v5749_v41  ;;  %v5768_v16 = vor.u32 %v4850_v56, %v4316_v20  ;;  %v4514_v5 = vld [vmem:[#allocation3 + $0x258] sm:$0xf]  ;;  %v5779_v20 = vor.u32 %v4846_v1, %v4282_v44  ;;  %v4250_v56 = vld [vmem:[#allocation3 + $0x50] sm:$0xf] }
  0xd7   :  { %1116 = vmatpush.bf16.msra.mxu0 %v5728_v23  ;;  %1142 = vmatpush.bf16.msrb.mxu2 %v5730_v9  ;;  %8021 = vst [vmem:[#allocation99_spill] sm:$0xff] %v5756_v2  ;;  %v4218_v44 = vld [vmem:[#allocation3 + $0x10] sm:$0xf] }
  0xd8   :  { %1206 = vmatpush.bf16.msra.mxu3 %v5732_v28  ;;  %1183 = vmatpush.bf16.msrb.mxu1 %v5736_v32  ;;  %v4644_v28 = vld [vmem:[#allocation3 + $0x378] sm:$0xf0]  ;;  %8022 = vst [vmem:[#allocation100_spill] sm:$0xff] %v5758_v45  ;;  %v4854_v32 = vld [vmem:[#allocation3 + $0xec] sm:$0xf0] }
  0xd9   :  { %1162 = vmatmul.bf16.vlgmr.msrb.gmra.mxu3 %v7990_v35  ;;  %v5752_v49 = vor.u32 %v4931_v48, %v4644_v28  ;;  %8023 = vst [vmem:[#allocation101_spill] sm:$0xff] %v5761_v21  ;;  %v4923_v28 = vld [vmem:[#allocation3 + $0x31c] sm:$0xf]  ;;  %v5766_v6 = vor.u32 %v4854_v32, %v4314_v57  ;;  %v4838_v57 = vld [vmem:[#allocation3 + $0x6c] sm:$0xf0] }
  0xda   :  { %v4612_v48 = vld [vmem:[#allocation3 + $0x338] sm:$0xf0]  ;;  %8025 = vst [vmem:[#allocation103_spill] sm:$0xff] %v5768_v16  ;;  %v4830_v1 = vld [vmem:[#allocation3 + $0x2c] sm:$0xf0] }
  0xdb   :  { %8020 = vst [vmem:[#allocation98_spill] sm:$0xff] %v5752_v49  ;;  %1117 = vmatpush.bf16.msra.mxu0 %v5743_v4  ;;  %1143 = vmatpush.bf16.msrb.mxu2 %v5745_v55  ;;  %v5771_v52 = vor.u32 %v4923_v28, %v4612_v48  ;;  %v5773_v55 = vor.u32 %v4903_v60, %v4514_v5  ;;  %v4834_v28 = vld [vmem:[#allocation3 + $0x54] sm:$0xf]  ;;  %v4482_v5 = vld [vmem:[#allocation3 + $0x218] sm:$0xf] }
  0xdc   :  { %1207 = vmatpush.bf16.msra.mxu3 %v5739_v38  ;;  %1184 = vmatpush.bf16.msrb.mxu1 %v5749_v41  ;;  %8024 = vst [vmem:[#allocation102_spill] sm:$0xff] %v5766_v6  ;;  %v4842_v38 = vld [vmem:[#allocation3 + $0x94] sm:$0xf] }
  0xdd   :  { %v4284_v41 = vld [vmem:[#allocation3 + $0xb0] sm:$0xf0]  ;;  %8026 = vst [vmem:[#allocation104_spill] sm:$0xff] %v5771_v52 }
  0xde   :  { %8027 = vst [vmem:[#allocation105_spill] sm:$0xff] %v5773_v55  ;;  %v5781_v32 = vor.u32 %v4842_v38, %v4284_v41  ;;  %v4252_v48 = vld [vmem:[#allocation3 + $0x70] sm:$0xf0]  ;;  %v5791_v38 = vor.u32 %v4838_v57, %v4250_v56  ;;  %v4899_v56 = vld [vmem:[#allocation3 + $0x25c] sm:$0xf] }
  0xdf   :  { %1118 = vmatpush.bf16.msra.mxu0 %v5756_v2  ;;  %1144 = vmatpush.bf16.msrb.mxu2 %v5758_v45  ;;  %v4580_v2 = vld [vmem:[#allocation3 + $0x2f8] sm:$0xf0]  ;;  %8028 = vst [vmem:[#allocation106_spill] sm:$0xff] %v5779_v20  ;;  %v5793_v41 = vor.u32 %v4834_v28, %v4252_v48  ;;  %v5802_v28 = vor.u32 %v4830_v1, %v4218_v44 }
  0xe0   :  { %1208 = vmatpush.bf16.msra.mxu3 %v5752_v49  ;;  %1185 = vmatpush.bf16.msrb.mxu1 %v5761_v21  ;;  %v4915_v49 = vld [vmem:[#allocation3 + $0x2dc] sm:$0xf]  ;;  %8029 = vst [vmem:[#allocation107_spill] sm:$0xff] %v5781_v32  ;;  %v4895_v21 = vld [vmem:[#allocation3 + $0x234] sm:$0xf0] }
  0xe1   :  { %v5785_v60 = vor.u32 %v4915_v49, %v4580_v2  ;;  %v5787_v45 = vor.u32 %v4895_v21, %v4482_v5  ;;  %v4450_v49 = vld [vmem:[#allocation3 + $0x1d8] sm:$0xf]  ;;  %v4883_v5 = vld [vmem:[#allocation3 + $0x1dc] sm:$0xf] }
  0xe2   :  { %1071 = vmatmul.bf16.vlgmr.msrb.gmra.mxu0 %v5716_v34  ;;  %1097 = vmatmul.bf16.vlgmr.msra.gmra.mxu2 %v5716_v34  ;;  %v4887_v2 = vld [vmem:[#allocation3 + $0x1f4] sm:$0xf0]  ;;  %v4516_v57 = vld [vmem:[#allocation3 + $0x278] sm:$0xf0] }
  0xe3   :  { %1119 = vmatpush.bf16.msra.mxu0 %v5766_v6  ;;  %1145 = vmatpush.bf16.msrb.mxu2 %v5768_v16  ;;  %8030 = vst [vmem:[#allocation108_spill] sm:$0xff] %v5785_v60  ;;  %v4907_v6 = vld [vmem:[#allocation3 + $0x29c] sm:$0xf]  ;;  %v5812_v4 = vor.u32 %v4899_v56, %v4516_v57  ;;  %v4354_v57 = vld [vmem:[#allocation3 + $0x118] sm:$0xf] }
  0xe4   :  { %1209 = vmatpush.bf16.msra.mxu3 %v5771_v52  ;;  %1186 = vmatpush.bf16.msrb.mxu1 %v5773_v55  ;;  %8031 = vst [vmem:[#allocation109_spill] sm:$0xff] %v5787_v45  ;;  %v4548_v16 = vld [vmem:[#allocation3 + $0x2b8] sm:$0xf0]  ;;  %v4826_v52 = vld [vmem:[#allocation3 + $0x14] sm:$0xf] }
  0xe5   :  { %v4220_v55 = vld [vmem:[#allocation3 + $0x30] sm:$0xf0]  ;;  %v5797_v21 = vor.u32 %v4907_v6, %v4548_v16  ;;  %v4418_v6 = vld [vmem:[#allocation3 + $0x198] sm:$0xf]  ;;  %8033 = vst [vmem:[#allocation111_spill] sm:$0xff] %v5812_v4 }
  0xe6   :  { %v5804_v48 = vor.u32 %v4826_v52, %v4220_v55  ;;  %v4879_v16 = vld [vmem:[#allocation3 + $0x1b4] sm:$0xf0]  ;;  %v4891_v44 = vld [vmem:[#allocation3 + $0x21c] sm:$0xf] }
  0xe7   :  { %1120 = vmatpush.bf16.msra.mxu0 %v5779_v20  ;;  %1146 = vmatpush.bf16.msrb.mxu2 %v5781_v32  ;;  %8032 = vst [vmem:[#allocation110_spill] sm:$0xff] %v5797_v21  ;;  %v4452_v20 = vld [vmem:[#allocation3 + $0x1f8] sm:$0xf0]  ;;  %v5819_v55 = vor.u32 %v4879_v16, %v4418_v6  ;;  %v4863_v6 = vld [vmem:[#allocation3 + $0x134] sm:$0xf0] }
  0xe8   :  { %1210 = vmatpush.bf16.msra.mxu3 %v5785_v60  ;;  %1187 = vmatpush.bf16.msrb.mxu1 %v5787_v45  ;;  %v5806_v60 = vor.u32 %v4887_v2, %v4450_v49  ;;  %v5808_v45 = vor.u32 %v4883_v5, %v4452_v20  ;;  %v4420_v32 = vld [vmem:[#allocation3 + $0x1b8] sm:$0xf0]  ;;  %v4386_v20 = vld [vmem:[#allocation3 + $0x158] sm:$0xf] }
  0xe9   :  { %v4484_v1 = vld [vmem:[#allocation3 + $0x238] sm:$0xf0]  ;;  %v4871_v49 = vld [vmem:[#allocation3 + $0x174] sm:$0xf0] }
  0xea   :  { %v4867_v2 = vld [vmem:[#allocation3 + $0x15c] sm:$0xf]  ;;  %v5824_v56 = vor.u32 %v4891_v44, %v4484_v1  ;;  %v5840_v44 = vor.u32 %v4863_v6, %v4354_v57  ;;  %v4847_v6 = vld [vmem:[#allocation3 + $0xb4] sm:$0xf0] }
  0xeb   :  { %1121 = vmatpush.bf16.msra.mxu0 %v5791_v38  ;;  %1147 = vmatpush.bf16.msrb.mxu2 %v5793_v41  ;;  %v4388_v5 = vld [vmem:[#allocation3 + $0x178] sm:$0xf0] }
  0xec   :  { %1445 = vmatpush.bf16.msra.mxu1 %v5381_v15  ;;  %1211 = vmatpush.bf16.msra.mxu3 %v5797_v21  ;;  %v4875_v15 = vld [vmem:[#allocation3 + $0x19c] sm:$0xf]  ;;  %8034 = vst [vmem:[#allocation112_spill] sm:$0xff] %v5824_v56 }
  0xed   :  { %1188 = vmatmul.bf16.vlgmr.msrb.gmra.mxu1 %v7990_v35  ;;  %v5821_v52 = vor.u32 %v4875_v15, %v4420_v32  ;;  %v5831_v15 = vor.u32 %v4871_v49, %v4386_v20  ;;  %v5833_v32 = vor.u32 %v4867_v2, %v4388_v5  ;;  %v4859_v16 = vld [vmem:[#allocation3 + $0x11c] sm:$0xf]  ;;  %v4322_v20 = vld [vmem:[#allocation3 + $0xd8] sm:$0xf] }
  0xee   :  { %v4855_v49 = vld [vmem:[#allocation3 + $0xf4] sm:$0xf0]  ;;  %v4851_v2 = vld [vmem:[#allocation3 + $0xdc] sm:$0xf] }
  0xef   :  { %1122 = vmatpush.bf16.msra.mxu0 %v5802_v28  ;;  %1148 = vmatpush.bf16.msrb.mxu2 %v5804_v48  ;;  %v4324_v5 = vld [vmem:[#allocation3 + $0xf8] sm:$0xf0] }
  0xf0   :  { %1446 = vmatpush.bf16.msra.mxu1 %v5384_v18  ;;  %1212 = vmatpush.bf16.msra.mxu3 %v5812_v4  ;;  %v4356_v18 = vld [vmem:[#allocation3 + $0x138] sm:$0xf0]  ;;  %v5851_v57 = vor.u32 %v4851_v2, %v4324_v5 }
  0xf1   :  { %v5842_v1 = vor.u32 %v4859_v16, %v4356_v18  ;;  %v4290_v18 = vld [vmem:[#allocation3 + $0x98] sm:$0xf]  ;;  %v4843_v16 = vld [vmem:[#allocation3 + $0x9c] sm:$0xf] }
  0xf2   :  { %1123 = vmatmul.bf16.vlgmr.msra.gmra.mxu0 %v5716_v34  ;;  %1149 = vmatmul.bf16.vlgmr.msrb.gmra.mxu2 %v5716_v34  ;;  %v4835_v2 = vld [vmem:[#allocation3 + $0x5c] sm:$0xf] }
  0xf3   :  { %1167 = vmatpush.bf16.msrb.mxu0 %v5806_v60  ;;  %1193 = vmatpush.bf16.msra.mxu2 %v5808_v45  ;;  %v4260_v5 = vld [vmem:[#allocation3 + $0x78] sm:$0xf0] }
  0xf4   :  { %1447 = vmatpush.bf16.msra.mxu1 %v5389_v26  ;;  %1213 = vmatpush.bf16.msra.mxu3 %v5824_v56  ;;  %v4292_v26 = vld [vmem:[#allocation3 + $0xb8] sm:$0xf0] }
  0xf7   :  { %1168 = vmatpush.bf16.msrb.mxu0 %v5819_v55  ;;  %1194 = vmatpush.bf16.msra.mxu2 %v5821_v52 }
  0xf8   :  { %1448 = vmatpush.bf16.msra.mxu1 %v5401_v37  ;;  %1471 = vmatpush.bf16.msrb.mxu3 %v5394_v30  ;;  %v5849_v37 = vor.u32 %v4855_v49, %v4322_v20  ;;  %v4258_v20 = vld [vmem:[#allocation3 + $0x58] sm:$0xf] }
  0xf9   :  { %1214 = vmatmul.bf16.vlgmr.msra.gmra.mxu3 %v7990_v35  ;;  %v5857_v35 = vor.u32 %v4847_v6, %v4290_v18  ;;  %v4839_v49 = vld [vmem:[#allocation3 + $0x74] sm:$0xf0] }
  0xfa   :  { %v4226_v18 = vld [vmem:[#allocation3 + $0x18] sm:$0xf] }
  0xfb   :  { %1169 = vmatpush.bf16.msrb.mxu0 %v5831_v15  ;;  %1195 = vmatpush.bf16.msra.mxu2 %v5833_v32  ;;  %8035 = vst [vmem:[#allocation113_spill] sm:$0xff] %v5857_v35  ;;  %v4831_v6 = vld [vmem:[#allocation3 + $0x34] sm:$0xf0] }
  0xfc   :  { %1449 = vmatpush.bf16.msra.mxu1 %v5413_v50  ;;  %1472 = vmatpush.bf16.msrb.mxu3 %v5407_v42  ;;  %v5859_v50 = vor.u32 %v4843_v16, %v4292_v26  ;;  %v4827_v26 = vld [vmem:[#allocation3 + $0x1c] sm:$0xf] }
  0xfd   :  { %v4228_v16 = vld [vmem:[#allocation3 + $0x38] sm:$0xf0] }
  0xfe   :  { %8036 = vst [vmem:[#allocation114_spill] sm:$0xff] %v5859_v50 }
  0xff   :  { %1170 = vmatpush.bf16.msrb.mxu0 %v5840_v44  ;;  %1196 = vmatpush.bf16.msra.mxu2 %v5842_v1 }
 0x100   :  { %1450 = vmatpush.bf16.msra.mxu1 %v5425_v62  ;;  %1473 = vmatpush.bf16.msrb.mxu3 %v5418_v54  ;;  %v5865_v62 = vor.u32 %v4839_v49, %v4258_v20  ;;  %v5867_v54 = vor.u32 %v4835_v2, %v4260_v5  ;;  %v5876_v20 = vor.u32 %v4827_v26, %v4228_v16  ;;  %v8041_v49 = vld [vmem:[#allocation58_spill] sm:$0xff]  ;;  %v8042_v2 = vld [vmem:[#allocation31_spill] sm:$0xff]  ;;  %v8043_v5 = vld [vmem:[#allocation33_spill] sm:$0xff] }
 0x101   :  { %v8045_v26 = vld [vmem:[#allocation62_spill] sm:$0xff]  ;;  %v8046_v16 = vld [vmem:[#allocation36_spill] sm:$0xff] }
 0x102   :  { %8037 = vst [vmem:[#allocation115_spill] sm:$0xff] %v5865_v62 }
 0x103   :  { %1171 = vmatpush.bf16.msrb.mxu0 %v5849_v37  ;;  %1197 = vmatpush.bf16.msra.mxu2 %v5851_v57  ;;  %8038 = vst [vmem:[#allocation116_spill] sm:$0xff] %v5867_v54 }
 0x104   :  { %1451 = vmatpush.bf16.msra.mxu1 %v5442_v11  ;;  %1474 = vmatpush.bf16.msrb.mxu3 %v5435_v3  ;;  %v5874_v11 = vor.u32 %v4831_v6, %v4226_v18  ;;  %8040 = vst [vmem:[#allocation118_spill] sm:$0xff] %v5876_v20  ;;  %v8044_v18 = vld [vmem:[#allocation64_spill] sm:$0xff] }
 0x106   :  { %8039 = vst [vmem:[#allocation117_spill] sm:$0xff] %v5874_v11 }
 0x107   :  { %1172 = vmatpush.bf16.msrb.mxu0 %v5857_v35  ;;  %1198 = vmatpush.bf16.msra.mxu2 %v5859_v50 }
 0x108   :  { %1452 = vmatpush.bf16.msra.mxu1 %v5455_v31  ;;  %1475 = vmatpush.bf16.msrb.mxu3 %v5448_v17  ;;  %v8063_v31 = vld [vmem:[#allocation63_spill] sm:$0xff]  ;;  %v8068_v17 = vld [vmem:[#allocation73_spill] sm:$0xff] }
 0x10b   :  { %1173 = vmatpush.bf16.msrb.mxu0 %v5865_v62  ;;  %1199 = vmatpush.bf16.msra.mxu2 %v5867_v54 }
 0x10c   :  { %1497 = vmatpush.bf16.msrb.mxu1 %v5465_v43  ;;  %1476 = vmatpush.bf16.msrb.mxu3 %v5462_v39  ;;  %v8061_v43 = vld [vmem:[#allocation59_spill] sm:$0xff]  ;;  %v8066_v39 = vld [vmem:[#allocation69_spill] sm:$0xff] }
 0x10f   :  { %1174 = vmatpush.bf16.msrb.mxu0 %v5874_v11  ;;  %1200 = vmatpush.bf16.msra.mxu2 %v5876_v20 }
 0x110   :  { %1498 = vmatpush.bf16.msrb.mxu1 %v5479_v0  ;;  %1477 = vmatpush.bf16.msrb.mxu3 %v5477_v61  ;;  %v8058_v0 = vld [vmem:[#allocation53_spill] sm:$0xff]  ;;  %v8065_v61 = vld [vmem:[#allocation68_spill] sm:$0xff] }
 0x112   :  { %1175 = vmatmul.bf16.vlgmr.msrb.gmra.mxu0 %v5716_v34  ;;  %1201 = vmatmul.bf16.vlgmr.msra.gmra.mxu2 %v5716_v34 }
 0x113   :  { %1432 = vmatpush.bf16.msra.mxu0 %v5387_v22  ;;  %1458 = vmatpush.bf16.msrb.mxu2 %v5391_v27 }
 0x114   :  { %1499 = vmatpush.bf16.msrb.mxu1 %v5499_v47  ;;  %1478 = vmatpush.bf16.msrb.mxu3 %v5490_v24  ;;  %v8053_v47 = vld [vmem:[#allocation70_spill] sm:$0xff]  ;;  %v8062_v24 = vld [vmem:[#allocation61_spill] sm:$0xff] }
 0x117   :  { %1433 = vmatpush.bf16.msra.mxu0 %v5399_v33  ;;  %1459 = vmatpush.bf16.msrb.mxu2 %v5404_v40 }
 0x118   :  { %1500 = vmatpush.bf16.msrb.mxu1 %v5514_v13  ;;  %1523 = vmatpush.bf16.msra.mxu3 %v5508_v59  ;;  %v1033_v34 = vpop.f32.mrf.mxu1  ;;  %v8049_v13 = vld [vmem:[#allocation40_spill] sm:$0xff]  ;;  %v8060_v59 = vld [vmem:[#allocation57_spill] sm:$0xff] }
 0x11b   :  { %1434 = vmatpush.bf16.msra.mxu0 %v5410_v46  ;;  %1460 = vmatpush.bf16.msrb.mxu2 %v5415_v51 }
 0x11c   :  { %1501 = vmatpush.bf16.msrb.mxu1 %v5531_v10  ;;  %1524 = vmatpush.bf16.msra.mxu3 %v5519_v29  ;;  %v8048_v10 = vld [vmem:[#allocation66_spill] sm:$0xff]  ;;  %v8057_v29 = vld [vmem:[#allocation51_spill] sm:$0xff] }
 0x11e   :  { %v1059_v3 = vpop.f32.mrf.mxu3 }
 0x11f   :  { %1435 = vmatpush.bf16.msra.mxu0 %v5422_v58  ;;  %1461 = vmatpush.bf16.msrb.mxu2 %v5427_v63 }
 0x120   :  { %1502 = vmatpush.bf16.msrb.mxu1 %v5548_v14  ;;  %1525 = vmatpush.bf16.msra.mxu3 %v5536_v25  ;;  %v1035_v6 = vpop.f32.mrf.mxu1  ;;  %v8047_v14 = vld [vmem:[#allocation37_spill] sm:$0xff] }
 0x121   :  { %v8052_v25 = vld [vmem:[#allocation45_spill] sm:$0xff] }
 0x122   :  { %v8055_v6 = vld [vmem:[#allocation49_spill] sm:$0xff] }
 0x123   :  { %1436 = vmatpush.bf16.msra.mxu0 %v5439_v7  ;;  %1462 = vmatpush.bf16.msrb.mxu2 %v5444_v12 }
 0x124   :  { %1503 = vmatpush.bf16.msrb.mxu1 %v5558_v53  ;;  %1526 = vmatpush.bf16.msra.mxu3 %v8041_v49  ;;  %v8050_v53 = vld [vmem:[#allocation41_spill] sm:$0xff]  ;;  %v8051_v49 = vld [vmem:[#allocation43_spill] sm:$0xff] }
 0x126   :  { %v1061_v4 = vpop.f32.mrf.mxu3 }
 0x127   :  { %1437 = vmatpush.bf16.msra.mxu0 %v8042_v2  ;;  %1463 = vmatpush.bf16.msrb.mxu2 %v8043_v5  ;;  %v1235_v4 = vld [vmem:[#allocation2 + $0x10] sm:$0xc] }
 0x128   :  { %1504 = vmatpush.bf16.msrb.mxu1 %v8044_v18  ;;  %1527 = vmatpush.bf16.msra.mxu3 %v8045_v26  ;;  %v8054_v18 = vld [vmem:[#allocation47_spill] sm:$0xff]  ;;  %v8056_v26 = vld [vmem:[#allocation74_spill] sm:$0xff] }
 0x12b   :  { %1438 = vmatpush.bf16.msra.mxu0 %v8046_v16  ;;  %1464 = vmatpush.bf16.msrb.mxu2 %v8047_v14 }
 0x12c   :  { %1528 = vmatpush.bf16.msra.mxu3 %v8048_v10  ;;  %v8059_v10 = vld [vmem:[#allocation55_spill] sm:$0xff] }
 0x12f   :  { %1439 = vmatpush.bf16.msra.mxu0 %v8049_v13  ;;  %1465 = vmatpush.bf16.msrb.mxu2 %v8050_v53 }
 0x130   :  { %1529 = vmatpush.bf16.msra.mxu3 %v8053_v47  ;;  %v8064_v47 = vld [vmem:[#allocation65_spill] sm:$0xff] }
 0x133   :  { %1484 = vmatpush.bf16.msrb.mxu0 %v8051_v49  ;;  %1510 = vmatpush.bf16.msra.mxu2 %v8052_v25 }
 0x134   :  { %1530 = vmatpush.bf16.msra.mxu3 %v8056_v26  ;;  %v8067_v26 = vld [vmem:[#allocation72_spill] sm:$0xff] }
 0x137   :  { %1485 = vmatpush.bf16.msrb.mxu0 %v8054_v18  ;;  %1511 = vmatpush.bf16.msra.mxu2 %v8055_v6 }
 0x13b   :  { %1486 = vmatpush.bf16.msrb.mxu0 %v8057_v29  ;;  %1512 = vmatpush.bf16.msra.mxu2 %v8058_v0  ;;  %v1085_v29 = vpop.f32.mrf.mxu1 }
 0x13f   :  { %1487 = vmatpush.bf16.msrb.mxu0 %v8059_v10  ;;  %1513 = vmatpush.bf16.msra.mxu2 %v8060_v59  ;;  %v1232_v59 = vld [vmem:[#allocation2 + $0x30] sm:$0xc] }
 0x143   :  { %1488 = vmatpush.bf16.msrb.mxu0 %v8061_v43  ;;  %1514 = vmatpush.bf16.msra.mxu2 %v8062_v24 }
 0x147   :  { %1489 = vmatpush.bf16.msrb.mxu0 %v8063_v31  ;;  %1515 = vmatpush.bf16.msra.mxu2 %v8064_v47 }
 0x14b   :  { %1490 = vmatpush.bf16.msrb.mxu0 %v8065_v61  ;;  %1516 = vmatpush.bf16.msra.mxu2 %v8066_v39  ;;  %v1233_v61 = vld [vmem:[#allocation2] sm:$0xc] }
 0x14f   :  { %1491 = vmatpush.bf16.msrb.mxu0 %v8067_v26  ;;  %1517 = vmatpush.bf16.msra.mxu2 %v8068_v17  ;;  %v1020_v42 = vpop.f32.mrf.mxu0  ;;  %v1111_v17 = vpop.f32.mrf.mxu3 }
 0x150   :  { %v1034_v30 = vadd.f32 %v1033_v34, %v1020_v42  ;;  %v1087_v42 = vpop.f32.mrf.mxu1 }
 0x152   :  { %v1240_v56 = vrot.slane %v1034_v30, 6 }
 0x154   :  { %v1248_v43 = vadd.f32 %v1240_v56, %v1232_v59  ;;  %v1234_v59 = vld [vmem:[#allocation2 + $0x18] sm:$0xc] }
 0x155   :  { %v1046_v10 = vpop.f32.mrf.mxu2 }
 0x156   :  { %v1060_v24 = vadd.f32 %v1059_v3, %v1046_v10  ;;  %v4712_v0 = vmul.f32 -1.442695, %v1248_v43 }
 0x157   :  { %v1022_v31 = vpop.f32.mrf.mxu0 }
 0x158   :  { %v1241_v47 = vrot.slane %v1060_v24, 6  ;;  %4984 = vpow2.f32 %v4712_v0  ;;  %v1113_v0 = vpop.f32.mrf.mxu3 }
 0x15a   :  { %v1249_v21 = vadd.f32 %v1241_v47, %v1233_v61 }
 0x15c   :  { %v4713_v39 = vmul.f32 -1.442695, %v1249_v21 }
 0x15d   :  { %v1048_v26 = vpop.f32.mrf.mxu2 }
 0x15e   :  { %4986 = vpow2.f32 %v4713_v39  ;;  %v4985_v30 = vpop.eup %4984 }
 0x15f   :  { %v1072_v6 = vpop.f32.mrf.mxu0  ;;  %v5932_v10 = vadd.f32 1.0, %v4985_v30 }
 0x160   :  { %v1086_v18 = vadd.f32 %v1085_v29, %v1072_v6  ;;  %v1137_v29 = vpop.f32.mrf.mxu1  ;;  %v1163_v30 = vpop.f32.mrf.mxu3 }
 0x161   :  { %vm1273_vm7 = vweird.f32 %v5932_v10 }
 0x162   :  { %v1242_v34 = vrot.slane %v1086_v18, 6 }
 0x164   :  { %v4987_v56 = vpop.eup %4986  ;;  %v1250_v3 = vadd.f32 %v1242_v34, %v1234_v59 }
 0x165   :  { %v5934_v31 = vadd.f32 1.0, %v4987_v56  ;;  %v1098_v43 = vpop.f32.mrf.mxu2 }
 0x166   :  { %v4714_v24 = vmul.f32 -1.442695, %v1250_v3  ;;  %v1112_v61 = vadd.f32 %v1111_v17, %v1098_v43 }
 0x167   :  { %4988 = vrcp.f32 %v5934_v31  ;;  %v1074_v39 = vpop.f32.mrf.mxu0  ;;  %vm1288_vm1 = vweird.f32 %v5934_v31 }
 0x168   :  { %4990 = vpow2.f32 %v4714_v24  ;;  %v1243_v47 = vrot.slane %v1112_v61, 6  ;;  %v1139_v3 = vpop.f32.mrf.mxu1 }
 0x169   :  { %4992 = vrcp.f32 %v5932_v10  ;;  %v5953_v3 = vld [vmem:[%s7692_s4] sm:$0xf] }
 0x16a   :  { %v1251_v21 = vadd.f32 %v1243_v47, %v1235_v4  ;;  %v1165_v4 = vpop.f32.mrf.mxu3  ;;  %v5964_v49 = vperm.slane %v5953_v3, 0 }
 0x16c   :  { %v4715_v18 = vmul.f32 -1.442695, %v1251_v21  ;;  %8070 = vst [vmem:[#allocation120_spill] sm:$0xff] %v5964_v49 }
 0x16d   :  { %v5938_v26 = vpop.eup %4988  ;;  %v1100_v6 = vpop.f32.mrf.mxu2 }
 0x16e   :  { %v4991_v42 = vpop.eup %4990  ;;  %4994 = vpow2.f32 %v4715_v18  ;;  %v1284_v56 = vmul.f32 %v5938_v26, %v5934_v31  ;;  %vm1289_vm2 = vweird.f32 %v5938_v26 }
 0x16f   :  { %v5940_v34 = vpop.eup %4992  ;;  %v1266_v17 = vadd.f32 1.0, %v4991_v42  ;;  %v1124_v59 = vpop.f32.mrf.mxu0  ;;  %vm5978_vm5 = vmor %vm1288_vm1, %vm1289_vm2 }
 0x170   :  { %v1269_v43 = vmul.f32 %v5940_v34, %v5932_v10  ;;  %v1285_v61 = vsub.f32 1.0, %v1284_v56  ;;  %v5955_v25 = vpop.f32.mrf.mxu1  ;;  %vm1274_vm4 = vweird.f32 %v5940_v34 }
 0x171   :  { %4996 = vrcp.f32 %v1266_v17  ;;  %vm1303_vm6 = vweird.f32 %v1266_v17  ;;  %vm1275_vm10 = vmor %vm1273_vm7, %vm1274_vm4 }
 0x172   :  { %v1270_v47 = vsub.f32 1.0, %v1269_v43  ;;  %v1286_v6 = vmul.f32 %v5938_v26, %v1285_v61  ;;  %v1309_v61 = vand.u32 2147483648, %v1266_v17 }
 0x174   :  { %v4995_v24 = vpop.eup %4994  ;;  %v1271_v43 = vmul.f32 %v5940_v34, %v1270_v47  ;;  %v1287_v53 = vadd.f32 %v5938_v26, %v1286_v6  ;;  %v1292_v47 = vand.u32 2147483647, %v5934_v31 }
 0x175   :  { %v5946_v0 = vadd.f32 1.0, %v4995_v24  ;;  %v1150_v39 = vpop.f32.mrf.mxu2  ;;  %v5958_v24 = vperm.slane %v5953_v3, 1 }
 0x176   :  { %v1164_v56 = vadd.f32 %v1163_v30, %v1150_v39  ;;  %v1307_v30 = vand.u32 2147483647, %v1266_v17  ;;  %vm1293_vm11 = vcmp.eq.f32.partialorder %v1292_v47, 8.507059e+37 }
 0x177   :  { %v4997_v21 = vpop.eup %4996  ;;  %4998 = vrcp.f32 %v5946_v0  ;;  %v1126_v18 = vpop.f32.mrf.mxu0  ;;  %8069 = vst [vmem:[#allocation119_spill] sm:$0xff] %v5958_v24  ;;  %vm1318_vm14 = vweird.f32 %v5946_v0 }
 0x178   :  { %v1299_v42 = vmul.f32 %v4997_v21, %v1266_v17  ;;  %v1138_v18 = vadd.f32 %v1137_v29, %v1124_v59  ;;  %vm1304_vm3 = vweird.f32 %v4997_v21  ;;  %v1229_v14 = vadd.f32 %v5958_v24, %v1164_v56  ;;  %v1191_v17 = vpop.f32.mrf.mxu1 }
 0x179   :  { %v1272_v29 = vadd.f32 %v5940_v34, %v1271_v43  ;;  %v1279_v56 = vand.u32 2147483648, %v5932_v10  ;;  %vm1305_vm8 = vmor %vm1303_vm6, %vm1304_vm3  ;;  %v1291_v24 = vsel %vm5978_vm5, %v5938_v26, %v1287_v53  ;;  %vm1308_vm9 = vcmp.eq.f32.partialorder %v1307_v30, 8.507059e+37 }
 0x17a   :  { %v1300_v4 = vsub.f32 1.0, %v1299_v42  ;;  %v1294_v42 = vand.u32 2147483648, %v5934_v31  ;;  %v1228_v43 = vadd.f32 %v5964_v49, %v1138_v18  ;;  %v1277_v31 = vand.u32 2147483647, %v5932_v10 }
 0x17b   :  { %v4718_v7 = vmul.f32 -1.442695, %v1229_v14  ;;  %v1280_v49 = vor.u32 1.1754944e-38, %v1279_v56  ;;  %v1331_v53 = vrot.slane %v5681_v19, 6 }
 0x17c   :  { %v1301_v13 = vmul.f32 %v4997_v21, %v1300_v4  ;;  %v1295_v5 = vor.u32 1.1754944e-38, %v1294_v42  ;;  %v4717_v63 = vmul.f32 -1.442695, %v1228_v43  ;;  %vm1278_vm12 = vcmp.eq.f32.partialorder %v1277_v31, 8.507059e+37 }
 0x17d   :  { %v5967_v39 = vpop.eup %4998  ;;  %v1152_v16 = vpop.f32.mrf.mxu2  ;;  %5000 = vpow2.f32 %v4718_v7  ;;  %v6006_v7 = vperm.slane %v5953_v3, 2 }
 0x17e   :  { %v1302_v6 = vadd.f32 %v4997_v21, %v1301_v13  ;;  %v1314_v4 = vmul.f32 %v5967_v39, %v5946_v0  ;;  %v1310_v16 = vor.u32 1.1754944e-38, %v1309_v61  ;;  %v1276_v61 = vsel %vm1275_vm10, %v5940_v34, %v1272_v29 }
 0x17f   :  { %v1296_v10 = vsel %vm1293_vm11, %v1295_v5, %v1291_v24  ;;  %5002 = vpow2.f32 %v4717_v63  ;;  %vm1319_vm13 = vweird.f32 %v5967_v39  ;;  %v1215_v5 = vpop.f32.mrf.mxu3 }
 0x180   :  { %v1306_v13 = vsel %vm1305_vm8, %v4997_v21, %v1302_v6  ;;  %v1315_v12 = vsub.f32 1.0, %v1314_v4  ;;  %v1281_v21 = vsel %vm1278_vm12, %v1280_v49, %v1276_v61  ;;  %v1333_v59 = vmul.f32 %v1331_v53, %v1296_v10  ;;  %vm1320_vm15 = vmor %vm1318_vm14, %vm1319_vm13 }
 0x181   :  { %v1311_v2 = vsel %vm1308_vm9, %v1310_v16, %v1306_v13  ;;  %v6016_v13 = vperm.slane %v5953_v3, 3 }
 0x182   :  { %v1328_v18 = vmul.f32 2.0, %v1311_v2  ;;  %v1316_v30 = vmul.f32 %v5967_v39, %v1315_v12  ;;  %v1324_v2 = vand.u32 2147483648, %v5946_v0  ;;  %v1322_v12 = vand.u32 2147483647, %v5946_v0 }
 0x183   :  { %v5001_v19 = vpop.eup %5000 }
 0x184   :  { %v4716_v26 = vadd.f32 -1.0, %v1328_v18  ;;  %v1317_v14 = vadd.f32 %v5967_v39, %v1316_v30  ;;  %v1325_v47 = vor.u32 1.1754944e-38, %v1324_v2  ;;  %v6010_v29 = vadd.f32 1.0, %v5001_v19 }
 0x185   :  { %v5003_v49 = vpop.eup %5002  ;;  %vm1323_vm0 = vcmp.eq.f32.partialorder %v1322_v12, 8.507059e+37 }
 0x186   :  { %v1334_v42 = vmul.f32 %v4716_v26, %v1281_v21  ;;  %v1321_v34 = vsel %vm1320_vm15, %v5967_v39, %v1317_v14  ;;  %v6013_v43 = vadd.f32 1.0, %v5003_v49  ;;  %v8074_v49 = vld [vmem:[#allocation96_spill] sm:$0xff]  ;;  %vm1374_vm4 = vweird.f32 %v6010_v29 }
 0x187   :  { %v1326_v16 = vsel %vm1323_vm0, %v1325_v47, %v1321_v34  ;;  %v1217_v17 = vpop.f32.mrf.mxu3 }
 0x188   :  { %v5997_v6 = vadd.f32 %v1334_v42, %v1333_v59  ;;  %vm1359_vm7 = vweird.f32 %v6013_v43 }
 0x18a   :  { %5004 = vtanh.f32 %v5997_v6 }
 0x18b   :  { %5006 = vrcp.f32 %v6010_v29 }
 0x18f   :  { %v1176_v63 = vpop.f32.mrf.mxu0 }
 0x190   :  { %v1190_v24 = vadd.f32 %v5955_v25, %v1176_v63  ;;  %v5005_v56 = vpop.eup %5004  ;;  %v8073_v63 = vld [vmem:[#allocation95_spill] sm:$0xff] }
 0x191   :  { %v1337_v0 = vmul.f32 %v5005_v56, %v1326_v16  ;;  %v6025_v3 = vpop.eup %5006  ;;  %v8075_v56 = vld [vmem:[#allocation99_spill] sm:$0xff]  ;;  %v8076_v16 = vld [vmem:[#allocation100_spill] sm:$0xff] }
 0x192   :  { %v1230_v4 = vadd.f32 %v6006_v7, %v1190_v24  ;;  %v1370_v14 = vmul.f32 %v6025_v3, %v6010_v29  ;;  %vm1375_vm1 = vweird.f32 %v6025_v3 }
 0x193   :  { %v1424_v25 = vpack.c.bf16 %v1337_v0, %v1337_v0  ;;  %vm6059_vm5 = vmor %vm1374_vm4, %vm1375_vm1 }
 0x194   :  { %v4719_v31 = vmul.f32 -1.442695, %v1230_v4  ;;  %v1371_v19 = vsub.f32 1.0, %v1370_v14 }
 0x195   :  { %v1202_v39 = vpop.f32.mrf.mxu2  ;;  %v6020_v10 = vrot.slane %v1424_v25, 1 }
 0x196   :  { %5008 = vpow2.f32 %v4719_v31  ;;  %v1216_v61 = vadd.f32 %v1215_v5, %v1202_v39  ;;  %v1372_v47 = vmul.f32 %v6025_v3, %v1371_v19 }
 0x197   :  { %5010 = vrcp.f32 %v6013_v43  ;;  %v1178_v18 = vpop.f32.mrf.mxu0  ;;  %1440 = vmatmul.bf16.vlgmr.msra.gmra.mxu0 %v6020_v10  ;;  %1466 = vmatmul.bf16.vlgmr.msrb.gmra.mxu2 %v6020_v10 }
 0x198   :  { %v1231_v53 = vadd.f32 %v6016_v13, %v1216_v61  ;;  %1536 = vmatpush.bf16.msra.mxu0 %v5712_v36  ;;  %1562 = vmatpush.bf16.msrb.mxu2 %v5714_v8  ;;  %v1373_v17 = vadd.f32 %v6025_v3, %v1372_v47  ;;  %v1363_v47 = vand.u32 2147483647, %v6013_v43 }
 0x19a   :  { %v4720_v26 = vmul.f32 -1.442695, %v1231_v53  ;;  %v1378_v53 = vand.u32 2147483647, %v6010_v29  ;;  %vm1364_vm12 = vcmp.eq.f32.partialorder %v1363_v47, 8.507059e+37  ;;  %v8083_v47 = vld [vmem:[#allocation67_spill] sm:$0xff] }
 0x19c   :  { %v5009_v21 = vpop.eup %5008  ;;  %5012 = vpow2.f32 %v4720_v26  ;;  %1537 = vmatpush.bf16.msra.mxu0 %v5728_v23  ;;  %1563 = vmatpush.bf16.msrb.mxu2 %v5730_v9  ;;  %v1380_v26 = vand.u32 2147483648, %v6010_v29  ;;  %v1365_v29 = vand.u32 2147483648, %v6013_v43  ;;  %vm1379_vm11 = vcmp.eq.f32.partialorder %v1378_v53, 8.507059e+37 }
 0x19d   :  { %v6029_v30 = vpop.eup %5010  ;;  %v1352_v59 = vadd.f32 1.0, %v5009_v21  ;;  %v1204_v42 = vpop.f32.mrf.mxu2  ;;  %v8077_v21 = vld [vmem:[#allocation102_spill] sm:$0xff] }
 0x19e   :  { %v1355_v2 = vmul.f32 %v6029_v30, %v6013_v43  ;;  %vm1360_vm3 = vweird.f32 %v6029_v30  ;;  %v8078_v42 = vld [vmem:[#allocation103_spill] sm:$0xff] }
 0x19f   :  { %5014 = vrcp.f32 %v1352_v59  ;;  %v1395_v39 = vand.u32 2147483648, %v1352_v59  ;;  %v1393_v61 = vand.u32 2147483647, %v1352_v59  ;;  %vm1389_vm6 = vweird.f32 %v1352_v59  ;;  %vm1361_vm10 = vmor %vm1359_vm7, %vm1360_vm3 }
 0x1a0   :  { %1538 = vmatpush.bf16.msra.mxu0 %v8073_v63  ;;  %1564 = vmatpush.bf16.msrb.mxu2 %v8074_v49  ;;  %v1356_v34 = vsub.f32 1.0, %v1355_v2 }
 0x1a1   :  { %vm1394_vm9 = vcmp.eq.f32.partialorder %v1393_v61, 8.507059e+37 }
 0x1a2   :  { %v5013_v5 = vpop.eup %5012  ;;  %v1357_v0 = vmul.f32 %v6029_v30, %v1356_v34  ;;  %v1396_v34 = vor.u32 1.1754944e-38, %v1395_v39 }
 0x1a3   :  { %v6037_v12 = vadd.f32 1.0, %v5013_v5 }
 0x1a4   :  { %1539 = vmatpush.bf16.msra.mxu0 %v8075_v56  ;;  %1565 = vmatpush.bf16.msrb.mxu2 %v8076_v16  ;;  %v1358_v14 = vadd.f32 %v6029_v30, %v1357_v0  ;;  %v1366_v16 = vor.u32 1.1754944e-38, %v1365_v29 }
 0x1a5   :  { %v5015_v24 = vpop.eup %5014  ;;  %5016 = vrcp.f32 %v6037_v12  ;;  %vm1404_vm14 = vweird.f32 %v6037_v12 }
 0x1a6   :  { %v1385_v4 = vmul.f32 %v5015_v24, %v1352_v59  ;;  %vm1390_vm2 = vweird.f32 %v5015_v24  ;;  %v1381_v59 = vor.u32 1.1754944e-38, %v1380_v26  ;;  %v1362_v39 = vsel %vm1361_vm10, %v6029_v30, %v1358_v14 }
 0x1a7   :  { %1492 = vmatmul.bf16.vlgmr.msrb.gmra.mxu0 %v6020_v10  ;;  %1518 = vmatmul.bf16.vlgmr.msra.gmra.mxu2 %v6020_v10  ;;  %vm1391_vm8 = vmor %vm1389_vm6, %vm1390_vm2  ;;  %v1410_v30 = vand.u32 2147483648, %v6037_v12 }
 0x1a8   :  { %v1386_v31 = vsub.f32 1.0, %v1385_v4  ;;  %1540 = vmatpush.bf16.msra.mxu0 %v8077_v21  ;;  %1566 = vmatpush.bf16.msrb.mxu2 %v8078_v42  ;;  %v1377_v4 = vsel %vm6059_vm5, %v6025_v3, %v1373_v17  ;;  %v8081_v42 = vld [vmem:[#allocation106_spill] sm:$0xff]  ;;  %v8082_v21 = vld [vmem:[#allocation107_spill] sm:$0xff] }
 0x1a9   :  { %v1382_v56 = vsel %vm1379_vm11, %v1381_v59, %v1377_v4  ;;  %v1411_v53 = vor.u32 1.1754944e-38, %v1410_v30  ;;  %v8084_v4 = vld [vmem:[#allocation76_spill] sm:$0xff]  ;;  %v8086_v59 = vld [vmem:[#allocation78_spill] sm:$0xff]  ;;  %v8097_v30 = vld [vmem:[#allocation25_spill] sm:$0xff] }
 0x1aa   :  { %v1387_v25 = vmul.f32 %v5015_v24, %v1386_v31  ;;  %v1416_v61 = vmul.f32 0.0, %v1382_v56  ;;  %v1408_v56 = vand.u32 2147483647, %v6037_v12 }
 0x1ab   :  { %v5017_v18 = vpop.eup %5016 }
 0x1ac   :  { %v1388_v5 = vadd.f32 %v5015_v24, %v1387_v25  ;;  %v1400_v19 = vmul.f32 %v5017_v18, %v6037_v12  ;;  %1541 = vmatpush.bf16.msra.mxu0 %v8081_v42  ;;  %1567 = vmatpush.bf16.msrb.mxu2 %v8082_v21  ;;  %vm1405_vm13 = vweird.f32 %v5017_v18  ;;  %vm1409_vm0 = vcmp.eq.f32.partialorder %v1408_v56, 8.507059e+37  ;;  %v8099_v56 = vld [vmem:[#allocation90_spill] sm:$0xff] }
 0x1ad   :  { %vm1406_vm15 = vmor %vm1404_vm14, %vm1405_vm13 }
 0x1ae   :  { %v1392_v0 = vsel %vm1391_vm8, %v5015_v24, %v1388_v5  ;;  %v1401_v25 = vsub.f32 1.0, %v1400_v19  ;;  %v1367_v24 = vsel %vm1364_vm12, %v1366_v16, %v1362_v39  ;;  %v8089_v39 = vld [vmem:[#allocation77_spill] sm:$0xff] }
 0x1af   :  { %v1397_v31 = vsel %vm1394_vm9, %v1396_v34, %v1392_v0  ;;  %v8085_v0 = vld [vmem:[#allocation71_spill] sm:$0xff] }
 0x1b0   :  { %v1414_v43 = vmul.f32 2.0, %v1397_v31  ;;  %v1402_v17 = vmul.f32 %v5017_v18, %v1401_v25  ;;  %1542 = vmatpush.bf16.msra.mxu0 %v5791_v38  ;;  %1568 = vmatpush.bf16.msrb.mxu2 %v5793_v41  ;;  %v8087_v31 = vld [vmem:[#allocation75_spill] sm:$0xff]  ;;  %v8088_v25 = vld [vmem:[#allocation80_spill] sm:$0xff] }
 0x1b2   :  { %v4721_v3 = vadd.f32 -1.0, %v1414_v43  ;;  %v1403_v5 = vadd.f32 %v5017_v18, %v1402_v17  ;;  %v8090_v43 = vld [vmem:[#allocation82_spill] sm:$0xff]  ;;  %v8093_v17 = vld [vmem:[#allocation81_spill] sm:$0xff] }
 0x1b4   :  { %v1417_v26 = vmul.f32 %v4721_v3, %v1367_v24  ;;  %1543 = vmatpush.bf16.msra.mxu0 %v5802_v28  ;;  %1569 = vmatpush.bf16.msrb.mxu2 %v5804_v48  ;;  %v1407_v16 = vsel %vm1406_vm15, %v5017_v18, %v1403_v5  ;;  %v8091_v3 = vld [vmem:[#allocation79_spill] sm:$0xff]  ;;  %v8092_v24 = vld [vmem:[#allocation84_spill] sm:$0xff] }
 0x1b5   :  { %v1412_v19 = vsel %vm1409_vm0, %v1411_v53, %v1407_v16  ;;  %v8096_v5 = vld [vmem:[#allocation88_spill] sm:$0xff]  ;;  %v8100_v16 = vld [vmem:[#allocation87_spill] sm:$0xff] }
 0x1b6   :  { %v6078_v2 = vadd.f32 %v1417_v26, %v1416_v61  ;;  %v8094_v61 = vld [vmem:[#allocation86_spill] sm:$0xff]  ;;  %v8095_v26 = vld [vmem:[#allocation83_spill] sm:$0xff]  ;;  %v8101_v53 = vld [vmem:[#allocation92_spill] sm:$0xff] }
 0x1b7   :  { %1544 = vmatmul.bf16.vlgmr.msra.gmra.mxu0 %v6020_v10  ;;  %1570 = vmatmul.bf16.vlgmr.msrb.gmra.mxu2 %v6020_v10 }
 0x1b8   :  { %5018 = vtanh.f32 %v6078_v2  ;;  %1588 = vmatpush.bf16.msrb.mxu0 %v5806_v60  ;;  %1614 = vmatpush.bf16.msra.mxu2 %v5808_v45 }
 0x1bc   :  { %1589 = vmatpush.bf16.msrb.mxu0 %v5819_v55  ;;  %1615 = vmatpush.bf16.msra.mxu2 %v5821_v52 }
 0x1be   :  { %v5019_v14 = vpop.eup %5018 }
 0x1bf   :  { %v1420_v29 = vmul.f32 %v5019_v14, %v1412_v19  ;;  %v8102_v14 = vld [vmem:[#allocation27_spill] sm:$0xff]  ;;  %v8103_v19 = vld [vmem:[#allocation29_spill] sm:$0xff] }
 0x1c0   :  { %1590 = vmatpush.bf16.msrb.mxu0 %v5831_v15  ;;  %1616 = vmatpush.bf16.msra.mxu2 %v5833_v32 }
 0x1c1   :  { %v1422_v12 = vrot.slane %v1420_v29, 6  ;;  %v8104_v29 = vld [vmem:[#allocation89_spill] sm:$0xff] }
 0x1c3   :  { %v1425_v34 = vpack.c.bf16 %v1422_v12, %v1422_v12  ;;  %v8105_v12 = vld [vmem:[#allocation94_spill] sm:$0xff] }
 0x1c4   :  { %1591 = vmatpush.bf16.msrb.mxu0 %v5840_v44  ;;  %1617 = vmatpush.bf16.msra.mxu2 %v5842_v1 }
 0x1c5   :  { %v6096_v18 = vrot.slane %v1425_v34, 1  ;;  %v8106_v34 = vld [vmem:[#allocation31_spill] sm:$0xff] }
 0x1c7   :  { %1453 = vmatmul.bf16.vlgmr.msra.gmra.mxu1 %v6096_v18  ;;  %1479 = vmatmul.bf16.vlgmr.msrb.gmra.mxu3 %v6096_v18 }
 0x1c8   :  { %1549 = vmatpush.bf16.msra.mxu1 %v8083_v47  ;;  %1575 = vmatpush.bf16.msrb.mxu3 %v8084_v4 }
 0x1c9   :  { %1592 = vmatpush.bf16.msrb.mxu0 %v5849_v37  ;;  %1618 = vmatpush.bf16.msra.mxu2 %v5851_v57 }
 0x1cc   :  { %1550 = vmatpush.bf16.msra.mxu1 %v8085_v0  ;;  %1576 = vmatpush.bf16.msrb.mxu3 %v8086_v59 }
 0x1cd   :  { %1593 = vmatpush.bf16.msrb.mxu0 %v5857_v35  ;;  %1619 = vmatpush.bf16.msra.mxu2 %v5859_v50 }
 0x1d0   :  { %1551 = vmatpush.bf16.msra.mxu1 %v8087_v31  ;;  %1577 = vmatpush.bf16.msrb.mxu3 %v8088_v25 }
 0x1d1   :  { %1594 = vmatpush.bf16.msrb.mxu0 %v5865_v62  ;;  %1620 = vmatpush.bf16.msra.mxu2 %v5867_v54 }
 0x1d4   :  { %1552 = vmatpush.bf16.msra.mxu1 %v8089_v39  ;;  %1578 = vmatpush.bf16.msrb.mxu3 %v8090_v43 }
 0x1d5   :  { %1595 = vmatpush.bf16.msrb.mxu0 %v5874_v11  ;;  %1621 = vmatpush.bf16.msra.mxu2 %v5876_v20 }
 0x1d7   :  { %1505 = vmatmul.bf16.vlgmr.msrb.gmra.mxu1 %v6096_v18  ;;  %1531 = vmatmul.bf16.vlgmr.msra.gmra.mxu3 %v6096_v18 }
 0x1d8   :  { %1553 = vmatpush.bf16.msra.mxu1 %v8091_v3  ;;  %1579 = vmatpush.bf16.msrb.mxu3 %v8092_v24 }
 0x1d9   :  { %1844 = vmatpush.bf16.msra.mxu0 %v5387_v22  ;;  %1870 = vmatpush.bf16.msrb.mxu2 %v5391_v27 }
 0x1da   :  { %1596 = vmatmul.bf16.vlgmr.msrb.gmra.mxu0 %v6020_v10  ;;  %1622 = vmatmul.bf16.vlgmr.msra.gmra.mxu2 %v6020_v10  ;;  %v8098_v10 = vld [vmem:[#allocation85_spill] sm:$0xff] }
 0x1dc   :  { %1554 = vmatpush.bf16.msra.mxu1 %v8093_v17  ;;  %1580 = vmatpush.bf16.msrb.mxu3 %v8094_v61 }
 0x1dd   :  { %1845 = vmatpush.bf16.msra.mxu0 %v5399_v33  ;;  %1871 = vmatpush.bf16.msrb.mxu2 %v5404_v40 }
 0x1e0   :  { %1555 = vmatpush.bf16.msra.mxu1 %v8095_v26  ;;  %1581 = vmatpush.bf16.msrb.mxu3 %v8096_v5  ;;  %v8160_v26 = vld [vmem:[#allocation44_spill] sm:$0xff] }
 0x1e1   :  { %1846 = vmatpush.bf16.msra.mxu0 %v5410_v46  ;;  %1872 = vmatpush.bf16.msrb.mxu2 %v5415_v51  ;;  %v8164_v51 = vld [vmem:[#allocation52_spill] sm:$0xff] }
 0x1e4   :  { %1556 = vmatpush.bf16.msra.mxu1 %v8098_v10  ;;  %1582 = vmatpush.bf16.msrb.mxu3 %v8099_v56  ;;  %v8107_v10 = vld [vmem:[#allocation33_spill] sm:$0xff]  ;;  %v8108_v56 = vld [vmem:[#allocation91_spill] sm:$0xff] }
 0x1e5   :  { %1847 = vmatpush.bf16.msra.mxu0 %v5422_v58  ;;  %1873 = vmatpush.bf16.msrb.mxu2 %v8097_v30  ;;  %v8113_v30 = vld [vmem:[#allocation104_spill] sm:$0xff] }
 0x1e6   :  { %v8114_v58 = vld [vmem:[#allocation40_spill] sm:$0xff] }
 0x1e7   :  { %1557 = vmatmul.bf16.vlgmr.msra.gmra.mxu1 %v6096_v18  ;;  %1583 = vmatmul.bf16.vlgmr.msrb.gmra.mxu3 %v6096_v18 }
 0x1e8   :  { %1601 = vmatpush.bf16.msrb.mxu1 %v8100_v16  ;;  %1627 = vmatpush.bf16.msra.mxu3 %v8101_v53  ;;  %v8109_v16 = vld [vmem:[#allocation98_spill] sm:$0xff]  ;;  %v8110_v53 = vld [vmem:[#allocation36_spill] sm:$0xff] }
 0x1e9   :  { %1848 = vmatpush.bf16.msra.mxu0 %v8102_v14  ;;  %1874 = vmatpush.bf16.msrb.mxu2 %v8103_v19  ;;  %v8111_v14 = vld [vmem:[#allocation37_spill] sm:$0xff] }
 0x1ea   :  { %v8112_v19 = vld [vmem:[#allocation93_spill] sm:$0xff] }
 0x1ec   :  { %1602 = vmatpush.bf16.msrb.mxu1 %v8104_v29  ;;  %1628 = vmatpush.bf16.msra.mxu3 %v8105_v12  ;;  %v8115_v29 = vld [vmem:[#allocation41_spill] sm:$0xff]  ;;  %v8116_v12 = vld [vmem:[#allocation43_spill] sm:$0xff] }
 0x1ed   :  { %1849 = vmatpush.bf16.msra.mxu0 %v8106_v34  ;;  %1875 = vmatpush.bf16.msrb.mxu2 %v8107_v10  ;;  %v8117_v34 = vld [vmem:[#allocation45_spill] sm:$0xff] }
 0x1ee   :  { %v8118_v10 = vld [vmem:[#allocation97_spill] sm:$0xff] }
 0x1f0   :  { %1603 = vmatpush.bf16.msrb.mxu1 %v8108_v56  ;;  %1629 = vmatpush.bf16.msra.mxu3 %v8109_v16  ;;  %v8119_v56 = vld [vmem:[#allocation108_spill] sm:$0xff]  ;;  %v8120_v16 = vld [vmem:[#allocation47_spill] sm:$0xff] }
 0x1f1   :  { %1850 = vmatpush.bf16.msra.mxu0 %v8110_v53  ;;  %1876 = vmatpush.bf16.msrb.mxu2 %v8111_v14  ;;  %v8121_v53 = vld [vmem:[#allocation49_spill] sm:$0xff] }
 0x1f2   :  { %v8122_v14 = vld [vmem:[#allocation101_spill] sm:$0xff] }
 0x1f4   :  { %1604 = vmatpush.bf16.msrb.mxu1 %v8112_v19  ;;  %1630 = vmatpush.bf16.msra.mxu3 %v8113_v30  ;;  %v8123_v19 = vld [vmem:[#allocation110_spill] sm:$0xff]  ;;  %v8124_v30 = vld [vmem:[#allocation51_spill] sm:$0xff] }
 0x1f5   :  { %1851 = vmatpush.bf16.msra.mxu0 %v8114_v58  ;;  %1877 = vmatpush.bf16.msrb.mxu2 %v8115_v29  ;;  %v8125_v58 = vld [vmem:[#allocation53_spill] sm:$0xff] }
 0x1f6   :  { %v8126_v29 = vld [vmem:[#allocation105_spill] sm:$0xff] }
 0x1f8   :  { %1605 = vmatpush.bf16.msrb.mxu1 %v8118_v10  ;;  %1631 = vmatpush.bf16.msra.mxu3 %v8119_v56  ;;  %v8129_v10 = vld [vmem:[#allocation57_spill] sm:$0xff] }
 0x1f9   :  { %1896 = vmatpush.bf16.msrb.mxu0 %v8116_v12  ;;  %1922 = vmatpush.bf16.msra.mxu2 %v8117_v34  ;;  %v8127_v12 = vld [vmem:[#allocation111_spill] sm:$0xff]  ;;  %v8130_v56 = vld [vmem:[#allocation109_spill] sm:$0xff] }
 0x1fa   :  { %v8128_v34 = vld [vmem:[#allocation55_spill] sm:$0xff] }
 0x1fc   :  { %1606 = vmatpush.bf16.msrb.mxu1 %v8122_v14  ;;  %1632 = vmatpush.bf16.msra.mxu3 %v8123_v19  ;;  %v8133_v14 = vld [vmem:[#allocation14_spill] sm:$0xff]  ;;  %v8134_v19 = vld [vmem:[#allocation59_spill] sm:$0xff] }
 0x1fd   :  { %1897 = vmatpush.bf16.msrb.mxu0 %v8120_v16  ;;  %1923 = vmatpush.bf16.msra.mxu2 %v8121_v53  ;;  %v8131_v16 = vld [vmem:[#allocation112_spill] sm:$0xff]  ;;  %v8132_v53 = vld [vmem:[#allocation9_spill] sm:$0xff] }
 0x200   :  { %1607 = vmatpush.bf16.msrb.mxu1 %v8126_v29  ;;  %1633 = vmatpush.bf16.msra.mxu3 %v8127_v12  ;;  %v8136_v12 = vld [vmem:[#allocation10_spill] sm:$0xff] }
 0x201   :  { %1898 = vmatpush.bf16.msrb.mxu0 %v8124_v30  ;;  %1924 = vmatpush.bf16.msra.mxu2 %v8125_v58  ;;  %v8135_v30 = vld [vmem:[#allocation61_spill] sm:$0xff]  ;;  %v8145_v29 = vld [vmem:[#allocation26_spill] sm:$0xff]  ;;  %v8154_v58 = vld [vmem:[#allocation32_spill] sm:$0xff] }
 0x204   :  { %1608 = vmatpush.bf16.msrb.mxu1 %v8130_v56  ;;  %1634 = vmatpush.bf16.msra.mxu3 %v8131_v16  ;;  %v8139_v56 = vld [vmem:[#allocation65_spill] sm:$0xff]  ;;  %v8140_v16 = vld [vmem:[#allocation12_spill] sm:$0xff] }
 0x205   :  { %1899 = vmatpush.bf16.msrb.mxu0 %v8128_v34  ;;  %1925 = vmatpush.bf16.msra.mxu2 %v8129_v10  ;;  %v8137_v34 = vld [vmem:[#allocation18_spill] sm:$0xff]  ;;  %v8138_v10 = vld [vmem:[#allocation63_spill] sm:$0xff] }
 0x207   :  { %1609 = vmatmul.bf16.vlgmr.msrb.gmra.mxu1 %v6096_v18  ;;  %1635 = vmatmul.bf16.vlgmr.msra.gmra.mxu3 %v6096_v18  ;;  %v8146_v18 = vld [vmem:[#allocation72_spill] sm:$0xff] }
 0x208   :  { %1857 = vmatpush.bf16.msra.mxu1 %v8132_v53  ;;  %1883 = vmatpush.bf16.msrb.mxu3 %v8133_v14  ;;  %v8141_v53 = vld [vmem:[#allocation22_spill] sm:$0xff]  ;;  %v8142_v14 = vld [vmem:[#allocation68_spill] sm:$0xff] }
 0x209   :  { %1900 = vmatpush.bf16.msrb.mxu0 %v8134_v19  ;;  %1926 = vmatpush.bf16.msra.mxu2 %v8135_v30  ;;  %v8143_v19 = vld [vmem:[#allocation69_spill] sm:$0xff]  ;;  %v8144_v30 = vld [vmem:[#allocation16_spill] sm:$0xff] }
 0x20c   :  { %1858 = vmatpush.bf16.msra.mxu1 %v8136_v12  ;;  %1884 = vmatpush.bf16.msrb.mxu3 %v8137_v34  ;;  %v8147_v12 = vld [vmem:[#allocation73_spill] sm:$0xff]  ;;  %v8148_v34 = vld [vmem:[#allocation20_spill] sm:$0xff] }
 0x20d   :  { %1901 = vmatpush.bf16.msrb.mxu0 %v8138_v10  ;;  %1927 = vmatpush.bf16.msra.mxu2 %v8139_v56  ;;  %v8149_v10 = vld [vmem:[#allocation30_spill] sm:$0xff]  ;;  %v8150_v56 = vld [vmem:[#allocation24_spill] sm:$0xff] }
 0x210   :  { %1859 = vmatpush.bf16.msra.mxu1 %v8140_v16  ;;  %1885 = vmatpush.bf16.msrb.mxu3 %v8141_v53  ;;  %v8151_v16 = vld [vmem:[#allocation34_spill] sm:$0xff] }
 0x211   :  { %1902 = vmatpush.bf16.msrb.mxu0 %v8142_v14  ;;  %1928 = vmatpush.bf16.msra.mxu2 %v8143_v19  ;;  %v8152_v14 = vld [vmem:[#allocation28_spill] sm:$0xff]  ;;  %v8153_v19 = vld [vmem:[#allocation38_spill] sm:$0xff] }
 0x214   :  { %1860 = vmatpush.bf16.msra.mxu1 %v8144_v30  ;;  %1886 = vmatpush.bf16.msrb.mxu3 %v8145_v29  ;;  %v1441_v53 = vpop.f32.mrf.mxu0  ;;  %v8155_v29 = vld [vmem:[#allocation42_spill] sm:$0xff] }
 0x215   :  { %1903 = vmatpush.bf16.msrb.mxu0 %v8146_v18  ;;  %1929 = vmatpush.bf16.msra.mxu2 %v8147_v12  ;;  %v8156_v12 = vld [vmem:[#allocation35_spill] sm:$0xff] }
 0x218   :  { %1861 = vmatpush.bf16.msra.mxu1 %v8148_v34  ;;  %1887 = vmatpush.bf16.msrb.mxu3 %v8149_v10  ;;  %v8157_v34 = vld [vmem:[#allocation46_spill] sm:$0xff]  ;;  %v8158_v10 = vld [vmem:[#allocation39_spill] sm:$0xff] }
 0x21a   :  { %v1467_v30 = vpop.f32.mrf.mxu2 }
 0x21c   :  { %1862 = vmatpush.bf16.msra.mxu1 %v8150_v56  ;;  %1888 = vmatpush.bf16.msrb.mxu3 %v8151_v16  ;;  %v1443_v18 = vpop.f32.mrf.mxu0  ;;  %v8159_v56 = vld [vmem:[#allocation50_spill] sm:$0xff] }
 0x220   :  { %1863 = vmatpush.bf16.msra.mxu1 %v8152_v14  ;;  %1889 = vmatpush.bf16.msrb.mxu3 %v8153_v19  ;;  %v8161_v14 = vld [vmem:[#allocation54_spill] sm:$0xff]  ;;  %v8162_v19 = vld [vmem:[#allocation48_spill] sm:$0xff] }
 0x222   :  { %v1469_v16 = vpop.f32.mrf.mxu2 }
 0x224   :  { %1864 = vmatpush.bf16.msra.mxu1 %v8154_v58  ;;  %1890 = vmatpush.bf16.msrb.mxu3 %v8155_v29  ;;  %v1493_v5 = vpop.f32.mrf.mxu0  ;;  %v8163_v58 = vld [vmem:[#allocation58_spill] sm:$0xff] }
 0x228   :  { %1909 = vmatpush.bf16.msrb.mxu1 %v8156_v12  ;;  %1935 = vmatpush.bf16.msra.mxu3 %v8157_v34  ;;  %v8165_v12 = vld [vmem:[#allocation62_spill] sm:$0xff]  ;;  %v8166_v34 = vld [vmem:[#allocation56_spill] sm:$0xff] }
 0x22a   :  { %v1519_v29 = vpop.f32.mrf.mxu2 }
 0x22c   :  { %1910 = vmatpush.bf16.msrb.mxu1 %v8158_v10  ;;  %1936 = vmatpush.bf16.msra.mxu3 %v8159_v56  ;;  %v1495_v18 = vpop.f32.mrf.mxu0  ;;  %v8167_v10 = vld [vmem:[#allocation66_spill] sm:$0xff] }
 0x230   :  { %1911 = vmatpush.bf16.msrb.mxu1 %v8160_v26  ;;  %1937 = vmatpush.bf16.msra.mxu3 %v8161_v14  ;;  %v8168_v26 = vld [vmem:[#allocation60_spill] sm:$0xff]  ;;  %v8169_v14 = vld [vmem:[#allocation70_spill] sm:$0xff] }
 0x232   :  { %v1521_v16 = vpop.f32.mrf.mxu2 }
 0x234   :  { %1912 = vmatpush.bf16.msrb.mxu1 %v8162_v19  ;;  %1938 = vmatpush.bf16.msra.mxu3 %v8163_v58  ;;  %v6208_v56 = vpop.f32.mrf.mxu0  ;;  %v8170_v19 = vld [vmem:[#allocation64_spill] sm:$0xff]  ;;  %v8171_v58 = vld [vmem:[#allocation74_spill] sm:$0xff] }
 0x238   :  { %1913 = vmatpush.bf16.msrb.mxu1 %v8164_v51  ;;  %1939 = vmatpush.bf16.msra.mxu3 %v8165_v12 }
 0x23a   :  { %v1571_v18 = vpop.f32.mrf.mxu2 }
 0x23c   :  { %1914 = vmatpush.bf16.msrb.mxu1 %v8166_v34  ;;  %1940 = vmatpush.bf16.msra.mxu3 %v8167_v10  ;;  %v1547_v46 = vpop.f32.mrf.mxu0  ;;  %v1644_v34 = vld [vmem:[#allocation2 + $0x30] sm:$0x30] }
 0x240   :  { %1915 = vmatpush.bf16.msrb.mxu1 %v8168_v26  ;;  %1941 = vmatpush.bf16.msra.mxu3 %v8169_v14  ;;  %v1645_v26 = vld [vmem:[#allocation2] sm:$0x30] }
 0x242   :  { %v1573_v12 = vpop.f32.mrf.mxu2 }
 0x244   :  { %1916 = vmatpush.bf16.msrb.mxu1 %v8170_v19  ;;  %1942 = vmatpush.bf16.msra.mxu3 %v8171_v58  ;;  %v1454_v51 = vpop.f32.mrf.mxu1 }
 0x245   :  { %v1455_v61 = vadd.f32 %v1454_v51, %v1441_v53 }
 0x247   :  { %v1652_v17 = vrot.slane %v1455_v61, 4  ;;  %v1646_v61 = vld [vmem:[#allocation2 + $0x18] sm:$0x30] }
 0x249   :  { %v1660_v40 = vadd.f32 %v1652_v17, %v1644_v34 }
 0x24a   :  { %v1480_v10 = vpop.f32.mrf.mxu3 }
 0x24b   :  { %v1481_v16 = vadd.f32 %v1480_v10, %v1467_v30  ;;  %v4722_v24 = vmul.f32 -1.442695, %v1660_v40 }
 0x24c   :  { %v1456_v33 = vpop.f32.mrf.mxu1 }
 0x24d   :  { %v1653_v3 = vrot.slane %v1481_v16, 4  ;;  %5020 = vpow2.f32 %v4722_v24 }
 0x24f   :  { %v1661_v27 = vadd.f32 %v1653_v3, %v1645_v26 }
 0x251   :  { %v4723_v14 = vmul.f32 -1.442695, %v1661_v27 }
 0x252   :  { %v1482_v19 = vpop.f32.mrf.mxu3 }
 0x253   :  { %5022 = vpow2.f32 %v4723_v14  ;;  %v5021_v46 = vpop.eup %5020 }
 0x254   :  { %v1506_v58 = vpop.f32.mrf.mxu1  ;;  %v6216_v12 = vadd.f32 1.0, %v5021_v46 }
 0x255   :  { %v1507_v22 = vadd.f32 %v1506_v58, %v1493_v5  ;;  %v1647_v5 = vld [vmem:[#allocation2 + $0x10] sm:$0x30] }
 0x256   :  { %vm1685_vm7 = vweird.f32 %v6216_v12 }
 0x257   :  { %v1654_v20 = vrot.slane %v1507_v22, 4  ;;  %v6214_v51 = vpop.f32.mrf.mxu0 }
 0x259   :  { %v5023_v53 = vpop.eup %5022  ;;  %v1662_v17 = vadd.f32 %v1654_v20, %v1646_v61 }
 0x25a   :  { %v6218_v33 = vadd.f32 1.0, %v5023_v53  ;;  %v1532_v27 = vpop.f32.mrf.mxu3 }
 0x25b   :  { %v4724_v40 = vmul.f32 -1.442695, %v1662_v17  ;;  %v1533_v22 = vadd.f32 %v1532_v27, %v1519_v29 }
 0x25c   :  { %5024 = vrcp.f32 %v6218_v33  ;;  %v1508_v3 = vpop.f32.mrf.mxu1  ;;  %vm1700_vm3 = vweird.f32 %v6218_v33 }
 0x25d   :  { %5026 = vpow2.f32 %v4724_v40  ;;  %v6221_v24 = vpop.f32.mrf.mxu2  ;;  %v1655_v26 = vrot.slane %v1533_v22, 4 }
 0x25e   :  { %5028 = vrcp.f32 %v6216_v12 }
 0x25f   :  { %v1599_v58 = vpop.f32.mrf.mxu0  ;;  %v1663_v20 = vadd.f32 %v1655_v26, %v1647_v5 }
 0x261   :  { %v4725_v34 = vmul.f32 -1.442695, %v1663_v20 }
 0x262   :  { %v6224_v30 = vpop.eup %5024  ;;  %v1534_v46 = vpop.f32.mrf.mxu3 }
 0x263   :  { %v5027_v10 = vpop.eup %5026  ;;  %v1696_v16 = vmul.f32 %v6224_v30, %v6218_v33  ;;  %vm1701_vm1 = vweird.f32 %v6224_v30 }
 0x264   :  { %v6226_v14 = vpop.eup %5028  ;;  %v1678_v19 = vadd.f32 1.0, %v5027_v10  ;;  %v1558_v53 = vpop.f32.mrf.mxu1  ;;  %vm6246_vm5 = vmor %vm1700_vm3, %vm1701_vm1 }
 0x265   :  { %v1625_v61 = vpop.f32.mrf.mxu2  ;;  %v1681_v29 = vmul.f32 %v6226_v14, %v6216_v12  ;;  %v1697_v17 = vsub.f32 1.0, %v1696_v16  ;;  %vm1686_vm4 = vweird.f32 %v6226_v14 }
 0x266   :  { %5030 = vrcp.f32 %v1678_v19  ;;  %v1721_v11 = vand.u32 2147483648, %v1678_v19  ;;  %vm1715_vm6 = vweird.f32 %v1678_v19  ;;  %vm6259_vm10 = vmor %vm1685_vm7, %vm1686_vm4 }
 0x267   :  { %5032 = vpow2.f32 %v4725_v34  ;;  %v1682_v40 = vsub.f32 1.0, %v1681_v29  ;;  %v1698_v22 = vmul.f32 %v6224_v30, %v1697_v17  ;;  %v1559_v34 = vadd.f32 %v1558_v53, %v6208_v56 }
 0x268   :  { %v1719_v17 = vand.u32 2147483647, %v1678_v19  ;;  %v1691_v53 = vand.u32 2147483648, %v6216_v12 }
 0x269   :  { %v1683_v10 = vmul.f32 %v6226_v14, %v1682_v40  ;;  %v1699_v16 = vadd.f32 %v6224_v30, %v1698_v22  ;;  %v1706_v40 = vand.u32 2147483648, %v6218_v33  ;;  %v1722_v22 = vor.u32 1.1754944e-38, %v1721_v11 }
 0x26a   :  { %v1584_v26 = vpop.f32.mrf.mxu3  ;;  %vm1720_vm9 = vcmp.eq.f32.partialorder %v1719_v17, 8.507059e+37  ;;  %v1743_v17 = vrot.slane %v5997_v6, 6 }
 0x26b   :  { %v1585_v20 = vadd.f32 %v1584_v26, %v1571_v18  ;;  %v1704_v18 = vand.u32 2147483647, %v6218_v33  ;;  %v1684_v26 = vadd.f32 %v6226_v14, %v1683_v10  ;;  %v1703_v10 = vsel %vm6246_vm5, %v6224_v30, %v1699_v16 }
 0x26c   :  { %v5031_v3 = vpop.eup %5030  ;;  %v1560_v61 = vpop.f32.mrf.mxu1 }
 0x26d   :  { %v5033_v27 = vpop.eup %5032  ;;  %v1711_v58 = vmul.f32 %v5031_v3, %v1678_v19  ;;  %vm1716_vm2 = vweird.f32 %v5031_v3  ;;  %vm1705_vm11 = vcmp.eq.f32.partialorder %v1704_v18, 8.507059e+37 }
 0x26e   :  { %v6233_v5 = vadd.f32 1.0, %v5033_v27  ;;  %v8172_v27 = vld [vmem:[#allocation119_spill] sm:$0xff]  ;;  %vm1717_vm8 = vmor %vm1715_vm6, %vm1716_vm2 }
 0x26f   :  { %v1712_v46 = vsub.f32 1.0, %v1711_v58  ;;  %v1641_v58 = vadd.f32 %v1585_v20, %v8172_v27  ;;  %v1689_v20 = vand.u32 2147483647, %v6216_v12  ;;  %v1688_v12 = vsel %vm6259_vm10, %v6226_v14, %v1684_v26 }
 0x270   :  { %5034 = vrcp.f32 %v6233_v5  ;;  %v1736_v18 = vand.u32 2147483648, %v6233_v5  ;;  %vm1730_vm14 = vweird.f32 %v6233_v5  ;;  %v1734_v6 = vand.u32 2147483647, %v6233_v5 }
 0x271   :  { %v1713_v29 = vmul.f32 %v5031_v3, %v1712_v46  ;;  %v8175_v46 = vld [vmem:[#allocation120_spill] sm:$0xff]  ;;  %v4728_v54 = vmul.f32 -1.442695, %v1641_v58  ;;  %vm1690_vm12 = vcmp.eq.f32.partialorder %v1689_v20, 8.507059e+37 }
 0x272   :  { %v1640_v33 = vadd.f32 %v1559_v34, %v8175_v46  ;;  %v1586_v43 = vpop.f32.mrf.mxu3  ;;  %v1737_v20 = vor.u32 1.1754944e-38, %v1736_v18  ;;  %vm1735_vm0 = vcmp.eq.f32.partialorder %v1734_v6, 8.507059e+37 }
 0x273   :  { %v1714_v56 = vadd.f32 %v5031_v3, %v1713_v29  ;;  %v1707_v29 = vor.u32 1.1754944e-38, %v1706_v40  ;;  %5036 = vpow2.f32 %v4728_v54 }
 0x274   :  { %v4727_v16 = vmul.f32 -1.442695, %v1640_v33 }
 0x275   :  { %v1718_v27 = vsel %vm1717_vm8, %v5031_v3, %v1714_v56  ;;  %v1692_v3 = vor.u32 1.1754944e-38, %v1691_v53  ;;  %v1708_v43 = vsel %vm1705_vm11, %v1707_v29, %v1703_v10 }
 0x276   :  { %v5035_v39 = vpop.eup %5034  ;;  %v1723_v11 = vsel %vm1720_vm9, %v1722_v22, %v1718_v27  ;;  %v1745_v40 = vmul.f32 %v1743_v17, %v1708_v43  ;;  %5038 = vpow2.f32 %v4727_v16 }
 0x277   :  { %v1740_v34 = vmul.f32 2.0, %v1723_v11  ;;  %v1726_v30 = vmul.f32 %v5035_v39, %v6233_v5  ;;  %v1693_v46 = vsel %vm1690_vm12, %v1692_v3, %v1688_v12  ;;  %vm1731_vm13 = vweird.f32 %v5035_v39 }
 0x278   :  { %vm1732_vm15 = vmor %vm1730_vm14, %vm1731_vm13 }
 0x279   :  { %v4726_v61 = vadd.f32 -1.0, %v1740_v34  ;;  %v1727_v56 = vsub.f32 1.0, %v1726_v30  ;;  %v5037_v26 = vpop.eup %5036 }
 0x27a   :  { %v6275_v10 = vadd.f32 1.0, %v5037_v26 }
 0x27b   :  { %v1746_v27 = vmul.f32 %v4726_v61, %v1693_v46  ;;  %v1728_v58 = vmul.f32 %v5035_v39, %v1727_v56 }
 0x27c   :  { %v5039_v54 = vpop.eup %5038  ;;  %vm1786_vm4 = vweird.f32 %v6275_v10 }
 0x27d   :  { %v6268_v22 = vadd.f32 %v1746_v27, %v1745_v40  ;;  %v1729_v14 = vadd.f32 %v5035_v39, %v1728_v58  ;;  %v6278_v12 = vadd.f32 1.0, %v5039_v54 }
 0x27f   :  { %5040 = vtanh.f32 %v6268_v22  ;;  %v1733_v33 = vsel %vm1732_vm15, %v5035_v39, %v1729_v14  ;;  %vm1771_vm7 = vweird.f32 %v6278_v12 }
 0x280   :  { %v1738_v11 = vsel %vm1735_vm0, %v1737_v20, %v1733_v33  ;;  %5042 = vrcp.f32 %v6275_v10  ;;  %v8178_v20 = vld [vmem:[#allocation99_spill] sm:$0xff] }
 0x284   :  { %v1610_v53 = vpop.f32.mrf.mxu1 }
 0x285   :  { %v1611_v46 = vadd.f32 %v1610_v53, %v6214_v51  ;;  %v5041_v29 = vpop.eup %5040 }
 0x286   :  { %v1749_v34 = vmul.f32 %v5041_v29, %v1738_v11  ;;  %v6288_v17 = vpop.eup %5042 }
 0x287   :  { %v1642_v19 = vadd.f32 %v1611_v46, %v6006_v7  ;;  %vm1787_vm1 = vweird.f32 %v6288_v17 }
 0x288   :  { %v1836_v5 = vpack.c.bf16 %v1749_v34, %v1749_v34  ;;  %vm6319_vm5 = vmor %vm1786_vm4, %vm1787_vm1 }
 0x289   :  { %v4729_v30 = vmul.f32 -1.442695, %v1642_v19  ;;  %v8179_v19 = vld [vmem:[#allocation100_spill] sm:$0xff] }
 0x28a   :  { %v1636_v39 = vpop.f32.mrf.mxu3  ;;  %v6282_v3 = vrot.slane %v1836_v5, 2 }
 0x28b   :  { %5044 = vpow2.f32 %v4729_v30  ;;  %v1637_v43 = vadd.f32 %v1636_v39, %v6221_v24  ;;  %v1782_v24 = vmul.f32 %v6288_v17, %v6275_v10 }
 0x28c   :  { %5046 = vrcp.f32 %v6278_v12  ;;  %v1612_v51 = vpop.f32.mrf.mxu1  ;;  %1852 = vmatmul.bf16.vlgmr.msra.gmra.mxu0 %v6282_v3  ;;  %1878 = vmatmul.bf16.vlgmr.msrb.gmra.mxu2 %v6282_v3 }
 0x28d   :  { %v1643_v16 = vadd.f32 %v1637_v43, %v6016_v13  ;;  %1948 = vmatpush.bf16.msra.mxu0 %v5712_v36  ;;  %1974 = vmatpush.bf16.msrb.mxu2 %v5714_v8  ;;  %v1783_v18 = vsub.f32 1.0, %v1782_v24  ;;  %v1792_v51 = vand.u32 2147483648, %v6275_v10  ;;  %v8180_v43 = vld [vmem:[#allocation102_spill] sm:$0xff]  ;;  %v1790_v24 = vand.u32 2147483647, %v6275_v10 }
 0x28f   :  { %v4730_v56 = vmul.f32 -1.442695, %v1643_v16  ;;  %v1784_v33 = vmul.f32 %v6288_v17, %v1783_v18  ;;  %v8181_v16 = vld [vmem:[#allocation103_spill] sm:$0xff]  ;;  %v1775_v18 = vand.u32 2147483647, %v6278_v12  ;;  %vm1791_vm11 = vcmp.eq.f32.partialorder %v1790_v24, 8.507059e+37 }
 0x291   :  { %v5045_v61 = vpop.eup %5044  ;;  %5048 = vpow2.f32 %v4730_v56  ;;  %1949 = vmatpush.bf16.msra.mxu0 %v5728_v23  ;;  %1975 = vmatpush.bf16.msrb.mxu2 %v5730_v9  ;;  %v1785_v30 = vadd.f32 %v6288_v17, %v1784_v33  ;;  %vm1776_vm12 = vcmp.eq.f32.partialorder %v1775_v18, 8.507059e+37 }
 0x292   :  { %v6292_v40 = vpop.eup %5046  ;;  %v1764_v27 = vadd.f32 1.0, %v5045_v61  ;;  %v1638_v58 = vpop.f32.mrf.mxu3 }
 0x293   :  { %v1767_v14 = vmul.f32 %v6292_v40, %v6278_v12  ;;  %vm1772_vm3 = vweird.f32 %v6292_v40  ;;  %v1789_v33 = vsel %vm6319_vm5, %v6288_v17, %v1785_v30 }
 0x294   :  { %5050 = vrcp.f32 %v1764_v27  ;;  %v1807_v34 = vand.u32 2147483648, %v1764_v27  ;;  %v1805_v39 = vand.u32 2147483647, %v1764_v27  ;;  %vm1801_vm6 = vweird.f32 %v1764_v27  ;;  %vm1773_vm10 = vmor %vm1771_vm7, %vm1772_vm3 }
 0x295   :  { %1950 = vmatpush.bf16.msra.mxu0 %v8073_v63  ;;  %1976 = vmatpush.bf16.msrb.mxu2 %v8074_v49  ;;  %v1768_v6 = vsub.f32 1.0, %v1767_v14 }
 0x296   :  { %vm1806_vm9 = vcmp.eq.f32.partialorder %v1805_v39, 8.507059e+37 }
 0x297   :  { %v5049_v26 = vpop.eup %5048  ;;  %v1769_v29 = vmul.f32 %v6292_v40, %v1768_v6  ;;  %v1808_v6 = vor.u32 1.1754944e-38, %v1807_v34 }
 0x298   :  { %v6302_v54 = vadd.f32 1.0, %v5049_v26  ;;  %v1777_v26 = vand.u32 2147483648, %v6278_v12 }
 0x299   :  { %1951 = vmatpush.bf16.msra.mxu0 %v8178_v20  ;;  %1977 = vmatpush.bf16.msrb.mxu2 %v8179_v19  ;;  %v1770_v61 = vadd.f32 %v6292_v40, %v1769_v29 }
 0x29a   :  { %v5051_v53 = vpop.eup %5050  ;;  %5052 = vrcp.f32 %v6302_v54  ;;  %vm1816_vm14 = vweird.f32 %v6302_v54 }
 0x29b   :  { %v1797_v46 = vmul.f32 %v5051_v53, %v1764_v27  ;;  %vm1802_vm2 = vweird.f32 %v5051_v53  ;;  %v1793_v27 = vor.u32 1.1754944e-38, %v1792_v51  ;;  %v1774_v12 = vsel %vm1773_vm10, %v6292_v40, %v1770_v61 }
 0x29c   :  { %1904 = vmatmul.bf16.vlgmr.msrb.gmra.mxu0 %v6282_v3  ;;  %1930 = vmatmul.bf16.vlgmr.msra.gmra.mxu2 %v6282_v3  ;;  %vm1803_vm8 = vmor %vm1801_vm6, %vm1802_vm2  ;;  %v1822_v40 = vand.u32 2147483648, %v6302_v54 }
 0x29d   :  { %v1798_v11 = vsub.f32 1.0, %v1797_v46  ;;  %1952 = vmatpush.bf16.msra.mxu0 %v8180_v43  ;;  %1978 = vmatpush.bf16.msrb.mxu2 %v8181_v16  ;;  %v1794_v17 = vsel %vm1791_vm11, %v1793_v27, %v1789_v33  ;;  %v8185_v27 = vld [vmem:[#allocation77_spill] sm:$0xff] }
 0x29e   :  { %v1828_v51 = vmul.f32 %v1794_v17, %v6078_v2  ;;  %v1820_v2 = vand.u32 2147483647, %v6302_v54  ;;  %v1823_v24 = vor.u32 1.1754944e-38, %v1822_v40  ;;  %v8191_v17 = vld [vmem:[#allocation79_spill] sm:$0xff]  ;;  %v8198_v40 = vld [vmem:[#allocation21_spill] sm:$0xff] }
 0x29f   :  { %v1799_v5 = vmul.f32 %v5051_v53, %v1798_v11 }
 0x2a0   :  { %v5053_v14 = vpop.eup %5052  ;;  %vm1821_vm0 = vcmp.eq.f32.partialorder %v1820_v2, 8.507059e+37  ;;  %v8199_v2 = vld [vmem:[#allocation83_spill] sm:$0xff] }
 0x2a1   :  { %v1800_v58 = vadd.f32 %v5051_v53, %v1799_v5  ;;  %v1812_v10 = vmul.f32 %v5053_v14, %v6302_v54  ;;  %1953 = vmatpush.bf16.msra.mxu0 %v8081_v42  ;;  %1979 = vmatpush.bf16.msrb.mxu2 %v8082_v21  ;;  %v1778_v5 = vor.u32 1.1754944e-38, %v1777_v26  ;;  %vm1817_vm13 = vweird.f32 %v5053_v14 }
 0x2a2   :  { %vm1818_vm15 = vmor %vm1816_vm14, %vm1817_vm13 }
 0x2a3   :  { %v1804_v46 = vsel %vm1803_vm8, %v5051_v53, %v1800_v58  ;;  %v1813_v34 = vsub.f32 1.0, %v1812_v10  ;;  %v1779_v30 = vsel %vm1776_vm12, %v1778_v5, %v1774_v12  ;;  %v8184_v10 = vld [vmem:[#allocation116_spill] sm:$0xff]  ;;  %v8187_v12 = vld [vmem:[#allocation117_spill] sm:$0xff] }
 0x2a4   :  { %v1809_v29 = vsel %vm1806_vm9, %v1808_v6, %v1804_v46  ;;  %v8190_v5 = vld [vmem:[#allocation13_spill] sm:$0xff] }
 0x2a5   :  { %v1826_v11 = vmul.f32 2.0, %v1809_v29  ;;  %v1814_v39 = vmul.f32 %v5053_v14, %v1813_v34  ;;  %1954 = vmatpush.bf16.msra.mxu0 %v5791_v38  ;;  %1980 = vmatpush.bf16.msrb.mxu2 %v5793_v41  ;;  %v8186_v29 = vld [vmem:[#allocation82_spill] sm:$0xff]  ;;  %v8189_v34 = vld [vmem:[#allocation11_spill] sm:$0xff] }
 0x2a7   :  { %v4731_v53 = vadd.f32 -1.0, %v1826_v11  ;;  %v1815_v6 = vadd.f32 %v5053_v14, %v1814_v39  ;;  %v8188_v11 = vld [vmem:[#allocation118_spill] sm:$0xff]  ;;  %v8194_v39 = vld [vmem:[#allocation17_spill] sm:$0xff] }
 0x2a9   :  { %v1829_v56 = vmul.f32 %v4731_v53, %v1779_v30  ;;  %1955 = vmatpush.bf16.msra.mxu0 %v5802_v28  ;;  %1981 = vmatpush.bf16.msrb.mxu2 %v5804_v48  ;;  %v1819_v61 = vsel %vm1818_vm15, %v5053_v14, %v1815_v6  ;;  %v8192_v53 = vld [vmem:[#allocation84_spill] sm:$0xff]  ;;  %v8193_v30 = vld [vmem:[#allocation15_spill] sm:$0xff] }
 0x2aa   :  { %v1824_v26 = vsel %vm1821_vm0, %v1823_v24, %v1819_v61  ;;  %v8197_v6 = vld [vmem:[#allocation19_spill] sm:$0xff]  ;;  %v8200_v61 = vld [vmem:[#allocation88_spill] sm:$0xff] }
 0x2ab   :  { %v6340_v58 = vadd.f32 %v1829_v56, %v1828_v51  ;;  %v8195_v51 = vld [vmem:[#allocation81_spill] sm:$0xff]  ;;  %v8196_v56 = vld [vmem:[#allocation86_spill] sm:$0xff]  ;;  %v8201_v24 = vld [vmem:[#allocation23_spill] sm:$0xff] }
 0x2ac   :  { %1956 = vmatmul.bf16.vlgmr.msra.gmra.mxu0 %v6282_v3  ;;  %1982 = vmatmul.bf16.vlgmr.msrb.gmra.mxu2 %v6282_v3 }
 0x2ad   :  { %5054 = vtanh.f32 %v6340_v58  ;;  %2000 = vmatpush.bf16.msrb.mxu0 %v5806_v60  ;;  %2026 = vmatpush.bf16.msra.mxu2 %v5808_v45 }
 0x2b1   :  { %2001 = vmatpush.bf16.msrb.mxu0 %v5819_v55  ;;  %2027 = vmatpush.bf16.msra.mxu2 %v5821_v52 }
 0x2b3   :  { %v5055_v18 = vpop.eup %5054 }
 0x2b4   :  { %v1832_v33 = vmul.f32 %v5055_v18, %v1824_v26  ;;  %v8202_v18 = vld [vmem:[#allocation25_spill] sm:$0xff]  ;;  %v8204_v26 = vld [vmem:[#allocation90_spill] sm:$0xff] }
 0x2b5   :  { %2002 = vmatpush.bf16.msrb.mxu0 %v5831_v15  ;;  %2028 = vmatpush.bf16.msra.mxu2 %v5833_v32 }
 0x2b6   :  { %v1834_v54 = vrot.slane %v1832_v33, 4  ;;  %v8205_v33 = vld [vmem:[#allocation87_spill] sm:$0xff] }
 0x2b8   :  { %v1837_v46 = vpack.c.bf16 %v1834_v54, %v1834_v54  ;;  %v8206_v54 = vld [vmem:[#allocation92_spill] sm:$0xff] }
 0x2b9   :  { %2003 = vmatpush.bf16.msrb.mxu0 %v5840_v44  ;;  %2029 = vmatpush.bf16.msra.mxu2 %v5842_v1 }
 0x2ba   :  { %v6358_v14 = vrot.slane %v1837_v46, 2  ;;  %v8207_v46 = vld [vmem:[#allocation27_spill] sm:$0xff] }
 0x2bc   :  { %1865 = vmatmul.bf16.vlgmr.msra.gmra.mxu1 %v6358_v14  ;;  %1891 = vmatmul.bf16.vlgmr.msrb.gmra.mxu3 %v6358_v14 }
 0x2bd   :  { %1961 = vmatpush.bf16.msra.mxu1 %v8083_v47  ;;  %1987 = vmatpush.bf16.msrb.mxu3 %v8084_v4 }
 0x2be   :  { %2004 = vmatpush.bf16.msrb.mxu0 %v5849_v37  ;;  %2030 = vmatpush.bf16.msra.mxu2 %v5851_v57 }
 0x2c1   :  { %1962 = vmatpush.bf16.msra.mxu1 %v8085_v0  ;;  %1988 = vmatpush.bf16.msrb.mxu3 %v8086_v59 }
 0x2c2   :  { %2005 = vmatpush.bf16.msrb.mxu0 %v5857_v35  ;;  %2031 = vmatpush.bf16.msra.mxu2 %v5859_v50 }
 0x2c5   :  { %1963 = vmatpush.bf16.msra.mxu1 %v8087_v31  ;;  %1989 = vmatpush.bf16.msrb.mxu3 %v8088_v25 }
 0x2c6   :  { %2006 = vmatpush.bf16.msrb.mxu0 %v5865_v62  ;;  %2032 = vmatpush.bf16.msra.mxu2 %v8184_v10 }
 0x2c9   :  { %1964 = vmatpush.bf16.msra.mxu1 %v8185_v27  ;;  %1990 = vmatpush.bf16.msrb.mxu3 %v8186_v29 }
 0x2ca   :  { %2007 = vmatpush.bf16.msrb.mxu0 %v8187_v12  ;;  %2033 = vmatpush.bf16.msra.mxu2 %v8188_v11  ;;  %v2057_v12 = vld [vmem:[#allocation2] sm:$0xc0] }
 0x2cc   :  { %1917 = vmatmul.bf16.vlgmr.msrb.gmra.mxu1 %v6358_v14  ;;  %1943 = vmatmul.bf16.vlgmr.msra.gmra.mxu3 %v6358_v14 }
 0x2cd   :  { %1965 = vmatpush.bf16.msra.mxu1 %v8191_v17  ;;  %1991 = vmatpush.bf16.msrb.mxu3 %v8192_v53  ;;  %v2056_v17 = vld [vmem:[#allocation2 + $0x30] sm:$0xc0] }
 0x2ce   :  { %2256 = vmatpush.bf16.msra.mxu0 %v8189_v34  ;;  %2282 = vmatpush.bf16.msrb.mxu2 %v8190_v5 }
 0x2cf   :  { %2008 = vmatmul.bf16.vlgmr.msrb.gmra.mxu0 %v6282_v3  ;;  %2034 = vmatmul.bf16.vlgmr.msra.gmra.mxu2 %v6282_v3  ;;  %v8203_v3 = vld [vmem:[#allocation85_spill] sm:$0xff] }
 0x2d1   :  { %1966 = vmatpush.bf16.msra.mxu1 %v8195_v51  ;;  %1992 = vmatpush.bf16.msrb.mxu3 %v8196_v56  ;;  %v8265_v51 = vld [vmem:[#allocation44_spill] sm:$0xff] }
 0x2d2   :  { %2257 = vmatpush.bf16.msra.mxu0 %v8193_v30  ;;  %2283 = vmatpush.bf16.msrb.mxu2 %v8194_v39  ;;  %v8269_v39 = vld [vmem:[#allocation52_spill] sm:$0xff] }
 0x2d5   :  { %1967 = vmatpush.bf16.msra.mxu1 %v8199_v2  ;;  %1993 = vmatpush.bf16.msrb.mxu3 %v8200_v61  ;;  %v8209_v61 = vld [vmem:[#allocation89_spill] sm:$0xff]  ;;  %v8218_v2 = vld [vmem:[#allocation104_spill] sm:$0xff] }
 0x2d6   :  { %2258 = vmatpush.bf16.msra.mxu0 %v8197_v6  ;;  %2284 = vmatpush.bf16.msrb.mxu2 %v8198_v40  ;;  %v8208_v6 = vld [vmem:[#allocation29_spill] sm:$0xff]  ;;  %v8219_v40 = vld [vmem:[#allocation40_spill] sm:$0xff] }
 0x2d9   :  { %1968 = vmatpush.bf16.msra.mxu1 %v8203_v3  ;;  %1994 = vmatpush.bf16.msrb.mxu3 %v8204_v26  ;;  %v8212_v3 = vld [vmem:[#allocation33_spill] sm:$0xff]  ;;  %v8213_v26 = vld [vmem:[#allocation91_spill] sm:$0xff] }
 0x2da   :  { %2259 = vmatpush.bf16.msra.mxu0 %v8201_v24  ;;  %2285 = vmatpush.bf16.msrb.mxu2 %v8202_v18  ;;  %v8210_v24 = vld [vmem:[#allocation94_spill] sm:$0xff]  ;;  %v8211_v18 = vld [vmem:[#allocation31_spill] sm:$0xff] }
 0x2dc   :  { %1969 = vmatmul.bf16.vlgmr.msra.gmra.mxu1 %v6358_v14  ;;  %1995 = vmatmul.bf16.vlgmr.msrb.gmra.mxu3 %v6358_v14 }
 0x2dd   :  { %2013 = vmatpush.bf16.msrb.mxu1 %v8205_v33  ;;  %2039 = vmatpush.bf16.msra.mxu3 %v8206_v54  ;;  %v8214_v33 = vld [vmem:[#allocation98_spill] sm:$0xff]  ;;  %v8215_v54 = vld [vmem:[#allocation36_spill] sm:$0xff] }
 0x2de   :  { %2260 = vmatpush.bf16.msra.mxu0 %v8207_v46  ;;  %2286 = vmatpush.bf16.msrb.mxu2 %v8208_v6  ;;  %v8216_v46 = vld [vmem:[#allocation37_spill] sm:$0xff] }
 0x2df   :  { %v8217_v6 = vld [vmem:[#allocation93_spill] sm:$0xff] }
 0x2e1   :  { %2014 = vmatpush.bf16.msrb.mxu1 %v8209_v61  ;;  %2040 = vmatpush.bf16.msra.mxu3 %v8210_v24  ;;  %v8220_v61 = vld [vmem:[#allocation41_spill] sm:$0xff]  ;;  %v8221_v24 = vld [vmem:[#allocation43_spill] sm:$0xff] }
 0x2e2   :  { %2261 = vmatpush.bf16.msra.mxu0 %v8211_v18  ;;  %2287 = vmatpush.bf16.msrb.mxu2 %v8212_v3  ;;  %v8222_v18 = vld [vmem:[#allocation45_spill] sm:$0xff] }
 0x2e3   :  { %v8223_v3 = vld [vmem:[#allocation97_spill] sm:$0xff] }
 0x2e5   :  { %2015 = vmatpush.bf16.msrb.mxu1 %v8213_v26  ;;  %2041 = vmatpush.bf16.msra.mxu3 %v8214_v33  ;;  %v8224_v26 = vld [vmem:[#allocation108_spill] sm:$0xff]  ;;  %v8225_v33 = vld [vmem:[#allocation47_spill] sm:$0xff] }
 0x2e6   :  { %2262 = vmatpush.bf16.msra.mxu0 %v8215_v54  ;;  %2288 = vmatpush.bf16.msrb.mxu2 %v8216_v46  ;;  %v8226_v54 = vld [vmem:[#allocation49_spill] sm:$0xff] }
 0x2e7   :  { %v8227_v46 = vld [vmem:[#allocation101_spill] sm:$0xff] }
 0x2e9   :  { %2016 = vmatpush.bf16.msrb.mxu1 %v8217_v6  ;;  %2042 = vmatpush.bf16.msra.mxu3 %v8218_v2  ;;  %v8228_v6 = vld [vmem:[#allocation110_spill] sm:$0xff]  ;;  %v8229_v2 = vld [vmem:[#allocation51_spill] sm:$0xff] }
 0x2ea   :  { %2263 = vmatpush.bf16.msra.mxu0 %v8219_v40  ;;  %2289 = vmatpush.bf16.msrb.mxu2 %v8220_v61  ;;  %v8230_v40 = vld [vmem:[#allocation53_spill] sm:$0xff] }
 0x2eb   :  { %v8231_v61 = vld [vmem:[#allocation105_spill] sm:$0xff] }
 0x2ed   :  { %2017 = vmatpush.bf16.msrb.mxu1 %v8223_v3  ;;  %2043 = vmatpush.bf16.msra.mxu3 %v8224_v26  ;;  %v8234_v3 = vld [vmem:[#allocation57_spill] sm:$0xff] }
 0x2ee   :  { %2308 = vmatpush.bf16.msrb.mxu0 %v8221_v24  ;;  %2334 = vmatpush.bf16.msra.mxu2 %v8222_v18  ;;  %v8232_v24 = vld [vmem:[#allocation111_spill] sm:$0xff]  ;;  %v8235_v26 = vld [vmem:[#allocation109_spill] sm:$0xff] }
 0x2ef   :  { %v8233_v18 = vld [vmem:[#allocation55_spill] sm:$0xff] }
 0x2f1   :  { %2018 = vmatpush.bf16.msrb.mxu1 %v8227_v46  ;;  %2044 = vmatpush.bf16.msra.mxu3 %v8228_v6  ;;  %v8238_v46 = vld [vmem:[#allocation14_spill] sm:$0xff]  ;;  %v8239_v6 = vld [vmem:[#allocation59_spill] sm:$0xff] }
 0x2f2   :  { %2309 = vmatpush.bf16.msrb.mxu0 %v8225_v33  ;;  %2335 = vmatpush.bf16.msra.mxu2 %v8226_v54  ;;  %v8236_v33 = vld [vmem:[#allocation112_spill] sm:$0xff]  ;;  %v8237_v54 = vld [vmem:[#allocation9_spill] sm:$0xff] }
 0x2f5   :  { %2019 = vmatpush.bf16.msrb.mxu1 %v8231_v61  ;;  %2045 = vmatpush.bf16.msra.mxu3 %v8232_v24  ;;  %v8241_v24 = vld [vmem:[#allocation10_spill] sm:$0xff] }
 0x2f6   :  { %2310 = vmatpush.bf16.msrb.mxu0 %v8229_v2  ;;  %2336 = vmatpush.bf16.msra.mxu2 %v8230_v40  ;;  %v8240_v2 = vld [vmem:[#allocation61_spill] sm:$0xff]  ;;  %v8250_v61 = vld [vmem:[#allocation26_spill] sm:$0xff]  ;;  %v8259_v40 = vld [vmem:[#allocation32_spill] sm:$0xff] }
 0x2f9   :  { %2020 = vmatpush.bf16.msrb.mxu1 %v8235_v26  ;;  %2046 = vmatpush.bf16.msra.mxu3 %v8236_v33  ;;  %v8244_v26 = vld [vmem:[#allocation65_spill] sm:$0xff]  ;;  %v8245_v33 = vld [vmem:[#allocation12_spill] sm:$0xff] }
 0x2fa   :  { %2311 = vmatpush.bf16.msrb.mxu0 %v8233_v18  ;;  %2337 = vmatpush.bf16.msra.mxu2 %v8234_v3  ;;  %v8242_v18 = vld [vmem:[#allocation18_spill] sm:$0xff]  ;;  %v8243_v3 = vld [vmem:[#allocation63_spill] sm:$0xff] }
 0x2fc   :  { %2021 = vmatmul.bf16.vlgmr.msrb.gmra.mxu1 %v6358_v14  ;;  %2047 = vmatmul.bf16.vlgmr.msra.gmra.mxu3 %v6358_v14  ;;  %v8251_v14 = vld [vmem:[#allocation72_spill] sm:$0xff] }
 0x2fd   :  { %2269 = vmatpush.bf16.msra.mxu1 %v8237_v54  ;;  %2295 = vmatpush.bf16.msrb.mxu3 %v8238_v46  ;;  %v8246_v54 = vld [vmem:[#allocation22_spill] sm:$0xff]  ;;  %v8247_v46 = vld [vmem:[#allocation68_spill] sm:$0xff] }
 0x2fe   :  { %2312 = vmatpush.bf16.msrb.mxu0 %v8239_v6  ;;  %2338 = vmatpush.bf16.msra.mxu2 %v8240_v2  ;;  %v8248_v6 = vld [vmem:[#allocation69_spill] sm:$0xff]  ;;  %v8249_v2 = vld [vmem:[#allocation16_spill] sm:$0xff] }
 0x301   :  { %2270 = vmatpush.bf16.msra.mxu1 %v8241_v24  ;;  %2296 = vmatpush.bf16.msrb.mxu3 %v8242_v18  ;;  %v8252_v24 = vld [vmem:[#allocation73_spill] sm:$0xff]  ;;  %v8253_v18 = vld [vmem:[#allocation20_spill] sm:$0xff] }
 0x302   :  { %2313 = vmatpush.bf16.msrb.mxu0 %v8243_v3  ;;  %2339 = vmatpush.bf16.msra.mxu2 %v8244_v26  ;;  %v8254_v3 = vld [vmem:[#allocation30_spill] sm:$0xff]  ;;  %v8255_v26 = vld [vmem:[#allocation24_spill] sm:$0xff] }
 0x305   :  { %2271 = vmatpush.bf16.msra.mxu1 %v8245_v33  ;;  %2297 = vmatpush.bf16.msrb.mxu3 %v8246_v54  ;;  %v8256_v33 = vld [vmem:[#allocation34_spill] sm:$0xff] }
 0x306   :  { %2314 = vmatpush.bf16.msrb.mxu0 %v8247_v46  ;;  %2340 = vmatpush.bf16.msra.mxu2 %v8248_v6  ;;  %v8257_v46 = vld [vmem:[#allocation28_spill] sm:$0xff]  ;;  %v8258_v6 = vld [vmem:[#allocation38_spill] sm:$0xff] }
 0x309   :  { %2272 = vmatpush.bf16.msra.mxu1 %v8249_v2  ;;  %2298 = vmatpush.bf16.msrb.mxu3 %v8250_v61  ;;  %v1853_v54 = vpop.f32.mrf.mxu0  ;;  %v8260_v61 = vld [vmem:[#allocation42_spill] sm:$0xff] }
 0x30a   :  { %2315 = vmatpush.bf16.msrb.mxu0 %v8251_v14  ;;  %2341 = vmatpush.bf16.msra.mxu2 %v8252_v24  ;;  %v8261_v24 = vld [vmem:[#allocation35_spill] sm:$0xff] }
 0x30d   :  { %2273 = vmatpush.bf16.msra.mxu1 %v8253_v18  ;;  %2299 = vmatpush.bf16.msrb.mxu3 %v8254_v3  ;;  %v8262_v18 = vld [vmem:[#allocation46_spill] sm:$0xff]  ;;  %v8263_v3 = vld [vmem:[#allocation39_spill] sm:$0xff] }
 0x30f   :  { %v1879_v2 = vpop.f32.mrf.mxu2 }
 0x311   :  { %2274 = vmatpush.bf16.msra.mxu1 %v8255_v26  ;;  %2300 = vmatpush.bf16.msrb.mxu3 %v8256_v33  ;;  %v1855_v14 = vpop.f32.mrf.mxu0  ;;  %v8264_v26 = vld [vmem:[#allocation50_spill] sm:$0xff] }
 0x315   :  { %2275 = vmatpush.bf16.msra.mxu1 %v8257_v46  ;;  %2301 = vmatpush.bf16.msrb.mxu3 %v8258_v6  ;;  %v8266_v46 = vld [vmem:[#allocation54_spill] sm:$0xff]  ;;  %v8267_v6 = vld [vmem:[#allocation48_spill] sm:$0xff] }
 0x317   :  { %v1881_v33 = vpop.f32.mrf.mxu2 }
 0x319   :  { %2276 = vmatpush.bf16.msra.mxu1 %v8259_v40  ;;  %2302 = vmatpush.bf16.msrb.mxu3 %v8260_v61  ;;  %v1905_v56 = vpop.f32.mrf.mxu0  ;;  %v8268_v40 = vld [vmem:[#allocation58_spill] sm:$0xff] }
 0x31d   :  { %2321 = vmatpush.bf16.msrb.mxu1 %v8261_v24  ;;  %2347 = vmatpush.bf16.msra.mxu3 %v8262_v18  ;;  %v8270_v24 = vld [vmem:[#allocation62_spill] sm:$0xff]  ;;  %v8271_v18 = vld [vmem:[#allocation56_spill] sm:$0xff] }
 0x31f   :  { %v1931_v61 = vpop.f32.mrf.mxu2 }
 0x321   :  { %2322 = vmatpush.bf16.msrb.mxu1 %v8263_v3  ;;  %2348 = vmatpush.bf16.msra.mxu3 %v8264_v26  ;;  %v1907_v14 = vpop.f32.mrf.mxu0  ;;  %v8272_v3 = vld [vmem:[#allocation66_spill] sm:$0xff] }
 0x325   :  { %2323 = vmatpush.bf16.msrb.mxu1 %v8265_v51  ;;  %2349 = vmatpush.bf16.msra.mxu3 %v8266_v46  ;;  %v8273_v51 = vld [vmem:[#allocation60_spill] sm:$0xff]  ;;  %v8274_v46 = vld [vmem:[#allocation70_spill] sm:$0xff] }
 0x327   :  { %v1933_v33 = vpop.f32.mrf.mxu2 }
 0x329   :  { %2324 = vmatpush.bf16.msrb.mxu1 %v8267_v6  ;;  %2350 = vmatpush.bf16.msra.mxu3 %v8268_v40  ;;  %v6470_v26 = vpop.f32.mrf.mxu0  ;;  %v8275_v6 = vld [vmem:[#allocation64_spill] sm:$0xff]  ;;  %v8276_v40 = vld [vmem:[#allocation74_spill] sm:$0xff] }
 0x32d   :  { %2325 = vmatpush.bf16.msrb.mxu1 %v8269_v39  ;;  %2351 = vmatpush.bf16.msra.mxu3 %v8270_v24 }
 0x32f   :  { %v6476_v14 = vpop.f32.mrf.mxu2 }
 0x331   :  { %2326 = vmatpush.bf16.msrb.mxu1 %v8271_v18  ;;  %2352 = vmatpush.bf16.msra.mxu3 %v8272_v3  ;;  %v1959_v39 = vpop.f32.mrf.mxu0 }
 0x335   :  { %2327 = vmatpush.bf16.msrb.mxu1 %v8273_v51  ;;  %2353 = vmatpush.bf16.msra.mxu3 %v8274_v46 }
 0x337   :  { %v1985_v53 = vpop.f32.mrf.mxu2 }
 0x339   :  { %2328 = vmatpush.bf16.msrb.mxu1 %v8275_v6  ;;  %2354 = vmatpush.bf16.msra.mxu3 %v8276_v40  ;;  %v1866_v30 = vpop.f32.mrf.mxu1 }
 0x33a   :  { %v1867_v24 = vadd.f32 %v1866_v30, %v1853_v54  ;;  %v2058_v30 = vld [vmem:[#allocation2 + $0x18] sm:$0xc0] }
 0x33c   :  { %v2064_v18 = vrot.slane %v1867_v24, 2 }
 0x33e   :  { %v2072_v3 = vadd.f32 %v2064_v18, %v2056_v17 }
 0x33f   :  { %v1892_v33 = vpop.f32.mrf.mxu3 }
 0x340   :  { %v1893_v5 = vadd.f32 %v1892_v33, %v1879_v2  ;;  %v4732_v11 = vmul.f32 -1.442695, %v2072_v3 }
 0x341   :  { %v1868_v34 = vpop.f32.mrf.mxu1 }
 0x342   :  { %v2065_v51 = vrot.slane %v1893_v5, 2  ;;  %5056 = vpow2.f32 %v4732_v11 }
 0x344   :  { %v2073_v46 = vadd.f32 %v2065_v51, %v2057_v12 }
 0x346   :  { %v4733_v6 = vmul.f32 -1.442695, %v2073_v46 }
 0x347   :  { %v1894_v29 = vpop.f32.mrf.mxu3 }
 0x348   :  { %5058 = vpow2.f32 %v4733_v6  ;;  %v5057_v39 = vpop.eup %5056 }
 0x349   :  { %v1918_v40 = vpop.f32.mrf.mxu1  ;;  %v6478_v54 = vadd.f32 1.0, %v5057_v39 }
 0x34a   :  { %v1919_v27 = vadd.f32 %v1918_v40, %v1905_v56 }
 0x34b   :  { %vm2097_vm7 = vweird.f32 %v6478_v54  ;;  %v2101_v25 = vand.u32 2147483647, %v6478_v54 }
 0x34c   :  { %v2066_v10 = vrot.slane %v1919_v27, 2  ;;  %v6483_v12 = vpop.f32.mrf.mxu0 }
 0x34d   :  { %vm2102_vm12 = vcmp.eq.f32.partialorder %v2101_v25, 8.507059e+37 }
 0x34e   :  { %v5059_v53 = vpop.eup %5058  ;;  %v2074_v24 = vadd.f32 %v2066_v10, %v2058_v30  ;;  %v2059_v10 = vld [vmem:[#allocation2 + $0x10] sm:$0xc0] }
 0x34f   :  { %v6480_v17 = vadd.f32 1.0, %v5059_v53  ;;  %v1944_v29 = vpop.f32.mrf.mxu3 }
 0x350   :  { %v4734_v34 = vmul.f32 -1.442695, %v2074_v24  ;;  %v1945_v11 = vadd.f32 %v1944_v29, %v1931_v61 }
 0x351   :  { %5060 = vrcp.f32 %v6480_v17  ;;  %v1920_v5 = vpop.f32.mrf.mxu1  ;;  %vm2112_vm1 = vweird.f32 %v6480_v17  ;;  %v2118_v62 = vand.u32 2147483648, %v6480_v17 }
 0x352   :  { %5062 = vpow2.f32 %v4734_v34  ;;  %v2067_v27 = vrot.slane %v1945_v11, 2  ;;  %v6488_v6 = vpop.f32.mrf.mxu2 }
 0x353   :  { %5064 = vrcp.f32 %v6478_v54 }
 0x354   :  { %v2075_v18 = vadd.f32 %v2067_v27, %v2059_v10  ;;  %v2011_v46 = vpop.f32.mrf.mxu0 }
 0x356   :  { %v4735_v61 = vmul.f32 -1.442695, %v2075_v18 }
 0x357   :  { %v6486_v51 = vpop.eup %5060  ;;  %v1946_v39 = vpop.f32.mrf.mxu3 }
 0x358   :  { %v5063_v56 = vpop.eup %5062  ;;  %v2108_v3 = vmul.f32 %v6486_v51, %v6480_v17  ;;  %vm2113_vm2 = vweird.f32 %v6486_v51 }
 0x359   :  { %v6490_v40 = vpop.eup %5064  ;;  %v2090_v2 = vadd.f32 1.0, %v5063_v56  ;;  %v1970_v53 = vpop.f32.mrf.mxu1  ;;  %vm6514_vm5 = vmor %vm2112_vm1, %vm2113_vm2 }
 0x35a   :  { %v2093_v33 = vmul.f32 %v6490_v40, %v6478_v54  ;;  %v2109_v30 = vsub.f32 1.0, %v2108_v3  ;;  %v2037_v34 = vpop.f32.mrf.mxu2  ;;  %v1971_v3 = vadd.f32 %v1970_v53, %v6470_v26  ;;  %vm2098_vm4 = vweird.f32 %v6490_v40  ;;  %v8279_v53 = vld [vmem:[#allocation119_spill] sm:$0xff] }
 0x35b   :  { %5066 = vrcp.f32 %v2090_v2  ;;  %v2133_v18 = vand.u32 2147483648, %v2090_v2  ;;  %v2131_v34 = vand.u32 2147483647, %v2090_v2  ;;  %vm2127_vm6 = vweird.f32 %v2090_v2  ;;  %vm6528_vm10 = vmor %vm2097_vm7, %vm2098_vm4 }
 0x35c   :  { %5068 = vpow2.f32 %v4735_v61  ;;  %v2094_v24 = vsub.f32 1.0, %v2093_v33  ;;  %v2110_v29 = vmul.f32 %v6486_v51, %v2109_v30 }
 0x35d   :  { %vm2132_vm9 = vcmp.eq.f32.partialorder %v2131_v34, 8.507059e+37  ;;  %v2155_v34 = vrot.slane %v6268_v22, 6 }
 0x35e   :  { %v2095_v56 = vmul.f32 %v6490_v40, %v2094_v24  ;;  %v2111_v61 = vadd.f32 %v6486_v51, %v2110_v29  ;;  %v2116_v24 = vand.u32 2147483647, %v6480_v17 }
 0x35f   :  { %v1996_v46 = vpop.f32.mrf.mxu3 }
 0x360   :  { %v1997_v33 = vadd.f32 %v1996_v46, %v6476_v14  ;;  %v2134_v46 = vor.u32 1.1754944e-38, %v2133_v18  ;;  %v2115_v17 = vsel %vm6514_vm5, %v6486_v51, %v2111_v61  ;;  %vm2117_vm11 = vcmp.eq.f32.partialorder %v2116_v24, 8.507059e+37 }
 0x361   :  { %v5067_v5 = vpop.eup %5066 }
 0x362   :  { %v2123_v11 = vmul.f32 %v5067_v5, %v2090_v2  ;;  %v5069_v27 = vpop.eup %5068  ;;  %vm2128_vm3 = vweird.f32 %v5067_v5  ;;  %v2053_v29 = vadd.f32 %v1997_v33, %v8279_v53  ;;  %v2119_v33 = vor.u32 1.1754944e-38, %v2118_v62 }
 0x363   :  { %v6500_v39 = vadd.f32 1.0, %v5069_v27  ;;  %v2096_v27 = vadd.f32 %v6490_v40, %v2095_v56  ;;  %vm2129_vm8 = vmor %vm2127_vm6, %vm2128_vm3 }
 0x364   :  { %v2124_v10 = vsub.f32 1.0, %v2123_v11  ;;  %v1972_v11 = vpop.f32.mrf.mxu1  ;;  %v4738_v53 = vmul.f32 -1.442695, %v2053_v29 }
 0x365   :  { %5070 = vrcp.f32 %v6500_v39  ;;  %v8280_v11 = vld [vmem:[#allocation120_spill] sm:$0xff]  ;;  %v2100_v18 = vsel %vm6528_vm10, %v6490_v40, %v2096_v27  ;;  %v2148_v25 = vand.u32 2147483648, %v6500_v39  ;;  %vm2142_vm14 = vweird.f32 %v6500_v39 }
 0x366   :  { %v2125_v30 = vmul.f32 %v5067_v5, %v2124_v10  ;;  %v2103_v10 = vand.u32 2147483648, %v6478_v54  ;;  %v2052_v56 = vadd.f32 %v1971_v3, %v8280_v11  ;;  %5072 = vpow2.f32 %v4738_v53 }
 0x367   :  { %v1998_v3 = vpop.f32.mrf.mxu3  ;;  %v2146_v22 = vand.u32 2147483647, %v6500_v39  ;;  %v2149_v2 = vor.u32 1.1754944e-38, %v2148_v25 }
 0x368   :  { %v2126_v14 = vadd.f32 %v5067_v5, %v2125_v30  ;;  %v2104_v51 = vor.u32 1.1754944e-38, %v2103_v10  ;;  %v4737_v61 = vmul.f32 -1.442695, %v2052_v56 }
 0x369   :  { %vm2147_vm0 = vcmp.eq.f32.partialorder %v2146_v22, 8.507059e+37 }
 0x36a   :  { %v2130_v31 = vsel %vm2129_vm8, %v5067_v5, %v2126_v14  ;;  %v2120_v5 = vsel %vm2117_vm11, %v2119_v33, %v2115_v17  ;;  %v2105_v62 = vsel %vm2102_vm12, %v2104_v51, %v2100_v18  ;;  %5074 = vpow2.f32 %v4737_v61 }
 0x36b   :  { %v2135_v30 = vsel %vm2132_vm9, %v2134_v46, %v2130_v31  ;;  %v5071_v26 = vpop.eup %5070  ;;  %v2157_v31 = vmul.f32 %v2155_v34, %v2120_v5 }
 0x36c   :  { %v2152_v54 = vmul.f32 2.0, %v2135_v30  ;;  %v2138_v11 = vmul.f32 %v5071_v26, %v6500_v39  ;;  %vm2143_vm13 = vweird.f32 %v5071_v26  ;;  %v5073_v10 = vpop.eup %5072 }
 0x36d   :  { %vm2144_vm15 = vmor %vm2142_vm14, %vm2143_vm13  ;;  %v6544_v33 = vadd.f32 1.0, %v5073_v10 }
 0x36e   :  { %v4736_v14 = vadd.f32 -1.0, %v2152_v54  ;;  %v2139_v46 = vsub.f32 1.0, %v2138_v11 }
 0x36f   :  { %vm2198_vm3 = vweird.f32 %v6544_v33 }
 0x370   :  { %v2158_v29 = vmul.f32 %v4736_v14, %v2105_v62  ;;  %v2140_v24 = vmul.f32 %v5071_v26, %v2139_v46  ;;  %v5075_v56 = vpop.eup %5074 }
 0x371   :  { %v6547_v3 = vadd.f32 1.0, %v5075_v56 }
 0x372   :  { %v6537_v40 = vadd.f32 %v2158_v29, %v2157_v31  ;;  %v2141_v27 = vadd.f32 %v5071_v26, %v2140_v24 }
 0x373   :  { %vm2183_vm7 = vweird.f32 %v6547_v3 }
 0x374   :  { %5076 = vtanh.f32 %v6537_v40  ;;  %v2145_v17 = vsel %vm2144_vm15, %v5071_v26, %v2141_v27 }
 0x375   :  { %v2150_v54 = vsel %vm2147_vm0, %v2149_v2, %v2145_v17  ;;  %5078 = vrcp.f32 %v6544_v33 }
 0x379   :  { %v2022_v53 = vpop.f32.mrf.mxu1 }
 0x37a   :  { %v2023_v11 = vadd.f32 %v2022_v53, %v6483_v12  ;;  %v5077_v18 = vpop.eup %5076 }
 0x37b   :  { %v2161_v51 = vmul.f32 %v5077_v18, %v2150_v54  ;;  %v6556_v14 = vpop.eup %5078 }
 0x37c   :  { %v2054_v30 = vadd.f32 %v2023_v11, %v6006_v7  ;;  %vm2199_vm1 = vweird.f32 %v6556_v14 }
 0x37d   :  { %v2248_v39 = vpack.c.bf16 %v2161_v51, %v2161_v51  ;;  %vm6591_vm5 = vmor %vm2198_vm3, %vm2199_vm1 }
 0x37e   :  { %v4739_v5 = vmul.f32 -1.442695, %v2054_v30 }
 0x37f   :  { %v6551_v12 = vrot.slane %v2248_v39, 3  ;;  %v2048_v61 = vpop.f32.mrf.mxu3 }
 0x380   :  { %5080 = vpow2.f32 %v4739_v5  ;;  %v2049_v34 = vadd.f32 %v2048_v61, %v6488_v6  ;;  %v2194_v6 = vmul.f32 %v6556_v14, %v6544_v33  ;;  %v2204_v61 = vand.u32 2147483648, %v6544_v33 }
 0x381   :  { %5082 = vrcp.f32 %v6547_v3  ;;  %v2024_v26 = vpop.f32.mrf.mxu1  ;;  %2264 = vmatmul.bf16.vlgmr.msra.gmra.mxu0 %v6551_v12  ;;  %2290 = vmatmul.bf16.vlgmr.msrb.gmra.mxu2 %v6551_v12 }
 0x382   :  { %v2055_v62 = vadd.f32 %v2049_v34, %v6016_v13  ;;  %2360 = vmatpush.bf16.msra.mxu0 %v5712_v36  ;;  %2386 = vmatpush.bf16.msrb.mxu2 %v5714_v8  ;;  %v2195_v10 = vsub.f32 1.0, %v2194_v6  ;;  %v2202_v26 = vand.u32 2147483647, %v6544_v33  ;;  %v2189_v33 = vand.u32 2147483648, %v6547_v3 }
 0x383   :  { %v2187_v6 = vand.u32 2147483647, %v6547_v3 }
 0x384   :  { %v4740_v24 = vmul.f32 -1.442695, %v2055_v62  ;;  %v2196_v17 = vmul.f32 %v6556_v14, %v2195_v10  ;;  %vm2203_vm11 = vcmp.eq.f32.partialorder %v2202_v26, 8.507059e+37 }
 0x385   :  { %vm2188_vm12 = vcmp.eq.f32.partialorder %v2187_v6, 8.507059e+37 }
 0x386   :  { %v5081_v31 = vpop.eup %5080  ;;  %2361 = vmatpush.bf16.msra.mxu0 %v5728_v23  ;;  %2387 = vmatpush.bf16.msrb.mxu2 %v5730_v9  ;;  %v2197_v51 = vadd.f32 %v6556_v14, %v2196_v17 }
 0x387   :  { %v6561_v29 = vpop.eup %5082  ;;  %v2176_v46 = vadd.f32 1.0, %v5081_v31  ;;  %v2050_v25 = vpop.f32.mrf.mxu3 }
 0x388   :  { %v2179_v27 = vmul.f32 %v6561_v29, %v6547_v3  ;;  %vm2184_vm4 = vweird.f32 %v6561_v29 }
 0x389   :  { %5084 = vrcp.f32 %v2176_v46  ;;  %v2219_v54 = vand.u32 2147483648, %v2176_v46  ;;  %v2217_v39 = vand.u32 2147483647, %v2176_v46  ;;  %vm2213_vm6 = vweird.f32 %v2176_v46  ;;  %vm2185_vm10 = vmor %vm2183_vm7, %vm2184_vm4 }
 0x38a   :  { %5086 = vpow2.f32 %v4740_v24  ;;  %2362 = vmatpush.bf16.msra.mxu0 %v8073_v63  ;;  %2388 = vmatpush.bf16.msrb.mxu2 %v8074_v49  ;;  %v2180_v22 = vsub.f32 1.0, %v2179_v27  ;;  %v2201_v27 = vsel %vm6591_vm5, %v6556_v14, %v2197_v51 }
 0x38b   :  { %v2220_v24 = vor.u32 1.1754944e-38, %v2219_v54  ;;  %vm2218_vm9 = vcmp.eq.f32.partialorder %v2217_v39, 8.507059e+37 }
 0x38c   :  { %v2181_v30 = vmul.f32 %v6561_v29, %v2180_v22  ;;  %v2205_v22 = vor.u32 1.1754944e-38, %v2204_v61 }
 0x38e   :  { %2363 = vmatpush.bf16.msra.mxu0 %v8178_v20  ;;  %2389 = vmatpush.bf16.msrb.mxu2 %v8179_v19  ;;  %v2182_v34 = vadd.f32 %v6561_v29, %v2181_v30  ;;  %v2206_v30 = vsel %vm2203_vm11, %v2205_v22, %v2201_v27  ;;  %v8285_v27 = vld [vmem:[#allocation75_spill] sm:$0xff]  ;;  %v8288_v22 = vld [vmem:[#allocation116_spill] sm:$0xff] }
 0x38f   :  { %v5085_v53 = vpop.eup %5084  ;;  %v2240_v54 = vmul.f32 %v2206_v30, %v6340_v58  ;;  %v8294_v30 = vld [vmem:[#allocation13_spill] sm:$0xff] }
 0x390   :  { %v5087_v56 = vpop.eup %5086  ;;  %v2209_v11 = vmul.f32 %v5085_v53, %v2176_v46  ;;  %vm2214_vm2 = vweird.f32 %v5085_v53  ;;  %v2186_v46 = vsel %vm2185_vm10, %v6561_v29, %v2182_v34 }
 0x391   :  { %v6572_v2 = vadd.f32 1.0, %v5087_v56  ;;  %2316 = vmatmul.bf16.vlgmr.msrb.gmra.mxu0 %v6551_v12  ;;  %2342 = vmatmul.bf16.vlgmr.msra.gmra.mxu2 %v6551_v12  ;;  %vm2215_vm8 = vmor %vm2213_vm6, %vm2214_vm2 }
 0x392   :  { %v2210_v18 = vsub.f32 1.0, %v2209_v11  ;;  %2364 = vmatpush.bf16.msra.mxu0 %v8180_v43  ;;  %2390 = vmatpush.bf16.msrb.mxu2 %v8181_v16  ;;  %v2190_v11 = vor.u32 1.1754944e-38, %v2189_v33 }
 0x393   :  { %5088 = vrcp.f32 %v6572_v2  ;;  %v2234_v26 = vand.u32 2147483648, %v6572_v2  ;;  %vm2228_vm14 = vweird.f32 %v6572_v2  ;;  %v2232_v58 = vand.u32 2147483647, %v6572_v2 }
 0x394   :  { %v2211_v5 = vmul.f32 %v5085_v53, %v2210_v18  ;;  %v2191_v18 = vsel %vm2188_vm12, %v2190_v11, %v2186_v46  ;;  %v8290_v46 = vld [vmem:[#allocation82_spill] sm:$0xff]  ;;  %v8293_v11 = vld [vmem:[#allocation11_spill] sm:$0xff] }
 0x395   :  { %v2235_v34 = vor.u32 1.1754944e-38, %v2234_v26  ;;  %vm2233_vm0 = vcmp.eq.f32.partialorder %v2232_v58, 8.507059e+37  ;;  %v8302_v26 = vld [vmem:[#allocation21_spill] sm:$0xff]  ;;  %v8303_v58 = vld [vmem:[#allocation83_spill] sm:$0xff] }
 0x396   :  { %v2212_v31 = vadd.f32 %v5085_v53, %v2211_v5  ;;  %2365 = vmatpush.bf16.msra.mxu0 %v8081_v42  ;;  %2391 = vmatpush.bf16.msrb.mxu2 %v8082_v21 }
 0x398   :  { %v2216_v25 = vsel %vm2215_vm8, %v5085_v53, %v2212_v31 }
 0x399   :  { %v5089_v10 = vpop.eup %5088  ;;  %v2221_v56 = vsel %vm2218_vm9, %v2220_v24, %v2216_v25  ;;  %v8286_v25 = vld [vmem:[#allocation80_spill] sm:$0xff] }
 0x39a   :  { %v2238_v17 = vmul.f32 2.0, %v2221_v56  ;;  %v2224_v3 = vmul.f32 %v5089_v10, %v6572_v2  ;;  %2366 = vmatpush.bf16.msra.mxu0 %v5791_v38  ;;  %2392 = vmatpush.bf16.msrb.mxu2 %v5793_v41  ;;  %vm2229_vm13 = vweird.f32 %v5089_v10  ;;  %v8289_v56 = vld [vmem:[#allocation77_spill] sm:$0xff] }
 0x39b   :  { %vm2230_vm15 = vmor %vm2228_vm14, %vm2229_vm13 }
 0x39c   :  { %v4741_v14 = vadd.f32 -1.0, %v2238_v17  ;;  %v2225_v53 = vsub.f32 1.0, %v2224_v3  ;;  %v8291_v17 = vld [vmem:[#allocation117_spill] sm:$0xff]  ;;  %v8292_v3 = vld [vmem:[#allocation118_spill] sm:$0xff] }
 0x39e   :  { %v2241_v51 = vmul.f32 %v4741_v14, %v2191_v18  ;;  %v2226_v5 = vmul.f32 %v5089_v10, %v2225_v53  ;;  %2367 = vmatpush.bf16.msra.mxu0 %v5802_v28  ;;  %2393 = vmatpush.bf16.msrb.mxu2 %v5804_v48  ;;  %v8295_v14 = vld [vmem:[#allocation79_spill] sm:$0xff]  ;;  %v8296_v53 = vld [vmem:[#allocation84_spill] sm:$0xff] }
 0x39f   :  { %v8297_v18 = vld [vmem:[#allocation15_spill] sm:$0xff] }
 0x3a0   :  { %v6609_v39 = vadd.f32 %v2241_v51, %v2240_v54  ;;  %v2227_v29 = vadd.f32 %v5089_v10, %v2226_v5  ;;  %v8298_v54 = vld [vmem:[#allocation17_spill] sm:$0xff]  ;;  %v8300_v5 = vld [vmem:[#allocation86_spill] sm:$0xff] }
 0x3a1   :  { %2368 = vmatmul.bf16.vlgmr.msra.gmra.mxu0 %v6551_v12  ;;  %2394 = vmatmul.bf16.vlgmr.msrb.gmra.mxu2 %v6551_v12  ;;  %v8299_v51 = vld [vmem:[#allocation81_spill] sm:$0xff] }
 0x3a2   :  { %5090 = vtanh.f32 %v6609_v39  ;;  %2412 = vmatpush.bf16.msrb.mxu0 %v5806_v60  ;;  %2438 = vmatpush.bf16.msra.mxu2 %v5808_v45  ;;  %v2231_v61 = vsel %vm2230_vm15, %v5089_v10, %v2227_v29  ;;  %v8287_v10 = vld [vmem:[#allocation115_spill] sm:$0xff] }
 0x3a3   :  { %v2236_v31 = vsel %vm2233_vm0, %v2235_v34, %v2231_v61  ;;  %v8301_v29 = vld [vmem:[#allocation19_spill] sm:$0xff]  ;;  %v8304_v61 = vld [vmem:[#allocation88_spill] sm:$0xff] }
 0x3a4   :  { %v8305_v34 = vld [vmem:[#allocation23_spill] sm:$0xff] }
 0x3a6   :  { %2413 = vmatpush.bf16.msrb.mxu0 %v5819_v55  ;;  %2439 = vmatpush.bf16.msra.mxu2 %v5821_v52 }
 0x3a8   :  { %v5091_v62 = vpop.eup %5090 }
 0x3a9   :  { %v2244_v33 = vmul.f32 %v5091_v62, %v2236_v31  ;;  %v8306_v62 = vld [vmem:[#allocation25_spill] sm:$0xff]  ;;  %v8308_v31 = vld [vmem:[#allocation90_spill] sm:$0xff] }
 0x3aa   :  { %2414 = vmatpush.bf16.msrb.mxu0 %v5831_v15  ;;  %2440 = vmatpush.bf16.msra.mxu2 %v5833_v32 }
 0x3ab   :  { %v2246_v2 = vrot.slane %v2244_v33, 2  ;;  %v8309_v33 = vld [vmem:[#allocation87_spill] sm:$0xff] }
 0x3ad   :  { %v2249_v24 = vpack.c.bf16 %v2246_v2, %v2246_v2  ;;  %v8310_v2 = vld [vmem:[#allocation92_spill] sm:$0xff] }
 0x3ae   :  { %2415 = vmatpush.bf16.msrb.mxu0 %v5840_v44  ;;  %2441 = vmatpush.bf16.msra.mxu2 %v5842_v1 }
 0x3af   :  { %v6627_v6 = vrot.slane %v2249_v24, 3  ;;  %v8311_v24 = vld [vmem:[#allocation27_spill] sm:$0xff] }
 0x3b1   :  { %2277 = vmatmul.bf16.vlgmr.msra.gmra.mxu1 %v6627_v6  ;;  %2303 = vmatmul.bf16.vlgmr.msrb.gmra.mxu3 %v6627_v6 }
 0x3b2   :  { %2373 = vmatpush.bf16.msra.mxu1 %v8083_v47  ;;  %2399 = vmatpush.bf16.msrb.mxu3 %v8084_v4 }
 0x3b3   :  { %2416 = vmatpush.bf16.msrb.mxu0 %v5849_v37  ;;  %2442 = vmatpush.bf16.msra.mxu2 %v5851_v57 }
 0x3b6   :  { %2374 = vmatpush.bf16.msra.mxu1 %v8085_v0  ;;  %2400 = vmatpush.bf16.msrb.mxu3 %v8086_v59 }
 0x3b7   :  { %2417 = vmatpush.bf16.msrb.mxu0 %v5857_v35  ;;  %2443 = vmatpush.bf16.msra.mxu2 %v5859_v50  ;;  %v8386_v50 = vld [vmem:[#allocation120_spill] sm:$0xff] }
 0x3ba   :  { %2375 = vmatpush.bf16.msra.mxu1 %v8285_v27  ;;  %2401 = vmatpush.bf16.msrb.mxu3 %v8286_v25 }
 0x3bb   :  { %2418 = vmatpush.bf16.msrb.mxu0 %v8287_v10  ;;  %2444 = vmatpush.bf16.msra.mxu2 %v8288_v22 }
 0x3be   :  { %2376 = vmatpush.bf16.msra.mxu1 %v8289_v56  ;;  %2402 = vmatpush.bf16.msrb.mxu3 %v8290_v46  ;;  %v2470_v56 = vld [vmem:[#allocation2 + $0x28] sm:$0x3] }
 0x3bf   :  { %2419 = vmatpush.bf16.msrb.mxu0 %v8291_v17  ;;  %2445 = vmatpush.bf16.msra.mxu2 %v8292_v3 }
 0x3c1   :  { %2329 = vmatmul.bf16.vlgmr.msrb.gmra.mxu1 %v6627_v6  ;;  %2355 = vmatmul.bf16.vlgmr.msra.gmra.mxu3 %v6627_v6 }
 0x3c2   :  { %2377 = vmatpush.bf16.msra.mxu1 %v8295_v14  ;;  %2403 = vmatpush.bf16.msrb.mxu3 %v8296_v53 }
 0x3c3   :  { %2647 = vmatpush.bf16.msra.mxu0 %v8293_v11  ;;  %2673 = vmatpush.bf16.msrb.mxu2 %v8294_v30  ;;  %v2469_v11 = vld [vmem:[#allocation2 + $0x20] sm:$0x3] }
 0x3c4   :  { %2420 = vmatmul.bf16.vlgmr.msrb.gmra.mxu0 %v6551_v12  ;;  %2446 = vmatmul.bf16.vlgmr.msra.gmra.mxu2 %v6551_v12  ;;  %v8307_v12 = vld [vmem:[#allocation85_spill] sm:$0xff] }
 0x3c6   :  { %2378 = vmatpush.bf16.msra.mxu1 %v8299_v51  ;;  %2404 = vmatpush.bf16.msrb.mxu3 %v8300_v5  ;;  %v8369_v51 = vld [vmem:[#allocation44_spill] sm:$0xff] }
 0x3c7   :  { %2648 = vmatpush.bf16.msra.mxu0 %v8297_v18  ;;  %2674 = vmatpush.bf16.msrb.mxu2 %v8298_v54  ;;  %v8373_v54 = vld [vmem:[#allocation52_spill] sm:$0xff] }
 0x3ca   :  { %2379 = vmatpush.bf16.msra.mxu1 %v8303_v58  ;;  %2405 = vmatpush.bf16.msrb.mxu3 %v8304_v61  ;;  %v8313_v61 = vld [vmem:[#allocation89_spill] sm:$0xff]  ;;  %v8322_v58 = vld [vmem:[#allocation104_spill] sm:$0xff] }
 0x3cb   :  { %2649 = vmatpush.bf16.msra.mxu0 %v8301_v29  ;;  %2675 = vmatpush.bf16.msrb.mxu2 %v8302_v26  ;;  %v8312_v29 = vld [vmem:[#allocation29_spill] sm:$0xff]  ;;  %v8323_v26 = vld [vmem:[#allocation40_spill] sm:$0xff] }
 0x3ce   :  { %2380 = vmatpush.bf16.msra.mxu1 %v8307_v12  ;;  %2406 = vmatpush.bf16.msrb.mxu3 %v8308_v31  ;;  %v8316_v12 = vld [vmem:[#allocation33_spill] sm:$0xff]  ;;  %v8317_v31 = vld [vmem:[#allocation91_spill] sm:$0xff] }
 0x3cf   :  { %2650 = vmatpush.bf16.msra.mxu0 %v8305_v34  ;;  %2676 = vmatpush.bf16.msrb.mxu2 %v8306_v62  ;;  %v8314_v34 = vld [vmem:[#allocation94_spill] sm:$0xff]  ;;  %v8315_v62 = vld [vmem:[#allocation31_spill] sm:$0xff] }
 0x3d1   :  { %2381 = vmatmul.bf16.vlgmr.msra.gmra.mxu1 %v6627_v6  ;;  %2407 = vmatmul.bf16.vlgmr.msrb.gmra.mxu3 %v6627_v6 }
 0x3d2   :  { %2425 = vmatpush.bf16.msrb.mxu1 %v8309_v33  ;;  %2451 = vmatpush.bf16.msra.mxu3 %v8310_v2  ;;  %v8318_v33 = vld [vmem:[#allocation98_spill] sm:$0xff]  ;;  %v8319_v2 = vld [vmem:[#allocation36_spill] sm:$0xff] }
 0x3d3   :  { %2651 = vmatpush.bf16.msra.mxu0 %v8311_v24  ;;  %2677 = vmatpush.bf16.msrb.mxu2 %v8312_v29  ;;  %v8320_v24 = vld [vmem:[#allocation37_spill] sm:$0xff] }
 0x3d4   :  { %v8321_v29 = vld [vmem:[#allocation93_spill] sm:$0xff] }
 0x3d6   :  { %2426 = vmatpush.bf16.msrb.mxu1 %v8313_v61  ;;  %2452 = vmatpush.bf16.msra.mxu3 %v8314_v34  ;;  %v8324_v61 = vld [vmem:[#allocation41_spill] sm:$0xff]  ;;  %v8325_v34 = vld [vmem:[#allocation43_spill] sm:$0xff] }
 0x3d7   :  { %2652 = vmatpush.bf16.msra.mxu0 %v8315_v62  ;;  %2678 = vmatpush.bf16.msrb.mxu2 %v8316_v12  ;;  %v8326_v62 = vld [vmem:[#allocation45_spill] sm:$0xff] }
 0x3d8   :  { %v8327_v12 = vld [vmem:[#allocation97_spill] sm:$0xff] }
 0x3da   :  { %2427 = vmatpush.bf16.msrb.mxu1 %v8317_v31  ;;  %2453 = vmatpush.bf16.msra.mxu3 %v8318_v33  ;;  %v8328_v31 = vld [vmem:[#allocation108_spill] sm:$0xff]  ;;  %v8329_v33 = vld [vmem:[#allocation47_spill] sm:$0xff] }
 0x3db   :  { %2653 = vmatpush.bf16.msra.mxu0 %v8319_v2  ;;  %2679 = vmatpush.bf16.msrb.mxu2 %v8320_v24  ;;  %v8330_v2 = vld [vmem:[#allocation49_spill] sm:$0xff] }
 0x3dc   :  { %v8331_v24 = vld [vmem:[#allocation101_spill] sm:$0xff] }
 0x3de   :  { %2428 = vmatpush.bf16.msrb.mxu1 %v8321_v29  ;;  %2454 = vmatpush.bf16.msra.mxu3 %v8322_v58  ;;  %v8332_v29 = vld [vmem:[#allocation110_spill] sm:$0xff]  ;;  %v8333_v58 = vld [vmem:[#allocation51_spill] sm:$0xff] }
 0x3df   :  { %2654 = vmatpush.bf16.msra.mxu0 %v8323_v26  ;;  %2680 = vmatpush.bf16.msrb.mxu2 %v8324_v61  ;;  %v8334_v26 = vld [vmem:[#allocation53_spill] sm:$0xff] }
 0x3e0   :  { %v8335_v61 = vld [vmem:[#allocation105_spill] sm:$0xff] }
 0x3e2   :  { %2429 = vmatpush.bf16.msrb.mxu1 %v8327_v12  ;;  %2455 = vmatpush.bf16.msra.mxu3 %v8328_v31  ;;  %v8338_v12 = vld [vmem:[#allocation57_spill] sm:$0xff] }
 0x3e3   :  { %2699 = vmatpush.bf16.msrb.mxu0 %v8325_v34  ;;  %2725 = vmatpush.bf16.msra.mxu2 %v8326_v62  ;;  %v8336_v34 = vld [vmem:[#allocation111_spill] sm:$0xff]  ;;  %v8339_v31 = vld [vmem:[#allocation109_spill] sm:$0xff] }
 0x3e4   :  { %v8337_v62 = vld [vmem:[#allocation55_spill] sm:$0xff] }
 0x3e6   :  { %2430 = vmatpush.bf16.msrb.mxu1 %v8331_v24  ;;  %2456 = vmatpush.bf16.msra.mxu3 %v8332_v29  ;;  %v8342_v24 = vld [vmem:[#allocation14_spill] sm:$0xff]  ;;  %v8343_v29 = vld [vmem:[#allocation59_spill] sm:$0xff] }
 0x3e7   :  { %2700 = vmatpush.bf16.msrb.mxu0 %v8329_v33  ;;  %2726 = vmatpush.bf16.msra.mxu2 %v8330_v2  ;;  %v8340_v33 = vld [vmem:[#allocation112_spill] sm:$0xff]  ;;  %v8341_v2 = vld [vmem:[#allocation9_spill] sm:$0xff] }
 0x3ea   :  { %2431 = vmatpush.bf16.msrb.mxu1 %v8335_v61  ;;  %2457 = vmatpush.bf16.msra.mxu3 %v8336_v34  ;;  %v8345_v34 = vld [vmem:[#allocation10_spill] sm:$0xff] }
 0x3eb   :  { %2701 = vmatpush.bf16.msrb.mxu0 %v8333_v58  ;;  %2727 = vmatpush.bf16.msra.mxu2 %v8334_v26  ;;  %v8344_v58 = vld [vmem:[#allocation61_spill] sm:$0xff]  ;;  %v8354_v61 = vld [vmem:[#allocation26_spill] sm:$0xff]  ;;  %v8363_v26 = vld [vmem:[#allocation32_spill] sm:$0xff] }
 0x3ee   :  { %2432 = vmatpush.bf16.msrb.mxu1 %v8339_v31  ;;  %2458 = vmatpush.bf16.msra.mxu3 %v8340_v33  ;;  %v8348_v31 = vld [vmem:[#allocation65_spill] sm:$0xff]  ;;  %v8349_v33 = vld [vmem:[#allocation12_spill] sm:$0xff] }
 0x3ef   :  { %2702 = vmatpush.bf16.msrb.mxu0 %v8337_v62  ;;  %2728 = vmatpush.bf16.msra.mxu2 %v8338_v12  ;;  %v8346_v62 = vld [vmem:[#allocation18_spill] sm:$0xff]  ;;  %v8347_v12 = vld [vmem:[#allocation63_spill] sm:$0xff] }
 0x3f1   :  { %2433 = vmatmul.bf16.vlgmr.msrb.gmra.mxu1 %v6627_v6  ;;  %2459 = vmatmul.bf16.vlgmr.msra.gmra.mxu3 %v6627_v6  ;;  %v8355_v6 = vld [vmem:[#allocation72_spill] sm:$0xff] }
 0x3f2   :  { %2660 = vmatpush.bf16.msra.mxu1 %v8341_v2  ;;  %2686 = vmatpush.bf16.msrb.mxu3 %v8342_v24  ;;  %v8350_v2 = vld [vmem:[#allocation22_spill] sm:$0xff]  ;;  %v8351_v24 = vld [vmem:[#allocation68_spill] sm:$0xff] }
 0x3f3   :  { %2703 = vmatpush.bf16.msrb.mxu0 %v8343_v29  ;;  %2729 = vmatpush.bf16.msra.mxu2 %v8344_v58  ;;  %v8352_v29 = vld [vmem:[#allocation69_spill] sm:$0xff]  ;;  %v8353_v58 = vld [vmem:[#allocation16_spill] sm:$0xff] }
 0x3f6   :  { %2661 = vmatpush.bf16.msra.mxu1 %v8345_v34  ;;  %2687 = vmatpush.bf16.msrb.mxu3 %v8346_v62  ;;  %v8356_v34 = vld [vmem:[#allocation73_spill] sm:$0xff]  ;;  %v8357_v62 = vld [vmem:[#allocation20_spill] sm:$0xff] }
 0x3f7   :  { %2704 = vmatpush.bf16.msrb.mxu0 %v8347_v12  ;;  %2730 = vmatpush.bf16.msra.mxu2 %v8348_v31  ;;  %v8358_v12 = vld [vmem:[#allocation30_spill] sm:$0xff]  ;;  %v8359_v31 = vld [vmem:[#allocation24_spill] sm:$0xff] }
 0x3fa   :  { %2662 = vmatpush.bf16.msra.mxu1 %v8349_v33  ;;  %2688 = vmatpush.bf16.msrb.mxu3 %v8350_v2  ;;  %v8360_v33 = vld [vmem:[#allocation34_spill] sm:$0xff] }
 0x3fb   :  { %2705 = vmatpush.bf16.msrb.mxu0 %v8351_v24  ;;  %2731 = vmatpush.bf16.msra.mxu2 %v8352_v29  ;;  %v8361_v24 = vld [vmem:[#allocation28_spill] sm:$0xff]  ;;  %v8362_v29 = vld [vmem:[#allocation38_spill] sm:$0xff] }
 0x3fe   :  { %2663 = vmatpush.bf16.msra.mxu1 %v8353_v58  ;;  %2689 = vmatpush.bf16.msrb.mxu3 %v8354_v61  ;;  %v2265_v2 = vpop.f32.mrf.mxu0  ;;  %v8364_v61 = vld [vmem:[#allocation42_spill] sm:$0xff] }
 0x3ff   :  { %2706 = vmatpush.bf16.msrb.mxu0 %v8355_v6  ;;  %2732 = vmatpush.bf16.msra.mxu2 %v8356_v34  ;;  %v8365_v34 = vld [vmem:[#allocation35_spill] sm:$0xff] }
 0x402   :  { %2664 = vmatpush.bf16.msra.mxu1 %v8357_v62  ;;  %2690 = vmatpush.bf16.msrb.mxu3 %v8358_v12  ;;  %v8366_v62 = vld [vmem:[#allocation46_spill] sm:$0xff]  ;;  %v8367_v12 = vld [vmem:[#allocation39_spill] sm:$0xff] }
 0x404   :  { %v2291_v58 = vpop.f32.mrf.mxu2 }
 0x406   :  { %2665 = vmatpush.bf16.msra.mxu1 %v8359_v31  ;;  %2691 = vmatpush.bf16.msrb.mxu3 %v8360_v33  ;;  %v2267_v6 = vpop.f32.mrf.mxu0  ;;  %v8368_v31 = vld [vmem:[#allocation50_spill] sm:$0xff] }
 0x40a   :  { %2666 = vmatpush.bf16.msra.mxu1 %v8361_v24  ;;  %2692 = vmatpush.bf16.msrb.mxu3 %v8362_v29  ;;  %v8370_v24 = vld [vmem:[#allocation54_spill] sm:$0xff]  ;;  %v8371_v29 = vld [vmem:[#allocation48_spill] sm:$0xff] }
 0x40c   :  { %v2293_v33 = vpop.f32.mrf.mxu2 }
 0x40e   :  { %2667 = vmatpush.bf16.msra.mxu1 %v8363_v26  ;;  %2693 = vmatpush.bf16.msrb.mxu3 %v8364_v61  ;;  %v2317_v5 = vpop.f32.mrf.mxu0  ;;  %v8372_v26 = vld [vmem:[#allocation58_spill] sm:$0xff] }
 0x412   :  { %2712 = vmatpush.bf16.msrb.mxu1 %v8365_v34  ;;  %2738 = vmatpush.bf16.msra.mxu3 %v8366_v62  ;;  %v8374_v34 = vld [vmem:[#allocation62_spill] sm:$0xff]  ;;  %v8375_v62 = vld [vmem:[#allocation56_spill] sm:$0xff] }
 0x414   :  { %v2343_v61 = vpop.f32.mrf.mxu2 }
 0x416   :  { %2713 = vmatpush.bf16.msrb.mxu1 %v8367_v12  ;;  %2739 = vmatpush.bf16.msra.mxu3 %v8368_v31  ;;  %v2319_v6 = vpop.f32.mrf.mxu0  ;;  %v8376_v12 = vld [vmem:[#allocation66_spill] sm:$0xff] }
 0x41a   :  { %2714 = vmatpush.bf16.msrb.mxu1 %v8369_v51  ;;  %2740 = vmatpush.bf16.msra.mxu3 %v8370_v24  ;;  %v8377_v51 = vld [vmem:[#allocation60_spill] sm:$0xff]  ;;  %v8378_v24 = vld [vmem:[#allocation70_spill] sm:$0xff] }
 0x41c   :  { %v2345_v33 = vpop.f32.mrf.mxu2 }
 0x41e   :  { %2715 = vmatpush.bf16.msrb.mxu1 %v8371_v29  ;;  %2741 = vmatpush.bf16.msra.mxu3 %v8372_v26  ;;  %v6739_v31 = vpop.f32.mrf.mxu0  ;;  %v8379_v29 = vld [vmem:[#allocation64_spill] sm:$0xff]  ;;  %v8380_v26 = vld [vmem:[#allocation74_spill] sm:$0xff] }
 0x422   :  { %2716 = vmatpush.bf16.msrb.mxu1 %v8373_v54  ;;  %2742 = vmatpush.bf16.msra.mxu3 %v8374_v34 }
 0x424   :  { %v6745_v6 = vpop.f32.mrf.mxu2 }
 0x426   :  { %2717 = vmatpush.bf16.msrb.mxu1 %v8375_v62  ;;  %2743 = vmatpush.bf16.msra.mxu3 %v8376_v12  ;;  %v2371_v54 = vpop.f32.mrf.mxu0  ;;  %v2468_v62 = vld [vmem:[#allocation2 + $0x8] sm:$0x3] }
 0x42a   :  { %2718 = vmatpush.bf16.msrb.mxu1 %v8377_v51  ;;  %2744 = vmatpush.bf16.msra.mxu3 %v8378_v24 }
 0x42c   :  { %v2397_v53 = vpop.f32.mrf.mxu2 }
 0x42e   :  { %2719 = vmatpush.bf16.msrb.mxu1 %v8379_v29  ;;  %2745 = vmatpush.bf16.msra.mxu3 %v8380_v26  ;;  %v2278_v18 = vpop.f32.mrf.mxu1 }
 0x42f   :  { %v2279_v34 = vadd.f32 %v2278_v18, %v2265_v2 }
 0x431   :  { %v2472_v14 = vadd.f32 %v2468_v62, %v2279_v34 }
 0x433   :  { %v4742_v33 = vmul.f32 -1.442695, %v2472_v14 }
 0x434   :  { %v2304_v12 = vpop.f32.mrf.mxu3 }
 0x435   :  { %v2305_v30 = vadd.f32 %v2304_v12, %v2291_v58  ;;  %5092 = vpow2.f32 %v4742_v33 }
 0x436   :  { %v2280_v3 = vpop.f32.mrf.mxu1 }
 0x437   :  { %v2473_v51 = vadd.f32 %v2469_v11, %v2305_v30 }
 0x439   :  { %v4743_v24 = vmul.f32 -1.442695, %v2473_v51  ;;  %v2471_v51 = vld [vmem:[#allocation2 + $0x38] sm:$0x3] }
 0x43b   :  { %5094 = vpow2.f32 %v4743_v24  ;;  %v5093_v26 = vpop.eup %5092 }
 0x43c   :  { %v2306_v29 = vpop.f32.mrf.mxu3  ;;  %v6747_v18 = vadd.f32 1.0, %v5093_v26 }
 0x43e   :  { %v2330_v17 = vpop.f32.mrf.mxu1  ;;  %vm2497_vm7 = vweird.f32 %v6747_v18 }
 0x43f   :  { %v2331_v46 = vadd.f32 %v2330_v17, %v2317_v5 }
 0x441   :  { %v5095_v54 = vpop.eup %5094  ;;  %v2474_v22 = vadd.f32 %v2470_v56, %v2331_v46  ;;  %v6753_v3 = vpop.f32.mrf.mxu0 }
 0x442   :  { %v6749_v53 = vadd.f32 1.0, %v5095_v54 }
 0x443   :  { %v4744_v34 = vmul.f32 -1.442695, %v2474_v22 }
 0x444   :  { %5096 = vrcp.f32 %v6749_v53  ;;  %v2356_v30 = vpop.f32.mrf.mxu3  ;;  %vm2512_vm3 = vweird.f32 %v6749_v53 }
 0x445   :  { %5098 = vpow2.f32 %v4744_v34  ;;  %v2357_v14 = vadd.f32 %v2356_v30, %v2343_v61 }
 0x446   :  { %5100 = vrcp.f32 %v6747_v18  ;;  %v2332_v11 = vpop.f32.mrf.mxu1 }
 0x447   :  { %v2475_v5 = vadd.f32 %v2471_v51, %v2357_v14  ;;  %v6759_v22 = vpop.f32.mrf.mxu2 }
 0x449   :  { %v4745_v26 = vmul.f32 -1.442695, %v2475_v5  ;;  %v2423_v62 = vpop.f32.mrf.mxu0 }
 0x44a   :  { %v6755_v17 = vpop.eup %5096 }
 0x44b   :  { %v5099_v56 = vpop.eup %5098  ;;  %v2508_v58 = vmul.f32 %v6755_v17, %v6749_v53  ;;  %vm2513_vm1 = vweird.f32 %v6755_v17 }
 0x44c   :  { %v6757_v46 = vpop.eup %5100  ;;  %v2490_v29 = vadd.f32 1.0, %v5099_v56  ;;  %v2358_v61 = vpop.f32.mrf.mxu3  ;;  %vm6781_vm5 = vmor %vm2512_vm3, %vm2513_vm1 }
 0x44d   :  { %v2493_v12 = vmul.f32 %v6757_v46, %v6747_v18  ;;  %v2509_v24 = vsub.f32 1.0, %v2508_v58  ;;  %vm2498_vm4 = vweird.f32 %v6757_v46 }
 0x44e   :  { %5102 = vrcp.f32 %v2490_v29  ;;  %v2382_v2 = vpop.f32.mrf.mxu1  ;;  %v2531_v10 = vand.u32 2147483647, %v2490_v29  ;;  %vm2527_vm6 = vweird.f32 %v2490_v29  ;;  %vm6792_vm10 = vmor %vm2497_vm7, %vm2498_vm4 }
 0x44f   :  { %5104 = vpow2.f32 %v4745_v26  ;;  %v2494_v33 = vsub.f32 1.0, %v2493_v12  ;;  %v2449_v34 = vpop.f32.mrf.mxu2  ;;  %v2510_v30 = vmul.f32 %v6755_v17, %v2509_v24  ;;  %v2533_v26 = vand.u32 2147483648, %v2490_v29 }
 0x450   :  { %v2516_v34 = vand.u32 2147483647, %v6749_v53  ;;  %vm2532_vm9 = vcmp.eq.f32.partialorder %v2531_v10, 8.507059e+37 }
 0x451   :  { %v2495_v5 = vmul.f32 %v6757_v46, %v2494_v33  ;;  %v2511_v12 = vadd.f32 %v6755_v17, %v2510_v30  ;;  %v2518_v33 = vand.u32 2147483648, %v6749_v53  ;;  %v2534_v53 = vor.u32 1.1754944e-38, %v2533_v26 }
 0x452   :  { %vm2517_vm11 = vcmp.eq.f32.partialorder %v2516_v34, 8.507059e+37  ;;  %v2555_v30 = vrot.slane %v6537_v40, 6 }
 0x454   :  { %v5103_v54 = vpop.eup %5102  ;;  %v2408_v62 = vpop.f32.mrf.mxu3 }
 0x455   :  { %v5105_v11 = vpop.eup %5104  ;;  %v2523_v14 = vmul.f32 %v5103_v54, %v2490_v29  ;;  %vm2528_vm2 = vweird.f32 %v5103_v54  ;;  %v2409_v24 = vadd.f32 %v2408_v62, %v6745_v6  ;;  %v2503_v6 = vand.u32 2147483648, %v6747_v18  ;;  %v8383_v62 = vld [vmem:[#allocation119_spill] sm:$0xff] }
 0x456   :  { %v6766_v51 = vadd.f32 1.0, %v5105_v11  ;;  %v2384_v58 = vpop.f32.mrf.mxu1  ;;  %v2383_v11 = vadd.f32 %v2382_v2, %v6739_v31  ;;  %vm2529_vm8 = vmor %vm2527_vm6, %vm2528_vm2  ;;  %v2501_v2 = vand.u32 2147483647, %v6747_v18  ;;  %v2519_v29 = vor.u32 1.1754944e-38, %v2518_v33 }
 0x457   :  { %v2524_v56 = vsub.f32 1.0, %v2523_v14  ;;  %v2496_v14 = vadd.f32 %v6757_v46, %v2495_v5  ;;  %v2465_v31 = vadd.f32 %v2409_v24, %v8383_v62  ;;  %v2515_v5 = vsel %vm6781_vm5, %v6755_v17, %v2511_v12 }
 0x458   :  { %5106 = vrcp.f32 %v6766_v51  ;;  %v2464_v35 = vadd.f32 %v2383_v11, %v8386_v50  ;;  %v2520_v10 = vsel %vm2517_vm11, %v2519_v29, %v2515_v5  ;;  %vm2502_vm12 = vcmp.eq.f32.partialorder %v2501_v2, 8.507059e+37 }
 0x459   :  { %v2525_v61 = vmul.f32 %v5103_v54, %v2524_v56  ;;  %v2500_v26 = vsel %vm6792_vm10, %v6757_v46, %v2496_v14  ;;  %v4748_v12 = vmul.f32 -1.442695, %v2465_v31  ;;  %v2557_v11 = vmul.f32 %v2555_v30, %v2520_v10 }
 0x45a   :  { %v2548_v34 = vand.u32 2147483648, %v6766_v51  ;;  %vm2542_vm14 = vweird.f32 %v6766_v51  ;;  %v2546_v40 = vand.u32 2147483647, %v6766_v51 }
 0x45b   :  { %v2526_v56 = vadd.f32 %v5103_v54, %v2525_v61  ;;  %5108 = vpow2.f32 %v4748_v12 }
 0x45c   :  { %v2410_v17 = vpop.f32.mrf.mxu3  ;;  %vm2547_vm0 = vcmp.eq.f32.partialorder %v2546_v40, 8.507059e+37 }
 0x45d   :  { %v2530_v58 = vsel %vm2529_vm8, %v5103_v54, %v2526_v56  ;;  %v2504_v54 = vor.u32 1.1754944e-38, %v2503_v6  ;;  %v2549_v6 = vor.u32 1.1754944e-38, %v2548_v34 }
 0x45e   :  { %v5107_v25 = vpop.eup %5106  ;;  %v2535_v27 = vsel %vm2532_vm9, %v2534_v53, %v2530_v58  ;;  %v4747_v58 = vmul.f32 -1.442695, %v2464_v35 }
 0x45f   :  { %v2552_v18 = vmul.f32 2.0, %v2535_v27  ;;  %v2538_v24 = vmul.f32 %v5107_v25, %v6766_v51  ;;  %v2505_v53 = vsel %vm2502_vm12, %v2504_v54, %v2500_v26  ;;  %vm2543_vm13 = vweird.f32 %v5107_v25 }
 0x460   :  { %5110 = vpow2.f32 %v4747_v58  ;;  %vm2544_vm15 = vmor %vm2542_vm14, %vm2543_vm13 }
 0x461   :  { %v4746_v56 = vadd.f32 -1.0, %v2552_v18  ;;  %v2539_v33 = vsub.f32 1.0, %v2538_v24  ;;  %v5109_v14 = vpop.eup %5108 }
 0x462   :  { %v6809_v61 = vadd.f32 1.0, %v5109_v14 }
 0x463   :  { %v2558_v50 = vmul.f32 %v4746_v56, %v2505_v53  ;;  %v2540_v62 = vmul.f32 %v5107_v25, %v2539_v33 }
 0x464   :  { %vm2598_vm4 = vweird.f32 %v6809_v61 }
 0x465   :  { %v6802_v46 = vadd.f32 %v2558_v50, %v2557_v11  ;;  %v2541_v27 = vadd.f32 %v5107_v25, %v2540_v62 }
 0x466   :  { %v5111_v2 = vpop.eup %5110 }
 0x467   :  { %5112 = vtanh.f32 %v6802_v46  ;;  %v2545_v35 = vsel %vm2544_vm15, %v5107_v25, %v2541_v27  ;;  %v6812_v18 = vadd.f32 1.0, %v5111_v2 }
 0x468   :  { %v2550_v5 = vsel %vm2547_vm0, %v2549_v6, %v2545_v35  ;;  %5114 = vrcp.f32 %v6809_v61 }
 0x469   :  { %vm2583_vm7 = vweird.f32 %v6812_v18 }
 0x46d   :  { %v5113_v62 = vpop.eup %5112 }
 0x46e   :  { %v2434_v31 = vpop.f32.mrf.mxu1  ;;  %v2561_v29 = vmul.f32 %v5113_v62, %v2550_v5  ;;  %v6823_v54 = vpop.eup %5114 }
 0x46f   :  { %v2435_v50 = vadd.f32 %v2434_v31, %v6753_v3  ;;  %v2594_v53 = vmul.f32 %v6823_v54, %v6809_v61  ;;  %vm2599_vm1 = vweird.f32 %v6823_v54 }
 0x470   :  { %v6814_v24 = vpack.c.bf16 %v2561_v29, %v2561_v29  ;;  %vm6855_vm5 = vmor %vm2598_vm4, %vm2599_vm1 }
 0x471   :  { %v2466_v26 = vadd.f32 %v2435_v50, %v6006_v7  ;;  %v2595_v11 = vsub.f32 1.0, %v2594_v53 }
 0x472   :  { %2655 = vmatmul.bf16.vlgmr.msra.gmra.mxu0 %v6814_v24  ;;  %2681 = vmatmul.bf16.vlgmr.msrb.gmra.mxu2 %v6814_v24 }
 0x473   :  { %v4749_v51 = vmul.f32 -1.442695, %v2466_v26  ;;  %2751 = vmatpush.bf16.msra.mxu0 %v5712_v36  ;;  %2777 = vmatpush.bf16.msrb.mxu2 %v5714_v8  ;;  %v2596_v14 = vmul.f32 %v6823_v54, %v2595_v11  ;;  %v2604_v26 = vand.u32 2147483648, %v6809_v61 }
 0x474   :  { %v2460_v3 = vpop.f32.mrf.mxu3 }
 0x475   :  { %5116 = vpow2.f32 %v4749_v51  ;;  %v2461_v17 = vadd.f32 %v2460_v3, %v6759_v22  ;;  %v2597_v62 = vadd.f32 %v6823_v54, %v2596_v14  ;;  %v2602_v3 = vand.u32 2147483647, %v6809_v61 }
 0x476   :  { %5118 = vrcp.f32 %v6812_v18  ;;  %v2436_v25 = vpop.f32.mrf.mxu1  ;;  %v2605_v61 = vor.u32 1.1754944e-38, %v2604_v26 }
 0x477   :  { %v2467_v10 = vadd.f32 %v2461_v17, %v6016_v13  ;;  %2752 = vmatpush.bf16.msra.mxu0 %v5728_v23  ;;  %2778 = vmatpush.bf16.msrb.mxu2 %v5730_v9  ;;  %v2601_v53 = vsel %vm6855_vm5, %v6823_v54, %v2597_v62  ;;  %vm2603_vm11 = vcmp.eq.f32.partialorder %v2602_v3, 8.507059e+37 }
 0x478   :  { %v2606_v54 = vsel %vm2603_vm11, %v2605_v61, %v2601_v53  ;;  %v8393_v53 = vld [vmem:[#allocation115_spill] sm:$0xff]  ;;  %v8396_v61 = vld [vmem:[#allocation82_spill] sm:$0xff] }
 0x479   :  { %v4750_v33 = vmul.f32 -1.442695, %v2467_v10  ;;  %v2589_v10 = vand.u32 2147483648, %v6812_v18 }
 0x47b   :  { %v5117_v12 = vpop.eup %5116  ;;  %2753 = vmatpush.bf16.msra.mxu0 %v8073_v63  ;;  %2779 = vmatpush.bf16.msrb.mxu2 %v8074_v49 }
 0x47c   :  { %v6828_v30 = vpop.eup %5118  ;;  %v2576_v56 = vadd.f32 1.0, %v5117_v12  ;;  %v2462_v58 = vpop.f32.mrf.mxu3 }
 0x47d   :  { %v2579_v22 = vmul.f32 %v6828_v30, %v6812_v18  ;;  %vm2584_vm3 = vweird.f32 %v6828_v30 }
 0x47e   :  { %5120 = vrcp.f32 %v2576_v56  ;;  %v2619_v50 = vand.u32 2147483648, %v2576_v56  ;;  %v2617_v29 = vand.u32 2147483647, %v2576_v56  ;;  %vm2613_vm6 = vweird.f32 %v2576_v56  ;;  %vm2585_vm10 = vmor %vm2583_vm7, %vm2584_vm3 }
 0x47f   :  { %5122 = vpow2.f32 %v4750_v33  ;;  %2754 = vmatpush.bf16.msra.mxu0 %v8178_v20  ;;  %2780 = vmatpush.bf16.msrb.mxu2 %v8179_v19  ;;  %v2580_v27 = vsub.f32 1.0, %v2579_v22  ;;  %v2587_v33 = vand.u32 2147483647, %v6812_v18 }
 0x480   :  { %v2620_v12 = vor.u32 1.1754944e-38, %v2619_v50  ;;  %vm2618_vm9 = vcmp.eq.f32.partialorder %v2617_v29, 8.507059e+37 }
 0x481   :  { %v2581_v31 = vmul.f32 %v6828_v30, %v2580_v27  ;;  %vm2588_vm12 = vcmp.eq.f32.partialorder %v2587_v33, 8.507059e+37  ;;  %v8392_v33 = vld [vmem:[#allocation80_spill] sm:$0xff] }
 0x482   :  { %2707 = vmatmul.bf16.vlgmr.msrb.gmra.mxu0 %v6814_v24  ;;  %2733 = vmatmul.bf16.vlgmr.msra.gmra.mxu2 %v6814_v24 }
 0x483   :  { %2755 = vmatpush.bf16.msra.mxu0 %v8180_v43  ;;  %2781 = vmatpush.bf16.msrb.mxu2 %v8181_v16  ;;  %v2582_v51 = vadd.f32 %v6828_v30, %v2581_v31  ;;  %v2640_v31 = vmul.f32 %v2606_v54, %v6609_v39  ;;  %v8402_v54 = vld [vmem:[#allocation84_spill] sm:$0xff] }
 0x484   :  { %v5121_v34 = vpop.eup %5120 }
 0x485   :  { %v5123_v40 = vpop.eup %5122  ;;  %v2609_v35 = vmul.f32 %v5121_v34, %v2576_v56  ;;  %vm2614_vm2 = vweird.f32 %v5121_v34  ;;  %v2586_v11 = vsel %vm2585_vm10, %v6828_v30, %v2582_v51 }
 0x486   :  { %v6841_v6 = vadd.f32 1.0, %v5123_v40  ;;  %vm2615_vm8 = vmor %vm2613_vm6, %vm2614_vm2  ;;  %v2590_v40 = vor.u32 1.1754944e-38, %v2589_v10  ;;  %v8390_v10 = vld [vmem:[#allocation114_spill] sm:$0xff] }
 0x487   :  { %v2610_v2 = vsub.f32 1.0, %v2609_v35  ;;  %2756 = vmatpush.bf16.msra.mxu0 %v8081_v42  ;;  %2782 = vmatpush.bf16.msrb.mxu2 %v8082_v21 }
 0x488   :  { %5124 = vrcp.f32 %v6841_v6  ;;  %v2591_v35 = vsel %vm2588_vm12, %v2590_v40, %v2586_v11  ;;  %vm2628_vm14 = vweird.f32 %v6841_v6  ;;  %v2632_v39 = vand.u32 2147483647, %v6841_v6  ;;  %v8398_v11 = vld [vmem:[#allocation118_spill] sm:$0xff]  ;;  %v8401_v40 = vld [vmem:[#allocation79_spill] sm:$0xff] }
 0x489   :  { %v2611_v5 = vmul.f32 %v5121_v34, %v2610_v2 }
 0x48a   :  { %vm2633_vm0 = vcmp.eq.f32.partialorder %v2632_v39, 8.507059e+37  ;;  %v8411_v39 = vld [vmem:[#allocation23_spill] sm:$0xff] }
 0x48b   :  { %v2612_v17 = vadd.f32 %v5121_v34, %v2611_v5  ;;  %2757 = vmatpush.bf16.msra.mxu0 %v5791_v38  ;;  %2783 = vmatpush.bf16.msrb.mxu2 %v5793_v41  ;;  %v2634_v5 = vand.u32 2147483648, %v6841_v6 }
 0x48d   :  { %v2616_v22 = vsel %vm2615_vm8, %v5121_v34, %v2612_v17  ;;  %v2635_v26 = vor.u32 1.1754944e-38, %v2634_v5  ;;  %v8410_v5 = vld [vmem:[#allocation88_spill] sm:$0xff] }
 0x48e   :  { %v5125_v58 = vpop.eup %5124  ;;  %v2621_v56 = vsel %vm2618_vm9, %v2620_v12, %v2616_v22  ;;  %v8391_v12 = vld [vmem:[#allocation75_spill] sm:$0xff]  ;;  %v8394_v22 = vld [vmem:[#allocation116_spill] sm:$0xff] }
 0x48f   :  { %v2638_v18 = vmul.f32 2.0, %v2621_v56  ;;  %v2624_v27 = vmul.f32 %v5125_v58, %v6841_v6  ;;  %2758 = vmatpush.bf16.msra.mxu0 %v5802_v28  ;;  %2784 = vmatpush.bf16.msrb.mxu2 %v5804_v48  ;;  %vm2629_vm13 = vweird.f32 %v5125_v58  ;;  %v8389_v6 = vld [vmem:[#allocation113_spill] sm:$0xff] }
 0x490   :  { %vm2630_vm15 = vmor %vm2628_vm14, %vm2629_vm13  ;;  %v8397_v56 = vld [vmem:[#allocation117_spill] sm:$0xff] }
 0x491   :  { %v4751_v34 = vadd.f32 -1.0, %v2638_v18  ;;  %v2625_v14 = vsub.f32 1.0, %v2624_v27  ;;  %v8399_v18 = vld [vmem:[#allocation11_spill] sm:$0xff]  ;;  %v8400_v27 = vld [vmem:[#allocation13_spill] sm:$0xff] }
 0x492   :  { %2759 = vmatmul.bf16.vlgmr.msra.gmra.mxu0 %v6814_v24  ;;  %2785 = vmatmul.bf16.vlgmr.msrb.gmra.mxu2 %v6814_v24 }
 0x493   :  { %v2641_v2 = vmul.f32 %v4751_v34, %v2591_v35  ;;  %v2626_v50 = vmul.f32 %v5125_v58, %v2625_v14  ;;  %2803 = vmatpush.bf16.msrb.mxu0 %v5806_v60  ;;  %2829 = vmatpush.bf16.msra.mxu2 %v5808_v45  ;;  %v8403_v34 = vld [vmem:[#allocation15_spill] sm:$0xff]  ;;  %v8404_v14 = vld [vmem:[#allocation17_spill] sm:$0xff] }
 0x494   :  { %v8405_v35 = vld [vmem:[#allocation81_spill] sm:$0xff] }
 0x495   :  { %v6877_v30 = vadd.f32 %v2641_v2, %v2640_v31  ;;  %v2627_v62 = vadd.f32 %v5125_v58, %v2626_v50  ;;  %v8406_v31 = vld [vmem:[#allocation86_spill] sm:$0xff]  ;;  %v8407_v2 = vld [vmem:[#allocation19_spill] sm:$0xff]  ;;  %v8408_v50 = vld [vmem:[#allocation21_spill] sm:$0xff] }
 0x497   :  { %5126 = vtanh.f32 %v6877_v30  ;;  %2804 = vmatpush.bf16.msrb.mxu0 %v5819_v55  ;;  %2830 = vmatpush.bf16.msra.mxu2 %v5821_v52  ;;  %v2631_v29 = vsel %vm2630_vm15, %v5125_v58, %v2627_v62  ;;  %v8395_v58 = vld [vmem:[#allocation77_spill] sm:$0xff]  ;;  %v8409_v62 = vld [vmem:[#allocation83_spill] sm:$0xff] }
 0x498   :  { %v2636_v25 = vsel %vm2633_vm0, %v2635_v26, %v2631_v29  ;;  %v8412_v29 = vld [vmem:[#allocation25_spill] sm:$0xff]  ;;  %v8414_v26 = vld [vmem:[#allocation90_spill] sm:$0xff] }
 0x49b   :  { %2805 = vmatpush.bf16.msrb.mxu0 %v5831_v15  ;;  %2831 = vmatpush.bf16.msra.mxu2 %v5833_v32 }
 0x49d   :  { %v5127_v51 = vpop.eup %5126 }
 0x49e   :  { %v2644_v3 = vmul.f32 %v5127_v51, %v2636_v25  ;;  %v8415_v51 = vld [vmem:[#allocation87_spill] sm:$0xff]  ;;  %v8416_v25 = vld [vmem:[#allocation92_spill] sm:$0xff] }
 0x49f   :  { %2806 = vmatpush.bf16.msrb.mxu0 %v5840_v44  ;;  %2832 = vmatpush.bf16.msra.mxu2 %v5842_v1 }
 0x4a0   :  { %v6891_v17 = vpack.c.bf16 %v2644_v3, %v2644_v3  ;;  %v8417_v3 = vld [vmem:[#allocation27_spill] sm:$0xff] }
 0x4a2   :  { %2668 = vmatmul.bf16.vlgmr.msra.gmra.mxu1 %v6891_v17  ;;  %2694 = vmatmul.bf16.vlgmr.msrb.gmra.mxu3 %v6891_v17 }
 0x4a3   :  { %2764 = vmatpush.bf16.msra.mxu1 %v8083_v47  ;;  %2790 = vmatpush.bf16.msrb.mxu3 %v8084_v4 }
 0x4a4   :  { %2807 = vmatpush.bf16.msrb.mxu0 %v5849_v37  ;;  %2833 = vmatpush.bf16.msra.mxu2 %v5851_v57 }
 0x4a7   :  { %2765 = vmatpush.bf16.msra.mxu1 %v8085_v0  ;;  %2791 = vmatpush.bf16.msrb.mxu3 %v8086_v59 }
 0x4a8   :  { %2808 = vmatpush.bf16.msrb.mxu0 %v8389_v6  ;;  %2834 = vmatpush.bf16.msra.mxu2 %v8390_v10 }
 0x4ab   :  { %2766 = vmatpush.bf16.msra.mxu1 %v8391_v12  ;;  %2792 = vmatpush.bf16.msrb.mxu3 %v8392_v33 }
 0x4ac   :  { %2809 = vmatpush.bf16.msrb.mxu0 %v8393_v53  ;;  %2835 = vmatpush.bf16.msra.mxu2 %v8394_v22 }
 0x4af   :  { %2767 = vmatpush.bf16.msra.mxu1 %v8395_v58  ;;  %2793 = vmatpush.bf16.msrb.mxu3 %v8396_v61 }
 0x4b0   :  { %2810 = vmatpush.bf16.msrb.mxu0 %v8397_v56  ;;  %2836 = vmatpush.bf16.msra.mxu2 %v8398_v11  ;;  %v2860_v56 = vld [vmem:[#allocation2 + $0x20] sm:$0xc] }
 0x4b2   :  { %2720 = vmatmul.bf16.vlgmr.msrb.gmra.mxu1 %v6891_v17  ;;  %2746 = vmatmul.bf16.vlgmr.msra.gmra.mxu3 %v6891_v17 }
 0x4b3   :  { %2768 = vmatpush.bf16.msra.mxu1 %v8401_v40  ;;  %2794 = vmatpush.bf16.msrb.mxu3 %v8402_v54  ;;  %v2859_v40 = vld [vmem:[#allocation2 + $0x8] sm:$0xc] }
 0x4b4   :  { %3059 = vmatpush.bf16.msra.mxu0 %v8399_v18  ;;  %3085 = vmatpush.bf16.msrb.mxu2 %v8400_v27 }
 0x4b5   :  { %2811 = vmatmul.bf16.vlgmr.msrb.gmra.mxu0 %v6814_v24  ;;  %2837 = vmatmul.bf16.vlgmr.msra.gmra.mxu2 %v6814_v24  ;;  %v8413_v24 = vld [vmem:[#allocation85_spill] sm:$0xff] }
 0x4b7   :  { %2769 = vmatpush.bf16.msra.mxu1 %v8405_v35  ;;  %2795 = vmatpush.bf16.msrb.mxu3 %v8406_v31  ;;  %v8475_v35 = vld [vmem:[#allocation44_spill] sm:$0xff] }
 0x4b8   :  { %3060 = vmatpush.bf16.msra.mxu0 %v8403_v34  ;;  %3086 = vmatpush.bf16.msrb.mxu2 %v8404_v14  ;;  %v8479_v14 = vld [vmem:[#allocation52_spill] sm:$0xff] }
 0x4bb   :  { %2770 = vmatpush.bf16.msra.mxu1 %v8409_v62  ;;  %2796 = vmatpush.bf16.msrb.mxu3 %v8410_v5  ;;  %v8419_v5 = vld [vmem:[#allocation89_spill] sm:$0xff]  ;;  %v8428_v62 = vld [vmem:[#allocation104_spill] sm:$0xff] }
 0x4bc   :  { %3061 = vmatpush.bf16.msra.mxu0 %v8407_v2  ;;  %3087 = vmatpush.bf16.msrb.mxu2 %v8408_v50  ;;  %v8418_v2 = vld [vmem:[#allocation29_spill] sm:$0xff]  ;;  %v8429_v50 = vld [vmem:[#allocation40_spill] sm:$0xff] }
 0x4bf   :  { %2771 = vmatpush.bf16.msra.mxu1 %v8413_v24  ;;  %2797 = vmatpush.bf16.msrb.mxu3 %v8414_v26  ;;  %v8422_v24 = vld [vmem:[#allocation33_spill] sm:$0xff]  ;;  %v8423_v26 = vld [vmem:[#allocation91_spill] sm:$0xff] }
 0x4c0   :  { %3062 = vmatpush.bf16.msra.mxu0 %v8411_v39  ;;  %3088 = vmatpush.bf16.msrb.mxu2 %v8412_v29  ;;  %v8420_v39 = vld [vmem:[#allocation94_spill] sm:$0xff]  ;;  %v8421_v29 = vld [vmem:[#allocation31_spill] sm:$0xff] }
 0x4c2   :  { %2772 = vmatmul.bf16.vlgmr.msra.gmra.mxu1 %v6891_v17  ;;  %2798 = vmatmul.bf16.vlgmr.msrb.gmra.mxu3 %v6891_v17 }
 0x4c3   :  { %2816 = vmatpush.bf16.msrb.mxu1 %v8415_v51  ;;  %2842 = vmatpush.bf16.msra.mxu3 %v8416_v25  ;;  %v8424_v51 = vld [vmem:[#allocation98_spill] sm:$0xff]  ;;  %v8425_v25 = vld [vmem:[#allocation36_spill] sm:$0xff] }
 0x4c4   :  { %3063 = vmatpush.bf16.msra.mxu0 %v8417_v3  ;;  %3089 = vmatpush.bf16.msrb.mxu2 %v8418_v2  ;;  %v8426_v3 = vld [vmem:[#allocation37_spill] sm:$0xff] }
 0x4c5   :  { %v8427_v2 = vld [vmem:[#allocation93_spill] sm:$0xff] }
 0x4c7   :  { %2817 = vmatpush.bf16.msrb.mxu1 %v8419_v5  ;;  %2843 = vmatpush.bf16.msra.mxu3 %v8420_v39  ;;  %v8430_v5 = vld [vmem:[#allocation41_spill] sm:$0xff]  ;;  %v8431_v39 = vld [vmem:[#allocation43_spill] sm:$0xff] }
 0x4c8   :  { %3064 = vmatpush.bf16.msra.mxu0 %v8421_v29  ;;  %3090 = vmatpush.bf16.msrb.mxu2 %v8422_v24  ;;  %v8432_v29 = vld [vmem:[#allocation45_spill] sm:$0xff] }
 0x4c9   :  { %v8433_v24 = vld [vmem:[#allocation97_spill] sm:$0xff] }
 0x4cb   :  { %2818 = vmatpush.bf16.msrb.mxu1 %v8423_v26  ;;  %2844 = vmatpush.bf16.msra.mxu3 %v8424_v51  ;;  %v8434_v26 = vld [vmem:[#allocation108_spill] sm:$0xff]  ;;  %v8435_v51 = vld [vmem:[#allocation47_spill] sm:$0xff] }
 0x4cc   :  { %3065 = vmatpush.bf16.msra.mxu0 %v8425_v25  ;;  %3091 = vmatpush.bf16.msrb.mxu2 %v8426_v3  ;;  %v8436_v25 = vld [vmem:[#allocation49_spill] sm:$0xff] }
 0x4cd   :  { %v8437_v3 = vld [vmem:[#allocation101_spill] sm:$0xff] }
 0x4cf   :  { %2819 = vmatpush.bf16.msrb.mxu1 %v8427_v2  ;;  %2845 = vmatpush.bf16.msra.mxu3 %v8428_v62  ;;  %v8438_v2 = vld [vmem:[#allocation110_spill] sm:$0xff]  ;;  %v8439_v62 = vld [vmem:[#allocation51_spill] sm:$0xff] }
 0x4d0   :  { %3066 = vmatpush.bf16.msra.mxu0 %v8429_v50  ;;  %3092 = vmatpush.bf16.msrb.mxu2 %v8430_v5  ;;  %v8440_v50 = vld [vmem:[#allocation53_spill] sm:$0xff] }
 0x4d1   :  { %v8441_v5 = vld [vmem:[#allocation105_spill] sm:$0xff] }
 0x4d3   :  { %2820 = vmatpush.bf16.msrb.mxu1 %v8433_v24  ;;  %2846 = vmatpush.bf16.msra.mxu3 %v8434_v26  ;;  %v8444_v24 = vld [vmem:[#allocation57_spill] sm:$0xff] }
 0x4d4   :  { %3111 = vmatpush.bf16.msrb.mxu0 %v8431_v39  ;;  %3137 = vmatpush.bf16.msra.mxu2 %v8432_v29  ;;  %v8442_v39 = vld [vmem:[#allocation111_spill] sm:$0xff]  ;;  %v8445_v26 = vld [vmem:[#allocation109_spill] sm:$0xff] }
 0x4d5   :  { %v8443_v29 = vld [vmem:[#allocation55_spill] sm:$0xff] }
 0x4d7   :  { %2821 = vmatpush.bf16.msrb.mxu1 %v8437_v3  ;;  %2847 = vmatpush.bf16.msra.mxu3 %v8438_v2  ;;  %v8448_v3 = vld [vmem:[#allocation14_spill] sm:$0xff]  ;;  %v8449_v2 = vld [vmem:[#allocation59_spill] sm:$0xff] }
 0x4d8   :  { %3112 = vmatpush.bf16.msrb.mxu0 %v8435_v51  ;;  %3138 = vmatpush.bf16.msra.mxu2 %v8436_v25  ;;  %v8446_v51 = vld [vmem:[#allocation112_spill] sm:$0xff]  ;;  %v8447_v25 = vld [vmem:[#allocation9_spill] sm:$0xff] }
 0x4db   :  { %2822 = vmatpush.bf16.msrb.mxu1 %v8441_v5  ;;  %2848 = vmatpush.bf16.msra.mxu3 %v8442_v39  ;;  %v8451_v39 = vld [vmem:[#allocation10_spill] sm:$0xff] }
 0x4dc   :  { %3113 = vmatpush.bf16.msrb.mxu0 %v8439_v62  ;;  %3139 = vmatpush.bf16.msra.mxu2 %v8440_v50  ;;  %v8450_v62 = vld [vmem:[#allocation61_spill] sm:$0xff]  ;;  %v8460_v5 = vld [vmem:[#allocation26_spill] sm:$0xff]  ;;  %v8469_v50 = vld [vmem:[#allocation32_spill] sm:$0xff] }
 0x4df   :  { %2823 = vmatpush.bf16.msrb.mxu1 %v8445_v26  ;;  %2849 = vmatpush.bf16.msra.mxu3 %v8446_v51  ;;  %v8454_v26 = vld [vmem:[#allocation65_spill] sm:$0xff]  ;;  %v8455_v51 = vld [vmem:[#allocation12_spill] sm:$0xff] }
 0x4e0   :  { %3114 = vmatpush.bf16.msrb.mxu0 %v8443_v29  ;;  %3140 = vmatpush.bf16.msra.mxu2 %v8444_v24  ;;  %v8452_v29 = vld [vmem:[#allocation18_spill] sm:$0xff]  ;;  %v8453_v24 = vld [vmem:[#allocation63_spill] sm:$0xff] }
 0x4e2   :  { %2824 = vmatmul.bf16.vlgmr.msrb.gmra.mxu1 %v6891_v17  ;;  %2850 = vmatmul.bf16.vlgmr.msra.gmra.mxu3 %v6891_v17  ;;  %v8461_v17 = vld [vmem:[#allocation72_spill] sm:$0xff] }
 0x4e3   :  { %3072 = vmatpush.bf16.msra.mxu1 %v8447_v25  ;;  %3098 = vmatpush.bf16.msrb.mxu3 %v8448_v3  ;;  %v8456_v25 = vld [vmem:[#allocation22_spill] sm:$0xff]  ;;  %v8457_v3 = vld [vmem:[#allocation68_spill] sm:$0xff] }
 0x4e4   :  { %3115 = vmatpush.bf16.msrb.mxu0 %v8449_v2  ;;  %3141 = vmatpush.bf16.msra.mxu2 %v8450_v62  ;;  %v8458_v2 = vld [vmem:[#allocation69_spill] sm:$0xff]  ;;  %v8459_v62 = vld [vmem:[#allocation16_spill] sm:$0xff] }
 0x4e7   :  { %3073 = vmatpush.bf16.msra.mxu1 %v8451_v39  ;;  %3099 = vmatpush.bf16.msrb.mxu3 %v8452_v29  ;;  %v8462_v39 = vld [vmem:[#allocation73_spill] sm:$0xff]  ;;  %v8463_v29 = vld [vmem:[#allocation20_spill] sm:$0xff] }
 0x4e8   :  { %3116 = vmatpush.bf16.msrb.mxu0 %v8453_v24  ;;  %3142 = vmatpush.bf16.msra.mxu2 %v8454_v26  ;;  %v8464_v24 = vld [vmem:[#allocation30_spill] sm:$0xff]  ;;  %v8465_v26 = vld [vmem:[#allocation24_spill] sm:$0xff] }
 0x4eb   :  { %3074 = vmatpush.bf16.msra.mxu1 %v8455_v51  ;;  %3100 = vmatpush.bf16.msrb.mxu3 %v8456_v25  ;;  %v8466_v51 = vld [vmem:[#allocation34_spill] sm:$0xff] }
 0x4ec   :  { %3117 = vmatpush.bf16.msrb.mxu0 %v8457_v3  ;;  %3143 = vmatpush.bf16.msra.mxu2 %v8458_v2  ;;  %v8467_v3 = vld [vmem:[#allocation28_spill] sm:$0xff]  ;;  %v8468_v2 = vld [vmem:[#allocation38_spill] sm:$0xff] }
 0x4ef   :  { %3075 = vmatpush.bf16.msra.mxu1 %v8459_v62  ;;  %3101 = vmatpush.bf16.msrb.mxu3 %v8460_v5  ;;  %v2656_v25 = vpop.f32.mrf.mxu0  ;;  %v8470_v5 = vld [vmem:[#allocation42_spill] sm:$0xff] }
 0x4f0   :  { %3118 = vmatpush.bf16.msrb.mxu0 %v8461_v17  ;;  %3144 = vmatpush.bf16.msra.mxu2 %v8462_v39  ;;  %v8471_v39 = vld [vmem:[#allocation35_spill] sm:$0xff] }
 0x4f3   :  { %3076 = vmatpush.bf16.msra.mxu1 %v8463_v29  ;;  %3102 = vmatpush.bf16.msrb.mxu3 %v8464_v24  ;;  %v8472_v29 = vld [vmem:[#allocation46_spill] sm:$0xff]  ;;  %v8473_v24 = vld [vmem:[#allocation39_spill] sm:$0xff] }
 0x4f5   :  { %v2682_v62 = vpop.f32.mrf.mxu2 }
 0x4f7   :  { %3077 = vmatpush.bf16.msra.mxu1 %v8465_v26  ;;  %3103 = vmatpush.bf16.msrb.mxu3 %v8466_v51  ;;  %v2658_v17 = vpop.f32.mrf.mxu0  ;;  %v8474_v26 = vld [vmem:[#allocation50_spill] sm:$0xff] }
 0x4fb   :  { %3078 = vmatpush.bf16.msra.mxu1 %v8467_v3  ;;  %3104 = vmatpush.bf16.msrb.mxu3 %v8468_v2  ;;  %v8476_v3 = vld [vmem:[#allocation54_spill] sm:$0xff]  ;;  %v8477_v2 = vld [vmem:[#allocation48_spill] sm:$0xff] }
 0x4fd   :  { %v2684_v51 = vpop.f32.mrf.mxu2 }
 0x4ff   :  { %3079 = vmatpush.bf16.msra.mxu1 %v8469_v50  ;;  %3105 = vmatpush.bf16.msrb.mxu3 %v8470_v5  ;;  %v2708_v31 = vpop.f32.mrf.mxu0  ;;  %v8478_v50 = vld [vmem:[#allocation58_spill] sm:$0xff] }
 0x503   :  { %3124 = vmatpush.bf16.msrb.mxu1 %v8471_v39  ;;  %3150 = vmatpush.bf16.msra.mxu3 %v8472_v29  ;;  %v8480_v39 = vld [vmem:[#allocation62_spill] sm:$0xff]  ;;  %v8481_v29 = vld [vmem:[#allocation56_spill] sm:$0xff] }
 0x505   :  { %v2734_v5 = vpop.f32.mrf.mxu2 }
 0x507   :  { %3125 = vmatpush.bf16.msrb.mxu1 %v8473_v24  ;;  %3151 = vmatpush.bf16.msra.mxu3 %v8474_v26  ;;  %v2710_v17 = vpop.f32.mrf.mxu0  ;;  %v8482_v24 = vld [vmem:[#allocation66_spill] sm:$0xff] }
 0x50b   :  { %3126 = vmatpush.bf16.msrb.mxu1 %v8475_v35  ;;  %3152 = vmatpush.bf16.msra.mxu3 %v8476_v3  ;;  %v8483_v35 = vld [vmem:[#allocation60_spill] sm:$0xff]  ;;  %v8484_v3 = vld [vmem:[#allocation70_spill] sm:$0xff] }
 0x50d   :  { %v2736_v51 = vpop.f32.mrf.mxu2 }
 0x50f   :  { %3127 = vmatpush.bf16.msrb.mxu1 %v8477_v2  ;;  %3153 = vmatpush.bf16.msra.mxu3 %v8478_v50  ;;  %v7003_v26 = vpop.f32.mrf.mxu0  ;;  %v8485_v2 = vld [vmem:[#allocation64_spill] sm:$0xff]  ;;  %v8486_v50 = vld [vmem:[#allocation74_spill] sm:$0xff] }
 0x513   :  { %3128 = vmatpush.bf16.msrb.mxu1 %v8479_v14  ;;  %3154 = vmatpush.bf16.msra.mxu3 %v8480_v39 }
 0x515   :  { %v7009_v17 = vpop.f32.mrf.mxu2 }
 0x517   :  { %3129 = vmatpush.bf16.msrb.mxu1 %v8481_v29  ;;  %3155 = vmatpush.bf16.msra.mxu3 %v8482_v24  ;;  %v2762_v14 = vpop.f32.mrf.mxu0 }
 0x51b   :  { %3130 = vmatpush.bf16.msrb.mxu1 %v8483_v35  ;;  %3156 = vmatpush.bf16.msra.mxu3 %v8484_v3 }
 0x51d   :  { %v2788_v54 = vpop.f32.mrf.mxu2 }
 0x51f   :  { %3131 = vmatpush.bf16.msrb.mxu1 %v8485_v2  ;;  %3157 = vmatpush.bf16.msra.mxu3 %v8486_v50  ;;  %v2669_v34 = vpop.f32.mrf.mxu1 }
 0x520   :  { %v2670_v39 = vadd.f32 %v2669_v34, %v2656_v25  ;;  %v2861_v34 = vld [vmem:[#allocation2 + $0x28] sm:$0xc] }
 0x522   :  { %v2867_v29 = vrot.slane %v2670_v39, 6 }
 0x524   :  { %v2875_v24 = vadd.f32 %v2867_v29, %v2859_v40 }
 0x525   :  { %v2695_v51 = vpop.f32.mrf.mxu3 }
 0x526   :  { %v2696_v27 = vadd.f32 %v2695_v51, %v2682_v62  ;;  %v4752_v11 = vmul.f32 -1.442695, %v2875_v24 }
 0x527   :  { %v2671_v18 = vpop.f32.mrf.mxu1 }
 0x528   :  { %v2868_v35 = vrot.slane %v2696_v27, 6  ;;  %5128 = vpow2.f32 %v4752_v11 }
 0x52a   :  { %v2876_v3 = vadd.f32 %v2868_v35, %v2860_v56 }
 0x52c   :  { %v4753_v2 = vmul.f32 -1.442695, %v2876_v3 }
 0x52d   :  { %v2697_v61 = vpop.f32.mrf.mxu3 }
 0x52e   :  { %5130 = vpow2.f32 %v4753_v2  ;;  %v5129_v14 = vpop.eup %5128 }
 0x52f   :  { %v2721_v50 = vpop.f32.mrf.mxu1  ;;  %v7011_v25 = vadd.f32 1.0, %v5129_v14 }
 0x530   :  { %v2722_v58 = vadd.f32 %v2721_v50, %v2708_v31 }
 0x531   :  { %vm2900_vm7 = vweird.f32 %v7011_v25  ;;  %v2904_v33 = vand.u32 2147483647, %v7011_v25 }
 0x532   :  { %v2869_v22 = vrot.slane %v2722_v58, 6  ;;  %v7017_v61 = vpop.f32.mrf.mxu0 }
 0x533   :  { %vm2905_vm12 = vcmp.eq.f32.partialorder %v2904_v33, 8.507059e+37 }
 0x534   :  { %v5131_v54 = vpop.eup %5130  ;;  %v2877_v39 = vadd.f32 %v2869_v22, %v2861_v34  ;;  %v2862_v22 = vld [vmem:[#allocation2 + $0x38] sm:$0xc] }
 0x535   :  { %v7013_v40 = vadd.f32 1.0, %v5131_v54  ;;  %v2747_v56 = vpop.f32.mrf.mxu3 }
 0x536   :  { %v4754_v18 = vmul.f32 -1.442695, %v2877_v39  ;;  %v2748_v11 = vadd.f32 %v2747_v56, %v2734_v5 }
 0x537   :  { %5132 = vrcp.f32 %v7013_v40  ;;  %v2723_v27 = vpop.f32.mrf.mxu1  ;;  %vm2915_vm1 = vweird.f32 %v7013_v40  ;;  %v2921_v53 = vand.u32 2147483648, %v7013_v40 }
 0x538   :  { %5134 = vpow2.f32 %v4754_v18  ;;  %v2870_v58 = vrot.slane %v2748_v11, 6  ;;  %v7025_v24 = vpop.f32.mrf.mxu2 }
 0x539   :  { %5136 = vrcp.f32 %v7011_v25 }
 0x53a   :  { %v2878_v62 = vadd.f32 %v2870_v58, %v2862_v22  ;;  %v2814_v5 = vpop.f32.mrf.mxu0 }
 0x53c   :  { %v4755_v51 = vmul.f32 -1.442695, %v2878_v62 }
 0x53d   :  { %v7019_v35 = vpop.eup %5132  ;;  %v2749_v14 = vpop.f32.mrf.mxu3 }
 0x53e   :  { %v5135_v31 = vpop.eup %5134  ;;  %v2911_v29 = vmul.f32 %v7019_v35, %v7013_v40  ;;  %vm2916_vm2 = vweird.f32 %v7019_v35 }
 0x53f   :  { %v7021_v2 = vpop.eup %5136  ;;  %v2893_v50 = vadd.f32 1.0, %v5135_v31  ;;  %v2773_v54 = vpop.f32.mrf.mxu1  ;;  %vm7047_vm5 = vmor %vm2915_vm1, %vm2916_vm2 }
 0x540   :  { %v2896_v3 = vmul.f32 %v7021_v2, %v7011_v25  ;;  %v2912_v34 = vsub.f32 1.0, %v2911_v29  ;;  %v2840_v11 = vpop.f32.mrf.mxu2  ;;  %v2774_v29 = vadd.f32 %v2773_v54, %v7003_v26  ;;  %vm2901_vm4 = vweird.f32 %v7021_v2  ;;  %v8489_v54 = vld [vmem:[#allocation119_spill] sm:$0xff] }
 0x541   :  { %5138 = vrcp.f32 %v2893_v50  ;;  %v2936_v5 = vand.u32 2147483648, %v2893_v50  ;;  %v2934_v11 = vand.u32 2147483647, %v2893_v50  ;;  %vm2930_vm6 = vweird.f32 %v2893_v50  ;;  %vm7061_vm10 = vmor %vm2900_vm7, %vm2901_vm4 }
 0x542   :  { %5140 = vpow2.f32 %v4755_v51  ;;  %v2897_v39 = vsub.f32 1.0, %v2896_v3  ;;  %v2913_v27 = vmul.f32 %v7019_v35, %v2912_v34 }
 0x543   :  { %vm2935_vm9 = vcmp.eq.f32.partialorder %v2934_v11, 8.507059e+37  ;;  %v2958_v11 = vrot.slane %v6802_v46, 6 }
 0x544   :  { %v2898_v31 = vmul.f32 %v7021_v2, %v2897_v39  ;;  %v2914_v51 = vadd.f32 %v7019_v35, %v2913_v27  ;;  %v2919_v39 = vand.u32 2147483647, %v7013_v40 }
 0x545   :  { %v2799_v62 = vpop.f32.mrf.mxu3 }
 0x546   :  { %v2800_v3 = vadd.f32 %v2799_v62, %v7009_v17  ;;  %v2937_v62 = vor.u32 1.1754944e-38, %v2936_v5  ;;  %v2918_v40 = vsel %vm7047_vm5, %v7019_v35, %v2914_v51  ;;  %vm2920_vm11 = vcmp.eq.f32.partialorder %v2919_v39, 8.507059e+37 }
 0x547   :  { %v5139_v18 = vpop.eup %5138 }
 0x548   :  { %v2926_v56 = vmul.f32 %v5139_v18, %v2893_v50  ;;  %v5141_v58 = vpop.eup %5140  ;;  %vm2931_vm3 = vweird.f32 %v5139_v18  ;;  %v2856_v27 = vadd.f32 %v2800_v3, %v8489_v54  ;;  %v2922_v3 = vor.u32 1.1754944e-38, %v2921_v53 }
 0x549   :  { %v7033_v14 = vadd.f32 1.0, %v5141_v58  ;;  %v2899_v58 = vadd.f32 %v7021_v2, %v2898_v31  ;;  %vm2932_vm8 = vmor %vm2930_vm6, %vm2931_vm3 }
 0x54a   :  { %v2927_v22 = vsub.f32 1.0, %v2926_v56  ;;  %v2775_v56 = vpop.f32.mrf.mxu1  ;;  %v4758_v54 = vmul.f32 -1.442695, %v2856_v27 }
 0x54b   :  { %5142 = vrcp.f32 %v7033_v14  ;;  %v8490_v56 = vld [vmem:[#allocation120_spill] sm:$0xff]  ;;  %v2903_v5 = vsel %vm7061_vm10, %v7021_v2, %v2899_v58  ;;  %v2951_v33 = vand.u32 2147483648, %v7033_v14  ;;  %vm2945_vm14 = vweird.f32 %v7033_v14 }
 0x54c   :  { %v2928_v34 = vmul.f32 %v5139_v18, %v2927_v22  ;;  %v2906_v22 = vand.u32 2147483648, %v7011_v25  ;;  %v2855_v31 = vadd.f32 %v2774_v29, %v8490_v56  ;;  %5144 = vpow2.f32 %v4758_v54 }
 0x54d   :  { %v2801_v29 = vpop.f32.mrf.mxu3  ;;  %v2949_v46 = vand.u32 2147483647, %v7033_v14  ;;  %v2952_v50 = vor.u32 1.1754944e-38, %v2951_v33 }
 0x54e   :  { %v2929_v17 = vadd.f32 %v5139_v18, %v2928_v34  ;;  %v2907_v35 = vor.u32 1.1754944e-38, %v2906_v22  ;;  %v4757_v51 = vmul.f32 -1.442695, %v2855_v31 }
 0x54f   :  { %vm2950_vm0 = vcmp.eq.f32.partialorder %v2949_v46, 8.507059e+37 }
 0x550   :  { %v2933_v12 = vsel %vm2932_vm8, %v5139_v18, %v2929_v17  ;;  %v2923_v18 = vsel %vm2920_vm11, %v2922_v3, %v2918_v40  ;;  %v2908_v53 = vsel %vm2905_vm12, %v2907_v35, %v2903_v5  ;;  %5146 = vpow2.f32 %v4757_v51 }
 0x551   :  { %v2938_v34 = vsel %vm2935_vm9, %v2937_v62, %v2933_v12  ;;  %v5143_v26 = vpop.eup %5142  ;;  %v2960_v12 = vmul.f32 %v2958_v11, %v2923_v18 }
 0x552   :  { %v2955_v25 = vmul.f32 2.0, %v2938_v34  ;;  %v2941_v56 = vmul.f32 %v5143_v26, %v7033_v14  ;;  %vm2946_vm13 = vweird.f32 %v5143_v26  ;;  %v5145_v22 = vpop.eup %5144 }
 0x553   :  { %vm2947_vm15 = vmor %vm2945_vm14, %vm2946_vm13  ;;  %v7077_v3 = vadd.f32 1.0, %v5145_v22 }
 0x554   :  { %v4756_v17 = vadd.f32 -1.0, %v2955_v25  ;;  %v2942_v62 = vsub.f32 1.0, %v2941_v56 }
 0x555   :  { %vm3001_vm3 = vweird.f32 %v7077_v3 }
 0x556   :  { %v2961_v27 = vmul.f32 %v4756_v17, %v2908_v53  ;;  %v2943_v39 = vmul.f32 %v5143_v26, %v2942_v62  ;;  %v5147_v31 = vpop.eup %5146 }
 0x557   :  { %v7080_v29 = vadd.f32 1.0, %v5147_v31 }
 0x558   :  { %v7070_v2 = vadd.f32 %v2961_v27, %v2960_v12  ;;  %v2944_v58 = vadd.f32 %v5143_v26, %v2943_v39 }
 0x559   :  { %vm2986_vm7 = vweird.f32 %v7080_v29 }
 0x55a   :  { %5148 = vtanh.f32 %v7070_v2  ;;  %v2948_v40 = vsel %vm2947_vm15, %v5143_v26, %v2944_v58 }
 0x55b   :  { %v2953_v25 = vsel %vm2950_vm0, %v2952_v50, %v2948_v40  ;;  %5150 = vrcp.f32 %v7077_v3 }
 0x55f   :  { %v2825_v54 = vpop.f32.mrf.mxu1 }
 0x560   :  { %v2826_v56 = vadd.f32 %v2825_v54, %v7017_v61  ;;  %v5149_v5 = vpop.eup %5148 }
 0x561   :  { %v2964_v35 = vmul.f32 %v5149_v5, %v2953_v25  ;;  %v7089_v17 = vpop.eup %5150 }
 0x562   :  { %v2857_v34 = vadd.f32 %v2826_v56, %v6006_v7  ;;  %vm3002_vm1 = vweird.f32 %v7089_v17 }
 0x563   :  { %v3051_v14 = vpack.c.bf16 %v2964_v35, %v2964_v35  ;;  %vm7124_vm5 = vmor %vm3001_vm3, %vm3002_vm1 }
 0x564   :  { %v4759_v18 = vmul.f32 -1.442695, %v2857_v34 }
 0x565   :  { %v7084_v61 = vrot.slane %v3051_v14, 1  ;;  %v2851_v51 = vpop.f32.mrf.mxu3 }
 0x566   :  { %5152 = vpow2.f32 %v4759_v18  ;;  %v2852_v11 = vadd.f32 %v2851_v51, %v7025_v24  ;;  %v2997_v24 = vmul.f32 %v7089_v17, %v7077_v3  ;;  %v3007_v51 = vand.u32 2147483648, %v7077_v3 }
 0x567   :  { %5154 = vrcp.f32 %v7080_v29  ;;  %v2827_v26 = vpop.f32.mrf.mxu1  ;;  %3067 = vmatmul.bf16.vlgmr.msra.gmra.mxu0 %v7084_v61  ;;  %3093 = vmatmul.bf16.vlgmr.msrb.gmra.mxu2 %v7084_v61 }
 0x568   :  { %v2858_v53 = vadd.f32 %v2852_v11, %v6016_v13  ;;  %3163 = vmatpush.bf16.msra.mxu0 %v5712_v36  ;;  %3189 = vmatpush.bf16.msrb.mxu2 %v5714_v8  ;;  %v2998_v22 = vsub.f32 1.0, %v2997_v24  ;;  %v3005_v26 = vand.u32 2147483647, %v7077_v3  ;;  %v2992_v3 = vand.u32 2147483648, %v7080_v29 }
 0x569   :  { %v2990_v24 = vand.u32 2147483647, %v7080_v29 }
 0x56a   :  { %v4760_v39 = vmul.f32 -1.442695, %v2858_v53  ;;  %v2999_v40 = vmul.f32 %v7089_v17, %v2998_v22  ;;  %vm3006_vm11 = vcmp.eq.f32.partialorder %v3005_v26, 8.507059e+37 }
 0x56b   :  { %vm2991_vm12 = vcmp.eq.f32.partialorder %v2990_v24, 8.507059e+37 }
 0x56c   :  { %v5153_v12 = vpop.eup %5152  ;;  %3164 = vmatpush.bf16.msra.mxu0 %v5728_v23  ;;  %3190 = vmatpush.bf16.msrb.mxu2 %v5730_v9  ;;  %v3000_v35 = vadd.f32 %v7089_v17, %v2999_v40 }
 0x56d   :  { %v7094_v27 = vpop.eup %5154  ;;  %v2979_v62 = vadd.f32 1.0, %v5153_v12  ;;  %v2853_v33 = vpop.f32.mrf.mxu3 }
 0x56e   :  { %v2982_v58 = vmul.f32 %v7094_v27, %v7080_v29  ;;  %vm2987_vm4 = vweird.f32 %v7094_v27 }
 0x56f   :  { %5156 = vrcp.f32 %v2979_v62  ;;  %v3022_v25 = vand.u32 2147483648, %v2979_v62  ;;  %v3020_v14 = vand.u32 2147483647, %v2979_v62  ;;  %vm3016_vm6 = vweird.f32 %v2979_v62  ;;  %vm2988_vm10 = vmor %vm2986_vm7, %vm2987_vm4 }
 0x570   :  { %5158 = vpow2.f32 %v4760_v39  ;;  %3165 = vmatpush.bf16.msra.mxu0 %v8073_v63  ;;  %3191 = vmatpush.bf16.msrb.mxu2 %v8074_v49  ;;  %v2983_v46 = vsub.f32 1.0, %v2982_v58  ;;  %v3004_v58 = vsel %vm7124_vm5, %v7089_v17, %v3000_v35 }
 0x571   :  { %v3023_v39 = vor.u32 1.1754944e-38, %v3022_v25  ;;  %vm3021_vm9 = vcmp.eq.f32.partialorder %v3020_v14, 8.507059e+37 }
 0x572   :  { %v2984_v34 = vmul.f32 %v7094_v27, %v2983_v46  ;;  %v3008_v46 = vor.u32 1.1754944e-38, %v3007_v51 }
 0x574   :  { %3166 = vmatpush.bf16.msra.mxu0 %v8178_v20  ;;  %3192 = vmatpush.bf16.msrb.mxu2 %v8179_v19  ;;  %v2985_v11 = vadd.f32 %v7094_v27, %v2984_v34  ;;  %v3009_v34 = vsel %vm3006_vm11, %v3008_v46, %v3004_v58  ;;  %v8495_v58 = vld [vmem:[#allocation75_spill] sm:$0xff]  ;;  %v8498_v46 = vld [vmem:[#allocation116_spill] sm:$0xff] }
 0x575   :  { %v5157_v54 = vpop.eup %5156  ;;  %v3043_v25 = vmul.f32 %v3009_v34, %v6877_v30  ;;  %v8504_v34 = vld [vmem:[#allocation13_spill] sm:$0xff] }
 0x576   :  { %v5159_v31 = vpop.eup %5158  ;;  %v3012_v56 = vmul.f32 %v5157_v54, %v2979_v62  ;;  %vm3017_vm2 = vweird.f32 %v5157_v54  ;;  %v2989_v62 = vsel %vm2988_vm10, %v7094_v27, %v2985_v11 }
 0x577   :  { %v7105_v50 = vadd.f32 1.0, %v5159_v31  ;;  %3119 = vmatmul.bf16.vlgmr.msrb.gmra.mxu0 %v7084_v61  ;;  %3145 = vmatmul.bf16.vlgmr.msra.gmra.mxu2 %v7084_v61  ;;  %vm3018_vm8 = vmor %vm3016_vm6, %vm3017_vm2 }
 0x578   :  { %v3013_v5 = vsub.f32 1.0, %v3012_v56  ;;  %3167 = vmatpush.bf16.msra.mxu0 %v8180_v43  ;;  %3193 = vmatpush.bf16.msrb.mxu2 %v8181_v16  ;;  %v2993_v56 = vor.u32 1.1754944e-38, %v2992_v3 }
 0x579   :  { %5160 = vrcp.f32 %v7105_v50  ;;  %v3037_v26 = vand.u32 2147483648, %v7105_v50  ;;  %vm3031_vm14 = vweird.f32 %v7105_v50  ;;  %v3035_v30 = vand.u32 2147483647, %v7105_v50 }
 0x57a   :  { %v3014_v18 = vmul.f32 %v5157_v54, %v3013_v5  ;;  %v2994_v5 = vsel %vm2991_vm12, %v2993_v56, %v2989_v62  ;;  %v8500_v62 = vld [vmem:[#allocation82_spill] sm:$0xff]  ;;  %v8503_v56 = vld [vmem:[#allocation11_spill] sm:$0xff] }
 0x57b   :  { %v3038_v11 = vor.u32 1.1754944e-38, %v3037_v26  ;;  %vm3036_vm0 = vcmp.eq.f32.partialorder %v3035_v30, 8.507059e+37  ;;  %v8512_v26 = vld [vmem:[#allocation21_spill] sm:$0xff]  ;;  %v8513_v30 = vld [vmem:[#allocation83_spill] sm:$0xff] }
 0x57c   :  { %v3015_v12 = vadd.f32 %v5157_v54, %v3014_v18  ;;  %3168 = vmatpush.bf16.msra.mxu0 %v8081_v42  ;;  %3194 = vmatpush.bf16.msrb.mxu2 %v8082_v21 }
 0x57e   :  { %v3019_v33 = vsel %vm3018_vm8, %v5157_v54, %v3015_v12 }
 0x57f   :  { %v5161_v22 = vpop.eup %5160  ;;  %v3024_v31 = vsel %vm3021_vm9, %v3023_v39, %v3019_v33  ;;  %v8496_v33 = vld [vmem:[#allocation80_spill] sm:$0xff] }
 0x580   :  { %v3041_v40 = vmul.f32 2.0, %v3024_v31  ;;  %v3027_v29 = vmul.f32 %v5161_v22, %v7105_v50  ;;  %3169 = vmatpush.bf16.msra.mxu0 %v5791_v38  ;;  %3195 = vmatpush.bf16.msrb.mxu2 %v5793_v41  ;;  %vm3032_vm13 = vweird.f32 %v5161_v22  ;;  %v8499_v31 = vld [vmem:[#allocation77_spill] sm:$0xff] }
 0x581   :  { %vm3033_vm15 = vmor %vm3031_vm14, %vm3032_vm13 }
 0x582   :  { %v4761_v17 = vadd.f32 -1.0, %v3041_v40  ;;  %v3028_v54 = vsub.f32 1.0, %v3027_v29  ;;  %v8501_v40 = vld [vmem:[#allocation117_spill] sm:$0xff]  ;;  %v8502_v29 = vld [vmem:[#allocation118_spill] sm:$0xff] }
 0x584   :  { %v3044_v35 = vmul.f32 %v4761_v17, %v2994_v5  ;;  %v3029_v18 = vmul.f32 %v5161_v22, %v3028_v54  ;;  %3170 = vmatpush.bf16.msra.mxu0 %v5802_v28  ;;  %3196 = vmatpush.bf16.msrb.mxu2 %v5804_v48  ;;  %v8505_v17 = vld [vmem:[#allocation79_spill] sm:$0xff]  ;;  %v8506_v54 = vld [vmem:[#allocation84_spill] sm:$0xff] }
 0x585   :  { %v8507_v5 = vld [vmem:[#allocation15_spill] sm:$0xff] }
 0x586   :  { %v7142_v14 = vadd.f32 %v3044_v35, %v3043_v25  ;;  %v3030_v27 = vadd.f32 %v5161_v22, %v3029_v18  ;;  %v8508_v25 = vld [vmem:[#allocation17_spill] sm:$0xff]  ;;  %v8510_v18 = vld [vmem:[#allocation86_spill] sm:$0xff] }
 0x587   :  { %3171 = vmatmul.bf16.vlgmr.msra.gmra.mxu0 %v7084_v61  ;;  %3197 = vmatmul.bf16.vlgmr.msrb.gmra.mxu2 %v7084_v61  ;;  %v8509_v35 = vld [vmem:[#allocation81_spill] sm:$0xff] }
 0x588   :  { %5162 = vtanh.f32 %v7142_v14  ;;  %3215 = vmatpush.bf16.msrb.mxu0 %v5806_v60  ;;  %3241 = vmatpush.bf16.msra.mxu2 %v5808_v45  ;;  %v3034_v51 = vsel %vm3033_vm15, %v5161_v22, %v3030_v27  ;;  %v8497_v22 = vld [vmem:[#allocation115_spill] sm:$0xff] }
 0x589   :  { %v3039_v12 = vsel %vm3036_vm0, %v3038_v11, %v3034_v51  ;;  %v8511_v27 = vld [vmem:[#allocation19_spill] sm:$0xff]  ;;  %v8514_v51 = vld [vmem:[#allocation88_spill] sm:$0xff] }
 0x58a   :  { %v8515_v11 = vld [vmem:[#allocation23_spill] sm:$0xff] }
 0x58c   :  { %3216 = vmatpush.bf16.msrb.mxu0 %v5819_v55  ;;  %3242 = vmatpush.bf16.msra.mxu2 %v5821_v52 }
 0x58e   :  { %v5163_v53 = vpop.eup %5162 }
 0x58f   :  { %v3047_v3 = vmul.f32 %v5163_v53, %v3039_v12  ;;  %v8516_v53 = vld [vmem:[#allocation25_spill] sm:$0xff]  ;;  %v8518_v12 = vld [vmem:[#allocation90_spill] sm:$0xff] }
 0x590   :  { %3217 = vmatpush.bf16.msrb.mxu0 %v5831_v15  ;;  %3243 = vmatpush.bf16.msra.mxu2 %v5833_v32 }
 0x591   :  { %v3049_v50 = vrot.slane %v3047_v3, 6  ;;  %v8519_v3 = vld [vmem:[#allocation87_spill] sm:$0xff] }
 0x593   :  { %v3052_v39 = vpack.c.bf16 %v3049_v50, %v3049_v50  ;;  %v8520_v50 = vld [vmem:[#allocation92_spill] sm:$0xff] }
 0x594   :  { %3218 = vmatpush.bf16.msrb.mxu0 %v5840_v44  ;;  %3244 = vmatpush.bf16.msra.mxu2 %v5842_v1 }
 0x595   :  { %v7160_v24 = vrot.slane %v3052_v39, 1  ;;  %v8521_v39 = vld [vmem:[#allocation27_spill] sm:$0xff] }
 0x597   :  { %3080 = vmatmul.bf16.vlgmr.msra.gmra.mxu1 %v7160_v24  ;;  %3106 = vmatmul.bf16.vlgmr.msrb.gmra.mxu3 %v7160_v24 }
 0x598   :  { %3176 = vmatpush.bf16.msra.mxu1 %v8083_v47  ;;  %3202 = vmatpush.bf16.msrb.mxu3 %v8084_v4 }
 0x599   :  { %3219 = vmatpush.bf16.msrb.mxu0 %v5849_v37  ;;  %3245 = vmatpush.bf16.msra.mxu2 %v5851_v57 }
 0x59c   :  { %3177 = vmatpush.bf16.msra.mxu1 %v8085_v0  ;;  %3203 = vmatpush.bf16.msrb.mxu3 %v8086_v59 }
 0x59d   :  { %3220 = vmatpush.bf16.msrb.mxu0 %v8389_v6  ;;  %3246 = vmatpush.bf16.msra.mxu2 %v8390_v10 }
 0x5a0   :  { %3178 = vmatpush.bf16.msra.mxu1 %v8495_v58  ;;  %3204 = vmatpush.bf16.msrb.mxu3 %v8496_v33 }
 0x5a1   :  { %3221 = vmatpush.bf16.msrb.mxu0 %v8497_v22  ;;  %3247 = vmatpush.bf16.msra.mxu2 %v8498_v46 }
 0x5a4   :  { %3179 = vmatpush.bf16.msra.mxu1 %v8499_v31  ;;  %3205 = vmatpush.bf16.msrb.mxu3 %v8500_v62 }
 0x5a5   :  { %3222 = vmatpush.bf16.msrb.mxu0 %v8501_v40  ;;  %3248 = vmatpush.bf16.msra.mxu2 %v8502_v29  ;;  %v3272_v40 = vld [vmem:[#allocation2 + $0x20] sm:$0x30] }
 0x5a7   :  { %3132 = vmatmul.bf16.vlgmr.msrb.gmra.mxu1 %v7160_v24  ;;  %3158 = vmatmul.bf16.vlgmr.msra.gmra.mxu3 %v7160_v24 }
 0x5a8   :  { %3180 = vmatpush.bf16.msra.mxu1 %v8505_v17  ;;  %3206 = vmatpush.bf16.msrb.mxu3 %v8506_v54 }
 0x5a9   :  { %3471 = vmatpush.bf16.msra.mxu0 %v8503_v56  ;;  %3497 = vmatpush.bf16.msrb.mxu2 %v8504_v34  ;;  %v8522_v56 = vld [vmem:[#allocation29_spill] sm:$0xff] }
 0x5aa   :  { %3223 = vmatmul.bf16.vlgmr.msrb.gmra.mxu0 %v7084_v61  ;;  %3249 = vmatmul.bf16.vlgmr.msra.gmra.mxu2 %v7084_v61  ;;  %v8517_v61 = vld [vmem:[#allocation85_spill] sm:$0xff] }
 0x5ab   :  { %v8523_v34 = vld [vmem:[#allocation89_spill] sm:$0xff] }
 0x5ac   :  { %3181 = vmatpush.bf16.msra.mxu1 %v8509_v35  ;;  %3207 = vmatpush.bf16.msrb.mxu3 %v8510_v18  ;;  %v3271_v35 = vld [vmem:[#allocation2 + $0x8] sm:$0x30] }
 0x5ad   :  { %3472 = vmatpush.bf16.msra.mxu0 %v8507_v5  ;;  %3498 = vmatpush.bf16.msrb.mxu2 %v8508_v25  ;;  %v8524_v5 = vld [vmem:[#allocation94_spill] sm:$0xff]  ;;  %v8525_v25 = vld [vmem:[#allocation31_spill] sm:$0xff] }
 0x5b0   :  { %3182 = vmatpush.bf16.msra.mxu1 %v8513_v30  ;;  %3208 = vmatpush.bf16.msrb.mxu3 %v8514_v51  ;;  %v8583_v51 = vld [vmem:[#allocation52_spill] sm:$0xff] }
 0x5b1   :  { %3473 = vmatpush.bf16.msra.mxu0 %v8511_v27  ;;  %3499 = vmatpush.bf16.msrb.mxu2 %v8512_v26  ;;  %v8526_v27 = vld [vmem:[#allocation33_spill] sm:$0xff]  ;;  %v8527_v26 = vld [vmem:[#allocation91_spill] sm:$0xff] }
 0x5b4   :  { %3183 = vmatpush.bf16.msra.mxu1 %v8517_v61  ;;  %3209 = vmatpush.bf16.msrb.mxu3 %v8518_v12  ;;  %v8579_v61 = vld [vmem:[#allocation44_spill] sm:$0xff] }
 0x5b5   :  { %3474 = vmatpush.bf16.msra.mxu0 %v8515_v11  ;;  %3500 = vmatpush.bf16.msrb.mxu2 %v8516_v53  ;;  %v8528_v11 = vld [vmem:[#allocation98_spill] sm:$0xff]  ;;  %v8529_v53 = vld [vmem:[#allocation36_spill] sm:$0xff] }
 0x5b7   :  { %3184 = vmatmul.bf16.vlgmr.msra.gmra.mxu1 %v7160_v24  ;;  %3210 = vmatmul.bf16.vlgmr.msrb.gmra.mxu3 %v7160_v24 }
 0x5b8   :  { %3228 = vmatpush.bf16.msrb.mxu1 %v8519_v3  ;;  %3254 = vmatpush.bf16.msra.mxu3 %v8520_v50  ;;  %v8532_v50 = vld [vmem:[#allocation104_spill] sm:$0xff] }
 0x5b9   :  { %3475 = vmatpush.bf16.msra.mxu0 %v8521_v39  ;;  %3501 = vmatpush.bf16.msrb.mxu2 %v8522_v56  ;;  %v8530_v39 = vld [vmem:[#allocation37_spill] sm:$0xff]  ;;  %v8533_v3 = vld [vmem:[#allocation40_spill] sm:$0xff] }
 0x5ba   :  { %v8531_v56 = vld [vmem:[#allocation93_spill] sm:$0xff] }
 0x5bc   :  { %3229 = vmatpush.bf16.msrb.mxu1 %v8523_v34  ;;  %3255 = vmatpush.bf16.msra.mxu3 %v8524_v5  ;;  %v8534_v34 = vld [vmem:[#allocation41_spill] sm:$0xff]  ;;  %v8535_v5 = vld [vmem:[#allocation43_spill] sm:$0xff] }
 0x5bd   :  { %3476 = vmatpush.bf16.msra.mxu0 %v8525_v25  ;;  %3502 = vmatpush.bf16.msrb.mxu2 %v8526_v27  ;;  %v8536_v25 = vld [vmem:[#allocation45_spill] sm:$0xff] }
 0x5be   :  { %v8537_v27 = vld [vmem:[#allocation97_spill] sm:$0xff] }
 0x5c0   :  { %3230 = vmatpush.bf16.msrb.mxu1 %v8527_v26  ;;  %3256 = vmatpush.bf16.msra.mxu3 %v8528_v11  ;;  %v8538_v26 = vld [vmem:[#allocation108_spill] sm:$0xff]  ;;  %v8539_v11 = vld [vmem:[#allocation47_spill] sm:$0xff] }
 0x5c1   :  { %3477 = vmatpush.bf16.msra.mxu0 %v8529_v53  ;;  %3503 = vmatpush.bf16.msrb.mxu2 %v8530_v39  ;;  %v8540_v53 = vld [vmem:[#allocation49_spill] sm:$0xff] }
 0x5c2   :  { %v8541_v39 = vld [vmem:[#allocation101_spill] sm:$0xff] }
 0x5c4   :  { %3231 = vmatpush.bf16.msrb.mxu1 %v8531_v56  ;;  %3257 = vmatpush.bf16.msra.mxu3 %v8532_v50  ;;  %v8542_v56 = vld [vmem:[#allocation110_spill] sm:$0xff]  ;;  %v8543_v50 = vld [vmem:[#allocation51_spill] sm:$0xff] }
 0x5c5   :  { %3478 = vmatpush.bf16.msra.mxu0 %v8533_v3  ;;  %3504 = vmatpush.bf16.msrb.mxu2 %v8534_v34  ;;  %v8544_v3 = vld [vmem:[#allocation53_spill] sm:$0xff] }
 0x5c6   :  { %v8545_v34 = vld [vmem:[#allocation105_spill] sm:$0xff] }
 0x5c8   :  { %3232 = vmatpush.bf16.msrb.mxu1 %v8537_v27  ;;  %3258 = vmatpush.bf16.msra.mxu3 %v8538_v26  ;;  %v8548_v27 = vld [vmem:[#allocation57_spill] sm:$0xff] }
 0x5c9   :  { %3523 = vmatpush.bf16.msrb.mxu0 %v8535_v5  ;;  %3549 = vmatpush.bf16.msra.mxu2 %v8536_v25  ;;  %v8546_v5 = vld [vmem:[#allocation111_spill] sm:$0xff]  ;;  %v8549_v26 = vld [vmem:[#allocation109_spill] sm:$0xff] }
 0x5ca   :  { %v8547_v25 = vld [vmem:[#allocation55_spill] sm:$0xff] }
 0x5cc   :  { %3233 = vmatpush.bf16.msrb.mxu1 %v8541_v39  ;;  %3259 = vmatpush.bf16.msra.mxu3 %v8542_v56  ;;  %v8552_v39 = vld [vmem:[#allocation14_spill] sm:$0xff]  ;;  %v8553_v56 = vld [vmem:[#allocation59_spill] sm:$0xff] }
 0x5cd   :  { %3524 = vmatpush.bf16.msrb.mxu0 %v8539_v11  ;;  %3550 = vmatpush.bf16.msra.mxu2 %v8540_v53  ;;  %v8550_v11 = vld [vmem:[#allocation112_spill] sm:$0xff]  ;;  %v8551_v53 = vld [vmem:[#allocation9_spill] sm:$0xff] }
 0x5d0   :  { %3234 = vmatpush.bf16.msrb.mxu1 %v8545_v34  ;;  %3260 = vmatpush.bf16.msra.mxu3 %v8546_v5  ;;  %v8564_v5 = vld [vmem:[#allocation26_spill] sm:$0xff]  ;;  %v8573_v34 = vld [vmem:[#allocation32_spill] sm:$0xff] }
 0x5d1   :  { %3525 = vmatpush.bf16.msrb.mxu0 %v8543_v50  ;;  %3551 = vmatpush.bf16.msra.mxu2 %v8544_v3  ;;  %v8554_v50 = vld [vmem:[#allocation61_spill] sm:$0xff]  ;;  %v8555_v3 = vld [vmem:[#allocation10_spill] sm:$0xff] }
 0x5d4   :  { %3235 = vmatpush.bf16.msrb.mxu1 %v8549_v26  ;;  %3261 = vmatpush.bf16.msra.mxu3 %v8550_v11  ;;  %v8558_v26 = vld [vmem:[#allocation65_spill] sm:$0xff]  ;;  %v8559_v11 = vld [vmem:[#allocation12_spill] sm:$0xff] }
 0x5d5   :  { %3526 = vmatpush.bf16.msrb.mxu0 %v8547_v25  ;;  %3552 = vmatpush.bf16.msra.mxu2 %v8548_v27  ;;  %v8556_v25 = vld [vmem:[#allocation18_spill] sm:$0xff]  ;;  %v8557_v27 = vld [vmem:[#allocation63_spill] sm:$0xff] }
 0x5d7   :  { %3236 = vmatmul.bf16.vlgmr.msrb.gmra.mxu1 %v7160_v24  ;;  %3262 = vmatmul.bf16.vlgmr.msra.gmra.mxu3 %v7160_v24  ;;  %v8565_v24 = vld [vmem:[#allocation72_spill] sm:$0xff] }
 0x5d8   :  { %3484 = vmatpush.bf16.msra.mxu1 %v8551_v53  ;;  %3510 = vmatpush.bf16.msrb.mxu3 %v8552_v39  ;;  %v8560_v53 = vld [vmem:[#allocation22_spill] sm:$0xff]  ;;  %v8561_v39 = vld [vmem:[#allocation68_spill] sm:$0xff] }
 0x5d9   :  { %3527 = vmatpush.bf16.msrb.mxu0 %v8553_v56  ;;  %3553 = vmatpush.bf16.msra.mxu2 %v8554_v50  ;;  %v8562_v56 = vld [vmem:[#allocation69_spill] sm:$0xff]  ;;  %v8563_v50 = vld [vmem:[#allocation16_spill] sm:$0xff] }
 0x5dc   :  { %3485 = vmatpush.bf16.msra.mxu1 %v8555_v3  ;;  %3511 = vmatpush.bf16.msrb.mxu3 %v8556_v25  ;;  %v8566_v3 = vld [vmem:[#allocation73_spill] sm:$0xff]  ;;  %v8567_v25 = vld [vmem:[#allocation20_spill] sm:$0xff] }
 0x5dd   :  { %3528 = vmatpush.bf16.msrb.mxu0 %v8557_v27  ;;  %3554 = vmatpush.bf16.msra.mxu2 %v8558_v26  ;;  %v8568_v27 = vld [vmem:[#allocation30_spill] sm:$0xff]  ;;  %v8569_v26 = vld [vmem:[#allocation24_spill] sm:$0xff] }
 0x5e0   :  { %3486 = vmatpush.bf16.msra.mxu1 %v8559_v11  ;;  %3512 = vmatpush.bf16.msrb.mxu3 %v8560_v53  ;;  %v8570_v11 = vld [vmem:[#allocation34_spill] sm:$0xff] }
 0x5e1   :  { %3529 = vmatpush.bf16.msrb.mxu0 %v8561_v39  ;;  %3555 = vmatpush.bf16.msra.mxu2 %v8562_v56  ;;  %v8571_v39 = vld [vmem:[#allocation28_spill] sm:$0xff]  ;;  %v8572_v56 = vld [vmem:[#allocation38_spill] sm:$0xff] }
 0x5e4   :  { %3487 = vmatpush.bf16.msra.mxu1 %v8563_v50  ;;  %3513 = vmatpush.bf16.msrb.mxu3 %v8564_v5  ;;  %v3068_v53 = vpop.f32.mrf.mxu0  ;;  %v8574_v5 = vld [vmem:[#allocation42_spill] sm:$0xff] }
 0x5e5   :  { %3530 = vmatpush.bf16.msrb.mxu0 %v8565_v24  ;;  %3556 = vmatpush.bf16.msra.mxu2 %v8566_v3  ;;  %v8575_v3 = vld [vmem:[#allocation35_spill] sm:$0xff] }
 0x5e8   :  { %3488 = vmatpush.bf16.msra.mxu1 %v8567_v25  ;;  %3514 = vmatpush.bf16.msrb.mxu3 %v8568_v27  ;;  %v8576_v25 = vld [vmem:[#allocation46_spill] sm:$0xff]  ;;  %v8577_v27 = vld [vmem:[#allocation39_spill] sm:$0xff] }
 0x5ea   :  { %v3094_v50 = vpop.f32.mrf.mxu2 }
 0x5ec   :  { %3489 = vmatpush.bf16.msra.mxu1 %v8569_v26  ;;  %3515 = vmatpush.bf16.msrb.mxu3 %v8570_v11  ;;  %v3070_v24 = vpop.f32.mrf.mxu0  ;;  %v8578_v26 = vld [vmem:[#allocation50_spill] sm:$0xff] }
 0x5f0   :  { %3490 = vmatpush.bf16.msra.mxu1 %v8571_v39  ;;  %3516 = vmatpush.bf16.msrb.mxu3 %v8572_v56  ;;  %v8580_v39 = vld [vmem:[#allocation54_spill] sm:$0xff]  ;;  %v8581_v56 = vld [vmem:[#allocation48_spill] sm:$0xff] }
 0x5f2   :  { %v3096_v11 = vpop.f32.mrf.mxu2 }
 0x5f4   :  { %3491 = vmatpush.bf16.msra.mxu1 %v8573_v34  ;;  %3517 = vmatpush.bf16.msrb.mxu3 %v8574_v5  ;;  %v3120_v12 = vpop.f32.mrf.mxu0  ;;  %v8582_v34 = vld [vmem:[#allocation58_spill] sm:$0xff] }
 0x5f8   :  { %3536 = vmatpush.bf16.msrb.mxu1 %v8575_v3  ;;  %3562 = vmatpush.bf16.msra.mxu3 %v8576_v25  ;;  %v8584_v3 = vld [vmem:[#allocation62_spill] sm:$0xff]  ;;  %v8585_v25 = vld [vmem:[#allocation56_spill] sm:$0xff] }
 0x5fa   :  { %v3146_v5 = vpop.f32.mrf.mxu2 }
 0x5fc   :  { %3537 = vmatpush.bf16.msrb.mxu1 %v8577_v27  ;;  %3563 = vmatpush.bf16.msra.mxu3 %v8578_v26  ;;  %v3122_v24 = vpop.f32.mrf.mxu0  ;;  %v8586_v27 = vld [vmem:[#allocation66_spill] sm:$0xff] }
 0x600   :  { %3538 = vmatpush.bf16.msrb.mxu1 %v8579_v61  ;;  %3564 = vmatpush.bf16.msra.mxu3 %v8580_v39  ;;  %v8587_v61 = vld [vmem:[#allocation60_spill] sm:$0xff]  ;;  %v8588_v39 = vld [vmem:[#allocation70_spill] sm:$0xff] }
 0x602   :  { %v3148_v26 = vpop.f32.mrf.mxu2 }
 0x604   :  { %3539 = vmatpush.bf16.msrb.mxu1 %v8581_v56  ;;  %3565 = vmatpush.bf16.msra.mxu3 %v8582_v34  ;;  %v7272_v11 = vpop.f32.mrf.mxu0  ;;  %v8589_v56 = vld [vmem:[#allocation64_spill] sm:$0xff]  ;;  %v8590_v34 = vld [vmem:[#allocation74_spill] sm:$0xff] }
 0x608   :  { %3540 = vmatpush.bf16.msrb.mxu1 %v8583_v51  ;;  %3566 = vmatpush.bf16.msra.mxu3 %v8584_v3 }
 0x60a   :  { %v7278_v24 = vpop.f32.mrf.mxu2 }
 0x60c   :  { %3541 = vmatpush.bf16.msrb.mxu1 %v8585_v25  ;;  %3567 = vmatpush.bf16.msra.mxu3 %v8586_v27  ;;  %v3174_v51 = vpop.f32.mrf.mxu0 }
 0x610   :  { %3542 = vmatpush.bf16.msrb.mxu1 %v8587_v61  ;;  %3568 = vmatpush.bf16.msra.mxu3 %v8588_v39 }
 0x612   :  { %v3200_v18 = vpop.f32.mrf.mxu2 }
 0x614   :  { %3543 = vmatpush.bf16.msrb.mxu1 %v8589_v56  ;;  %3569 = vmatpush.bf16.msra.mxu3 %v8590_v34  ;;  %v3081_v30 = vpop.f32.mrf.mxu1 }
 0x615   :  { %v3082_v3 = vadd.f32 %v3081_v30, %v3068_v53  ;;  %v3273_v30 = vld [vmem:[#allocation2 + $0x28] sm:$0x30] }
 0x617   :  { %v3279_v25 = vrot.slane %v3082_v3, 4 }
 0x619   :  { %v3287_v27 = vadd.f32 %v3279_v25, %v3271_v35 }
 0x61a   :  { %v3107_v26 = vpop.f32.mrf.mxu3 }
 0x61b   :  { %v3108_v54 = vadd.f32 %v3107_v26, %v3094_v50  ;;  %v4762_v29 = vmul.f32 -1.442695, %v3287_v27 }
 0x61c   :  { %v3083_v17 = vpop.f32.mrf.mxu1 }
 0x61d   :  { %v3280_v61 = vrot.slane %v3108_v54, 4  ;;  %5164 = vpow2.f32 %v4762_v29 }
 0x61f   :  { %v3288_v39 = vadd.f32 %v3280_v61, %v3272_v40 }
 0x621   :  { %v4763_v56 = vmul.f32 -1.442695, %v3288_v39 }
 0x622   :  { %v3109_v62 = vpop.f32.mrf.mxu3 }
 0x623   :  { %5166 = vpow2.f32 %v4763_v56  ;;  %v5165_v51 = vpop.eup %5164 }
 0x624   :  { %v3133_v34 = vpop.f32.mrf.mxu1  ;;  %v7280_v3 = vadd.f32 1.0, %v5165_v51 }
 0x625   :  { %v3134_v31 = vadd.f32 %v3133_v34, %v3120_v12 }
 0x626   :  { %vm3312_vm7 = vweird.f32 %v7280_v3 }
 0x627   :  { %v3281_v46 = vrot.slane %v3134_v31, 4  ;;  %v7286_v62 = vpop.f32.mrf.mxu0 }
 0x629   :  { %v5167_v18 = vpop.eup %5166  ;;  %v3289_v53 = vadd.f32 %v3281_v46, %v3273_v30  ;;  %v3274_v46 = vld [vmem:[#allocation2 + $0x38] sm:$0x30] }
 0x62a   :  { %v7282_v35 = vadd.f32 1.0, %v5167_v18  ;;  %v3159_v40 = vpop.f32.mrf.mxu3 }
 0x62b   :  { %v4764_v17 = vmul.f32 -1.442695, %v3289_v53  ;;  %v3160_v29 = vadd.f32 %v3159_v40, %v3146_v5 }
 0x62c   :  { %5168 = vrcp.f32 %v7282_v35  ;;  %v3135_v54 = vpop.f32.mrf.mxu1  ;;  %vm3327_vm1 = vweird.f32 %v7282_v35  ;;  %v3333_v22 = vand.u32 2147483648, %v7282_v35 }
 0x62d   :  { %5170 = vpow2.f32 %v4764_v17  ;;  %v3282_v31 = vrot.slane %v3160_v29, 4  ;;  %v7296_v30 = vpop.f32.mrf.mxu2 }
 0x62e   :  { %5172 = vrcp.f32 %v7280_v3 }
 0x62f   :  { %v3290_v26 = vadd.f32 %v3282_v31, %v3274_v46  ;;  %v3226_v34 = vpop.f32.mrf.mxu0 }
 0x631   :  { %v4765_v56 = vmul.f32 -1.442695, %v3290_v26 }
 0x632   :  { %v7288_v12 = vpop.eup %5168  ;;  %v3161_v51 = vpop.f32.mrf.mxu3 }
 0x633   :  { %v5171_v50 = vpop.eup %5170  ;;  %v3323_v61 = vmul.f32 %v7288_v12, %v7282_v35  ;;  %vm3328_vm2 = vweird.f32 %v7288_v12 }
 0x634   :  { %v7290_v25 = vpop.eup %5172  ;;  %v3305_v27 = vadd.f32 1.0, %v5171_v50  ;;  %v3185_v18 = vpop.f32.mrf.mxu1  ;;  %vm7316_vm5 = vmor %vm3327_vm1, %vm3328_vm2 }
 0x635   :  { %v3308_v39 = vmul.f32 %v7290_v25, %v7280_v3  ;;  %v3324_v5 = vsub.f32 1.0, %v3323_v61  ;;  %vm3313_vm4 = vweird.f32 %v7290_v25 }
 0x636   :  { %5174 = vrcp.f32 %v3305_v27  ;;  %v3348_v26 = vand.u32 2147483648, %v3305_v27  ;;  %vm3342_vm6 = vweird.f32 %v3305_v27  ;;  %vm7331_vm10 = vmor %vm3312_vm7, %vm3313_vm4 }
 0x637   :  { %5176 = vpow2.f32 %v4765_v56  ;;  %v3309_v53 = vsub.f32 1.0, %v3308_v39  ;;  %v3325_v54 = vmul.f32 %v7288_v12, %v3324_v5  ;;  %v3186_v56 = vadd.f32 %v3185_v18, %v7272_v11  ;;  %v8593_v18 = vld [vmem:[#allocation119_spill] sm:$0xff] }
 0x638   :  { %v3346_v5 = vand.u32 2147483647, %v3305_v27 }
 0x639   :  { %v3310_v31 = vmul.f32 %v7290_v25, %v3309_v53  ;;  %v3326_v34 = vadd.f32 %v7288_v12, %v3325_v54  ;;  %v3331_v53 = vand.u32 2147483647, %v7282_v35 }
 0x63a   :  { %v3211_v46 = vpop.f32.mrf.mxu3  ;;  %vm3347_vm9 = vcmp.eq.f32.partialorder %v3346_v5, 8.507059e+37  ;;  %v3370_v5 = vrot.slane %v7070_v2, 6 }
 0x63b   :  { %v3212_v39 = vadd.f32 %v3211_v46, %v7278_v24  ;;  %v3311_v33 = vadd.f32 %v7290_v25, %v3310_v31  ;;  %v3349_v46 = vor.u32 1.1754944e-38, %v3348_v26  ;;  %v8594_v31 = vld [vmem:[#allocation120_spill] sm:$0xff]  ;;  %v3330_v35 = vsel %vm7316_vm5, %v7288_v12, %v3326_v34 }
 0x63c   :  { %v5175_v17 = vpop.eup %5174  ;;  %vm3332_vm11 = vcmp.eq.f32.partialorder %v3331_v53, 8.507059e+37 }
 0x63d   :  { %v3338_v40 = vmul.f32 %v5175_v17, %v3305_v27  ;;  %v5177_v29 = vpop.eup %5176  ;;  %vm3343_vm3 = vweird.f32 %v5175_v17  ;;  %v3268_v54 = vadd.f32 %v3212_v39, %v8593_v18  ;;  %v3334_v39 = vor.u32 1.1754944e-38, %v3333_v22 }
 0x63e   :  { %v7302_v61 = vadd.f32 1.0, %v5177_v29  ;;  %v3187_v29 = vpop.f32.mrf.mxu1  ;;  %vm3344_vm8 = vmor %vm3342_vm6, %vm3343_vm3  ;;  %v3315_v26 = vsel %vm7331_vm10, %v7290_v25, %v3311_v33 }
 0x63f   :  { %v3339_v50 = vsub.f32 1.0, %v3338_v40  ;;  %v3252_v40 = vpop.f32.mrf.mxu2  ;;  %v3316_v29 = vand.u32 2147483647, %v7280_v3  ;;  %v4768_v18 = vmul.f32 -1.442695, %v3268_v54 }
 0x640   :  { %5178 = vrcp.f32 %v7302_v61  ;;  %v3267_v40 = vadd.f32 %v3186_v56, %v8594_v31  ;;  %vm3357_vm14 = vweird.f32 %v7302_v61  ;;  %v3361_v2 = vand.u32 2147483647, %v7302_v61 }
 0x641   :  { %v3340_v51 = vmul.f32 %v5175_v17, %v3339_v50  ;;  %v3318_v50 = vand.u32 2147483648, %v7280_v3  ;;  %vm3317_vm12 = vcmp.eq.f32.partialorder %v3316_v29, 8.507059e+37  ;;  %5180 = vpow2.f32 %v4768_v18 }
 0x642   :  { %v3213_v56 = vpop.f32.mrf.mxu3  ;;  %v4767_v34 = vmul.f32 -1.442695, %v3267_v40  ;;  %vm3362_vm0 = vcmp.eq.f32.partialorder %v3361_v2, 8.507059e+37 }
 0x643   :  { %v3341_v24 = vadd.f32 %v5175_v17, %v3340_v51  ;;  %v3319_v12 = vor.u32 1.1754944e-38, %v3318_v50  ;;  %v3363_v50 = vand.u32 2147483648, %v7302_v61 }
 0x644   :  { %5182 = vpow2.f32 %v4767_v34 }
 0x645   :  { %v3345_v58 = vsel %vm3344_vm8, %v5175_v17, %v3341_v24  ;;  %v3335_v17 = vsel %vm3332_vm11, %v3334_v39, %v3330_v35  ;;  %v3320_v22 = vsel %vm3317_vm12, %v3319_v12, %v3315_v26  ;;  %v3364_v27 = vor.u32 1.1754944e-38, %v3363_v50 }
 0x646   :  { %v3350_v51 = vsel %vm3347_vm9, %v3349_v46, %v3345_v58  ;;  %v5179_v11 = vpop.eup %5178  ;;  %v3372_v58 = vmul.f32 %v3370_v5, %v3335_v17 }
 0x647   :  { %v3367_v3 = vmul.f32 2.0, %v3350_v51  ;;  %v3353_v31 = vmul.f32 %v5179_v11, %v7302_v61  ;;  %vm3358_vm13 = vweird.f32 %v5179_v11  ;;  %v5181_v40 = vpop.eup %5180 }
 0x648   :  { %vm3359_vm15 = vmor %vm3357_vm14, %vm3358_vm13  ;;  %v7347_v39 = vadd.f32 1.0, %v5181_v40 }
 0x649   :  { %v4766_v24 = vadd.f32 -1.0, %v3367_v3  ;;  %v3354_v46 = vsub.f32 1.0, %v3353_v31 }
 0x64a   :  { %v5183_v29 = vpop.eup %5182  ;;  %vm3413_vm3 = vweird.f32 %v7347_v39 }
 0x64b   :  { %v3373_v54 = vmul.f32 %v4766_v24, %v3320_v22  ;;  %v3355_v25 = vmul.f32 %v5179_v11, %v3354_v46  ;;  %v7350_v56 = vadd.f32 1.0, %v5183_v29 }
 0x64d   :  { %v7340_v33 = vadd.f32 %v3373_v54, %v3372_v58  ;;  %v3356_v53 = vadd.f32 %v5179_v11, %v3355_v25  ;;  %vm3398_vm7 = vweird.f32 %v7350_v56 }
 0x64f   :  { %5184 = vtanh.f32 %v7340_v33  ;;  %v3360_v35 = vsel %vm3359_vm15, %v5179_v11, %v3356_v53 }
 0x650   :  { %v3365_v3 = vsel %vm3362_vm0, %v3364_v27, %v3360_v35  ;;  %5186 = vrcp.f32 %v7347_v39 }
 0x654   :  { %v3237_v18 = vpop.f32.mrf.mxu1 }
 0x655   :  { %v3238_v31 = vadd.f32 %v3237_v18, %v7286_v62  ;;  %v5185_v26 = vpop.eup %5184 }
 0x656   :  { %v3376_v12 = vmul.f32 %v5185_v26, %v3365_v3  ;;  %v7359_v24 = vpop.eup %5186 }
 0x657   :  { %v3269_v51 = vadd.f32 %v3238_v31, %v6006_v7  ;;  %vm3414_vm1 = vweird.f32 %v7359_v24 }
 0x658   :  { %v3463_v61 = vpack.c.bf16 %v3376_v12, %v3376_v12  ;;  %vm7394_vm5 = vmor %vm3413_vm3, %vm3414_vm1 }
 0x659   :  { %v4769_v17 = vmul.f32 -1.442695, %v3269_v51 }
 0x65a   :  { %v7354_v62 = vrot.slane %v3463_v61, 2  ;;  %v3263_v34 = vpop.f32.mrf.mxu3 }
 0x65b   :  { %5188 = vpow2.f32 %v4769_v17  ;;  %v3264_v5 = vadd.f32 %v3263_v34, %v7296_v30  ;;  %v3409_v30 = vmul.f32 %v7359_v24, %v7347_v39  ;;  %v3419_v34 = vand.u32 2147483648, %v7347_v39 }
 0x65c   :  { %5190 = vrcp.f32 %v7350_v56  ;;  %v3239_v11 = vpop.f32.mrf.mxu1  ;;  %3479 = vmatmul.bf16.vlgmr.msra.gmra.mxu0 %v7354_v62  ;;  %3505 = vmatmul.bf16.vlgmr.msrb.gmra.mxu2 %v7354_v62 }
 0x65d   :  { %v3270_v22 = vadd.f32 %v3264_v5, %v6016_v13  ;;  %3575 = vmatpush.bf16.msra.mxu0 %v5712_v36  ;;  %3601 = vmatpush.bf16.msrb.mxu2 %v5714_v8  ;;  %v3410_v40 = vsub.f32 1.0, %v3409_v30  ;;  %v3417_v11 = vand.u32 2147483647, %v7347_v39  ;;  %v3404_v39 = vand.u32 2147483648, %v7350_v56 }
 0x65e   :  { %v3402_v30 = vand.u32 2147483647, %v7350_v56 }
 0x65f   :  { %v4770_v25 = vmul.f32 -1.442695, %v3270_v22  ;;  %v3411_v35 = vmul.f32 %v7359_v24, %v3410_v40  ;;  %vm3418_vm11 = vcmp.eq.f32.partialorder %v3417_v11, 8.507059e+37 }
 0x660   :  { %vm3403_vm12 = vcmp.eq.f32.partialorder %v3402_v30, 8.507059e+37 }
 0x661   :  { %v5189_v58 = vpop.eup %5188  ;;  %3576 = vmatpush.bf16.msra.mxu0 %v5728_v23  ;;  %3602 = vmatpush.bf16.msrb.mxu2 %v5730_v9  ;;  %v3412_v12 = vadd.f32 %v7359_v24, %v3411_v35 }
 0x662   :  { %v7364_v54 = vpop.eup %5190  ;;  %v3391_v46 = vadd.f32 1.0, %v5189_v58  ;;  %v3265_v50 = vpop.f32.mrf.mxu3 }
 0x663   :  { %v3394_v53 = vmul.f32 %v7364_v54, %v7350_v56  ;;  %vm3399_vm4 = vweird.f32 %v7364_v54 }
 0x664   :  { %5192 = vrcp.f32 %v3391_v46  ;;  %v3434_v3 = vand.u32 2147483648, %v3391_v46  ;;  %v3432_v61 = vand.u32 2147483647, %v3391_v46  ;;  %vm3428_vm6 = vweird.f32 %v3391_v46  ;;  %vm3400_vm10 = vmor %vm3398_vm7, %vm3399_vm4 }
 0x665   :  { %5194 = vpow2.f32 %v4770_v25  ;;  %3577 = vmatpush.bf16.msra.mxu0 %v8073_v63  ;;  %3603 = vmatpush.bf16.msrb.mxu2 %v8074_v49  ;;  %v3395_v2 = vsub.f32 1.0, %v3394_v53  ;;  %v3416_v53 = vsel %vm7394_vm5, %v7359_v24, %v3412_v12 }
 0x666   :  { %v3435_v25 = vor.u32 1.1754944e-38, %v3434_v3  ;;  %vm3433_vm9 = vcmp.eq.f32.partialorder %v3432_v61, 8.507059e+37 }
 0x667   :  { %v3396_v51 = vmul.f32 %v7364_v54, %v3395_v2  ;;  %v3420_v2 = vor.u32 1.1754944e-38, %v3419_v34 }
 0x669   :  { %3578 = vmatpush.bf16.msra.mxu0 %v8178_v20  ;;  %3604 = vmatpush.bf16.msrb.mxu2 %v8179_v19  ;;  %v3397_v5 = vadd.f32 %v7364_v54, %v3396_v51  ;;  %v3421_v51 = vsel %vm3418_vm11, %v3420_v2, %v3416_v53  ;;  %v8599_v53 = vld [vmem:[#allocation75_spill] sm:$0xff]  ;;  %v8602_v2 = vld [vmem:[#allocation116_spill] sm:$0xff] }
 0x66a   :  { %v5193_v18 = vpop.eup %5192  ;;  %v3455_v3 = vmul.f32 %v3421_v51, %v7142_v14  ;;  %v8608_v51 = vld [vmem:[#allocation84_spill] sm:$0xff] }
 0x66b   :  { %v5195_v29 = vpop.eup %5194  ;;  %v3424_v31 = vmul.f32 %v5193_v18, %v3391_v46  ;;  %vm3429_vm2 = vweird.f32 %v5193_v18  ;;  %v3401_v46 = vsel %vm3400_vm10, %v7364_v54, %v3397_v5 }
 0x66c   :  { %v7375_v27 = vadd.f32 1.0, %v5195_v29  ;;  %3531 = vmatmul.bf16.vlgmr.msrb.gmra.mxu0 %v7354_v62  ;;  %3557 = vmatmul.bf16.vlgmr.msra.gmra.mxu2 %v7354_v62  ;;  %vm3430_vm8 = vmor %vm3428_vm6, %vm3429_vm2 }
 0x66d   :  { %v3425_v26 = vsub.f32 1.0, %v3424_v31  ;;  %3579 = vmatpush.bf16.msra.mxu0 %v8180_v43  ;;  %3605 = vmatpush.bf16.msrb.mxu2 %v8181_v16  ;;  %v3405_v31 = vor.u32 1.1754944e-38, %v3404_v39 }
 0x66e   :  { %5196 = vrcp.f32 %v7375_v27  ;;  %v3449_v11 = vand.u32 2147483648, %v7375_v27  ;;  %vm3443_vm14 = vweird.f32 %v7375_v27  ;;  %v3447_v14 = vand.u32 2147483647, %v7375_v27 }
 0x66f   :  { %v3426_v17 = vmul.f32 %v5193_v18, %v3425_v26  ;;  %v3406_v26 = vsel %vm3403_vm12, %v3405_v31, %v3401_v46  ;;  %v8604_v46 = vld [vmem:[#allocation82_spill] sm:$0xff]  ;;  %v8607_v31 = vld [vmem:[#allocation79_spill] sm:$0xff] }
 0x670   :  { %v3450_v5 = vor.u32 1.1754944e-38, %v3449_v11  ;;  %vm3448_vm0 = vcmp.eq.f32.partialorder %v3447_v14, 8.507059e+37  ;;  %v3684_v11 = vld [vmem:[#allocation2 + $0x20] sm:$0xc0] }
 0x671   :  { %v3427_v58 = vadd.f32 %v5193_v18, %v3426_v17  ;;  %3580 = vmatpush.bf16.msra.mxu0 %v8081_v42  ;;  %3606 = vmatpush.bf16.msrb.mxu2 %v8082_v21 }
 0x673   :  { %v3431_v50 = vsel %vm3430_vm8, %v5193_v18, %v3427_v58 }
 0x674   :  { %v5197_v40 = vpop.eup %5196  ;;  %v3436_v29 = vsel %vm3433_vm9, %v3435_v25, %v3431_v50  ;;  %v8600_v50 = vld [vmem:[#allocation80_spill] sm:$0xff] }
 0x675   :  { %v3453_v35 = vmul.f32 2.0, %v3436_v29  ;;  %v3439_v56 = vmul.f32 %v5197_v40, %v7375_v27  ;;  %3581 = vmatpush.bf16.msra.mxu0 %v5791_v38  ;;  %3607 = vmatpush.bf16.msrb.mxu2 %v5793_v41  ;;  %vm3444_vm13 = vweird.f32 %v5197_v40  ;;  %v8603_v29 = vld [vmem:[#allocation77_spill] sm:$0xff] }
 0x676   :  { %vm3445_vm15 = vmor %vm3443_vm14, %vm3444_vm13 }
 0x677   :  { %v4771_v24 = vadd.f32 -1.0, %v3453_v35  ;;  %v3440_v18 = vsub.f32 1.0, %v3439_v56  ;;  %v8605_v35 = vld [vmem:[#allocation117_spill] sm:$0xff]  ;;  %v8606_v56 = vld [vmem:[#allocation118_spill] sm:$0xff] }
 0x679   :  { %v3456_v12 = vmul.f32 %v4771_v24, %v3406_v26  ;;  %v3441_v17 = vmul.f32 %v5197_v40, %v3440_v18  ;;  %3582 = vmatpush.bf16.msra.mxu0 %v5802_v28  ;;  %3608 = vmatpush.bf16.msrb.mxu2 %v5804_v48  ;;  %v8609_v24 = vld [vmem:[#allocation81_spill] sm:$0xff]  ;;  %v8612_v18 = vld [vmem:[#allocation88_spill] sm:$0xff] }
 0x67a   :  { %v8616_v26 = vld [vmem:[#allocation92_spill] sm:$0xff] }
 0x67b   :  { %v7412_v61 = vadd.f32 %v3456_v12, %v3455_v3  ;;  %v3442_v54 = vadd.f32 %v5197_v40, %v3441_v17 }
 0x67c   :  { %3583 = vmatmul.bf16.vlgmr.msra.gmra.mxu0 %v7354_v62  ;;  %3609 = vmatmul.bf16.vlgmr.msrb.gmra.mxu2 %v7354_v62 }
 0x67d   :  { %5198 = vtanh.f32 %v7412_v61  ;;  %3627 = vmatpush.bf16.msrb.mxu0 %v5806_v60  ;;  %3653 = vmatpush.bf16.msra.mxu2 %v5808_v45  ;;  %v3446_v34 = vsel %vm3445_vm15, %v5197_v40, %v3442_v54  ;;  %v8601_v40 = vld [vmem:[#allocation115_spill] sm:$0xff] }
 0x67e   :  { %v3451_v58 = vsel %vm3448_vm0, %v3450_v5, %v3446_v34 }
 0x681   :  { %3628 = vmatpush.bf16.msrb.mxu0 %v5819_v55  ;;  %3654 = vmatpush.bf16.msra.mxu2 %v5821_v52 }
 0x683   :  { %v5199_v22 = vpop.eup %5198 }
 0x684   :  { %v3459_v39 = vmul.f32 %v5199_v22, %v3451_v58  ;;  %v3683_v22 = vld [vmem:[#allocation2 + $0x8] sm:$0xc0] }
 0x685   :  { %3629 = vmatpush.bf16.msrb.mxu0 %v5831_v15  ;;  %3655 = vmatpush.bf16.msra.mxu2 %v5833_v32 }
 0x686   :  { %v3461_v27 = vrot.slane %v3459_v39, 4 }
 0x688   :  { %v3464_v25 = vpack.c.bf16 %v3461_v27, %v3461_v27 }
 0x689   :  { %3630 = vmatpush.bf16.msrb.mxu0 %v5840_v44  ;;  %3656 = vmatpush.bf16.msra.mxu2 %v5842_v1 }
 0x68a   :  { %v7430_v30 = vrot.slane %v3464_v25, 2 }
 0x68c   :  { %3492 = vmatmul.bf16.vlgmr.msra.gmra.mxu1 %v7430_v30  ;;  %3518 = vmatmul.bf16.vlgmr.msrb.gmra.mxu3 %v7430_v30 }
 0x68d   :  { %3588 = vmatpush.bf16.msra.mxu1 %v8083_v47  ;;  %3614 = vmatpush.bf16.msrb.mxu3 %v8084_v4 }
 0x68e   :  { %3631 = vmatpush.bf16.msrb.mxu0 %v5849_v37  ;;  %3657 = vmatpush.bf16.msra.mxu2 %v5851_v57 }
 0x691   :  { %3589 = vmatpush.bf16.msra.mxu1 %v8085_v0  ;;  %3615 = vmatpush.bf16.msrb.mxu3 %v8086_v59 }
 0x692   :  { %3632 = vmatpush.bf16.msrb.mxu0 %v8389_v6  ;;  %3658 = vmatpush.bf16.msra.mxu2 %v8390_v10 }
 0x695   :  { %3590 = vmatpush.bf16.msra.mxu1 %v8599_v53  ;;  %3616 = vmatpush.bf16.msrb.mxu3 %v8600_v50 }
 0x696   :  { %3633 = vmatpush.bf16.msrb.mxu0 %v8601_v40  ;;  %3659 = vmatpush.bf16.msra.mxu2 %v8602_v2 }
 0x699   :  { %3591 = vmatpush.bf16.msra.mxu1 %v8603_v29  ;;  %3617 = vmatpush.bf16.msrb.mxu3 %v8604_v46 }
 0x69a   :  { %3634 = vmatpush.bf16.msrb.mxu0 %v8605_v35  ;;  %3660 = vmatpush.bf16.msra.mxu2 %v8606_v56 }
 0x69c   :  { %3544 = vmatmul.bf16.vlgmr.msrb.gmra.mxu1 %v7430_v30  ;;  %3570 = vmatmul.bf16.vlgmr.msra.gmra.mxu3 %v7430_v30 }
 0x69d   :  { %3592 = vmatpush.bf16.msra.mxu1 %v8607_v31  ;;  %3618 = vmatpush.bf16.msrb.mxu3 %v8608_v51 }
 0x69e   :  { %3883 = vmatpush.bf16.msra.mxu0 %v5712_v36  ;;  %3909 = vmatpush.bf16.msrb.mxu2 %v5714_v8  ;;  %v8610_v36 = vld [vmem:[#allocation86_spill] sm:$0xff]  ;;  %v8611_v8 = vld [vmem:[#allocation83_spill] sm:$0xff] }
 0x69f   :  { %3635 = vmatmul.bf16.vlgmr.msrb.gmra.mxu0 %v7354_v62  ;;  %3661 = vmatmul.bf16.vlgmr.msra.gmra.mxu2 %v7354_v62  ;;  %v8613_v62 = vld [vmem:[#allocation85_spill] sm:$0xff] }
 0x6a1   :  { %3593 = vmatpush.bf16.msra.mxu1 %v8609_v24  ;;  %3619 = vmatpush.bf16.msrb.mxu3 %v8610_v36 }
 0x6a2   :  { %3884 = vmatpush.bf16.msra.mxu0 %v5728_v23  ;;  %3910 = vmatpush.bf16.msrb.mxu2 %v5730_v9  ;;  %v8614_v23 = vld [vmem:[#allocation90_spill] sm:$0xff]  ;;  %v8615_v9 = vld [vmem:[#allocation87_spill] sm:$0xff] }
 0x6a5   :  { %3594 = vmatpush.bf16.msra.mxu1 %v8611_v8  ;;  %3620 = vmatpush.bf16.msrb.mxu3 %v8612_v18 }
 0x6a6   :  { %3885 = vmatpush.bf16.msra.mxu0 %v8073_v63  ;;  %3911 = vmatpush.bf16.msrb.mxu2 %v8074_v49  ;;  %v8617_v63 = vld [vmem:[#allocation89_spill] sm:$0xff]  ;;  %v8618_v49 = vld [vmem:[#allocation94_spill] sm:$0xff] }
 0x6a9   :  { %3595 = vmatpush.bf16.msra.mxu1 %v8613_v62  ;;  %3621 = vmatpush.bf16.msrb.mxu3 %v8614_v23 }
 0x6aa   :  { %3886 = vmatpush.bf16.msra.mxu0 %v8178_v20  ;;  %3912 = vmatpush.bf16.msrb.mxu2 %v8179_v19  ;;  %v8619_v20 = vld [vmem:[#allocation91_spill] sm:$0xff]  ;;  %v8620_v19 = vld [vmem:[#allocation98_spill] sm:$0xff] }
 0x6ac   :  { %3596 = vmatmul.bf16.vlgmr.msra.gmra.mxu1 %v7430_v30  ;;  %3622 = vmatmul.bf16.vlgmr.msrb.gmra.mxu3 %v7430_v30 }
 0x6ad   :  { %3640 = vmatpush.bf16.msrb.mxu1 %v8615_v9  ;;  %3666 = vmatpush.bf16.msra.mxu3 %v8616_v26 }
 0x6ae   :  { %3887 = vmatpush.bf16.msra.mxu0 %v8180_v43  ;;  %3913 = vmatpush.bf16.msrb.mxu2 %v8181_v16  ;;  %v8621_v43 = vld [vmem:[#allocation93_spill] sm:$0xff]  ;;  %v8622_v16 = vld [vmem:[#allocation104_spill] sm:$0xff] }
 0x6b1   :  { %3641 = vmatpush.bf16.msrb.mxu1 %v8617_v63  ;;  %3667 = vmatpush.bf16.msra.mxu3 %v8618_v49 }
 0x6b2   :  { %3888 = vmatpush.bf16.msra.mxu0 %v8081_v42  ;;  %3914 = vmatpush.bf16.msrb.mxu2 %v8082_v21  ;;  %v8623_v21 = vld [vmem:[#allocation97_spill] sm:$0xff]  ;;  %v8624_v42 = vld [vmem:[#allocation108_spill] sm:$0xff] }
 0x6b5   :  { %3642 = vmatpush.bf16.msrb.mxu1 %v8619_v20  ;;  %3668 = vmatpush.bf16.msra.mxu3 %v8620_v19 }
 0x6b6   :  { %3889 = vmatpush.bf16.msra.mxu0 %v5791_v38  ;;  %3915 = vmatpush.bf16.msrb.mxu2 %v5793_v41  ;;  %v8625_v38 = vld [vmem:[#allocation101_spill] sm:$0xff]  ;;  %v8626_v41 = vld [vmem:[#allocation110_spill] sm:$0xff] }
 0x6b9   :  { %3643 = vmatpush.bf16.msrb.mxu1 %v8621_v43  ;;  %3669 = vmatpush.bf16.msra.mxu3 %v8622_v16 }
 0x6ba   :  { %3890 = vmatpush.bf16.msra.mxu0 %v5802_v28  ;;  %3916 = vmatpush.bf16.msrb.mxu2 %v5804_v48  ;;  %v8627_v28 = vld [vmem:[#allocation105_spill] sm:$0xff]  ;;  %v8630_v48 = vld [vmem:[#allocation112_spill] sm:$0xff] }
 0x6bd   :  { %3644 = vmatpush.bf16.msrb.mxu1 %v8623_v21  ;;  %3670 = vmatpush.bf16.msra.mxu3 %v8624_v42 }
 0x6be   :  { %3935 = vmatpush.bf16.msrb.mxu0 %v5806_v60  ;;  %3961 = vmatpush.bf16.msra.mxu2 %v5808_v45  ;;  %v8628_v60 = vld [vmem:[#allocation111_spill] sm:$0xff]  ;;  %v8629_v45 = vld [vmem:[#allocation109_spill] sm:$0xff] }
 0x6c1   :  { %3645 = vmatpush.bf16.msrb.mxu1 %v8625_v38  ;;  %3671 = vmatpush.bf16.msra.mxu3 %v8626_v41 }
 0x6c2   :  { %3936 = vmatpush.bf16.msrb.mxu0 %v5819_v55  ;;  %3962 = vmatpush.bf16.msra.mxu2 %v5821_v52 }
 0x6c5   :  { %3646 = vmatpush.bf16.msrb.mxu1 %v8627_v28  ;;  %3672 = vmatpush.bf16.msra.mxu3 %v8628_v60 }
 0x6c6   :  { %3937 = vmatpush.bf16.msrb.mxu0 %v5831_v15  ;;  %3963 = vmatpush.bf16.msra.mxu2 %v5833_v32 }
 0x6c9   :  { %3647 = vmatpush.bf16.msrb.mxu1 %v8629_v45  ;;  %3673 = vmatpush.bf16.msra.mxu3 %v8630_v48 }
 0x6ca   :  { %3938 = vmatpush.bf16.msrb.mxu0 %v5840_v44  ;;  %3964 = vmatpush.bf16.msra.mxu2 %v5842_v1 }
 0x6cc   :  { %3648 = vmatmul.bf16.vlgmr.msrb.gmra.mxu1 %v7430_v30  ;;  %3674 = vmatmul.bf16.vlgmr.msra.gmra.mxu3 %v7430_v30 }
 0x6cd   :  { %3896 = vmatpush.bf16.msra.mxu1 %v8083_v47  ;;  %3922 = vmatpush.bf16.msrb.mxu3 %v8084_v4 }
 0x6ce   :  { %3939 = vmatpush.bf16.msrb.mxu0 %v5849_v37  ;;  %3965 = vmatpush.bf16.msra.mxu2 %v5851_v57 }
 0x6d1   :  { %3897 = vmatpush.bf16.msra.mxu1 %v8085_v0  ;;  %3923 = vmatpush.bf16.msrb.mxu3 %v8086_v59 }
 0x6d2   :  { %3940 = vmatpush.bf16.msrb.mxu0 %v8389_v6  ;;  %3966 = vmatpush.bf16.msra.mxu2 %v8390_v10 }
 0x6d5   :  { %3898 = vmatpush.bf16.msra.mxu1 %v8599_v53  ;;  %3924 = vmatpush.bf16.msrb.mxu3 %v8600_v50  ;;  %v3685_v50 = vld [vmem:[#allocation2 + $0x28] sm:$0xc0] }
 0x6d6   :  { %3941 = vmatpush.bf16.msrb.mxu0 %v8601_v40  ;;  %3967 = vmatpush.bf16.msra.mxu2 %v8602_v2 }
 0x6d9   :  { %3899 = vmatpush.bf16.msra.mxu1 %v8603_v29  ;;  %3925 = vmatpush.bf16.msrb.mxu3 %v8604_v46  ;;  %v3480_v37 = vpop.f32.mrf.mxu0 }
 0x6da   :  { %3942 = vmatpush.bf16.msrb.mxu0 %v8605_v35  ;;  %3968 = vmatpush.bf16.msra.mxu2 %v8606_v56 }
 0x6dd   :  { %3900 = vmatpush.bf16.msra.mxu1 %v8607_v31  ;;  %3926 = vmatpush.bf16.msrb.mxu3 %v8608_v51 }
 0x6df   :  { %v3506_v55 = vpop.f32.mrf.mxu2 }
 0x6e1   :  { %3901 = vmatpush.bf16.msra.mxu1 %v8609_v24  ;;  %3927 = vmatpush.bf16.msrb.mxu3 %v8610_v36  ;;  %v3482_v52 = vpop.f32.mrf.mxu0 }
 0x6e5   :  { %3902 = vmatpush.bf16.msra.mxu1 %v8611_v8  ;;  %3928 = vmatpush.bf16.msrb.mxu3 %v8612_v18  ;;  %v3686_v8 = vld [vmem:[#allocation2 + $0x38] sm:$0xc0] }
 0x6e7   :  { %v3508_v15 = vpop.f32.mrf.mxu2 }
 0x6e9   :  { %3903 = vmatpush.bf16.msra.mxu1 %v8613_v62  ;;  %3929 = vmatpush.bf16.msrb.mxu3 %v8614_v23  ;;  %v3532_v32 = vpop.f32.mrf.mxu0 }
 0x6ed   :  { %3948 = vmatpush.bf16.msrb.mxu1 %v8615_v9  ;;  %3974 = vmatpush.bf16.msra.mxu3 %v8616_v26 }
 0x6ef   :  { %v3558_v44 = vpop.f32.mrf.mxu2 }
 0x6f1   :  { %3949 = vmatpush.bf16.msrb.mxu1 %v8617_v63  ;;  %3975 = vmatpush.bf16.msra.mxu3 %v8618_v49  ;;  %v3534_v1 = vpop.f32.mrf.mxu0 }
 0x6f5   :  { %3950 = vmatpush.bf16.msrb.mxu1 %v8619_v20  ;;  %3976 = vmatpush.bf16.msra.mxu3 %v8620_v19 }
 0x6f7   :  { %v3560_v57 = vpop.f32.mrf.mxu2 }
 0x6f9   :  { %3951 = vmatpush.bf16.msrb.mxu1 %v8621_v43  ;;  %3977 = vmatpush.bf16.msra.mxu3 %v8622_v16  ;;  %v7542_v47 = vpop.f32.mrf.mxu0 }
 0x6fd   :  { %3952 = vmatpush.bf16.msrb.mxu1 %v8623_v21  ;;  %3978 = vmatpush.bf16.msra.mxu3 %v8624_v42 }
 0x6ff   :  { %v7548_v4 = vpop.f32.mrf.mxu2 }
 0x701   :  { %3953 = vmatpush.bf16.msrb.mxu1 %v8625_v38  ;;  %3979 = vmatpush.bf16.msra.mxu3 %v8626_v41  ;;  %v3586_v0 = vpop.f32.mrf.mxu0 }
 0x705   :  { %3954 = vmatpush.bf16.msrb.mxu1 %v8627_v28  ;;  %3980 = vmatpush.bf16.msra.mxu3 %v8628_v60 }
 0x707   :  { %v3612_v6 = vpop.f32.mrf.mxu2 }
 0x709   :  { %3955 = vmatpush.bf16.msrb.mxu1 %v8629_v45  ;;  %3981 = vmatpush.bf16.msra.mxu3 %v8630_v48  ;;  %v3493_v59 = vpop.f32.mrf.mxu1 }
 0x70a   :  { %v3494_v3 = vadd.f32 %v3493_v59, %v3480_v37 }
 0x70c   :  { %v3691_v14 = vrot.slane %v3494_v3, 2 }
 0x70e   :  { %v3699_v39 = vadd.f32 %v3691_v14, %v3683_v22 }
 0x70f   :  { %v3519_v10 = vpop.f32.mrf.mxu3 }
 0x710   :  { %v3520_v12 = vadd.f32 %v3519_v10, %v3506_v55  ;;  %v4772_v30 = vmul.f32 -1.442695, %v3699_v39  ;;  %v3782_v55 = vrot.slane %v7340_v33, 6 }
 0x711   :  { %v3495_v17 = vpop.f32.mrf.mxu1 }
 0x712   :  { %v3692_v54 = vrot.slane %v3520_v12, 2 }
 0x714   :  { %v3700_v34 = vadd.f32 %v3692_v54, %v3684_v11  ;;  %v8631_v54 = vld [vmem:[#allocation119_spill] sm:$0xff] }
 0x716   :  { %v4773_v5 = vmul.f32 -1.442695, %v3700_v34  ;;  %v8632_v34 = vld [vmem:[#allocation120_spill] sm:$0xff] }
 0x717   :  { %v3521_v58 = vpop.f32.mrf.mxu3 }
 0x718   :  { %5200 = vpow2.f32 %v4773_v5 }
 0x719   :  { %v3545_v27 = vpop.f32.mrf.mxu1  ;;  %5202 = vpow2.f32 %v4772_v30 }
 0x71a   :  { %v3546_v25 = vadd.f32 %v3545_v27, %v3532_v32 }
 0x71c   :  { %v3693_v53 = vrot.slane %v3546_v25, 2  ;;  %v7550_v29 = vpop.f32.mrf.mxu0 }
 0x71e   :  { %v5201_v40 = vpop.eup %5200  ;;  %v3701_v2 = vadd.f32 %v3693_v53, %v3685_v50 }
 0x71f   :  { %v3716_v46 = vadd.f32 1.0, %v5201_v40  ;;  %v3571_v35 = vpop.f32.mrf.mxu3  ;;  %v5203_v62 = vpop.eup %5202 }
 0x720   :  { %v4774_v56 = vmul.f32 -1.442695, %v3701_v2  ;;  %v3572_v31 = vadd.f32 %v3571_v35, %v3558_v44  ;;  %v7554_v21 = vadd.f32 1.0, %v5203_v62 }
 0x721   :  { %5204 = vrcp.f32 %v3716_v46  ;;  %v3547_v24 = vpop.f32.mrf.mxu1  ;;  %v3745_v38 = vand.u32 2147483648, %v3716_v46  ;;  %v3743_v28 = vand.u32 2147483647, %v3716_v46  ;;  %vm3739_vm2 = vweird.f32 %v3716_v46 }
 0x722   :  { %v7552_v51 = vpop.f32.mrf.mxu2  ;;  %5206 = vpow2.f32 %v4774_v56  ;;  %v3694_v36 = vrot.slane %v3572_v31, 2  ;;  %v3730_v35 = vand.u32 2147483648, %v7554_v21  ;;  %vm3724_vm10 = vweird.f32 %v7554_v21 }
 0x723   :  { %v3746_v45 = vor.u32 1.1754944e-38, %v3745_v38  ;;  %vm3744_vm4 = vcmp.eq.f32.partialorder %v3743_v28, 8.507059e+37  ;;  %v3728_v31 = vand.u32 2147483647, %v7554_v21 }
 0x724   :  { %v3702_v18 = vadd.f32 %v3694_v36, %v3686_v8  ;;  %v3638_v23 = vpop.f32.mrf.mxu0 }
 0x725   :  { %vm3729_vm12 = vcmp.eq.f32.partialorder %v3728_v31, 8.507059e+37 }
 0x726   :  { %v4775_v19 = vmul.f32 -1.442695, %v3702_v18 }
 0x727   :  { %v5205_v9 = vpop.eup %5204  ;;  %v3573_v26 = vpop.f32.mrf.mxu3 }
 0x728   :  { %v5207_v63 = vpop.eup %5206  ;;  %v3735_v49 = vmul.f32 %v5205_v9, %v3716_v46  ;;  %vm3740_vm1 = vweird.f32 %v5205_v9 }
 0x729   :  { %v3717_v20 = vadd.f32 1.0, %v5207_v63  ;;  %v3597_v16 = vpop.f32.mrf.mxu1  ;;  %vm3741_vm3 = vmor %vm3739_vm2, %vm3740_vm1 }
 0x72a   :  { %v3664_v43 = vpop.f32.mrf.mxu2  ;;  %v3736_v42 = vsub.f32 1.0, %v3735_v49  ;;  %v3598_v10 = vadd.f32 %v3597_v16, %v7542_v47 }
 0x72b   :  { %5208 = vrcp.f32 %v3717_v20  ;;  %v3760_v22 = vand.u32 2147483648, %v3717_v20  ;;  %vm3754_vm6 = vweird.f32 %v3717_v20  ;;  %v3758_v58 = vand.u32 2147483647, %v3717_v20 }
 0x72c   :  { %v3737_v41 = vmul.f32 %v5205_v9, %v3736_v42  ;;  %5210 = vpow2.f32 %v4775_v19  ;;  %v3679_v5 = vadd.f32 %v3598_v10, %v8632_v34 }
 0x72d   :  { %5212 = vrcp.f32 %v7554_v21  ;;  %v3761_v25 = vor.u32 1.1754944e-38, %v3760_v22  ;;  %vm3759_vm8 = vcmp.eq.f32.partialorder %v3758_v58, 8.507059e+37 }
 0x72e   :  { %v3738_v60 = vadd.f32 %v5205_v9, %v3737_v41  ;;  %v4777_v27 = vmul.f32 -1.442695, %v3679_v5 }
 0x72f   :  { %v3623_v48 = vpop.f32.mrf.mxu3 }
 0x730   :  { %v3742_v37 = vsel %vm3741_vm3, %v5205_v9, %v3738_v60  ;;  %v3624_v0 = vadd.f32 %v3623_v48, %v7548_v4  ;;  %v3731_v9 = vor.u32 1.1754944e-38, %v3730_v35 }
 0x731   :  { %v5209_v52 = vpop.eup %5208  ;;  %v3747_v15 = vsel %vm3744_vm4, %v3746_v45, %v3742_v37  ;;  %v3599_v32 = vpop.f32.mrf.mxu1 }
 0x732   :  { %v3784_v44 = vmul.f32 %v3782_v55, %v3747_v15  ;;  %v3750_v1 = vmul.f32 %v5209_v52, %v3717_v20  ;;  %v5211_v57 = vpop.eup %5210  ;;  %v3680_v11 = vadd.f32 %v3624_v0, %v8631_v54  ;;  %vm3755_vm5 = vweird.f32 %v5209_v52 }
 0x733   :  { %v5213_v59 = vpop.eup %5212  ;;  %v7560_v12 = vadd.f32 1.0, %v5211_v57  ;;  %vm3756_vm7 = vmor %vm3754_vm6, %vm3755_vm5 }
 0x734   :  { %v3751_v6 = vsub.f32 1.0, %v3750_v1  ;;  %v3720_v17 = vmul.f32 %v5213_v59, %v7554_v21  ;;  %v4778_v39 = vmul.f32 -1.442695, %v3680_v11  ;;  %vm3725_vm9 = vweird.f32 %v5213_v59 }
 0x735   :  { %5214 = vrcp.f32 %v7560_v12  ;;  %vm3726_vm11 = vmor %vm3724_vm10, %vm3725_vm9  ;;  %v3775_v60 = vand.u32 2147483648, %v7560_v12  ;;  %vm3769_vm14 = vweird.f32 %v7560_v12  ;;  %v3773_v48 = vand.u32 2147483647, %v7560_v12 }
 0x736   :  { %v3752_v3 = vmul.f32 %v5209_v52, %v3751_v6  ;;  %v3721_v4 = vsub.f32 1.0, %v3720_v17  ;;  %5216 = vpow2.f32 %v4778_v39 }
 0x737   :  { %v3625_v33 = vpop.f32.mrf.mxu3  ;;  %5218 = vpow2.f32 %v4777_v27  ;;  %v3776_v32 = vor.u32 1.1754944e-38, %v3775_v60  ;;  %vm3774_vm0 = vcmp.eq.f32.partialorder %v3773_v48, 8.507059e+37 }
 0x738   :  { %v3753_v14 = vadd.f32 %v5209_v52, %v3752_v3  ;;  %v3722_v30 = vmul.f32 %v5213_v59, %v3721_v4 }
 0x73a   :  { %v3757_v47 = vsel %vm3756_vm7, %v5209_v52, %v3753_v14  ;;  %v3723_v40 = vadd.f32 %v5213_v59, %v3722_v30 }
 0x73b   :  { %v5215_v53 = vpop.eup %5214  ;;  %v3762_v50 = vsel %vm3759_vm8, %v3761_v25, %v3757_v47 }
 0x73c   :  { %v3779_v2 = vmul.f32 2.0, %v3762_v50  ;;  %v3765_v46 = vmul.f32 %v5215_v53, %v7560_v12  ;;  %v5217_v56 = vpop.eup %5216  ;;  %v3727_v8 = vsel %vm3726_vm11, %v5213_v59, %v3723_v40  ;;  %vm3770_vm13 = vweird.f32 %v5215_v53 }
 0x73d   :  { %v5219_v36 = vpop.eup %5218  ;;  %v7571_v26 = vadd.f32 1.0, %v5217_v56  ;;  %v3732_v49 = vsel %vm3729_vm12, %v3731_v9, %v3727_v8  ;;  %vm3771_vm15 = vmor %vm3769_vm14, %vm3770_vm13 }
 0x73e   :  { %v4776_v18 = vadd.f32 -1.0, %v3779_v2  ;;  %v3766_v62 = vsub.f32 1.0, %v3765_v46  ;;  %v7574_v20 = vadd.f32 1.0, %v5219_v36 }
 0x73f   :  { %5220 = vrcp.f32 %v7571_v26  ;;  %vm3825_vm4 = vweird.f32 %v7571_v26  ;;  %v3831_v50 = vand.u32 2147483648, %v7571_v26 }
 0x740   :  { %v3767_v19 = vmul.f32 %v5215_v53, %v3766_v62  ;;  %v3785_v16 = vmul.f32 %v4776_v18, %v3732_v49  ;;  %vm3810_vm7 = vweird.f32 %v7574_v20  ;;  %v3816_v56 = vand.u32 2147483648, %v7574_v20 }
 0x741   :  { %v3832_v18 = vor.u32 1.1754944e-38, %v3831_v50 }
 0x742   :  { %v3786_v38 = vadd.f32 %v3785_v16, %v3784_v44  ;;  %v3768_v28 = vadd.f32 %v5215_v53, %v3767_v19 }
 0x744   :  { %v3772_v55 = vsel %vm3771_vm15, %v5215_v53, %v3768_v28  ;;  %v3829_v53 = vand.u32 2147483647, %v7571_v26 }
 0x745   :  { %v7583_v37 = vpop.eup %5220  ;;  %v3777_v0 = vsel %vm3774_vm0, %v3776_v32, %v3772_v55 }
 0x746   :  { %v3821_v57 = vmul.f32 %v7583_v37, %v7571_v26  ;;  %vm3826_vm1 = vweird.f32 %v7583_v37  ;;  %vm3830_vm11 = vcmp.eq.f32.partialorder %v3829_v53, 8.507059e+37 }
 0x747   :  { %vm7594_vm5 = vmor %vm3825_vm4, %vm3826_vm1 }
 0x748   :  { %v3822_v3 = vsub.f32 1.0, %v3821_v57 }
 0x749   :  { %v3649_v24 = vpop.f32.mrf.mxu1 }
 0x74a   :  { %v3650_v23 = vadd.f32 %v3649_v24, %v7550_v29  ;;  %v3823_v5 = vmul.f32 %v7583_v37, %v3822_v3  ;;  %v3814_v24 = vand.u32 2147483647, %v7574_v20 }
 0x74c   :  { %v3681_v63 = vadd.f32 %v3650_v23, %v6006_v7  ;;  %v3824_v47 = vadd.f32 %v7583_v37, %v3823_v5  ;;  %vm3815_vm12 = vcmp.eq.f32.partialorder %v3814_v24, 8.507059e+37 }
 0x74e   :  { %v4779_v43 = vmul.f32 -1.442695, %v3681_v63  ;;  %v3828_v36 = vsel %vm7594_vm5, %v7583_v37, %v3824_v47  ;;  %v3817_v63 = vor.u32 1.1754944e-38, %v3816_v56 }
 0x74f   :  { %v3675_v21 = vpop.f32.mrf.mxu3  ;;  %v3833_v49 = vsel %vm3830_vm11, %v3832_v18, %v3828_v36 }
 0x750   :  { %5222 = vpow2.f32 %v4779_v43  ;;  %v3676_v42 = vadd.f32 %v3675_v21, %v7552_v51  ;;  %v3867_v16 = vmul.f32 %v3833_v49, %v7412_v61 }
 0x751   :  { %5224 = vrcp.f32 %v7574_v20  ;;  %v3651_v29 = vpop.f32.mrf.mxu1 }
 0x752   :  { %v3682_v41 = vadd.f32 %v3676_v42, %v6016_v13  ;;  %5226 = vtanh.f32 %v3786_v38 }
 0x754   :  { %v4780_v45 = vmul.f32 -1.442695, %v3682_v41 }
 0x756   :  { %v5223_v51 = vpop.eup %5222  ;;  %5228 = vpow2.f32 %v4780_v45 }
 0x757   :  { %v5225_v52 = vpop.eup %5224  ;;  %v3803_v15 = vadd.f32 1.0, %v5223_v51  ;;  %v3677_v44 = vpop.f32.mrf.mxu3 }
 0x758   :  { %v5227_v1 = vpop.eup %5226  ;;  %v3806_v59 = vmul.f32 %v5225_v52, %v7574_v20  ;;  %vm3811_vm3 = vweird.f32 %v5225_v52 }
 0x759   :  { %5230 = vrcp.f32 %v3803_v15  ;;  %v3788_v6 = vmul.f32 %v5227_v1, %v3777_v0  ;;  %v3846_v39 = vand.u32 2147483648, %v3803_v15  ;;  %v3844_v25 = vand.u32 2147483647, %v3803_v15  ;;  %vm3812_vm10 = vmor %vm3810_vm7, %vm3811_vm3 }
 0x75a   :  { %v3807_v11 = vsub.f32 1.0, %v3806_v59  ;;  %vm3840_vm6 = vweird.f32 %v3803_v15 }
 0x75b   :  { %v3875_v12 = vpack.c.bf16 %v3788_v6, %v3788_v6  ;;  %v3847_v31 = vor.u32 1.1754944e-38, %v3846_v39  ;;  %vm3845_vm9 = vcmp.eq.f32.partialorder %v3844_v25, 8.507059e+37 }
 0x75c   :  { %v5229_v10 = vpop.eup %5228  ;;  %v3808_v4 = vmul.f32 %v5225_v52, %v3807_v11 }
 0x75d   :  { %v3804_v17 = vadd.f32 1.0, %v5229_v10  ;;  %v3879_v33 = vrot.slane %v3875_v12, 3 }
 0x75e   :  { %v3809_v40 = vadd.f32 %v5225_v52, %v3808_v4 }
 0x75f   :  { %v5231_v14 = vpop.eup %5230  ;;  %5232 = vrcp.f32 %v3804_v17  ;;  %3891 = vmatmul.bf16.vlgmr.msra.gmra.mxu0 %v3879_v33  ;;  %3917 = vmatmul.bf16.vlgmr.msrb.gmra.mxu2 %v3879_v33  ;;  %v3861_v29 = vand.u32 2147483648, %v3804_v17  ;;  %vm3855_vm14 = vweird.f32 %v3804_v17  ;;  %v3859_v41 = vand.u32 2147483647, %v3804_v17 }
 0x760   :  { %v3836_v22 = vmul.f32 %v5231_v14, %v3803_v15  ;;  %vm3841_vm2 = vweird.f32 %v5231_v14  ;;  %v3813_v9 = vsel %vm3812_vm10, %v5225_v52, %v3809_v40 }
 0x761   :  { %vm3842_vm8 = vmor %vm3840_vm6, %vm3841_vm2  ;;  %v3818_v43 = vsel %vm3815_vm12, %v3817_v63, %v3813_v9  ;;  %v3862_v60 = vor.u32 1.1754944e-38, %v3861_v29  ;;  %vm3860_vm0 = vcmp.eq.f32.partialorder %v3859_v41, 8.507059e+37 }
 0x762   :  { %v3837_v58 = vsub.f32 1.0, %v3836_v22 }
 0x764   :  { %v3838_v27 = vmul.f32 %v5231_v14, %v3837_v58 }
 0x765   :  { %v5233_v30 = vpop.eup %5232 }
 0x766   :  { %v3839_v46 = vadd.f32 %v5231_v14, %v3838_v27  ;;  %v3851_v35 = vmul.f32 %v5233_v30, %v3804_v17  ;;  %vm3856_vm13 = vweird.f32 %v5233_v30 }
 0x767   :  { %vm3857_vm15 = vmor %vm3855_vm14, %vm3856_vm13 }
 0x768   :  { %v3843_v8 = vsel %vm3842_vm8, %v5231_v14, %v3839_v46  ;;  %v3852_v23 = vsub.f32 1.0, %v3851_v35  ;;  %v4957_v35 = vld [vmem:[%s7693_s5 + $0x28] sm:$0xff] }
 0x769   :  { %v3848_v62 = vsel %vm3845_vm9, %v3847_v31, %v3843_v8  ;;  %v4956_v8 = vld [vmem:[%s7693_s5 + $0x20] sm:$0xff] }
 0x76a   :  { %v3865_v26 = vmul.f32 2.0, %v3848_v62  ;;  %v3853_v20 = vmul.f32 %v5233_v30, %v3852_v23 }
 0x76c   :  { %v4781_v19 = vadd.f32 -1.0, %v3865_v26  ;;  %v3854_v38 = vadd.f32 %v5233_v30, %v3853_v20  ;;  %v4955_v26 = vld [vmem:[%s7693_s5 + $0x18] sm:$0xff] }
 0x76e   :  { %v3868_v21 = vmul.f32 %v4781_v19, %v3818_v43  ;;  %v3858_v28 = vsel %vm3857_vm15, %v5233_v30, %v3854_v38 }
 0x76f   :  { %3943 = vmatmul.bf16.vlgmr.msrb.gmra.mxu0 %v3879_v33  ;;  %3969 = vmatmul.bf16.vlgmr.msra.gmra.mxu2 %v3879_v33  ;;  %v3863_v48 = vsel %vm3860_vm0, %v3862_v60, %v3858_v28 }
 0x770   :  { %v7606_v42 = vadd.f32 %v3868_v21, %v3867_v16  ;;  %v4954_v16 = vld [vmem:[%s7693_s5 + $0x10] sm:$0xff] }
 0x772   :  { %5234 = vtanh.f32 %v7606_v42 }
 0x778   :  { %v5235_v45 = vpop.eup %5234 }
 0x779   :  { %v3871_v37 = vmul.f32 %v5235_v45, %v3863_v48  ;;  %v4953_v45 = vld [vmem:[%s7693_s5 + $0x8] sm:$0xff] }
 0x77b   :  { %v3873_v61 = vrot.slane %v3871_v37, 2 }
 0x77d   :  { %v3876_v51 = vpack.c.bf16 %v3873_v61, %v3873_v61 }
 0x77f   :  { %v3880_v55 = vrot.slane %v3876_v51, 3 }
 0x781   :  { %3904 = vmatmul.bf16.vlgmr.msra.gmra.mxu1 %v3880_v55  ;;  %3930 = vmatmul.bf16.vlgmr.msrb.gmra.mxu3 %v3880_v55 }
 0x791   :  { %3956 = vmatmul.bf16.vlgmr.msrb.gmra.mxu1 %v3880_v55  ;;  %3982 = vmatmul.bf16.vlgmr.msra.gmra.mxu3 %v3880_v55 }
 0x7dc   :  { %v3892_v52 = vpop.f32.mrf.mxu0 }
 0x7dd   :  { %v3893_v6 = vadd.f32 %v3892_v52, %v8632_v34 }
 0x7e2   :  { %v3918_v15 = vpop.f32.mrf.mxu2 }
 0x7e3   :  { %v3919_v12 = vadd.f32 %v3918_v15, %v8631_v54  ;;  %v4959_v54 = vld [vmem:[%s7693_s5 + $0x38] sm:$0xff] }
 0x7e4   :  { %v3894_v32 = vpop.f32.mrf.mxu0  ;;  %4139 = vmatpush.bf16.msra.mxu0 %v4959_v54 }
 0x7ea   :  { %v3920_v44 = vpop.f32.mrf.mxu2 }
 0x7ec   :  { %v3944_v1 = vpop.f32.mrf.mxu0 }
 0x7ed   :  { %v3945_v58 = vadd.f32 %v3944_v1, %v6006_v7  ;;  %v4958_v7 = vld [vmem:[%s7693_s5 + $0x30] sm:$0xff] }
 0x7ee   :  { %4140 = vmatpush.bf16.msra.mxu0 %v4958_v7 }
 0x7f2   :  { %v3970_v57 = vpop.f32.mrf.mxu2  ;;  %4141 = vmatpush.bf16.msra.mxu0 %v4957_v35 }
 0x7f3   :  { %v3971_v53 = vadd.f32 %v3970_v57, %v6016_v13 }
 0x7f4   :  { %v3946_v0 = vpop.f32.mrf.mxu0 }
 0x7f6   :  { %4142 = vmatpush.bf16.msra.mxu0 %v4956_v8 }
 0x7fa   :  { %v3972_v59 = vpop.f32.mrf.mxu2  ;;  %4143 = vmatpush.bf16.msra.mxu0 %v4955_v26 }
 0x7fb   :  { %v4952_v59 = vld [vmem:[%s7693_s5] sm:$0xff] }
 0x7fe   :  { %v3905_v10 = vpop.f32.mrf.mxu1  ;;  %4144 = vmatpush.bf16.msra.mxu0 %v4954_v16 }
 0x7ff   :  { %v3906_v3 = vadd.f32 %v3905_v10, %v3893_v6 }
 0x801   :  { %v4782_v17 = vmul.f32 -1.442695, %v3906_v3 }
 0x802   :  { %4145 = vmatpush.bf16.msra.mxu0 %v4953_v45 }
 0x803   :  { %5236 = vpow2.f32 %v4782_v17 }
 0x804   :  { %v3931_v11 = vpop.f32.mrf.mxu3 }
 0x805   :  { %v3932_v33 = vadd.f32 %v3931_v11, %v3919_v12 }
 0x806   :  { %v3907_v14 = vpop.f32.mrf.mxu1  ;;  %4146 = vmatpush.bf16.msra.mxu0 %v4952_v59 }
 0x807   :  { %v4783_v5 = vmul.f32 -1.442695, %v3932_v33 }
 0x809   :  { %5238 = vpow2.f32 %v4783_v5  ;;  %v5237_v4 = vpop.eup %5236 }
 0x80a   :  { %v7612_v25 = vadd.f32 1.0, %v5237_v4 }
 0x80c   :  { %v3933_v22 = vpop.f32.mrf.mxu3  ;;  %vm4008_vm7 = vweird.f32 %v7612_v25  ;;  %v4014_v32 = vand.u32 2147483648, %v7612_v25  ;;  %v4012_v1 = vand.u32 2147483647, %v7612_v25 }
 0x80e   :  { %v3957_v39 = vpop.f32.mrf.mxu1  ;;  %v4015_v11 = vor.u32 1.1754944e-38, %v4014_v32  ;;  %vm4013_vm12 = vcmp.eq.f32.partialorder %v4012_v1, 8.507059e+37 }
 0x80f   :  { %v5239_v47 = vpop.eup %5238  ;;  %v3958_v27 = vadd.f32 %v3957_v39, %v3945_v58 }
 0x810   :  { %v7614_v34 = vadd.f32 1.0, %v5239_v47 }
 0x811   :  { %v4784_v30 = vmul.f32 -1.442695, %v3958_v27 }
 0x812   :  { %5240 = vrcp.f32 %v7614_v34  ;;  %vm4023_vm4 = vweird.f32 %v7614_v34  ;;  %v4027_v37 = vand.u32 2147483647, %v7614_v34  ;;  %v4029_v61 = vand.u32 2147483648, %v7614_v34 }
 0x813   :  { %5242 = vpow2.f32 %v4784_v30 }
 0x814   :  { %5244 = vrcp.f32 %v7612_v25  ;;  %v3983_v50 = vpop.f32.mrf.mxu3  ;;  %v4030_v6 = vor.u32 1.1754944e-38, %v4029_v61  ;;  %vm4028_vm11 = vcmp.eq.f32.partialorder %v4027_v37, 8.507059e+37 }
 0x815   :  { %v3984_v40 = vadd.f32 %v3983_v50, %v3971_v53 }
 0x816   :  { %v3959_v2 = vpop.f32.mrf.mxu1 }
 0x817   :  { %v4785_v46 = vmul.f32 -1.442695, %v3984_v40 }
 0x818   :  { %v7628_v56 = vpop.eup %5240 }
 0x819   :  { %v5243_v13 = vpop.eup %5242  ;;  %5246 = vpow2.f32 %v4785_v46  ;;  %v4019_v36 = vmul.f32 %v7628_v56, %v7614_v34  ;;  %vm4024_vm1 = vweird.f32 %v7628_v56 }
 0x81a   :  { %v7630_v31 = vpop.eup %5244  ;;  %v4001_v24 = vadd.f32 1.0, %v5243_v13  ;;  %vm7660_vm5 = vmor %vm4023_vm4, %vm4024_vm1  ;;  %vm4152_vm1 = vcmask 25600  }
 0x81b   :  { %v4004_v62 = vmul.f32 %v7630_v31, %v7612_v25  ;;  %v4020_v9 = vsub.f32 1.0, %v4019_v36  ;;  %vm4009_vm3 = vweird.f32 %v7630_v31 }
 0x81c   :  { %5248 = vrcp.f32 %v4001_v24  ;;  %v3985_v18 = vpop.f32.mrf.mxu3  ;;  %v4044_v29 = vand.u32 2147483648, %v4001_v24  ;;  %v4042_v60 = vand.u32 2147483647, %v4001_v24  ;;  %vm4038_vm6 = vweird.f32 %v4001_v24  ;;  %vm4010_vm10 = vmor %vm4008_vm7, %vm4009_vm3 }
 0x81d   :  { %v4005_v49 = vsub.f32 1.0, %v4004_v62  ;;  %v4021_v43 = vmul.f32 %v7628_v56, %v4020_v9 }
 0x81e   :  { %v4045_v44 = vor.u32 1.1754944e-38, %v4044_v29  ;;  %vm4043_vm9 = vcmp.eq.f32.partialorder %v4042_v60, 8.507059e+37 }
 0x81f   :  { %v5247_v23 = vpop.eup %5246  ;;  %v4006_v21 = vmul.f32 %v7630_v31, %v4005_v49  ;;  %v4022_v41 = vadd.f32 %v7628_v56, %v4021_v43 }
 0x820   :  { %v7642_v63 = vadd.f32 1.0, %v5247_v23 }
 0x821   :  { %v4007_v51 = vadd.f32 %v7630_v31, %v4006_v21  ;;  %v4026_v57 = vsel %vm7660_vm5, %v7628_v56, %v4022_v41 }
 0x822   :  { %v5249_v19 = vpop.eup %5248  ;;  %5250 = vrcp.f32 %v7642_v63  ;;  %v4031_v33 = vsel %vm4028_vm11, %v4030_v6, %v4026_v57  ;;  %v4059_v27 = vand.u32 2147483648, %v7642_v63  ;;  %vm4053_vm14 = vweird.f32 %v7642_v63 }
 0x823   :  { %v4034_v20 = vmul.f32 %v5249_v19, %v4001_v24  ;;  %vm4039_vm2 = vweird.f32 %v5249_v19  ;;  %v4011_v12 = vsel %vm4010_vm10, %v7630_v31, %v4007_v51  ;;  %v4065_v4 = vmul.f32 %v4031_v33, %v7606_v42  ;;  %v4965_v42 = vld [vmem:[%s7694_s6] ss:$0 sm:$0xff] }
 0x824   :  { %vm4040_vm8 = vmor %vm4038_vm6, %vm4039_vm2  ;;  %v4016_v5 = vsel %vm4013_vm12, %v4015_v11, %v4011_v12  ;;  %v4057_v25 = vand.u32 2147483647, %v7642_v63  ;;  %v4060_v30 = vor.u32 1.1754944e-38, %v4059_v27 }
 0x825   :  { %v4035_v38 = vsub.f32 1.0, %v4034_v20 }
 0x826   :  { %vm4058_vm0 = vcmp.eq.f32.partialorder %v4057_v25, 8.507059e+37 }
 0x827   :  { %v4036_v28 = vmul.f32 %v5249_v19, %v4035_v38 }
 0x828   :  { %v5251_v48 = vpop.eup %5250 }
 0x829   :  { %v4037_v52 = vadd.f32 %v5249_v19, %v4036_v28  ;;  %v4049_v15 = vmul.f32 %v5251_v48, %v7642_v63  ;;  %vm4054_vm13 = vweird.f32 %v5251_v48 }
 0x82a   :  { %vm4055_vm15 = vmor %vm4053_vm14, %vm4054_vm13 }
 0x82b   :  { %v4041_v0 = vsel %vm4040_vm8, %v5249_v19, %v4037_v52  ;;  %v4050_v3 = vsub.f32 1.0, %v4049_v15 }
 0x82c   :  { %v4046_v10 = vsel %vm4043_vm9, %v4045_v44, %v4041_v0 }
 0x82d   :  { %v4063_v17 = vmul.f32 2.0, %v4046_v10  ;;  %v4051_v22 = vmul.f32 %v5251_v48, %v4050_v3 }
 0x82f   :  { %v4786_v14 = vadd.f32 -1.0, %v4063_v17  ;;  %v4052_v47 = vadd.f32 %v5251_v48, %v4051_v22 }
 0x831   :  { %v4066_v58 = vmul.f32 %v4786_v14, %v4016_v5  ;;  %v4056_v34 = vsel %vm4055_vm15, %v5251_v48, %v4052_v47 }
 0x832   :  { %v4061_v53 = vsel %vm4058_vm0, %v4060_v30, %v4056_v34 }
 0x833   :  { %v4067_v39 = vadd.f32 %v4066_v58, %v4065_v4 }
 0x835   :  { %5252 = vtanh.f32 %v4067_v39 }
 0x83b   :  { %v5253_v54 = vpop.eup %5252 }
 0x83c   :  { %v4069_v7 = vmul.f32 %v5253_v54, %v4061_v53 }
 0x83e   :  { %v4070_v50 = vpack.c.bf16 %v4069_v7, %v4069_v7 }
 0x840   :  { %4147 = vmatmul.bf16.vlgmr.msra.gmra.mxu0 %v4070_v50 }
 0x8bd   :  { %v4148_v40 = vpop.f32.mrf.mxu0 }
 0x8be   :  { %v4149_v2 = vadd.f32 %v4965_v42, %v4148_v40 }
 0x8c0   :  { %4153 = vst.msk [vmem:[#allocation6] sm:$0x3] %vm4152_vm1, %v4149_v2 }
 0x8c1   :  { %4164 = dma.vmem_to_hbm [thread:$0]  %s4160_s19, 32, %s4162_s22, [#allocation5]  }
 0x8c5   :  { %v4150_v46 = vpop.f32.mrf.mxu0 }
 0x8c6   :  { %5304 = dma.done.wait [#allocation5], 32  }
 0x8c7   :  { %5305 = vsyncadd [#allocation5], 4294967264 }
 0x8c8   :  { %4169 = vsyncpa [#allocation4], 1 }
 0x8c9   :  { %4170 = vsyncpa [#allocation5], 1 }

</bundles_post_ra>
